<compile_context>
chip_gen: v7x
topology: tpu7x:2x2x1
jax: 0.10.0
libtpu: 0.0.40
codegen_flags: <defaults>
</compile_context>

<pallas_src>
import functools

import jax
import jax.numpy as jnp
import numpy as np
from jax import lax
from jax.experimental import pallas as pl
from jax.experimental.pallas import tpu as pltpu


# ------------------------------ Pallas kernel ------------------------------ #

def _batched_softmax_attn(q, k, v):
    """q: (BW, nq, Dh), k/v: (BW, nk, Dh), all f32 (scale already folded into q).

    Returns (BW, nq, Dh).  Softmax stats and accumulation stay in f32; the
    normalization is applied to the small (nq, Dh) output, not the (nq, nk)
    probability matrix.
    """
    s = lax.dot_general(q, k, (((2,), (2,)), ((0,), (0,))),
                        preferred_element_type=jnp.float32)        # (BW, nq, nk)
    s = s - jnp.max(s, axis=-1, keepdims=True)
    p = jnp.exp(s)
    o = lax.dot_general(p, v, (((2,), (1,)), ((0,), (0,))),
                        preferred_element_type=jnp.float32)        # (BW, nq, Dh)
    return o * pl.reciprocal(jnp.sum(p, axis=-1, keepdims=True), approx=False)


def _fused_window_attn_kernel(*refs, num_heads, mut_attn):
    if mut_attn:
        x_ref, wqs_ref, wqm_ref, wp_ref, bp_ref, o_ref, cat_ref = refs
    else:
        x_ref, wqs_ref, wp_ref, bp_ref, o_ref, cat_ref = refs

    BW, N, C = x_ref.shape
    H = num_heads
    Dh = C // H
    half = N // 2
    cdt = wqs_ref.dtype                      # MXU compute dtype (bf16 or f32)

    # (BW, N, C) -> (BW*N, C): leading-dim merge, tiled (sublane/lane) dims are
    # unchanged (N is a multiple of 8), so this is a free reinterpretation.
    x2d = x_ref[...].reshape(BW * N, C).astype(cdt)

    # One all-head QKV matmul per branch across the whole window batch.
    qkv_s = jnp.dot(x2d, wqs_ref[...],
                    preferred_element_type=jnp.float32).reshape(BW, N, 3 * C)
    if mut_attn:
        qkv_m = jnp.dot(x2d, wqm_ref[...],
                        preferred_element_type=jnp.float32).reshape(BW, N, 3 * C)

    # Concat layout matches PyTorch: mutual result in lanes [0:C], self in [C:2C].
    self_off = C if mut_attn else 0

    for h in range(H):                       # static unroll; H is small
        lo = h * Dh
        qs = qkv_s[:, :, lo:lo + Dh]
        ks = qkv_s[:, :, C + lo:C + lo + Dh]
        vs = qkv_s[:, :, 2 * C + lo:2 * C + lo + Dh]
        # Self-attention, batched over the BW windows in this grid step.
        cat_ref[:, :, self_off + lo:self_off + lo + Dh] = \
            _batched_softmax_attn(qs, ks, vs)

        if mut_attn:
            qm = qkv_m[:, :, lo:lo + Dh]
            km = qkv_m[:, :, C + lo:C + lo + Dh]
            vm = qkv_m[:, :, 2 * C + lo:2 * C + lo + Dh]
            # x1_aligned = attn(q2, k1, v1); x2_aligned = attn(q1, k2, v2)
            cat_ref[:, :half, lo:lo + Dh] = _batched_softmax_attn(
                qm[:, half:], km[:, :half], vm[:, :half])
            cat_ref[:, half:, lo:lo + Dh] = _batched_softmax_attn(
                qm[:, :half], km[:, half:], vm[:, half:])

    proj_in = 2 * C if mut_attn else C
    # One projection matmul for the whole window batch; bias added once.
    x_cat = cat_ref[...].reshape(BW * N, proj_in).astype(cdt)
    out = jnp.dot(x_cat, wp_ref[...], preferred_element_type=jnp.float32)
    out = out + bp_ref[...]
    # TODO(synk): a lane-dense (BW, N*C) out_spec could remove masked stores at
    #             C=32, but the in-kernel reshape crosses (8,128) tiles; skipped
    #             pending a bundle-dump measurement showing vst.msk on the
    #             critical path.
    o_ref[...] = out.reshape(BW, N, C).astype(o_ref.dtype)


# ---------------------------- Parameter prep ------------------------------- #

def prepare_params(params, num_heads, mut_attn=True, compute_dtype=jnp.bfloat16):
    """One-time parameter prep (do this once, outside jit / per training step):
    fold the qk scale into the Q columns of the QKV weights and cast the matmul
    weights to the MXU compute dtype.  Bias stays f32."""
    C = params["w_qkv_self"].shape[0]
    scale = (C // num_heads) ** (-0.5)

    def fold_scale(w):                       # (C, 3C); columns [0:C] produce Q
        return jnp.concatenate([w[:, :C] * scale, w[:, C:]],
                               axis=1).astype(compute_dtype)

    prepared = {
        "w_qkv_self": fold_scale(params["w_qkv_self"]),
        "w_proj": params["w_proj"].astype(compute_dtype),
        "b_proj": params["b_proj"].reshape(1, C).astype(jnp.float32),
    }
    if mut_attn:
        prepared["w_qkv_mut"] = fold_scale(params["w_qkv_mut"])
    return prepared


# ------------------------------ Forward pass ------------------------------- #

def window_attention_forward(x, prepared_params, num_heads, mut_attn=True,
                             mask=None, block_windows=128):
    """Mirrors WindowAttention.forward (qkv_bias=False, qk_scale=None).

    `prepared_params` must come from prepare_params (scale already folded)."""
    # TODO(synk): additive per-window (nW, N, N) mask path not implemented; the
    #             reference call pattern exercised here uses mask=None.
    assert mask is None
    B_, N, C = x.shape
    H = num_heads
    Dh = C // H
    branches = 2 if mut_attn else 1
    proj_in = branches * C

    # Window-batch per grid step: big enough to fill the MXU M dim (BW*N rows)
    # and amortize per-step overhead, small enough to fit VMEM on every TPU
    # generation (v7x only has 64 MiB physical).  Ensure >=2 grid steps so the
    # "parallel" axis can actually be split across v7x's two TensorCores.
    bw = max(1, min(block_windows, B_))
    if B_ > 1 and -(-B_ // bw) < 2:
        bw = (B_ + 1) // 2
    Bp = -(-B_ // bw) * bw
    if Bp != B_:
        x = jnp.pad(x, ((0, Bp - B_), (0, 0), (0, 0)))
    grid = (Bp // bw,)

    kern = functools.partial(_fused_window_attn_kernel,
                             num_heads=H, mut_attn=mut_attn)

    in_specs = [
        pl.BlockSpec((bw, N, C), lambda b: (b, 0, 0)),            # x windows
        pl.BlockSpec((C, 3 * C), lambda b: (0, 0)),               # w_qkv_self
    ]
    args = [x, prepared_params["w_qkv_self"]]
    if mut_attn:
        in_specs.append(pl.BlockSpec((C, 3 * C), lambda b: (0, 0)))  # w_qkv_mut
        args.append(prepared_params["w_qkv_mut"])
    in_specs += [
        pl.BlockSpec((proj_in, C), lambda b: (0, 0)),             # w_proj
        pl.BlockSpec((1, C), lambda b: (0, 0)),                   # b_proj
    ]
    args += [prepared_params["w_proj"], prepared_params["b_proj"]]

    # Advisory cost estimate for XLA's scheduler.
    attn_flops = H * 4 * N * N * Dh
    if mut_attn:
        attn_flops += H * 2 * 4 * (N // 2) * (N // 2) * Dh
    flops = Bp * (2 * N * C * 3 * C * branches + 2 * N * proj_in * C + attn_flops)
    transcendentals = Bp * H * (N * N + (2 * (N // 2) * (N // 2) if mut_attn else 0))
    bytes_accessed = int(
        x.size * x.dtype.itemsize + Bp * N * C * x.dtype.itemsize
        + sum(int(np.prod(a.shape)) * a.dtype.itemsize for a in args[1:]))

    # Rough per-step VMEM footprint; raise the scoped limit only when needed,
    # capped with headroom below v7x's 64 MiB physical VMEM.
    vmem_est = 4 * bw * N * (2 * 2 * C + branches * 3 * C + proj_in) + (4 << 20)
    if vmem_est > 24 * 1024 * 1024:
        compiler_params = pltpu.CompilerParams(
            dimension_semantics=("parallel",),
            vmem_limit_bytes=min(vmem_est, 48 * 1024 * 1024))
    else:
        compiler_params = pltpu.CompilerParams(dimension_semantics=("parallel",))

    out = pl.pallas_call(
        kern,
        out_shape=jax.ShapeDtypeStruct((Bp, N, C), x.dtype),
        grid=grid,
        in_specs=in_specs,
        out_specs=pl.BlockSpec((bw, N, C), lambda b: (b, 0, 0)),
        scratch_shapes=[pltpu.VMEM((bw, N, proj_in), jnp.float32)],
        compiler_params=compiler_params,
        cost_estimate=pl.CostEstimate(flops=int(flops),
                                      transcendentals=int(transcendentals),
                                      bytes_accessed=int(bytes_accessed)),
    )(*args)
    return out[:B_] if Bp != B_ else out


# ------------------------- Pure-JAX reference check ------------------------ #

def _ref_attention(q, k, v, scale):
    B, H, n, Dh = q.shape
    attn = jnp.einsum("bhnd,bhmd->bhnm", q * scale, k)
    attn = jax.nn.softmax(attn, axis=-1)
    out = jnp.einsum("bhnm,bhmd->bhnd", attn, v)
    return out.transpose(0, 2, 1, 3).reshape(B, n, H * Dh)


def reference_forward(x, params, num_heads, mut_attn=True):
    B, N, C = x.shape
    H = num_heads
    Dh = C // H
    scale = Dh ** (-0.5)
    xf = x.reshape(B * N, C)

    qkv = (xf @ params["w_qkv_self"]).reshape(B, N, 3, H, Dh).transpose(2, 0, 3, 1, 4)
    q, k, v = qkv[0], qkv[1], qkv[2]
    x_out = _ref_attention(q, k, v, scale)

    if mut_attn:
        qkv_m = (xf @ params["w_qkv_mut"]).reshape(B, N, 3, H, Dh).transpose(2, 0, 3, 1, 4)
        qm, km, vm = qkv_m[0], qkv_m[1], qkv_m[2]
        half = N // 2
        x1 = _ref_attention(qm[:, :, half:], km[:, :, :half], vm[:, :, :half], scale)
        x2 = _ref_attention(qm[:, :, :half], km[:, :, half:], vm[:, :, half:], scale)
        x_out = jnp.concatenate([jnp.concatenate([x1, x2], axis=1), x_out], axis=2)

    out = x_out.reshape(B * N, x_out.shape[-1]) @ params["w_proj"] + params["b_proj"]
    return out.reshape(B, N, C)


# ----------------------------------- Main ----------------------------------- #

if __name__ == "__main__":
    # Small shapes consistent with the module: dim=32, num_heads=4, N=16 tokens
    # per window, B_ = num_windows*batch = 16 (so the window-batched grid has 2
    # steps with block_windows=8).
    B_, N, C, H = 16, 16, 32, 4

    key = jax.random.PRNGKey(0)
    k_x, k_ws, k_wm, k_wp, k_bp = jax.random.split(key, 5)
    x = jax.random.normal(k_x, (B_, N, C), dtype=jnp.float32)

    # Weights stored as (in, out), i.e. torch_weight.T.
    params = {
        "w_qkv_self": 0.1 * jax.random.normal(k_ws, (C, 3 * C), dtype=jnp.float32),
        "w_qkv_mut": 0.1 * jax.random.normal(k_wm, (C, 3 * C), dtype=jnp.float32),
        "w_proj": 0.1 * jax.random.normal(k_wp, (2 * C, C), dtype=jnp.float32),
        "b_proj": 0.1 * jax.random.normal(k_bp, (C,), dtype=jnp.float32),
    }

    ref = reference_forward(x, params, H, mut_attn=True)

    fwd = jax.jit(functools.partial(window_attention_forward, num_heads=H,
                                    mut_attn=True, block_windows=8))

    # 1) Exact-math check: f32 MXU inputs, tight tolerance.
    prep_f32 = prepare_params(params, H, mut_attn=True, compute_dtype=jnp.float32)
    out_f32 = jax.block_until_ready(fwd(x, prep_f32))
    np.testing.assert_allclose(np.asarray(out_f32), np.asarray(ref),
                               rtol=1e-3, atol=1e-3)
    assert out_f32.shape == (B_, N, C)

    # 2) Fast path: bf16 MXU inputs (f32 accumulation + f32 softmax), loose tol.
    prep_bf16 = prepare_params(params, H, mut_attn=True, compute_dtype=jnp.bfloat16)
    out_bf16 = jax.block_until_ready(fwd(x, prep_bf16))
    np.testing.assert_allclose(np.asarray(out_bf16), np.asarray(ref),
                               rtol=5e-2, atol=5e-2)
    assert out_bf16.shape == (B_, N, C)

    print("KERNEL_OK")
</pallas_src>

<mosaic_0001>
module attributes {stable_mosaic.version = 11 : i64} {
  func.func @_fused_window_attn_kernel(%arg0: i32, %arg1: memref<8x16x32xf32, #tpu.memory_space<vmem>>, %arg2: memref<32x96xf32, #tpu.memory_space<vmem>>, %arg3: memref<32x96xf32, #tpu.memory_space<vmem>>, %arg4: memref<64x32xf32, #tpu.memory_space<vmem>>, %arg5: memref<1x32xf32, #tpu.memory_space<vmem>>, %arg6: memref<8x16x32xf32, #tpu.memory_space<vmem>>, %arg7: memref<8x16x64xf32, #tpu.memory_space<vmem>>) attributes {dimension_semantics = [#tpu.dimension_semantics<parallel>], iteration_bounds = array<i64: 2>, scalar_prefetch = 0 : i64, scratch_operands = 1 : i64, tpu.core_type = #tpu.core_type<tc>, window_params = [{transform_indices = @transform_0, window_bounds = array<i64: 8, 16, 32>}, {pipeline_mode = #tpu.pipeline_mode<synchronous>, transform_indices = @transform_1, window_bounds = array<i64: 32, 96>}, {pipeline_mode = #tpu.pipeline_mode<synchronous>, transform_indices = @transform_2, window_bounds = array<i64: 32, 96>}, {pipeline_mode = #tpu.pipeline_mode<synchronous>, transform_indices = @transform_3, window_bounds = array<i64: 64, 32>}, {pipeline_mode = #tpu.pipeline_mode<synchronous>, transform_indices = @transform_4, window_bounds = array<i64: 1, 32>}, {transform_indices = @transform_5, window_bounds = array<i64: 8, 16, 32>}]} {
    %c0 = arith.constant 0 : index
    %c0_0 = arith.constant 0 : index
    %c0_1 = arith.constant 0 : index
    %0 = vector.load %arg1[%c0, %c0_0, %c0_1] : memref<8x16x32xf32, #tpu.memory_space<vmem>>, vector<8x16x32xf32>
    %1 = vector.shape_cast %0 : vector<8x16x32xf32> to vector<128x32xf32>
    %c0_2 = arith.constant 0 : index
    %c0_3 = arith.constant 0 : index
    %2 = vector.load %arg2[%c0_2, %c0_3] : memref<32x96xf32, #tpu.memory_space<vmem>>, vector<32x96xf32>
    %cst = arith.constant dense<0.000000e+00> : vector<128x96xf32>
    %3 = tpu.matmul %1, %2, %cst {dimension_numbers = #tpu.dot_dimension_numbers<[1], [0], [0], [1], [0, 0, 1, 1], [], []>} : vector<128x32xf32>, vector<32x96xf32>, vector<128x96xf32> -> vector<128x96xf32>
    %4 = vector.shape_cast %3 : vector<128x96xf32> to vector<8x16x96xf32>
    %c0_4 = arith.constant 0 : index
    %c0_5 = arith.constant 0 : index
    %5 = vector.load %arg3[%c0_4, %c0_5] : memref<32x96xf32, #tpu.memory_space<vmem>>, vector<32x96xf32>
    %cst_6 = arith.constant dense<0.000000e+00> : vector<128x96xf32>
    %6 = tpu.matmul %1, %5, %cst_6 {dimension_numbers = #tpu.dot_dimension_numbers<[1], [0], [0], [1], [0, 0, 1, 1], [], []>} : vector<128x32xf32>, vector<32x96xf32>, vector<128x96xf32> -> vector<128x96xf32>
    %7 = vector.shape_cast %6 : vector<128x96xf32> to vector<8x16x96xf32>
    %8 = vector.extract_strided_slice %4 {offsets = [0, 0, 0], sizes = [8, 16, 8], strides = [1, 1, 1]} : vector<8x16x96xf32> to vector<8x16x8xf32>
    %9 = vector.extract_strided_slice %4 {offsets = [0, 0, 32], sizes = [8, 16, 8], strides = [1, 1, 1]} : vector<8x16x96xf32> to vector<8x16x8xf32>
    %10 = vector.extract_strided_slice %4 {offsets = [0, 0, 64], sizes = [8, 16, 8], strides = [1, 1, 1]} : vector<8x16x96xf32> to vector<8x16x8xf32>
    %cst_7 = arith.constant dense<0.000000e+00> : vector<8x16x16xf32>
    %11 = tpu.matmul %8, %9, %cst_7 {dimension_numbers = #tpu.dot_dimension_numbers<[2], [2], [1], [1], [0, 0, 0, 1, 1, 1], [0], [0]>} : vector<8x16x8xf32>, vector<8x16x8xf32>, vector<8x16x16xf32> -> vector<8x16x16xf32>
    %cst_8 = arith.constant dense<0xFF800000> : vector<8x16xf32>
    %12 = vector.multi_reduction <maximumf>, %11, %cst_8 [2] : vector<8x16x16xf32> to vector<8x16xf32>
    %13 = vector.shape_cast %12 : vector<8x16xf32> to vector<8x16x1xf32>
    %14 = vector.broadcast %13 : vector<8x16x1xf32> to vector<8x16x16xf32>
    %15 = arith.subf %11, %14 : vector<8x16x16xf32>
    %16 = math.exp %15 : vector<8x16x16xf32>
    %cst_9 = arith.constant dense<0.000000e+00> : vector<8x16x8xf32>
    %17 = tpu.matmul %16, %10, %cst_9 {dimension_numbers = #tpu.dot_dimension_numbers<[2], [1], [1], [2], [0, 0, 0, 1, 1, 2], [0], [0]>} : vector<8x16x16xf32>, vector<8x16x8xf32>, vector<8x16x8xf32> -> vector<8x16x8xf32>
    %cst_10 = arith.constant dense<0.000000e+00> : vector<8x16xf32>
    %18 = vector.multi_reduction <add>, %16, %cst_10 [2] : vector<8x16x16xf32> to vector<8x16xf32>
    %19 = vector.shape_cast %18 : vector<8x16xf32> to vector<8x16x1xf32>
    %20 = tpu.reciprocal %19 : vector<8x16x1xf32> -> vector<8x16x1xf32>
    %21 = vector.broadcast %20 : vector<8x16x1xf32> to vector<8x16x8xf32>
    %22 = arith.mulf %17, %21 : vector<8x16x8xf32>
    %c0_11 = arith.constant 0 : index
    %c0_12 = arith.constant 0 : index
    %c32 = arith.constant 32 : index
    %23 = vector.load %arg7[%c0_11, %c0_12, %c32] : memref<8x16x64xf32, #tpu.memory_space<vmem>>, vector<8x16x8xf32>
    tpu.vector_store %arg7[%c0_11, %c0_12, %c32], %22 {strides = array<i32>} : memref<8x16x64xf32, #tpu.memory_space<vmem>>, vector<8x16x8xf32>,
    %24 = vector.extract_strided_slice %7 {offsets = [0, 0, 0], sizes = [8, 16, 8], strides = [1, 1, 1]} : vector<8x16x96xf32> to vector<8x16x8xf32>
    %25 = vector.extract_strided_slice %7 {offsets = [0, 0, 32], sizes = [8, 16, 8], strides = [1, 1, 1]} : vector<8x16x96xf32> to vector<8x16x8xf32>
    %26 = vector.extract_strided_slice %7 {offsets = [0, 0, 64], sizes = [8, 16, 8], strides = [1, 1, 1]} : vector<8x16x96xf32> to vector<8x16x8xf32>
    %27 = vector.extract_strided_slice %24 {offsets = [0, 8, 0], sizes = [8, 8, 8], strides = [1, 1, 1]} : vector<8x16x8xf32> to vector<8x8x8xf32>
    %28 = vector.extract_strided_slice %25 {offsets = [0, 0, 0], sizes = [8, 8, 8], strides = [1, 1, 1]} : vector<8x16x8xf32> to vector<8x8x8xf32>
    %29 = vector.extract_strided_slice %26 {offsets = [0, 0, 0], sizes = [8, 8, 8], strides = [1, 1, 1]} : vector<8x16x8xf32> to vector<8x8x8xf32>
    %cst_13 = arith.constant dense<0.000000e+00> : vector<8x8x8xf32>
    %30 = tpu.matmul %27, %28, %cst_13 {dimension_numbers = #tpu.dot_dimension_numbers<[2], [2], [1], [1], [0, 0, 0, 1, 1, 1], [0], [0]>} : vector<8x8x8xf32>, vector<8x8x8xf32>, vector<8x8x8xf32> -> vector<8x8x8xf32>
    %cst_14 = arith.constant dense<0xFF800000> : vector<8x8xf32>
    %31 = vector.multi_reduction <maximumf>, %30, %cst_14 [2] : vector<8x8x8xf32> to vector<8x8xf32>
    %32 = vector.shape_cast %31 : vector<8x8xf32> to vector<8x8x1xf32>
    %33 = vector.broadcast %32 : vector<8x8x1xf32> to vector<8x8x8xf32>
    %34 = arith.subf %30, %33 : vector<8x8x8xf32>
    %35 = math.exp %34 : vector<8x8x8xf32>
    %cst_15 = arith.constant dense<0.000000e+00> : vector<8x8x8xf32>
    %36 = tpu.matmul %35, %29, %cst_15 {dimension_numbers = #tpu.dot_dimension_numbers<[2], [1], [1], [2], [0, 0, 0, 1, 1, 2], [0], [0]>} : vector<8x8x8xf32>, vector<8x8x8xf32>, vector<8x8x8xf32> -> vector<8x8x8xf32>
    %cst_16 = arith.constant dense<0.000000e+00> : vector<8x8xf32>
    %37 = vector.multi_reduction <add>, %35, %cst_16 [2] : vector<8x8x8xf32> to vector<8x8xf32>
    %38 = vector.shape_cast %37 : vector<8x8xf32> to vector<8x8x1xf32>
    %39 = tpu.reciprocal %38 : vector<8x8x1xf32> -> vector<8x8x1xf32>
    %40 = vector.broadcast %39 : vector<8x8x1xf32> to vector<8x8x8xf32>
    %41 = arith.mulf %36, %40 : vector<8x8x8xf32>
    %c0_17 = arith.constant 0 : index
    %c0_18 = arith.constant 0 : index
    %c0_19 = arith.constant 0 : index
    %42 = vector.load %arg7[%c0_17, %c0_18, %c0_19] : memref<8x16x64xf32, #tpu.memory_space<vmem>>, vector<8x8x8xf32>
    tpu.vector_store %arg7[%c0_17, %c0_18, %c0_19], %41 {strides = array<i32>} : memref<8x16x64xf32, #tpu.memory_space<vmem>>, vector<8x8x8xf32>,
    %43 = vector.extract_strided_slice %24 {offsets = [0, 0, 0], sizes = [8, 8, 8], strides = [1, 1, 1]} : vector<8x16x8xf32> to vector<8x8x8xf32>
    %44 = vector.extract_strided_slice %25 {offsets = [0, 8, 0], sizes = [8, 8, 8], strides = [1, 1, 1]} : vector<8x16x8xf32> to vector<8x8x8xf32>
    %45 = vector.extract_strided_slice %26 {offsets = [0, 8, 0], sizes = [8, 8, 8], strides = [1, 1, 1]} : vector<8x16x8xf32> to vector<8x8x8xf32>
    %cst_20 = arith.constant dense<0.000000e+00> : vector<8x8x8xf32>
    %46 = tpu.matmul %43, %44, %cst_20 {dimension_numbers = #tpu.dot_dimension_numbers<[2], [2], [1], [1], [0, 0, 0, 1, 1, 1], [0], [0]>} : vector<8x8x8xf32>, vector<8x8x8xf32>, vector<8x8x8xf32> -> vector<8x8x8xf32>
    %cst_21 = arith.constant dense<0xFF800000> : vector<8x8xf32>
    %47 = vector.multi_reduction <maximumf>, %46, %cst_21 [2] : vector<8x8x8xf32> to vector<8x8xf32>
    %48 = vector.shape_cast %47 : vector<8x8xf32> to vector<8x8x1xf32>
    %49 = vector.broadcast %48 : vector<8x8x1xf32> to vector<8x8x8xf32>
    %50 = arith.subf %46, %49 : vector<8x8x8xf32>
    %51 = math.exp %50 : vector<8x8x8xf32>
    %cst_22 = arith.constant dense<0.000000e+00> : vector<8x8x8xf32>
    %52 = tpu.matmul %51, %45, %cst_22 {dimension_numbers = #tpu.dot_dimension_numbers<[2], [1], [1], [2], [0, 0, 0, 1, 1, 2], [0], [0]>} : vector<8x8x8xf32>, vector<8x8x8xf32>, vector<8x8x8xf32> -> vector<8x8x8xf32>
    %cst_23 = arith.constant dense<0.000000e+00> : vector<8x8xf32>
    %53 = vector.multi_reduction <add>, %51, %cst_23 [2] : vector<8x8x8xf32> to vector<8x8xf32>
    %54 = vector.shape_cast %53 : vector<8x8xf32> to vector<8x8x1xf32>
    %55 = tpu.reciprocal %54 : vector<8x8x1xf32> -> vector<8x8x1xf32>
    %56 = vector.broadcast %55 : vector<8x8x1xf32> to vector<8x8x8xf32>
    %57 = arith.mulf %52, %56 : vector<8x8x8xf32>
    %c0_24 = arith.constant 0 : index
    %c8 = arith.constant 8 : index
    %c0_25 = arith.constant 0 : index
    %58 = vector.load %arg7[%c0_24, %c8, %c0_25] : memref<8x16x64xf32, #tpu.memory_space<vmem>>, vector<8x8x8xf32>
    tpu.vector_store %arg7[%c0_24, %c8, %c0_25], %57 {strides = array<i32>} : memref<8x16x64xf32, #tpu.memory_space<vmem>>, vector<8x8x8xf32>,
    %59 = vector.extract_strided_slice %4 {offsets = [0, 0, 8], sizes = [8, 16, 8], strides = [1, 1, 1]} : vector<8x16x96xf32> to vector<8x16x8xf32>
    %60 = vector.extract_strided_slice %4 {offsets = [0, 0, 40], sizes = [8, 16, 8], strides = [1, 1, 1]} : vector<8x16x96xf32> to vector<8x16x8xf32>
    %61 = vector.extract_strided_slice %4 {offsets = [0, 0, 72], sizes = [8, 16, 8], strides = [1, 1, 1]} : vector<8x16x96xf32> to vector<8x16x8xf32>
    %cst_26 = arith.constant dense<0.000000e+00> : vector<8x16x16xf32>
    %62 = tpu.matmul %59, %60, %cst_26 {dimension_numbers = #tpu.dot_dimension_numbers<[2], [2], [1], [1], [0, 0, 0, 1, 1, 1], [0], [0]>} : vector<8x16x8xf32>, vector<8x16x8xf32>, vector<8x16x16xf32> -> vector<8x16x16xf32>
    %cst_27 = arith.constant dense<0xFF800000> : vector<8x16xf32>
    %63 = vector.multi_reduction <maximumf>, %62, %cst_27 [2] : vector<8x16x16xf32> to vector<8x16xf32>
    %64 = vector.shape_cast %63 : vector<8x16xf32> to vector<8x16x1xf32>
    %65 = vector.broadcast %64 : vector<8x16x1xf32> to vector<8x16x16xf32>
    %66 = arith.subf %62, %65 : vector<8x16x16xf32>
    %67 = math.exp %66 : vector<8x16x16xf32>
    %cst_28 = arith.constant dense<0.000000e+00> : vector<8x16x8xf32>
    %68 = tpu.matmul %67, %61, %cst_28 {dimension_numbers = #tpu.dot_dimension_numbers<[2], [1], [1], [2], [0, 0, 0, 1, 1, 2], [0], [0]>} : vector<8x16x16xf32>, vector<8x16x8xf32>, vector<8x16x8xf32> -> vector<8x16x8xf32>
    %cst_29 = arith.constant dense<0.000000e+00> : vector<8x16xf32>
    %69 = vector.multi_reduction <add>, %67, %cst_29 [2] : vector<8x16x16xf32> to vector<8x16xf32>
    %70 = vector.shape_cast %69 : vector<8x16xf32> to vector<8x16x1xf32>
    %71 = tpu.reciprocal %70 : vector<8x16x1xf32> -> vector<8x16x1xf32>
    %72 = vector.broadcast %71 : vector<8x16x1xf32> to vector<8x16x8xf32>
    %73 = arith.mulf %68, %72 : vector<8x16x8xf32>
    %c0_30 = arith.constant 0 : index
    %c0_31 = arith.constant 0 : index
    %c40 = arith.constant 40 : index
    %74 = vector.load %arg7[%c0_30, %c0_31, %c40] : memref<8x16x64xf32, #tpu.memory_space<vmem>>, vector<8x16x8xf32>
    tpu.vector_store %arg7[%c0_30, %c0_31, %c40], %73 {strides = array<i32>} : memref<8x16x64xf32, #tpu.memory_space<vmem>>, vector<8x16x8xf32>,
    %75 = vector.extract_strided_slice %7 {offsets = [0, 0, 8], sizes = [8, 16, 8], strides = [1, 1, 1]} : vector<8x16x96xf32> to vector<8x16x8xf32>
    %76 = vector.extract_strided_slice %7 {offsets = [0, 0, 40], sizes = [8, 16, 8], strides = [1, 1, 1]} : vector<8x16x96xf32> to vector<8x16x8xf32>
    %77 = vector.extract_strided_slice %7 {offsets = [0, 0, 72], sizes = [8, 16, 8], strides = [1, 1, 1]} : vector<8x16x96xf32> to vector<8x16x8xf32>
    %78 = vector.extract_strided_slice %75 {offsets = [0, 8, 0], sizes = [8, 8, 8], strides = [1, 1, 1]} : vector<8x16x8xf32> to vector<8x8x8xf32>
    %79 = vector.extract_strided_slice %76 {offsets = [0, 0, 0], sizes = [8, 8, 8], strides = [1, 1, 1]} : vector<8x16x8xf32> to vector<8x8x8xf32>
    %80 = vector.extract_strided_slice %77 {offsets = [0, 0, 0], sizes = [8, 8, 8], strides = [1, 1, 1]} : vector<8x16x8xf32> to vector<8x8x8xf32>
    %cst_32 = arith.constant dense<0.000000e+00> : vector<8x8x8xf32>
    %81 = tpu.matmul %78, %79, %cst_32 {dimension_numbers = #tpu.dot_dimension_numbers<[2], [2], [1], [1], [0, 0, 0, 1, 1, 1], [0], [0]>} : vector<8x8x8xf32>, vector<8x8x8xf32>, vector<8x8x8xf32> -> vector<8x8x8xf32>
    %cst_33 = arith.constant dense<0xFF800000> : vector<8x8xf32>
    %82 = vector.multi_reduction <maximumf>, %81, %cst_33 [2] : vector<8x8x8xf32> to vector<8x8xf32>
    %83 = vector.shape_cast %82 : vector<8x8xf32> to vector<8x8x1xf32>
    %84 = vector.broadcast %83 : vector<8x8x1xf32> to vector<8x8x8xf32>
    %85 = arith.subf %81, %84 : vector<8x8x8xf32>
    %86 = math.exp %85 : vector<8x8x8xf32>
    %cst_34 = arith.constant dense<0.000000e+00> : vector<8x8x8xf32>
    %87 = tpu.matmul %86, %80, %cst_34 {dimension_numbers = #tpu.dot_dimension_numbers<[2], [1], [1], [2], [0, 0, 0, 1, 1, 2], [0], [0]>} : vector<8x8x8xf32>, vector<8x8x8xf32>, vector<8x8x8xf32> -> vector<8x8x8xf32>
    %cst_35 = arith.constant dense<0.000000e+00> : vector<8x8xf32>
    %88 = vector.multi_reduction <add>, %86, %cst_35 [2] : vector<8x8x8xf32> to vector<8x8xf32>
    %89 = vector.shape_cast %88 : vector<8x8xf32> to vector<8x8x1xf32>
    %90 = tpu.reciprocal %89 : vector<8x8x1xf32> -> vector<8x8x1xf32>
    %91 = vector.broadcast %90 : vector<8x8x1xf32> to vector<8x8x8xf32>
    %92 = arith.mulf %87, %91 : vector<8x8x8xf32>
    %c0_36 = arith.constant 0 : index
    %c0_37 = arith.constant 0 : index
    %c8_38 = arith.constant 8 : index
    %93 = vector.load %arg7[%c0_36, %c0_37, %c8_38] : memref<8x16x64xf32, #tpu.memory_space<vmem>>, vector<8x8x8xf32>
    tpu.vector_store %arg7[%c0_36, %c0_37, %c8_38], %92 {strides = array<i32>} : memref<8x16x64xf32, #tpu.memory_space<vmem>>, vector<8x8x8xf32>,
    %94 = vector.extract_strided_slice %75 {offsets = [0, 0, 0], sizes = [8, 8, 8], strides = [1, 1, 1]} : vector<8x16x8xf32> to vector<8x8x8xf32>
    %95 = vector.extract_strided_slice %76 {offsets = [0, 8, 0], sizes = [8, 8, 8], strides = [1, 1, 1]} : vector<8x16x8xf32> to vector<8x8x8xf32>
    %96 = vector.extract_strided_slice %77 {offsets = [0, 8, 0], sizes = [8, 8, 8], strides = [1, 1, 1]} : vector<8x16x8xf32> to vector<8x8x8xf32>
    %cst_39 = arith.constant dense<0.000000e+00> : vector<8x8x8xf32>
    %97 = tpu.matmul %94, %95, %cst_39 {dimension_numbers = #tpu.dot_dimension_numbers<[2], [2], [1], [1], [0, 0, 0, 1, 1, 1], [0], [0]>} : vector<8x8x8xf32>, vector<8x8x8xf32>, vector<8x8x8xf32> -> vector<8x8x8xf32>
    %cst_40 = arith.constant dense<0xFF800000> : vector<8x8xf32>
    %98 = vector.multi_reduction <maximumf>, %97, %cst_40 [2] : vector<8x8x8xf32> to vector<8x8xf32>
    %99 = vector.shape_cast %98 : vector<8x8xf32> to vector<8x8x1xf32>
    %100 = vector.broadcast %99 : vector<8x8x1xf32> to vector<8x8x8xf32>
    %101 = arith.subf %97, %100 : vector<8x8x8xf32>
    %102 = math.exp %101 : vector<8x8x8xf32>
    %cst_41 = arith.constant dense<0.000000e+00> : vector<8x8x8xf32>
    %103 = tpu.matmul %102, %96, %cst_41 {dimension_numbers = #tpu.dot_dimension_numbers<[2], [1], [1], [2], [0, 0, 0, 1, 1, 2], [0], [0]>} : vector<8x8x8xf32>, vector<8x8x8xf32>, vector<8x8x8xf32> -> vector<8x8x8xf32>
    %cst_42 = arith.constant dense<0.000000e+00> : vector<8x8xf32>
    %104 = vector.multi_reduction <add>, %102, %cst_42 [2] : vector<8x8x8xf32> to vector<8x8xf32>
    %105 = vector.shape_cast %104 : vector<8x8xf32> to vector<8x8x1xf32>
    %106 = tpu.reciprocal %105 : vector<8x8x1xf32> -> vector<8x8x1xf32>
    %107 = vector.broadcast %106 : vector<8x8x1xf32> to vector<8x8x8xf32>
    %108 = arith.mulf %103, %107 : vector<8x8x8xf32>
    %c0_43 = arith.constant 0 : index
    %c8_44 = arith.constant 8 : index
    %c8_45 = arith.constant 8 : index
    %109 = vector.load %arg7[%c0_43, %c8_44, %c8_45] : memref<8x16x64xf32, #tpu.memory_space<vmem>>, vector<8x8x8xf32>
    tpu.vector_store %arg7[%c0_43, %c8_44, %c8_45], %108 {strides = array<i32>} : memref<8x16x64xf32, #tpu.memory_space<vmem>>, vector<8x8x8xf32>,
    %110 = vector.extract_strided_slice %4 {offsets = [0, 0, 16], sizes = [8, 16, 8], strides = [1, 1, 1]} : vector<8x16x96xf32> to vector<8x16x8xf32>
    %111 = vector.extract_strided_slice %4 {offsets = [0, 0, 48], sizes = [8, 16, 8], strides = [1, 1, 1]} : vector<8x16x96xf32> to vector<8x16x8xf32>
    %112 = vector.extract_strided_slice %4 {offsets = [0, 0, 80], sizes = [8, 16, 8], strides = [1, 1, 1]} : vector<8x16x96xf32> to vector<8x16x8xf32>
    %cst_46 = arith.constant dense<0.000000e+00> : vector<8x16x16xf32>
    %113 = tpu.matmul %110, %111, %cst_46 {dimension_numbers = #tpu.dot_dimension_numbers<[2], [2], [1], [1], [0, 0, 0, 1, 1, 1], [0], [0]>} : vector<8x16x8xf32>, vector<8x16x8xf32>, vector<8x16x16xf32> -> vector<8x16x16xf32>
    %cst_47 = arith.constant dense<0xFF800000> : vector<8x16xf32>
    %114 = vector.multi_reduction <maximumf>, %113, %cst_47 [2] : vector<8x16x16xf32> to vector<8x16xf32>
    %115 = vector.shape_cast %114 : vector<8x16xf32> to vector<8x16x1xf32>
    %116 = vector.broadcast %115 : vector<8x16x1xf32> to vector<8x16x16xf32>
    %117 = arith.subf %113, %116 : vector<8x16x16xf32>
    %118 = math.exp %117 : vector<8x16x16xf32>
    %cst_48 = arith.constant dense<0.000000e+00> : vector<8x16x8xf32>
    %119 = tpu.matmul %118, %112, %cst_48 {dimension_numbers = #tpu.dot_dimension_numbers<[2], [1], [1], [2], [0, 0, 0, 1, 1, 2], [0], [0]>} : vector<8x16x16xf32>, vector<8x16x8xf32>, vector<8x16x8xf32> -> vector<8x16x8xf32>
    %cst_49 = arith.constant dense<0.000000e+00> : vector<8x16xf32>
    %120 = vector.multi_reduction <add>, %118, %cst_49 [2] : vector<8x16x16xf32> to vector<8x16xf32>
    %121 = vector.shape_cast %120 : vector<8x16xf32> to vector<8x16x1xf32>
    %122 = tpu.reciprocal %121 : vector<8x16x1xf32> -> vector<8x16x1xf32>
    %123 = vector.broadcast %122 : vector<8x16x1xf32> to vector<8x16x8xf32>
    %124 = arith.mulf %119, %123 : vector<8x16x8xf32>
    %c0_50 = arith.constant 0 : index
    %c0_51 = arith.constant 0 : index
    %c48 = arith.constant 48 : index
    %125 = vector.load %arg7[%c0_50, %c0_51, %c48] : memref<8x16x64xf32, #tpu.memory_space<vmem>>, vector<8x16x8xf32>
    tpu.vector_store %arg7[%c0_50, %c0_51, %c48], %124 {strides = array<i32>} : memref<8x16x64xf32, #tpu.memory_space<vmem>>, vector<8x16x8xf32>,
    %126 = vector.extract_strided_slice %7 {offsets = [0, 0, 16], sizes = [8, 16, 8], strides = [1, 1, 1]} : vector<8x16x96xf32> to vector<8x16x8xf32>
    %127 = vector.extract_strided_slice %7 {offsets = [0, 0, 48], sizes = [8, 16, 8], strides = [1, 1, 1]} : vector<8x16x96xf32> to vector<8x16x8xf32>
    %128 = vector.extract_strided_slice %7 {offsets = [0, 0, 80], sizes = [8, 16, 8], strides = [1, 1, 1]} : vector<8x16x96xf32> to vector<8x16x8xf32>
    %129 = vector.extract_strided_slice %126 {offsets = [0, 8, 0], sizes = [8, 8, 8], strides = [1, 1, 1]} : vector<8x16x8xf32> to vector<8x8x8xf32>
    %130 = vector.extract_strided_slice %127 {offsets = [0, 0, 0], sizes = [8, 8, 8], strides = [1, 1, 1]} : vector<8x16x8xf32> to vector<8x8x8xf32>
    %131 = vector.extract_strided_slice %128 {offsets = [0, 0, 0], sizes = [8, 8, 8], strides = [1, 1, 1]} : vector<8x16x8xf32> to vector<8x8x8xf32>
    %cst_52 = arith.constant dense<0.000000e+00> : vector<8x8x8xf32>
    %132 = tpu.matmul %129, %130, %cst_52 {dimension_numbers = #tpu.dot_dimension_numbers<[2], [2], [1], [1], [0, 0, 0, 1, 1, 1], [0], [0]>} : vector<8x8x8xf32>, vector<8x8x8xf32>, vector<8x8x8xf32> -> vector<8x8x8xf32>
    %cst_53 = arith.constant dense<0xFF800000> : vector<8x8xf32>
    %133 = vector.multi_reduction <maximumf>, %132, %cst_53 [2] : vector<8x8x8xf32> to vector<8x8xf32>
    %134 = vector.shape_cast %133 : vector<8x8xf32> to vector<8x8x1xf32>
    %135 = vector.broadcast %134 : vector<8x8x1xf32> to vector<8x8x8xf32>
    %136 = arith.subf %132, %135 : vector<8x8x8xf32>
    %137 = math.exp %136 : vector<8x8x8xf32>
    %cst_54 = arith.constant dense<0.000000e+00> : vector<8x8x8xf32>
    %138 = tpu.matmul %137, %131, %cst_54 {dimension_numbers = #tpu.dot_dimension_numbers<[2], [1], [1], [2], [0, 0, 0, 1, 1, 2], [0], [0]>} : vector<8x8x8xf32>, vector<8x8x8xf32>, vector<8x8x8xf32> -> vector<8x8x8xf32>
    %cst_55 = arith.constant dense<0.000000e+00> : vector<8x8xf32>
    %139 = vector.multi_reduction <add>, %137, %cst_55 [2] : vector<8x8x8xf32> to vector<8x8xf32>
    %140 = vector.shape_cast %139 : vector<8x8xf32> to vector<8x8x1xf32>
    %141 = tpu.reciprocal %140 : vector<8x8x1xf32> -> vector<8x8x1xf32>
    %142 = vector.broadcast %141 : vector<8x8x1xf32> to vector<8x8x8xf32>
    %143 = arith.mulf %138, %142 : vector<8x8x8xf32>
    %c0_56 = arith.constant 0 : index
    %c0_57 = arith.constant 0 : index
    %c16 = arith.constant 16 : index
    %144 = vector.load %arg7[%c0_56, %c0_57, %c16] : memref<8x16x64xf32, #tpu.memory_space<vmem>>, vector<8x8x8xf32>
    tpu.vector_store %arg7[%c0_56, %c0_57, %c16], %143 {strides = array<i32>} : memref<8x16x64xf32, #tpu.memory_space<vmem>>, vector<8x8x8xf32>,
    %145 = vector.extract_strided_slice %126 {offsets = [0, 0, 0], sizes = [8, 8, 8], strides = [1, 1, 1]} : vector<8x16x8xf32> to vector<8x8x8xf32>
    %146 = vector.extract_strided_slice %127 {offsets = [0, 8, 0], sizes = [8, 8, 8], strides = [1, 1, 1]} : vector<8x16x8xf32> to vector<8x8x8xf32>
    %147 = vector.extract_strided_slice %128 {offsets = [0, 8, 0], sizes = [8, 8, 8], strides = [1, 1, 1]} : vector<8x16x8xf32> to vector<8x8x8xf32>
    %cst_58 = arith.constant dense<0.000000e+00> : vector<8x8x8xf32>
    %148 = tpu.matmul %145, %146, %cst_58 {dimension_numbers = #tpu.dot_dimension_numbers<[2], [2], [1], [1], [0, 0, 0, 1, 1, 1], [0], [0]>} : vector<8x8x8xf32>, vector<8x8x8xf32>, vector<8x8x8xf32> -> vector<8x8x8xf32>
    %cst_59 = arith.constant dense<0xFF800000> : vector<8x8xf32>
    %149 = vector.multi_reduction <maximumf>, %148, %cst_59 [2] : vector<8x8x8xf32> to vector<8x8xf32>
    %150 = vector.shape_cast %149 : vector<8x8xf32> to vector<8x8x1xf32>
    %151 = vector.broadcast %150 : vector<8x8x1xf32> to vector<8x8x8xf32>
    %152 = arith.subf %148, %151 : vector<8x8x8xf32>
    %153 = math.exp %152 : vector<8x8x8xf32>
    %cst_60 = arith.constant dense<0.000000e+00> : vector<8x8x8xf32>
    %154 = tpu.matmul %153, %147, %cst_60 {dimension_numbers = #tpu.dot_dimension_numbers<[2], [1], [1], [2], [0, 0, 0, 1, 1, 2], [0], [0]>} : vector<8x8x8xf32>, vector<8x8x8xf32>, vector<8x8x8xf32> -> vector<8x8x8xf32>
    %cst_61 = arith.constant dense<0.000000e+00> : vector<8x8xf32>
    %155 = vector.multi_reduction <add>, %153, %cst_61 [2] : vector<8x8x8xf32> to vector<8x8xf32>
    %156 = vector.shape_cast %155 : vector<8x8xf32> to vector<8x8x1xf32>
    %157 = tpu.reciprocal %156 : vector<8x8x1xf32> -> vector<8x8x1xf32>
    %158 = vector.broadcast %157 : vector<8x8x1xf32> to vector<8x8x8xf32>
    %159 = arith.mulf %154, %158 : vector<8x8x8xf32>
    %c0_62 = arith.constant 0 : index
    %c8_63 = arith.constant 8 : index
    %c16_64 = arith.constant 16 : index
    %160 = vector.load %arg7[%c0_62, %c8_63, %c16_64] : memref<8x16x64xf32, #tpu.memory_space<vmem>>, vector<8x8x8xf32>
    tpu.vector_store %arg7[%c0_62, %c8_63, %c16_64], %159 {strides = array<i32>} : memref<8x16x64xf32, #tpu.memory_space<vmem>>, vector<8x8x8xf32>,
    %161 = vector.extract_strided_slice %4 {offsets = [0, 0, 24], sizes = [8, 16, 8], strides = [1, 1, 1]} : vector<8x16x96xf32> to vector<8x16x8xf32>
    %162 = vector.extract_strided_slice %4 {offsets = [0, 0, 56], sizes = [8, 16, 8], strides = [1, 1, 1]} : vector<8x16x96xf32> to vector<8x16x8xf32>
    %163 = vector.extract_strided_slice %4 {offsets = [0, 0, 88], sizes = [8, 16, 8], strides = [1, 1, 1]} : vector<8x16x96xf32> to vector<8x16x8xf32>
    %cst_65 = arith.constant dense<0.000000e+00> : vector<8x16x16xf32>
    %164 = tpu.matmul %161, %162, %cst_65 {dimension_numbers = #tpu.dot_dimension_numbers<[2], [2], [1], [1], [0, 0, 0, 1, 1, 1], [0], [0]>} : vector<8x16x8xf32>, vector<8x16x8xf32>, vector<8x16x16xf32> -> vector<8x16x16xf32>
    %cst_66 = arith.constant dense<0xFF800000> : vector<8x16xf32>
    %165 = vector.multi_reduction <maximumf>, %164, %cst_66 [2] : vector<8x16x16xf32> to vector<8x16xf32>
    %166 = vector.shape_cast %165 : vector<8x16xf32> to vector<8x16x1xf32>
    %167 = vector.broadcast %166 : vector<8x16x1xf32> to vector<8x16x16xf32>
    %168 = arith.subf %164, %167 : vector<8x16x16xf32>
    %169 = math.exp %168 : vector<8x16x16xf32>
    %cst_67 = arith.constant dense<0.000000e+00> : vector<8x16x8xf32>
    %170 = tpu.matmul %169, %163, %cst_67 {dimension_numbers = #tpu.dot_dimension_numbers<[2], [1], [1], [2], [0, 0, 0, 1, 1, 2], [0], [0]>} : vector<8x16x16xf32>, vector<8x16x8xf32>, vector<8x16x8xf32> -> vector<8x16x8xf32>
    %cst_68 = arith.constant dense<0.000000e+00> : vector<8x16xf32>
    %171 = vector.multi_reduction <add>, %169, %cst_68 [2] : vector<8x16x16xf32> to vector<8x16xf32>
    %172 = vector.shape_cast %171 : vector<8x16xf32> to vector<8x16x1xf32>
    %173 = tpu.reciprocal %172 : vector<8x16x1xf32> -> vector<8x16x1xf32>
    %174 = vector.broadcast %173 : vector<8x16x1xf32> to vector<8x16x8xf32>
    %175 = arith.mulf %170, %174 : vector<8x16x8xf32>
    %c0_69 = arith.constant 0 : index
    %c0_70 = arith.constant 0 : index
    %c56 = arith.constant 56 : index
    %176 = vector.load %arg7[%c0_69, %c0_70, %c56] : memref<8x16x64xf32, #tpu.memory_space<vmem>>, vector<8x16x8xf32>
    tpu.vector_store %arg7[%c0_69, %c0_70, %c56], %175 {strides = array<i32>} : memref<8x16x64xf32, #tpu.memory_space<vmem>>, vector<8x16x8xf32>,
    %177 = vector.extract_strided_slice %7 {offsets = [0, 0, 24], sizes = [8, 16, 8], strides = [1, 1, 1]} : vector<8x16x96xf32> to vector<8x16x8xf32>
    %178 = vector.extract_strided_slice %7 {offsets = [0, 0, 56], sizes = [8, 16, 8], strides = [1, 1, 1]} : vector<8x16x96xf32> to vector<8x16x8xf32>
    %179 = vector.extract_strided_slice %7 {offsets = [0, 0, 88], sizes = [8, 16, 8], strides = [1, 1, 1]} : vector<8x16x96xf32> to vector<8x16x8xf32>
    %180 = vector.extract_strided_slice %177 {offsets = [0, 8, 0], sizes = [8, 8, 8], strides = [1, 1, 1]} : vector<8x16x8xf32> to vector<8x8x8xf32>
    %181 = vector.extract_strided_slice %178 {offsets = [0, 0, 0], sizes = [8, 8, 8], strides = [1, 1, 1]} : vector<8x16x8xf32> to vector<8x8x8xf32>
    %182 = vector.extract_strided_slice %179 {offsets = [0, 0, 0], sizes = [8, 8, 8], strides = [1, 1, 1]} : vector<8x16x8xf32> to vector<8x8x8xf32>
    %cst_71 = arith.constant dense<0.000000e+00> : vector<8x8x8xf32>
    %183 = tpu.matmul %180, %181, %cst_71 {dimension_numbers = #tpu.dot_dimension_numbers<[2], [2], [1], [1], [0, 0, 0, 1, 1, 1], [0], [0]>} : vector<8x8x8xf32>, vector<8x8x8xf32>, vector<8x8x8xf32> -> vector<8x8x8xf32>
    %cst_72 = arith.constant dense<0xFF800000> : vector<8x8xf32>
    %184 = vector.multi_reduction <maximumf>, %183, %cst_72 [2] : vector<8x8x8xf32> to vector<8x8xf32>
    %185 = vector.shape_cast %184 : vector<8x8xf32> to vector<8x8x1xf32>
    %186 = vector.broadcast %185 : vector<8x8x1xf32> to vector<8x8x8xf32>
    %187 = arith.subf %183, %186 : vector<8x8x8xf32>
    %188 = math.exp %187 : vector<8x8x8xf32>
    %cst_73 = arith.constant dense<0.000000e+00> : vector<8x8x8xf32>
    %189 = tpu.matmul %188, %182, %cst_73 {dimension_numbers = #tpu.dot_dimension_numbers<[2], [1], [1], [2], [0, 0, 0, 1, 1, 2], [0], [0]>} : vector<8x8x8xf32>, vector<8x8x8xf32>, vector<8x8x8xf32> -> vector<8x8x8xf32>
    %cst_74 = arith.constant dense<0.000000e+00> : vector<8x8xf32>
    %190 = vector.multi_reduction <add>, %188, %cst_74 [2] : vector<8x8x8xf32> to vector<8x8xf32>
    %191 = vector.shape_cast %190 : vector<8x8xf32> to vector<8x8x1xf32>
    %192 = tpu.reciprocal %191 : vector<8x8x1xf32> -> vector<8x8x1xf32>
    %193 = vector.broadcast %192 : vector<8x8x1xf32> to vector<8x8x8xf32>
    %194 = arith.mulf %189, %193 : vector<8x8x8xf32>
    %c0_75 = arith.constant 0 : index
    %c0_76 = arith.constant 0 : index
    %c24 = arith.constant 24 : index
    %195 = vector.load %arg7[%c0_75, %c0_76, %c24] : memref<8x16x64xf32, #tpu.memory_space<vmem>>, vector<8x8x8xf32>
    tpu.vector_store %arg7[%c0_75, %c0_76, %c24], %194 {strides = array<i32>} : memref<8x16x64xf32, #tpu.memory_space<vmem>>, vector<8x8x8xf32>,
    %196 = vector.extract_strided_slice %177 {offsets = [0, 0, 0], sizes = [8, 8, 8], strides = [1, 1, 1]} : vector<8x16x8xf32> to vector<8x8x8xf32>
    %197 = vector.extract_strided_slice %178 {offsets = [0, 8, 0], sizes = [8, 8, 8], strides = [1, 1, 1]} : vector<8x16x8xf32> to vector<8x8x8xf32>
    %198 = vector.extract_strided_slice %179 {offsets = [0, 8, 0], sizes = [8, 8, 8], strides = [1, 1, 1]} : vector<8x16x8xf32> to vector<8x8x8xf32>
    %cst_77 = arith.constant dense<0.000000e+00> : vector<8x8x8xf32>
    %199 = tpu.matmul %196, %197, %cst_77 {dimension_numbers = #tpu.dot_dimension_numbers<[2], [2], [1], [1], [0, 0, 0, 1, 1, 1], [0], [0]>} : vector<8x8x8xf32>, vector<8x8x8xf32>, vector<8x8x8xf32> -> vector<8x8x8xf32>
    %cst_78 = arith.constant dense<0xFF800000> : vector<8x8xf32>
    %200 = vector.multi_reduction <maximumf>, %199, %cst_78 [2] : vector<8x8x8xf32> to vector<8x8xf32>
    %201 = vector.shape_cast %200 : vector<8x8xf32> to vector<8x8x1xf32>
    %202 = vector.broadcast %201 : vector<8x8x1xf32> to vector<8x8x8xf32>
    %203 = arith.subf %199, %202 : vector<8x8x8xf32>
    %204 = math.exp %203 : vector<8x8x8xf32>
    %cst_79 = arith.constant dense<0.000000e+00> : vector<8x8x8xf32>
    %205 = tpu.matmul %204, %198, %cst_79 {dimension_numbers = #tpu.dot_dimension_numbers<[2], [1], [1], [2], [0, 0, 0, 1, 1, 2], [0], [0]>} : vector<8x8x8xf32>, vector<8x8x8xf32>, vector<8x8x8xf32> -> vector<8x8x8xf32>
    %cst_80 = arith.constant dense<0.000000e+00> : vector<8x8xf32>
    %206 = vector.multi_reduction <add>, %204, %cst_80 [2] : vector<8x8x8xf32> to vector<8x8xf32>
    %207 = vector.shape_cast %206 : vector<8x8xf32> to vector<8x8x1xf32>
    %208 = tpu.reciprocal %207 : vector<8x8x1xf32> -> vector<8x8x1xf32>
    %209 = vector.broadcast %208 : vector<8x8x1xf32> to vector<8x8x8xf32>
    %210 = arith.mulf %205, %209 : vector<8x8x8xf32>
    %c0_81 = arith.constant 0 : index
    %c8_82 = arith.constant 8 : index
    %c24_83 = arith.constant 24 : index
    %211 = vector.load %arg7[%c0_81, %c8_82, %c24_83] : memref<8x16x64xf32, #tpu.memory_space<vmem>>, vector<8x8x8xf32>
    tpu.vector_store %arg7[%c0_81, %c8_82, %c24_83], %210 {strides = array<i32>} : memref<8x16x64xf32, #tpu.memory_space<vmem>>, vector<8x8x8xf32>,
    %c0_84 = arith.constant 0 : index
    %c0_85 = arith.constant 0 : index
    %c0_86 = arith.constant 0 : index
    %212 = vector.load %arg7[%c0_84, %c0_85, %c0_86] : memref<8x16x64xf32, #tpu.memory_space<vmem>>, vector<8x16x64xf32>
    %213 = vector.shape_cast %212 : vector<8x16x64xf32> to vector<128x64xf32>
    %c0_87 = arith.constant 0 : index
    %c0_88 = arith.constant 0 : index
    %214 = vector.load %arg4[%c0_87, %c0_88] : memref<64x32xf32, #tpu.memory_space<vmem>>, vector<64x32xf32>
    %cst_89 = arith.constant dense<0.000000e+00> : vector<128x32xf32>
    %215 = tpu.matmul %213, %214, %cst_89 {dimension_numbers = #tpu.dot_dimension_numbers<[1], [0], [0], [1], [0, 0, 1, 1], [], []>} : vector<128x64xf32>, vector<64x32xf32>, vector<128x32xf32> -> vector<128x32xf32>
    %c0_90 = arith.constant 0 : index
    %c0_91 = arith.constant 0 : index
    %216 = vector.load %arg5[%c0_90, %c0_91] : memref<1x32xf32, #tpu.memory_space<vmem>>, vector<1x32xf32>
    %217 = vector.broadcast %216 : vector<1x32xf32> to vector<128x32xf32>
    %218 = arith.addf %215, %217 : vector<128x32xf32>
    %219 = vector.shape_cast %218 : vector<128x32xf32> to vector<8x16x32xf32>
    %c0_92 = arith.constant 0 : index
    %c0_93 = arith.constant 0 : index
    %c0_94 = arith.constant 0 : index
    %220 = vector.load %arg6[%c0_92, %c0_93, %c0_94] : memref<8x16x32xf32, #tpu.memory_space<vmem>>, vector<8x16x32xf32>
    tpu.vector_store %arg6[%c0_92, %c0_93, %c0_94], %219 {strides = array<i32>} : memref<8x16x32xf32, #tpu.memory_space<vmem>>, vector<8x16x32xf32>,
    return
  }
  func.func @transform_0(%arg0: i32) -> (i32, i32, i32) {
    %c0_i32 = arith.constant 0 : i32
    %c0_i32_0 = arith.constant 0 : i32
    %c0_i32_1 = arith.constant 0 : i32
    return %arg0, %c0_i32, %c0_i32_0 : i32, i32, i32
  }
  func.func @transform_1(%arg0: i32) -> (i32, i32) {
    %c0_i32 = arith.constant 0 : i32
    %c0_i32_0 = arith.constant 0 : i32
    %c0_i32_1 = arith.constant 0 : i32
    return %c0_i32, %c0_i32_0 : i32, i32
  }
  func.func @transform_2(%arg0: i32) -> (i32, i32) {
    %c0_i32 = arith.constant 0 : i32
    %c0_i32_0 = arith.constant 0 : i32
    %c0_i32_1 = arith.constant 0 : i32
    return %c0_i32, %c0_i32_0 : i32, i32
  }
  func.func @transform_3(%arg0: i32) -> (i32, i32) {
    %c0_i32 = arith.constant 0 : i32
    %c0_i32_0 = arith.constant 0 : i32
    %c0_i32_1 = arith.constant 0 : i32
    return %c0_i32, %c0_i32_0 : i32, i32
  }
  func.func @transform_4(%arg0: i32) -> (i32, i32) {
    %c0_i32 = arith.constant 0 : i32
    %c0_i32_0 = arith.constant 0 : i32
    %c0_i32_1 = arith.constant 0 : i32
    return %c0_i32, %c0_i32_0 : i32, i32
  }
  func.func @transform_5(%arg0: i32) -> (i32, i32, i32) {
    %c0_i32 = arith.constant 0 : i32
    %c0_i32_0 = arith.constant 0 : i32
    %c0_i32_1 = arith.constant 0 : i32
    return %arg0, %c0_i32, %c0_i32_0 : i32, i32, i32
  }
}

</mosaic_0001>

<bundles_post_ra>
// kernel: window_attention_forward.1
= control target key start
LH: loop header
LB: loop body
LE: loop exit
PB: predicated region body
PF: predicated region fallthrough
CT: control target
= control target key end

     0   :  { %10 = vsyncpa [#allocation4], 0  ;;  %s26260_s0 = inlined_call_operand.hbm [shape: f32[16,16,32], index: 0, kind: input, shape index: {}]   ;;  %s26261_s1 = inlined_call_operand.vmem [shape: f32[32,96], index: 1, kind: input, shape index: {}]   ;;  %s26262_s2 = inlined_call_operand.vmem [shape: f32[32,96], index: 2, kind: input, shape index: {}]   ;;  %s26263_s3 = inlined_call_operand.vmem [shape: f32[64,32], index: 3, kind: input, shape index: {}]   ;;  %s26264_s4 = inlined_call_operand.vmem [shape: f32[1,32], index: 4, kind: input, shape index: {}]   ;;  %s26265_s5 = inlined_call_operand.hbm [shape: f32[16,16,32], index: 5, kind: output, shape index: {}]  }
   0x1   :  { %12 = vsyncpa [#allocation4 + $0x1], 0 }
   0x2   :  { %13 = vsyncpa [#allocation5], 0 }
   0x3   :  { %15 = vsyncpa [#allocation5 + $0x1], 0  ;;  %s22076_s18 = smov 0   ;;  %s22078_s19 = smov 0  }
   0x4   :  { %s22080_s20 = smov 0   ;;  %s22082_s21 = smov 0  }
   0x5 LB: > { %s22097_s22 = sadd.s32 4294967295, %s22022_s21   ;;  %s18451_s23 = sadd.s32 4294967294, %s22022_s21   ;;  %s22022_s21 = sphi %s22082_s21, %s26942_s21   ;;  %s22018_s20 = sphi %s22080_s20, %s26941_s20   ;;  %s22014_s19 = sphi %s22078_s19, %s26940_s19   ;;  %s22010_s18 = sphi %s22076_s18, %s26939_s18  }
   0x6   : > { %s22101_s24 = sadd.s32 1, %s22022_s21   ;;  %s28_s25 = sadd.s32 1, %s22018_s20 }
   0x7   : > { %s25_s26 = ssub.s32 %s22022_s21, %s22101_s24  ;;  %p35_p0 = scmp.ne.s32.totalorder %s22018_s20, %s22014_s19 }
   0x8   : > { %p26_p1 = scmp.eq.s32.totalorder %s25_s26, 0  ;;  %p36_p2 = scmp.eq.s32.totalorder %s22022_s21, 0 }
   0x9   : > { %p41_p3 = scmp.ne.s32.totalorder %s22014_s19, %s22010_s18  ;;  %p42_p4 = scmp.eq.s32.totalorder %s22097_s22, 0 }
   0xa   : > { %s22113_s27 = scalar_select %p26_p1, %s22018_s20, %s28_s25  }
   0xb   : > { %p22115_p5 = por %p36_p2, %p35_p0  ;;  %p22119_p6 = por %p42_p4, %p41_p3 }
   0xc   : > { %p149_p7 = scmp.eq.s32.totalorder %s22097_s22, 1  ;;  %p155_p8 = scmp.eq.s32.totalorder %s18451_s23, 1 }
   0xd   : > { %p21040_p10 = scmp.lt.s32.totalorder %s22022_s21, 2  ;;  %s187_s7 = sand.u32 1, %s22018_s20  }
   0xe   : > { %p22126_p11 = por %p149_p7, %p35_p0  ;;  %p22130_p12 = por %p155_p8, %p41_p3 }
   0xf   : > { %s18901_s8 = sshll.u32 %s22022_s21, 11  ;;  %s18454_s9 = sshll.u32 %s187_s7, 7 }
  0x10   : > { %s26425_s30 = scalar_select %p22126_p11, 1, 0 }
  0x11   : > { %s26426_s6 = scalar_select %p22130_p12, 1, 0 }
  0x12   : > { %s22139_s12 = scalar_lea.hbm %s26260_s0, %s18901_s8  ;;  %s191_s13 = scalar_lea.vmem [#allocation3], %s18454_s9 }
  0x13   : > { %s199_s14 = sshll.u32 %s191_s13, 4  ;;  %p22143_p13 = pnand %p21040_p10, %p22115_p5  ;;  %s22147_s14 = int_to_ptr.vmem [resolvable:$true] %s199_s14 }
  0x14   : > { %s22149_s16 = scalar_lea.sflag [#allocation4], %s187_s7  ;;  %s21926_s17 = scalar_lea.hbm %s22139_s12, 2048 }
  0x15   : > { %p21927_p0 = scmp.ne.s32.totalorder %s22139_s12, %s21926_s17  ;;  %p21928_p1 = pneg %p22143_p13 }
  0x16   : > { %s21931_s26 = scalar_lea.hbm %s26260_s0, 4096  ;;  %p21932_p4 = scmp.lt.u32.totalorder %s22139_s12, %s26260_s0 }
  0x17   : > { %p21929_p2 = pnand %p21928_p1, %p21927_p0  ;;  %p21933_p5 = scmp.lt.u32.totalorder %s21931_s26, %s21926_s17 }
  0x18   : > { %p21935_p8 = scmp.lt.u32.totalorder %s21926_s17, %s22139_s12 }
  0x19   : > { %p21930_p3 = pneg %p21929_p2  ;;  %p21934_p7 = por %p21933_p5, %p21932_p4 }
  0x1b   : > { %p21936_p10 = por %p21935_p8, %p21934_p7 }
  0x1d   : > { %p21937_p9 = pnand %p21936_p10, %p21930_p3 }
  0x1f   : > { %21940 = shalt.err (!%p21937_p9)
}
  0x20   : > { %s21941_s7 = scalar_lea.vmem %s22147_s14, 2048  ;;  %s22024_s9 = smov [#allocation3]  }
  0x21   : > { %p21942_p0 = scmp.ne.s32.totalorder %s22147_s14, %s21941_s7  ;;  %s21946_s10 = sshll.u32 %s22024_s9, 4  ;;  %s21947_s10 = int_to_ptr.vmem [resolvable:$false] %s21946_s10 }
  0x22   : > { %s21948_s11 = scalar_lea.vmem %s21947_s10, 4096  ;;  %p21949_p11 = scmp.lt.s32.totalorder %s22147_s14, %s21947_s10 }
  0x23   : > { %p21944_p2 = pnand %p21942_p0, %p21928_p1  ;;  %p21950_p4 = scmp.lt.s32.totalorder %s21948_s11, %s21941_s7 }
  0x25   : > { %p21945_p12 = pneg %p21944_p2  ;;  %p21951_p5 = por %p21950_p4, %p21949_p11 }
  0x27   : > { %p21952_p7 = pnand %p21951_p5, %p21945_p12 }
  0x29   : > { %21955 = shalt.err (!%p21952_p7)
}
  0x2a   : > { %s22025_s13 = smov 128   ;;  %s22026_s17 = smov 8  }
  0x2b   : > { %21035 = dma.hbm_to_vmem [thread:$0]  (!%p22143_p13), %s22139_s12, 2048, %s22147_s14, %s22149_s16, %s22025_s13, %s22025_s13, %s22026_s17  }
  0x2c   : > { %p18458_p9 = scmp.ge.s32.totalorder %s22022_s21, 1  ;;  %p207_p1 = scmp.lt.s32.totalorder %s22022_s21, 3 }
  0x2e   : > { %p208_p3 = pnand %p18458_p9, %p207_p1 }
  0x30   : > { %211 = sbr.rel (%p208_p3) target bundleno = 6482 (0x1952), region = 40 }
  0x37   : > { %s22180_s23 = sand.u32 1, %s22014_s19  }
  0x38   : > { %s18459_s25 = sshll.u32 %s22180_s23, 7  ;;  %s214_s26 = scalar_lea.sflag [#allocation4], %s22180_s23 }
  0x39   : > { %s22186_s28 = scalar_lea.vmem [#allocation3], %s18459_s25 }
  0x3a   : > { %22001 = dma.done.wait (%p22119_p6), %s214_s26, 2048  }
  0x3b   : > { %22003 = vsyncadd (%p22119_p6), %s214_s26, 4294965248  ;;  %vm266_vm0 = vcmask 261120   ;;  %v262_v0 = vld [vmem:[%s26261_s1] sm:$0xff]  ;;  %v263_v1 = vld [vmem:[%s26261_s1 + $0x8] sm:$0xff]  ;;  %vm615_vm1 = vcmask 64512   ;;  %s22028_s16 = smov 64  }
  0x3c   : > { %v264_v2 = vld [vmem:[%s26261_s1 + $0x10] sm:$0xff]  ;;  %v20672_v3 = vpack.c.bf16 %v263_v1, %v262_v0  ;;  %v265_v4 = vld [vmem:[%s26261_s1 + $0x18] sm:$0xff]  ;;  %v246_v5 = vld [vmem:[%s22186_s28] sm:$0xff]  ;;  %vm1322_vm3 = vcmask 130048   ;;  %vm22030_vm4 = vmmov 0   ;;  %s22031_s8 = smov 88  }
  0x3d   : > { %v250_v6 = vld [vmem:[%s22186_s28 + $0x20] sm:$0xff]  ;;  %v20676_v7 = vpack.c.bf16 %v265_v4, %v264_v2  ;;  %19488 = vmatprep.mubr.msk.f32.mxu0 %vm266_vm0, %v246_v5  ;;  %v461_v9 = vld [vmem:[%s26262_s2 + $0x8] sm:$0xff]  ;;  %v462_v10 = vld [vmem:[%s26262_s2 + $0x10] sm:$0xff]  ;;  %s22032_s7 = smov 120   ;;  %s22033_s9 = smov 56   ;;  %vm2259_vm5 = vcmask 326912  }
  0x3e   : > { %19494 = vmatprep.mubr.msk.f32.mxu1 %vm266_vm0, %v250_v6  ;;  %20673 = vmatprep.subr.bf16.mxu0 %v20672_v3  ;;  %v460_v8 = vld [vmem:[%s26262_s2] sm:$0xff]  ;;  %v463_v11 = vld [vmem:[%s26262_s2 + $0x18] sm:$0xff]  ;;  %v247_v12 = vld [vmem:[%s22186_s28 + $0x8] sm:$0xff]  ;;  %s22034_s10 = smov 80   ;;  %s22035_s29 = smov 112   ;;  %vm6580_vm6 = vcmask 392512  }
  0x3f   : > { %21024 = vmatprep.subr.bf16.mxu1 %v20672_v3  ;;  %20675 = vmatpush3.bf16.msra.mxu0 %v20672_v3  ;;  %v251_v13 = vld [vmem:[%s22186_s28 + $0x28] sm:$0xff]  ;;  %v20680_v14 = vpack.c.bf16 %v461_v9, %v460_v8  ;;  %v248_v15 = vld [vmem:[%s22186_s28 + $0x10] sm:$0xff]  ;;  %v20684_v17 = vpack.c.bf16 %v463_v11, %v462_v10  ;;  %v249_v18 = vld [vmem:[%s22186_s28 + $0x18] sm:$0xff]  ;;  %s22036_s11 = smov 48   ;;  %s22037_s13 = smov 72   ;;  %vm7949_vm7 = vcmask 130112  }
  0x40   : > { %21026 = vmatpush3.bf16.msra.mxu1 %v20672_v3  ;;  %20677 = vmatprep.subr.bf16.mxu0 %v20676_v7  ;;  %v252_v16 = vld [vmem:[%s22186_s28 + $0x30] sm:$0xff]  ;;  %v253_v19 = vld [vmem:[%s22186_s28 + $0x38] sm:$0xff]  ;;  %v254_v20 = vld [vmem:[%s22186_s28 + $0x40] sm:$0xff]  ;;  %s22038_s17 = smov 104   ;;  %s22039_s26 = smov 40   ;;  %vm10982_vm8 = vcmask 458112  }
  0x41   : > { %21025 = vmatprep.subr.bf16.mxu1 %v20676_v7  ;;  %v255_v21 = vld [vmem:[%s22186_s28 + $0x48] sm:$0xff]  ;;  %v256_v22 = vld [vmem:[%s22186_s28 + $0x50] sm:$0xff]  ;;  %v257_v23 = vld [vmem:[%s22186_s28 + $0x58] sm:$0xff]  ;;  %s22040_s12 = smov 32   ;;  %s22041_s14 = smov 8   ;;  %vm12351_vm9 = vcmask 195712  }
  0x42   : > { %v258_v24 = vld [vmem:[%s22186_s28 + $0x60] sm:$0xff]  ;;  %v259_v25 = vld [vmem:[%s22186_s28 + $0x68] sm:$0xff]  ;;  %v260_v26 = vld [vmem:[%s22186_s28 + $0x70] sm:$0xff]  ;;  %s22042_s15 = smov 16   ;;  %vm15384_vm10 = vcmask 523712   ;;  %vm16753_vm11 = vcmask 261312  }
  0x43   : > { %20679 = vmatpush3.bf16.msra.mxu0 %v20676_v7  ;;  %v261_v27 = vld [vmem:[%s22186_s28 + $0x78] sm:$0xff]  ;;  %s22027_s28 = smov 96   ;;  %vm22396_vm2 = vmpackc.low %vm615_vm1, %vm615_vm1  ;;  %vm18153_vm12 = vcmask 523264   ;;  %p26936_p11 = scmp.ne.s32.totalorder %s26425_s30, 0 }
  0x44   : > { %21027 = vmatpush3.bf16.msra.mxu1 %v20676_v7  ;;  %v26447_v7 = vmov 0 }
  0x45   : > { %20681 = vmatprep.subr.bf16.mxu1 %v20680_v14  ;;  %v26448_v7 = vsel %vm22396_vm2, 4294967295, %v26447_v7 }
  0x46   : > { %19489 = vmatmul.mubr.msk.f32.vlgmr.msra.gmra.mrb[0].mxu0 %vm266_vm0, %v247_v12  ;;  %26449 = vst [vmem:[#allocation28_spill] sm:$0xff] %v26448_v7 }
  0x47   : > { %19495 = vmatmul.mubr.msk.f32.vlgmr.msra.gmra.mrb[0].mxu1 %vm266_vm0, %v251_v13  ;;  %19491 = vmatprep.mubr.msk.f32.mxu0 %vm266_vm0, %v248_v15 }
  0x48   : > { %19497 = vmatprep.mubr.msk.f32.mxu1 %vm266_vm0, %v252_v16  ;;  %20683 = vmatpush3.bf16.msra.mxu1 %v20680_v14 }
  0x49   : > { %20685 = vmatprep.subr.bf16.mxu1 %v20684_v17 }
  0x4a   : > { %19492 = vmatmul.mubr.msk.f32.gmra.mrb[2].mxu0 %vm266_vm0, %v249_v18 }
  0x4b   : > { %19498 = vmatmul.mubr.msk.f32.gmra.mrb[2].mxu1 %vm266_vm0, %v253_v19 }
  0x4c   : > { %19500 = vmatprep.mubr.msk.f32.mxu1 %vm266_vm0, %v254_v20  ;;  %20687 = vmatpush3.bf16.msra.mxu1 %v20684_v17 }
  0x4f   : > { %19501 = vmatmul.mubr.msk.f32.gmra.mrb[4].mxu1 %vm266_vm0, %v255_v21 }
  0x50   : > { %19503 = vmatprep.mubr.msk.f32.mxu1 %vm266_vm0, %v256_v22 }
  0x53   : > { %19504 = vmatmul.mubr.msk.f32.gmra.mrb[6].mxu1 %vm266_vm0, %v257_v23 }
  0x54   : > { %19506 = vmatprep.mubr.msk.f32.mxu1 %vm266_vm0, %v258_v24 }
  0x57   : > { %19507 = vmatmul.mubr.msk.f32.gmra.mrb[8].mxu1 %vm266_vm0, %v259_v25 }
  0x58   : > { %19509 = vmatprep.mubr.msk.f32.mxu1 %vm266_vm0, %v260_v26 }
  0x5b   : > { %19510 = vmatmul.mubr.msk.f32.gmra.mrb[10].mxu1 %vm266_vm0, %v261_v27 }
  0x5c   : > { %19520 = vmatprep.mubr.msk.f32.mxu1 %vm266_vm0, %v246_v5 }
  0x5f   : > { %19521 = vmatmul.mubr.msk.f32.vlgmr.msra.gmra.mrb[12].mxu1 %vm266_vm0, %v247_v12 }
  0x60   : > { %19523 = vmatprep.mubr.msk.f32.mxu1 %vm266_vm0, %v248_v15 }
  0x63   : > { %19524 = vmatmul.mubr.msk.f32.gmra.mrb[14].mxu1 %vm266_vm0, %v249_v18 }
  0x64   : > { %19526 = vmatprep.mubr.msk.f32.mxu1 %vm266_vm0, %v250_v6 }
  0x67   : > { %19527 = vmatmul.mubr.msk.f32.gmra.mrb[16].mxu1 %vm266_vm0, %v251_v13 }
  0x68   : > { %19529 = vmatprep.mubr.msk.f32.mxu1 %vm266_vm0, %v252_v16 }
  0x6b   : > { %19530 = vmatmul.mubr.msk.f32.gmra.mrb[18].mxu1 %vm266_vm0, %v253_v19 }
  0x6c   : > { %19532 = vmatprep.mubr.msk.f32.mxu1 %vm266_vm0, %v254_v20 }
  0x6f   : > { %19533 = vmatmul.mubr.msk.f32.gmra.mrb[20].mxu1 %vm266_vm0, %v255_v21 }
  0x70   : > { %19535 = vmatprep.mubr.msk.f32.mxu1 %vm266_vm0, %v256_v22 }
  0x73   : > { %19536 = vmatmul.mubr.msk.f32.gmra.mrb[22].mxu1 %vm266_vm0, %v257_v23 }
  0x74   : > { %19538 = vmatprep.mubr.msk.f32.mxu1 %vm266_vm0, %v258_v24 }
  0x77   : > { %19539 = vmatmul.mubr.msk.f32.gmra.mrb[24].mxu1 %vm266_vm0, %v259_v25 }
  0x78   : > { %19541 = vmatprep.mubr.msk.f32.mxu1 %vm266_vm0, %v260_v26 }
  0x7b   : > { %19542 = vmatmul.mubr.msk.f32.gmra.mrb[26].mxu1 %vm266_vm0, %v261_v27 }
 0x119   : > { %v22264_v28 = vpop.f32.mrb[0].mxu0 }
 0x11a   : > { %v22266_v29 = vpop.f32.mrb[0].mxu1  ;;  %v22268_v30 = vpop.f32.mrb[1].mxu0 }
 0x11b   : > { %26428 = vst [vmem:[#allocation9_spill] sm:$0xff] %v22266_v29  ;;  %v22270_v31 = vpop.f32.mrb[1].mxu1  ;;  %19548 = vmatprep.mubr.msk.f32.mxu0 %vm615_vm1, %v22268_v30  ;;  %v22276_v32 = vpack.i.bf16 %v22264_v28, %v22268_v30 }
 0x11c   : > { %26429 = vst [vmem:[#allocation10_spill] sm:$0xff] %v22270_v31  ;;  %v22280_v33 = vpack.i.bf16 %v22266_v29, %v22270_v31 }
 0x11d   : > { %21095 = vrot.lane.b32.xlu0 %v22276_v32, %s22027_s28  ;;  %v22284_v34 = vpop.f32.mrb[2].mxu0 }
 0x11e   : > { %v22286_v35 = vpop.f32.mrb[2].mxu1  ;;  %21105 = vrot.lane.b32.xlu1 %v22280_v33, %s22027_s28  ;;  %v22290_v36 = vpop.f32.mrb[3].mxu0 }
 0x11f   : > { %26430 = vst [vmem:[#allocation11_spill] sm:$0xff] %v22286_v35  ;;  %26431 = vst [vmem:[#allocation12_spill] sm:$0xff] %v22290_v36  ;;  %v22292_v37 = vpop.f32.mrb[3].mxu1  ;;  %19555 = vmatprep.mubr.msk.f32.mxu1 %vm615_vm1, %v22290_v36  ;;  %v22298_v38 = vpack.i.bf16 %v22284_v34, %v22290_v36 }
 0x120   : > { %26432 = vst [vmem:[#allocation13_spill] sm:$0xff] %v22292_v37  ;;  %v22302_v39 = vpack.i.bf16 %v22286_v35, %v22292_v37 }
 0x121   : > { %21100 = vrot.lane.b32.xlu0 %v22298_v38, %s22027_s28 }
 0x122   : > { %v22306_v40 = vpop.f32.mrb[4].mxu1  ;;  %21110 = vrot.lane.b32.xlu1 %v22302_v39, %s22027_s28 }
 0x123   : > { %26433 = vst [vmem:[#allocation14_spill] sm:$0xff] %v22306_v40  ;;  %v22310_v41 = vpop.f32.mrb[5].mxu1 }
 0x124   : > { %26434 = vst [vmem:[#allocation15_spill] sm:$0xff] %v22310_v41  ;;  %v22314_v42 = vpack.i.bf16 %v22306_v40, %v22310_v41 }
 0x126   : > { %26435 = vst [vmem:[#allocation16_spill] sm:$0xff] %v22314_v42  ;;  %v22316_v43 = vpop.f32.mrb[6].mxu1  ;;  %21115 = vrot.lane.b32.xlu0 %v22314_v42, %s22027_s28 }
 0x127   : > { %26436 = vst [vmem:[#allocation17_spill] sm:$0xff] %v22316_v43  ;;  %v22320_v44 = vpop.f32.mrb[7].mxu1 }
 0x128   : > { %26437 = vst [vmem:[#allocation18_spill] sm:$0xff] %v22320_v44  ;;  %v22324_v45 = vpack.i.bf16 %v22316_v43, %v22320_v44 }
 0x12a   : > { %26438 = vst [vmem:[#allocation19_spill] sm:$0xff] %v22324_v45  ;;  %v22326_v46 = vpop.f32.mrb[8].mxu1  ;;  %21120 = vrot.lane.b32.xlu1 %v22324_v45, %s22027_s28 }
 0x12b   : > { %26439 = vst [vmem:[#allocation20_spill] sm:$0xff] %v22326_v46  ;;  %v22330_v47 = vpop.f32.mrb[9].mxu1 }
 0x12c   : > { %26440 = vst [vmem:[#allocation21_spill] sm:$0xff] %v22330_v47  ;;  %v22334_v48 = vpack.i.bf16 %v22326_v46, %v22330_v47 }
 0x12e   : > { %26441 = vst [vmem:[#allocation22_spill] sm:$0xff] %v22334_v48  ;;  %v22336_v49 = vpop.f32.mrb[10].mxu1  ;;  %21125 = vrot.lane.b32.xlu0 %v22334_v48, %s22027_s28 }
 0x12f   : > { %26442 = vst [vmem:[#allocation23_spill] sm:$0xff] %v22336_v49  ;;  %v22340_v50 = vpop.f32.mrb[11].mxu1 }
 0x130   : > { %26443 = vst [vmem:[#allocation24_spill] sm:$0xff] %v22340_v50  ;;  %v22344_v51 = vpack.i.bf16 %v22336_v49, %v22340_v50 }
 0x132   : > { %26444 = vst [vmem:[#allocation25_spill] sm:$0xff] %v22344_v51  ;;  %21130 = vrot.lane.b32.xlu1 %v22344_v51, %s22027_s28  ;;  %21140 = vrot.lane.b32.xlu0 %v22298_v38, %s22028_s16  ;;  %v22358_v52 = vpop.f32.mrb[12].mxu1 }
 0x133   : > { %v22360_v53 = vpop.f32.mrb[13].mxu1 }
 0x134   : > { %26445 = vst [vmem:[#allocation26_spill] sm:$0xff] %v22360_v53 }
 0x136   : > { %21135 = vrot.lane.b32.xlu1 %v22276_v32, %s22028_s16  ;;  %21155 = vrot.lane.b32.xlu0 %v22314_v42, %s22028_s16  ;;  %v22362_v54 = vpop.f32.mrb[14].mxu1 }
 0x137   : > { %v22366_v55 = vpop.f32.mrb[15].mxu1 }
 0x138   : > { %26446 = vst [vmem:[#allocation27_spill] sm:$0xff] %v22366_v55 }
 0x13a   : > { %21145 = vrot.lane.b32.xlu1 %v22280_v33, %s22028_s16  ;;  %21165 = vrot.lane.b32.xlu0 %v22334_v48, %s22028_s16  ;;  %v22370_v56 = vpop.f32.mrb[16].mxu1 }
 0x13b   : > { %v22372_v57 = vpop.f32.mrb[17].mxu1 }
 0x13e   : > { %21150 = vrot.lane.b32.xlu1 %v22302_v39, %s22028_s16  ;;  %2277 = vrot.lane.b32.xlu0 %v22360_v53, %s22027_s28  ;;  %v22374_v58 = vpop.f32.mrb[18].mxu1 }
 0x13f   : > { %v22378_v59 = vpop.f32.mrb[19].mxu1 }
 0x142   : > { %21160 = vrot.lane.b32.xlu1 %v22324_v45, %s22028_s16  ;;  %v22380_v60 = vpop.f32.mrb[20].mxu1 }
 0x143   : > { %v22382_v61 = vpop.f32.mrb[21].mxu1 }
 0x146   : > { %21170 = vrot.lane.b32.xlu1 %v22344_v51, %s22028_s16  ;;  %v22386_v62 = vpop.f32.mrb[22].mxu1 }
 0x147   : > { %v22388_v63 = vpop.f32.mrb[23].mxu1 }
 0x14a   : > { %2355 = vrot.lane.b32.xlu1 %v22366_v55, %s22027_s28  ;;  %v22392_v0 = vpop.f32.mrb[24].mxu1 }
 0x18f   : > { %v21096_v1 = vpop.permute.xlu0 %21095 }
 0x190   : > { %v21106_v2 = vpop.permute.xlu1 %21105  ;;  %v21098_v3 = vunpack.i.h.bf16 %v21096_v1  ;;  %v21097_v4 = vunpack.i.l.bf16 %v21096_v1 }
 0x191   : > { %v21108_v5 = vunpack.i.h.bf16 %v21106_v2  ;;  %v21107_v6 = vunpack.i.l.bf16 %v21106_v2 }
 0x192   : > { %v20688_v8 = vpack.c.bf16 %v21098_v3, %v21097_v4 }
 0x193   : > { %v20700_v9 = vpack.c.bf16 %v21108_v5, %v21107_v6  ;;  %v21101_v10 = vpop.permute.xlu0 %21100 }
 0x194   : > { %v21111_v11 = vpop.permute.xlu1 %21110  ;;  %v21103_v12 = vunpack.i.h.bf16 %v21101_v10  ;;  %v21102_v13 = vunpack.i.l.bf16 %v21101_v10  ;;  %20690 = vmatprep.subr.msk.bf16.mxu0 %vm22396_vm2, %v20688_v8 }
 0x195   : > { %v21113_v14 = vunpack.i.h.bf16 %v21111_v11  ;;  %v21112_v15 = vunpack.i.l.bf16 %v21111_v11  ;;  %20693 = vmatpush3.bf16.xpose.msk.msra.mxu0 %vm22396_vm2, %v20688_v8 }
 0x196   : > { %v20694_v16 = vpack.c.bf16 %v21103_v12, %v21102_v13  ;;  %20702 = vmatprep.subr.msk.bf16.mxu0 %vm22396_vm2, %v20700_v9 }
 0x197   : > { %v20706_v17 = vpack.c.bf16 %v21113_v14, %v21112_v15 }
 0x198   : > { %v21116_v18 = vpop.permute.xlu0 %21115  ;;  %20696 = vmatprep.subr.msk.bf16.mxu1 %vm22396_vm2, %v20694_v16 }
 0x199   : > { %v21118_v19 = vunpack.i.h.bf16 %v21116_v18  ;;  %v21117_v20 = vunpack.i.l.bf16 %v21116_v18  ;;  %20699 = vmatpush3.bf16.xpose.msk.msra.mxu1 %vm22396_vm2, %v20694_v16 }
 0x19a   : > { %20708 = vmatprep.subr.msk.bf16.mxu1 %vm22396_vm2, %v20706_v17 }
 0x19b   : > { %v20712_v21 = vpack.c.bf16 %v21118_v19, %v21117_v20 }
 0x19c   : > { %v21121_v22 = vpop.permute.xlu1 %21120  ;;  %19549 = vmatmul.mubr.msk.f32.vlgmr.msra.gmra.mrb[4].mxu0 %vm615_vm1, %v22264_v28 }
 0x19d   : > { %v21123_v23 = vunpack.i.h.bf16 %v21121_v22  ;;  %v21122_v24 = vunpack.i.l.bf16 %v21121_v22  ;;  %20705 = vmatpush3.bf16.xpose.msk.msra.mxu0 %vm22396_vm2, %v20700_v9  ;;  %19562 = vmatprep.mubr.msk.f32.mxu0 %vm615_vm1, %v22270_v31 }
 0x19e   : > { %20714 = vmatprep.subr.msk.bf16.mxu0 %vm22396_vm2, %v20712_v21 }
 0x19f   : > { %v20718_v25 = vpack.c.bf16 %v21123_v23, %v21122_v24  ;;  %v22466_v24 = vpop.f32.mrb[25].mxu1 }
 0x1a0   : > { %v21126_v26 = vpop.permute.xlu0 %21125  ;;  %19556 = vmatmul.mubr.msk.f32.vlgmr.msra.gmra.mrb[28].mxu1 %vm615_vm1, %v22284_v34 }
 0x1a1   : > { %v21128_v27 = vunpack.i.h.bf16 %v21126_v26  ;;  %v21127_v1 = vunpack.i.l.bf16 %v21126_v26  ;;  %20711 = vmatpush3.bf16.xpose.msk.msra.mxu1 %vm22396_vm2, %v20706_v17  ;;  %19569 = vmatprep.mubr.msk.f32.mxu1 %vm615_vm1, %v22292_v37 }
 0x1a2   : > { %20720 = vmatprep.subr.msk.bf16.mxu1 %vm22396_vm2, %v20718_v25 }
 0x1a3   : > { %v20724_v2 = vpack.c.bf16 %v21128_v27, %v21127_v1 }
 0x1a4   : > { %v21131_v3 = vpop.permute.xlu1 %21130  ;;  %19563 = vmatmul.mubr.msk.f32.vlgmr.msra.gmra.mrb[6].mxu0 %vm615_vm1, %v22266_v29  ;;  %v21141_v11 = vpop.permute.xlu0 %21140 }
 0x1a5   : > { %v21133_v4 = vunpack.i.h.bf16 %v21131_v3  ;;  %v21132_v5 = vunpack.i.l.bf16 %v21131_v3  ;;  %20717 = vmatpush3.bf16.xpose.msk.msra.mxu0 %vm22396_vm2, %v20712_v21  ;;  %19576 = vmatprep.mubr.msk.f32.mxu0 %vm615_vm1, %v22310_v41  ;;  %v21143_v13 = vunpack.i.h.bf16 %v21141_v11  ;;  %v21142_v14 = vunpack.i.l.bf16 %v21141_v11 }
 0x1a6   : > { %20726 = vmatprep.subr.msk.bf16.mxu0 %vm22396_vm2, %v20724_v2 }
 0x1a7   : > { %v20730_v6 = vpack.c.bf16 %v21133_v4, %v21132_v5  ;;  %v20740_v18 = vpack.c.bf16 %v21143_v13, %v21142_v14 }
 0x1a8   : > { %v21136_v8 = vpop.permute.xlu1 %21135  ;;  %19570 = vmatmul.mubr.msk.f32.vlgmr.msra.gmra.mrb[30].mxu1 %vm615_vm1, %v22286_v35 }
 0x1a9   : > { %v21138_v9 = vunpack.i.h.bf16 %v21136_v8  ;;  %v21137_v10 = vunpack.i.l.bf16 %v21136_v8  ;;  %20723 = vmatpush3.bf16.xpose.msk.msra.mxu1 %vm22396_vm2, %v20718_v25  ;;  %19583 = vmatprep.mubr.msk.f32.mxu1 %vm615_vm1, %v22320_v44  ;;  %v22468_v25 = vpop.f32.mrb[26].mxu1 }
 0x1aa   : > { %20732 = vmatprep.subr.msk.bf16.mxu1 %vm22396_vm2, %v20730_v6  ;;  %v22470_v26 = vpop.f32.mrb[27].mxu1 }
 0x1ab   : > { %v20736_v15 = vpack.c.bf16 %v21138_v9, %v21137_v10 }
 0x1ac   : > { %v21146_v12 = vpop.permute.xlu1 %21145  ;;  %19577 = vmatmul.mubr.msk.f32.vlgmr.msra.gmra.mrb[8].mxu0 %vm615_vm1, %v22306_v40 }
 0x1ad   : > { %20729 = vmatpush3.bf16.xpose.msk.msra.mxu0 %vm22396_vm2, %v20724_v2  ;;  %19590 = vmatprep.mubr.msk.f32.mxu0 %vm615_vm1, %v22330_v47  ;;  %v21148_v16 = vunpack.i.h.bf16 %v21146_v12  ;;  %v21147_v17 = vunpack.i.l.bf16 %v21146_v12 }
 0x1ae   : > { %20737 = vmatprep.subr.bf16.mxu0 %v20736_v15 }
 0x1af   : > { %v22458_v22 = vpack.c.bf16 %v21148_v16, %v21147_v17 }
 0x1b0   : > { %19584 = vmatmul.mubr.msk.f32.vlgmr.msra.gmra.mrb[32].mxu1 %vm615_vm1, %v22316_v43  ;;  %v21151_v19 = vpop.permute.xlu1 %21150 }
 0x1b1   : > { %20735 = vmatpush3.bf16.xpose.msk.msra.mxu1 %vm22396_vm2, %v20730_v6  ;;  %19597 = vmatprep.mubr.msk.f32.mxu1 %vm615_vm1, %v22340_v50  ;;  %v21153_v20 = vunpack.i.h.bf16 %v21151_v19  ;;  %v21152_v21 = vunpack.i.l.bf16 %v21151_v19 }
 0x1b2   : > { %20741 = vmatprep.subr.bf16.mxu1 %v20740_v18 }
 0x1b3   : > { %v22463_v23 = vpack.c.bf16 %v21153_v20, %v21152_v21 }
 0x1b4   : > { %19591 = vmatmul.mubr.msk.f32.vlgmr.msra.gmra.mrb[10].mxu0 %vm615_vm1, %v22326_v46 }
 0x1b5   : > { %20739 = vmatpush3.bf16.msra.mxu0 %v20736_v15 }
 0x1b6   : > { %20745 = vmatprep.subr.bf16.mxu0 %v22458_v22 }
 0x1b8   : > { %19598 = vmatmul.mubr.msk.f32.vlgmr.msra.gmra.mrb[34].mxu1 %vm615_vm1, %v22336_v49 }
 0x1b9   : > { %20743 = vmatpush3.bf16.msra.mxu1 %v20740_v18 }
 0x1ba   : > { %20749 = vmatprep.subr.bf16.mxu1 %v22463_v23 }
 0x26f   : > { %v22472_v27 = vpop.f32.mrb[4].mxu0 }
 0x270   : > { %v22474_v1 = vpop.f32.mrb[5].mxu0  ;;  %v1326_v2 = vsel %vm1322_vm3, %v22472_v27, -inf }
 0x271   : > { %1327 = vmax.xlane.f32.xlu1 %v1326_v2  ;;  %v1323_v3 = vsel %vm1322_vm3, %v22474_v1, -inf }
 0x272   : > { %1324 = vmax.xlane.f32.xlu0 %v1323_v3 }
 0x273   : > { %v22480_v4 = vpop.f32.mrb[28].mxu1 }
 0x274   : > { %v22482_v5 = vpop.f32.mrb[29].mxu1  ;;  %v1332_v6 = vsel %vm1322_vm3, %v22480_v4, -inf }
 0x275   : > { %1333 = vmax.xlane.f32.xlu1 %v1332_v6  ;;  %v1329_v8 = vsel %vm1322_vm3, %v22482_v5, -inf }
 0x276   : > { %1330 = vmax.xlane.f32.xlu0 %v1329_v8 }
 0x277   : > { %v22488_v9 = vpop.f32.mrb[6].mxu0 }
 0x278   : > { %v22490_v10 = vpop.f32.mrb[7].mxu0  ;;  %v1338_v11 = vsel %vm1322_vm3, %v22488_v9, -inf }
 0x279   : > { %v1335_v15 = vsel %vm1322_vm3, %v22490_v10, -inf }
 0x27a   : > { %1339 = vmax.xlane.f32.xlu0 %v1338_v11 }
 0x27b   : > { %v22494_v12 = vpop.f32.mrb[30].mxu1 }
 0x27c   : > { %v22496_v13 = vpop.f32.mrb[31].mxu1  ;;  %v1344_v14 = vsel %vm1322_vm3, %v22494_v12, -inf }
 0x27d   : > { %1345 = vmax.xlane.f32.xlu1 %v1344_v14  ;;  %v1341_v18 = vsel %vm1322_vm3, %v22496_v13, -inf }
 0x27e   : > { %1336 = vmax.xlane.f32.xlu0 %v1335_v15 }
 0x27f   : > { %v22502_v16 = vpop.f32.mrb[8].mxu0 }
 0x280   : > { %v22504_v17 = vpop.f32.mrb[9].mxu0  ;;  %v1350_v19 = vsel %vm1322_vm3, %v22502_v16, -inf }
 0x281   : > { %1342 = vmax.xlane.f32.xlu1 %v1341_v18  ;;  %v1347_v3 = vsel %vm1322_vm3, %v22504_v17, -inf }
 0x282   : > { %1351 = vmax.xlane.f32.xlu0 %v1350_v19 }
 0x283   : > { %v22510_v20 = vpop.f32.mrb[32].mxu1 }
 0x284   : > { %v22512_v21 = vpop.f32.mrb[33].mxu1  ;;  %v1356_v11 = vsel %vm1322_vm3, %v22510_v20, -inf }
 0x285   : > { %v1353_v2 = vsel %vm1322_vm3, %v22512_v21, -inf }
 0x286   : > { %1354 = vmax.xlane.f32.xlu1 %v1353_v2  ;;  %1348 = vmax.xlane.f32.xlu0 %v1347_v3 }
 0x287   : > { %v22518_v6 = vpop.f32.mrb[10].mxu0 }
 0x288   : > { %v22520_v8 = vpop.f32.mrb[11].mxu0  ;;  %v1362_v19 = vsel %vm1322_vm3, %v22518_v6, -inf }
 0x289   : > { %v1359_v14 = vsel %vm1322_vm3, %v22520_v8, -inf }
 0x28a   : > { %1357 = vmax.xlane.f32.xlu0 %v1356_v11  ;;  %1360 = vmax.xlane.f32.xlu1 %v1359_v14  ;;  %v21161_v11 = vpop.permute.xlu1 %21160  ;;  %v21156_v14 = vpop.permute.xlu0 %21155 }
 0x28b   : > { %v22526_v15 = vpop.f32.mrb[34].mxu1  ;;  %v21158_v35 = vunpack.i.h.bf16 %v21156_v14 }
 0x28c   : > { %v22528_v18 = vpop.f32.mrb[35].mxu1  ;;  %v1368_v3 = vsel %vm1322_vm3, %v22526_v15, -inf }
 0x28d   : > { %v1365_v2 = vsel %vm1322_vm3, %v22528_v18, -inf }
 0x28e   : > { %1363 = vmax.xlane.f32.xlu0 %v1362_v19  ;;  %1366 = vmax.xlane.f32.xlu1 %v1365_v2  ;;  %v22564_v19 = vpop.permute.xlu1 %21170  ;;  %v22566_v2 = vpop.permute.xlu0 %21165 }
 0x292   : > { %1369 = vmax.xlane.f32.xlu0 %v1368_v3  ;;  %v22568_v3 = vpop.permute.xlu1 %2355  ;;  %v22570_v7 = vpop.permute.xlu0 %2277 }
 0x29f   : > { %2511 = vrot.lane.b32.xlu1 %v22378_v59, %s22027_s28 }
 0x2a3   : > { %2667 = vrot.lane.b32.xlu1 %v22388_v63, %s22027_s28 }
 0x2a7   : > { %2823 = vrot.lane.b32.xlu1 %v22470_v26, %s22027_s28 }
 0x2a8   : > { %2433 = vrot.lane.b32.xlu0 %v22372_v57, %s22027_s28 }
 0x2ab   : > { %2948 = vrot.lane.b32.xlu1 %v22360_v53, %s22028_s16 }
 0x2ac   : > { %2589 = vrot.lane.b32.xlu0 %v22382_v61, %s22027_s28 }
 0x2af   : > { %3100 = vrot.lane.b32.xlu1 %v22372_v57, %s22028_s16 }
 0x2b0   : > { %2745 = vrot.lane.b32.xlu0 %v22466_v24, %s22027_s28 }
 0x2b3   : > { %3252 = vrot.lane.b32.xlu1 %v22382_v61, %s22028_s16 }
 0x2b4   : > { %3024 = vrot.lane.b32.xlu0 %v22366_v55, %s22028_s16 }
 0x2b7   : > { %3404 = vrot.lane.b32.xlu1 %v22466_v24, %s22028_s16 }
 0x2b8   : > { %3176 = vrot.lane.b32.xlu0 %v22378_v59, %s22028_s16 }
 0x2bb   : > { %3480 = vrot.lane.b32.xlu1 %v22470_v26, %s22028_s16 }
 0x2bc   : > { %3328 = vrot.lane.b32.xlu0 %v22388_v63, %s22028_s16 }
 0x2fe   : > { %v1328_v50 = vpop.xlane.xlu1 %1327 }
 0x2ff   : > { %v1372_v47 = vsub.f32 %v22472_v27, %v1328_v50  ;;  %v1325_v44 = vpop.xlane.xlu0 %1324 }
 0x300   : > { %v1371_v49 = vsub.f32 %v22474_v1, %v1325_v44  ;;  %v21157_v44 = vunpack.i.l.bf16 %v21156_v14 }
 0x301   : > { %v1389_v40 = vmul.f32 1.442695, %v1372_v47 }
 0x302   : > { %v1387_v46 = vmul.f32 1.442695, %v1371_v49  ;;  %v1334_v48 = vpop.xlane.xlu1 %1333 }
 0x303   : > { %v1374_v43 = vsub.f32 %v22480_v4, %v1334_v48  ;;  %v1331_v37 = vpop.xlane.xlu0 %1330  ;;  %v21162_v4 = vunpack.i.l.bf16 %v21161_v11 }
 0x304   : > { %21414 = vpow2.f32 %v1387_v46  ;;  %v1373_v51 = vsub.f32 %v22482_v5, %v1331_v37 }
 0x305   : > { %21416 = vpow2.f32 %v1389_v40  ;;  %v1393_v29 = vmul.f32 1.442695, %v1374_v43 }
 0x306   : > { %v1391_v41 = vmul.f32 1.442695, %v1373_v51  ;;  %v21163_v51 = vunpack.i.h.bf16 %v21161_v11 }
 0x307   : > { %v1340_v42 = vpop.xlane.xlu0 %1339 }
 0x308   : > { %21418 = vpow2.f32 %v1391_v41  ;;  %v1376_v50 = vsub.f32 %v22488_v9, %v1340_v42  ;;  %v20752_v42 = vpack.c.bf16 %v21158_v35, %v21157_v44 }
 0x309   : > { %21420 = vpow2.f32 %v1393_v29 }
 0x30a   : > { %v1346_v27 = vpop.xlane.xlu1 %1345  ;;  %v1397_v1 = vmul.f32 1.442695, %v1376_v50 }
 0x30b   : > { %v1337_v47 = vpop.xlane.xlu0 %1336  ;;  %v1378_v49 = vsub.f32 %v22494_v12, %v1346_v27 }
 0x30c   : > { %v1375_v48 = vsub.f32 %v22490_v10, %v1337_v47  ;;  %v21168_v47 = vunpack.i.h.bf16 %v22566_v2 }
 0x30d   : > { %v1401_v5 = vmul.f32 1.442695, %v1378_v49 }
 0x30e   : > { %v22579_v46 = vpop.eup %21414  ;;  %v1395_v37 = vmul.f32 1.442695, %v1375_v48  ;;  %v1343_v40 = vpop.xlane.xlu1 %1342 }
 0x30f   : > { %26450 = vst [vmem:[#allocation29_spill] sm:$0xff] %v22579_v46  ;;  %v22581_v43 = vpop.eup %21416  ;;  %v1377_v41 = vsub.f32 %v22496_v13, %v1343_v40  ;;  %19604 = vmatprep.mubr.msk.f32.mxu0 %vm1322_vm3, %v22579_v46  ;;  %v1352_v29 = vpop.xlane.xlu0 %1351 }
 0x310   : > { %26451 = vst [vmem:[#allocation30_spill] sm:$0xff] %v22581_v43  ;;  %21422 = vpow2.f32 %v1395_v37  ;;  %19605 = vmatmul.mubr.msk.f32.vlgmr.msra.gmra.mrb[12].mxu0 %vm1322_vm3, %v22581_v43  ;;  %v1380_v12 = vsub.f32 %v22502_v16, %v1352_v29  ;;  %v21173_v29 = vunpack.i.h.bf16 %v22564_v19 }
 0x311   : > { %21424 = vpow2.f32 %v1397_v1  ;;  %v1399_v9 = vmul.f32 1.442695, %v1377_v41  ;;  %20747 = vmatpush3.bf16.msra.mxu0 %v22458_v22  ;;  %v20756_v22 = vpack.c.bf16 %v21163_v51, %v21162_v4  ;;  %v21167_v1 = vunpack.i.l.bf16 %v22566_v2 }
 0x312   : > { %v22589_v10 = vpop.eup %21418  ;;  %20753 = vmatprep.subr.bf16.mxu0 %v20752_v42  ;;  %v1405_v16 = vmul.f32 1.442695, %v1380_v12  ;;  %v21172_v51 = vunpack.i.l.bf16 %v22564_v19 }
 0x313   : > { %26452 = vst [vmem:[#allocation31_spill] sm:$0xff] %v22589_v10  ;;  %v22592_v13 = vpop.eup %21420  ;;  %21426 = vpow2.f32 %v1399_v9  ;;  %v1355_v35 = vpop.xlane.xlu1 %1354  ;;  %19611 = vmatprep.mubr.msk.f32.mxu1 %vm1322_vm3, %v22589_v10 }
 0x314   : > { %26453 = vst [vmem:[#allocation32_spill] sm:$0xff] %v22592_v13  ;;  %v1349_v11 = vpop.xlane.xlu0 %1348  ;;  %21428 = vpow2.f32 %v1401_v5  ;;  %v1381_v14 = vsub.f32 %v22512_v21, %v1355_v35  ;;  %19612 = vmatmul.mubr.msk.f32.vlgmr.msra.gmra.mrb[36].mxu1 %vm1322_vm3, %v22592_v13  ;;  %v20760_v5 = vpack.c.bf16 %v21168_v47, %v21167_v1 }
 0x315   : > { %v1379_v50 = vsub.f32 %v22504_v17, %v1349_v11  ;;  %20751 = vmatpush3.bf16.msra.mxu1 %v22463_v23 }
 0x316   : > { %v1407_v27 = vmul.f32 1.442695, %v1381_v14  ;;  %20757 = vmatprep.subr.bf16.mxu1 %v20756_v22 }
 0x317   : > { %v1403_v44 = vmul.f32 1.442695, %v1379_v50  ;;  %v1361_v48 = vpop.xlane.xlu1 %1360 }
 0x318   : > { %v1358_v49 = vpop.xlane.xlu0 %1357  ;;  %21430 = vpow2.f32 %v1407_v27  ;;  %v1383_v17 = vsub.f32 %v22520_v8, %v1361_v48  ;;  %v26297_v27 = vmov 0.0  }
 0x319   : > { %v1382_v21 = vsub.f32 %v22510_v20, %v1358_v49  ;;  %21432 = vpow2.f32 %v1403_v44 }
 0x31a   : > { %v22605_v37 = vpop.eup %21422  ;;  %21434 = vpow2.f32 %v1405_v16  ;;  %v1411_v40 = vmul.f32 1.442695, %v1383_v17 }
 0x31b   : > { %26454 = vst [vmem:[#allocation33_spill] sm:$0xff] %v22605_v37  ;;  %v1409_v23 = vmul.f32 1.442695, %v1382_v21  ;;  %v22607_v41 = vpop.eup %21424  ;;  %19618 = vmatprep.mubr.msk.f32.mxu0 %vm1322_vm3, %v22605_v37  ;;  %v1367_v4 = vpop.xlane.xlu1 %1366 }
 0x31c   : > { %26455 = vst [vmem:[#allocation34_spill] sm:$0xff] %v22607_v41  ;;  %v1364_v2 = vpop.xlane.xlu0 %1363  ;;  %v1385_v8 = vsub.f32 %v22528_v18, %v1367_v4  ;;  %19619 = vmatmul.mubr.msk.f32.vlgmr.msra.gmra.mrb[14].mxu0 %vm1322_vm3, %v22607_v41  ;;  %v20764_v18 = vpack.c.bf16 %v21173_v29, %v21172_v51 }
 0x31d   : > { %21436 = vpow2.f32 %v1409_v23  ;;  %v1384_v20 = vsub.f32 %v22518_v6, %v1364_v2  ;;  %v22617_v9 = vpop.eup %21426  ;;  %20755 = vmatpush3.bf16.msra.mxu0 %v20752_v42 }
 0x31e   : > { %26456 = vst [vmem:[#allocation35_spill] sm:$0xff] %v22617_v9  ;;  %21438 = vpow2.f32 %v1411_v40  ;;  %v22619_v12 = vpop.eup %21428  ;;  %v1415_v35 = vmul.f32 1.442695, %v1385_v8  ;;  %20761 = vmatprep.subr.bf16.mxu0 %v20760_v5  ;;  %19625 = vmatprep.mubr.msk.f32.mxu1 %vm1322_vm3, %v22617_v9 }
 0x31f   : > { %26457 = vst [vmem:[#allocation36_spill] sm:$0xff] %v22619_v12  ;;  %v1413_v19 = vmul.f32 1.442695, %v1384_v20  ;;  %19626 = vmatmul.mubr.msk.f32.vlgmr.msra.gmra.mrb[38].mxu1 %vm1322_vm3, %v22619_v12  ;;  %v2512_v49 = vpop.permute.xlu1 %2511 }
 0x320   : > { %v1370_v6 = vpop.xlane.xlu0 %1369  ;;  %20759 = vmatpush3.bf16.msra.mxu1 %v20756_v22 }
 0x321   : > { %21440 = vpow2.f32 %v1413_v19  ;;  %v1386_v11 = vsub.f32 %v22526_v15, %v1370_v6  ;;  %20765 = vmatprep.subr.bf16.mxu1 %v20764_v18 }
 0x322   : > { %21442 = vpow2.f32 %v1415_v35  ;;  %v22626_v42 = vpop.eup %21430 }
 0x323   : > { %26458 = vst [vmem:[#allocation37_spill] sm:$0xff] %v22626_v42  ;;  %v1417_v14 = vmul.f32 1.442695, %v1386_v11  ;;  %v22628_v50 = vpop.eup %21432  ;;  %19639 = vmatprep.mubr.msk.f32.mxu1 %vm1322_vm3, %v22626_v42  ;;  %v2668_v21 = vpop.permute.xlu1 %2667 }
 0x324   : > { %26459 = vst [vmem:[#allocation38_spill] sm:$0xff] %v22628_v50  ;;  %v22632_v16 = vpop.eup %21434  ;;  %19632 = vmatprep.mubr.msk.f32.mxu0 %vm1322_vm3, %v22628_v50  ;;  %v2434_v1 = vpop.permute.xlu0 %2433  ;;  %v26509_v50 = vld [vmem:[#allocation23_spill] sm:$0xff] }
 0x325   : > { %26460 = vst [vmem:[#allocation39_spill] sm:$0xff] %v22632_v16  ;;  %21444 = vpow2.f32 %v1417_v14  ;;  %19633 = vmatmul.mubr.msk.f32.vlgmr.msra.gmra.mrb[16].mxu0 %vm1322_vm3, %v22632_v16  ;;  %v26513_v16 = vld [vmem:[#allocation24_spill] sm:$0xff] }
 0x326   : > { %20763 = vmatpush3.bf16.msra.mxu0 %v20760_v5 }
 0x327   : > { %v22638_v15 = vpop.eup %21436  ;;  %19656 = vmatprep.subr.mxu0 %v26297_v27 }
 0x328   : > { %26461 = vst [vmem:[#allocation40_spill] sm:$0xff] %v22638_v15  ;;  %v22640_v22 = vpop.eup %21438  ;;  %19640 = vmatmul.mubr.msk.f32.vlgmr.msra.gmra.mrb[40].mxu1 %vm1322_vm3, %v22638_v15 }
 0x329   : > { %26462 = vst [vmem:[#allocation41_spill] sm:$0xff] %v22640_v22  ;;  %20767 = vmatpush3.bf16.msra.mxu1 %v20764_v18  ;;  %19646 = vmatprep.mubr.msk.f32.mxu0 %vm1322_vm3, %v22640_v22 }
 0x32a   : > { %19661 = vmatprep.subr.mxu1 %v26297_v27 }
 0x32b   : > { %v22648_v44 = vpop.eup %21440 }
 0x32c   : > { %26463 = vst [vmem:[#allocation42_spill] sm:$0xff] %v22648_v44  ;;  %v22650_v47 = vpop.eup %21442  ;;  %19647 = vmatmul.mubr.msk.f32.vlgmr.msra.gmra.mrb[18].mxu0 %vm1322_vm3, %v22648_v44 }
 0x32d   : > { %26464 = vst [vmem:[#allocation43_spill] sm:$0xff] %v22650_v47  ;;  %19653 = vmatprep.mubr.msk.f32.mxu1 %vm1322_vm3, %v22650_v47  ;;  %19658 = vmatprep.mubr.msk.f32.mxu0 %vm22030_vm4, %v26297_v27 }
 0x32f   : > { %v22658_v48 = vpop.eup %21444  ;;  %19657 = vmatpush3.xpose.msk.msra.mxu0 %vm615_vm1, %v22570_v7  ;;  %v2590_v7 = vpop.permute.xlu0 %2589 }
 0x330   : > { %26465 = vst [vmem:[#allocation44_spill] sm:$0xff] %v22658_v48  ;;  %19654 = vmatmul.mubr.msk.f32.vlgmr.msra.gmra.mrb[42].mxu1 %vm1322_vm3, %v22658_v48  ;;  %19666 = vmatprep.subr.mxu0 %v26297_v27 }
 0x331   : > { %19663 = vmatprep.mubr.msk.f32.mxu1 %vm22030_vm4, %v26297_v27 }
 0x332   : > { %19662 = vmatpush3.xpose.msk.msra.mxu1 %vm615_vm1, %v22568_v3  ;;  %19659 = vmatmul.mubr.msk.f32.vlgmr.msra.gmra.mrb[20].mxu0 %vm615_vm1, %v22358_v52  ;;  %v2824_v3 = vpop.permute.xlu1 %2823 }
 0x333   : > { %19671 = vmatprep.subr.mxu1 %v26297_v27  ;;  %19667 = vmatpush3.xpose.msk.msra.mxu0 %vm615_vm1, %v2434_v1  ;;  %v2746_v17 = vpop.permute.xlu0 %2745 }
 0x334   : > { %19668 = vmatprep.mubr.msk.f32.mxu0 %vm22030_vm4, %v26297_v27  ;;  %19676 = vmatprep.subr.mxu0 %v26297_v27 }
 0x335   : > { %19664 = vmatmul.mubr.msk.f32.vlgmr.msra.gmra.mrb[44].mxu1 %vm615_vm1, %v22362_v54 }
 0x336   : > { %19672 = vmatpush3.xpose.msk.msra.mxu1 %vm615_vm1, %v2512_v49  ;;  %19673 = vmatprep.mubr.msk.f32.mxu1 %vm22030_vm4, %v26297_v27  ;;  %v2949_v23 = vpop.permute.xlu1 %2948 }
 0x337   : > { %19669 = vmatmul.mubr.msk.f32.vlgmr.msra.gmra.mrb[22].mxu0 %vm615_vm1, %v22370_v56  ;;  %19681 = vmatprep.subr.mxu1 %v26297_v27  ;;  %v3025_v40 = vpop.permute.xlu0 %3024 }
 0x338   : > { %19677 = vmatpush3.xpose.msk.msra.mxu0 %vm615_vm1, %v2590_v7  ;;  %19678 = vmatprep.mubr.msk.f32.mxu0 %vm22030_vm4, %v26297_v27 }
 0x339   : > { %19674 = vmatmul.mubr.msk.f32.vlgmr.msra.gmra.mrb[46].mxu1 %vm615_vm1, %v22374_v58  ;;  %19686 = vmatprep.subr.mxu0 %v26297_v27 }
 0x33a   : > { %19682 = vmatpush3.xpose.msk.msra.mxu1 %vm615_vm1, %v2668_v21  ;;  %19683 = vmatprep.mubr.msk.f32.mxu1 %vm22030_vm4, %v26297_v27 }
 0x33b   : > { %19679 = vmatmul.mubr.msk.f32.vlgmr.msra.gmra.mrb[24].mxu0 %vm615_vm1, %v22380_v60  ;;  %19691 = vmatprep.subr.mxu1 %v26297_v27 }
 0x33c   : > { %19687 = vmatpush3.xpose.msk.msra.mxu0 %vm615_vm1, %v2746_v17  ;;  %19688 = vmatprep.mubr.msk.f32.mxu0 %vm22030_vm4, %v26297_v27 }
 0x33d   : > { %19684 = vmatmul.mubr.msk.f32.vlgmr.msra.gmra.mrb[48].mxu1 %vm615_vm1, %v22386_v62  ;;  %19696 = vmatprep.subr.mxu0 %v26297_v27 }
 0x33e   : > { %19692 = vmatpush3.xpose.msk.msra.mxu1 %vm615_vm1, %v2824_v3  ;;  %19693 = vmatprep.mubr.msk.f32.mxu1 %vm22030_vm4, %v26297_v27 }
 0x33f   : > { %19689 = vmatmul.mubr.msk.f32.vlgmr.msra.gmra.mrb[26].mxu0 %vm615_vm1, %v22392_v0  ;;  %19701 = vmatprep.subr.mxu1 %v26297_v27 }
 0x340   : > { %19697 = vmatpush3.msra.mxu0 %v2949_v23  ;;  %19698 = vmatprep.mubr.msk.f32.mxu0 %vm22030_vm4, %v26297_v27 }
 0x341   : > { %19694 = vmatmul.mubr.msk.f32.vlgmr.msra.gmra.mrb[50].mxu1 %vm615_vm1, %v22468_v25  ;;  %19706 = vmatprep.subr.mxu0 %v26297_v27 }
 0x342   : > { %19702 = vmatpush3.msra.mxu1 %v3025_v40  ;;  %19703 = vmatprep.mubr.msk.f32.mxu1 %vm22030_vm4, %v26297_v27 }
 0x343   : > { %19711 = vmatprep.subr.mxu1 %v26297_v27 }
 0x3e3   : > { %v22716_v29 = vpop.f32.mrb[12].mxu0 }
 0x3e4   : > { %26466 = vst [vmem:[#allocation45_spill] sm:$0xff] %v22716_v29  ;;  %v22718_v51 = vpop.f32.mrb[13].mxu0 }
 0x3e5   : > { %26467 = vst [vmem:[#allocation46_spill] sm:$0xff] %v22718_v51 }
 0x3e7   : > { %v22720_v2 = vpop.f32.mrb[36].mxu1 }
 0x3e8   : > { %26468 = vst [vmem:[#allocation47_spill] sm:$0xff] %v22720_v2  ;;  %v22722_v4 = vpop.f32.mrb[37].mxu1 }
 0x3e9   : > { %26469 = vst [vmem:[#allocation48_spill] sm:$0xff] %v22722_v4 }
 0x3ef   : > { %v22724_v20 = vpop.f32.mrb[14].mxu0 }
 0x3f0   : > { %26470 = vst [vmem:[#allocation49_spill] sm:$0xff] %v22724_v20  ;;  %v22726_v8 = vpop.f32.mrb[15].mxu0 }
 0x3f1   : > { %26471 = vst [vmem:[#allocation50_spill] sm:$0xff] %v22726_v8 }
 0x3f2   : > { %v22728_v5 = vpop.f32.mrb[38].mxu1 }
 0x3f3   : > { %26472 = vst [vmem:[#allocation51_spill] sm:$0xff] %v22728_v5  ;;  %v22730_v19 = vpop.f32.mrb[39].mxu1 }
 0x3f4   : > { %26473 = vst [vmem:[#allocation52_spill] sm:$0xff] %v22730_v19 }
 0x3f8   : > { %v22732_v35 = vpop.f32.mrb[16].mxu0 }
 0x3f9   : > { %26474 = vst [vmem:[#allocation53_spill] sm:$0xff] %v22732_v35  ;;  %v22734_v6 = vpop.f32.mrb[17].mxu0 }
 0x3fa   : > { %26475 = vst [vmem:[#allocation54_spill] sm:$0xff] %v22734_v6 }
 0x3fb   : > { %v22736_v18 = vpop.f32.mrb[40].mxu1 }
 0x3fc   : > { %26476 = vst [vmem:[#allocation55_spill] sm:$0xff] %v22736_v18  ;;  %v22738_v11 = vpop.f32.mrb[41].mxu1 }
 0x3fd   : > { %26477 = vst [vmem:[#allocation56_spill] sm:$0xff] %v22738_v11 }
 0x3ff   : > { %v22740_v14 = vpop.f32.mrb[18].mxu0 }
 0x400   : > { %26478 = vst [vmem:[#allocation57_spill] sm:$0xff] %v22740_v14  ;;  %v22742_v49 = vpop.f32.mrb[19].mxu0 }
 0x401   : > { %26479 = vst [vmem:[#allocation58_spill] sm:$0xff] %v22742_v49 }
 0x403   : > { %v22744_v1 = vpop.f32.mrb[42].mxu1 }
 0x404   : > { %26480 = vst [vmem:[#allocation59_spill] sm:$0xff] %v22744_v1  ;;  %v22746_v21 = vpop.f32.mrb[43].mxu1 }
 0x405   : > { %26481 = vst [vmem:[#allocation60_spill] sm:$0xff] %v22746_v21  ;;  %v22748_v7 = vpop.f32.mrb[20].mxu0 }
 0x406   : > { %v19660_v3 = vpop.f32.mrb[21].mxu0  ;;  %v2900_v17 = vsel %vm615_vm1, %v22748_v7, -inf }
 0x407   : > { %2901 = vmax.xlane.f32.xlu0 %v2900_v17 }
 0x408   : > { %v22752_v23 = vpop.f32.mrb[44].mxu1 }
 0x409   : > { %v19665_v40 = vpop.f32.mrb[45].mxu1  ;;  %v2903_v27 = vsel %vm615_vm1, %v22752_v23, -inf }
 0x40a   : > { %v22756_v14 = vpop.f32.mrb[22].mxu0  ;;  %2904 = vmax.xlane.f32.xlu1 %v2903_v27 }
 0x40b   : > { %v19670_v49 = vpop.f32.mrb[23].mxu0  ;;  %v2906_v21 = vsel %vm615_vm1, %v22756_v14, -inf }
 0x40c   : > { %2907 = vmax.xlane.f32.xlu0 %v2906_v21  ;;  %v22760_v1 = vpop.f32.mrb[46].mxu1 }
 0x40d   : > { %v19675_v3 = vpop.f32.mrb[47].mxu1  ;;  %v2909_v17 = vsel %vm615_vm1, %v22760_v1, -inf }
 0x40e   : > { %v22764_v11 = vpop.f32.mrb[24].mxu0 }
 0x40f   : > { %v19680_v40 = vpop.f32.mrb[25].mxu0  ;;  %v2912_v18 = vsel %vm615_vm1, %v22764_v11, -inf }
 0x410   : > { %2913 = vmax.xlane.f32.xlu1 %v2912_v18  ;;  %2910 = vmax.xlane.f32.xlu0 %v2909_v17  ;;  %v22768_v27 = vpop.f32.mrb[48].mxu1  ;;  %v3177_v17 = vpop.permute.xlu0 %3176 }
 0x411   : > { %v19685_v49 = vpop.f32.mrb[49].mxu1  ;;  %v2915_v21 = vsel %vm615_vm1, %v22768_v27, -inf }
 0x412   : > { %v22772_v6 = vpop.f32.mrb[26].mxu0 }
 0x413   : > { %v19690_v3 = vpop.f32.mrb[27].mxu0  ;;  %v2918_v35 = vsel %vm615_vm1, %v22772_v6, -inf }
 0x414   : > { %2919 = vmax.xlane.f32.xlu1 %v2918_v35  ;;  %2916 = vmax.xlane.f32.xlu0 %v2915_v21  ;;  %v22776_v40 = vpop.f32.mrb[50].mxu1  ;;  %v3101_v35 = vpop.permute.xlu1 %3100 }
 0x415   : > { %v19695_v19 = vpop.f32.mrb[51].mxu1  ;;  %v3329_v21 = vpop.permute.xlu0 %3328 }
 0x416   : > { %v2921_v19 = vsel %vm615_vm1, %v22776_v40, -inf }
 0x418   : > { %v3253_v18 = vpop.permute.xlu1 %3252 }
 0x41c   : > { %v3405_v49 = vpop.permute.xlu1 %3404 }
 0x420   : > { %v3481_v3 = vpop.permute.xlu1 %3480 }
 0x425   : > { %3680 = vrot.lane.b32.xlu1 %v22362_v54, %s22027_s28 }
 0x429   : > { %3832 = vrot.lane.b32.xlu1 %v22374_v58, %s22027_s28 }
 0x42a   : > { %3604 = vrot.lane.b32.xlu0 %v22358_v52, %s22027_s28 }
 0x42d   : > { %3984 = vrot.lane.b32.xlu1 %v22386_v62, %s22027_s28 }
 0x431   : > { %4136 = vrot.lane.b32.xlu1 %v22468_v25, %s22027_s28 }
 0x435   : > { %4260 = vrot.lane.b32.xlu1 %v22358_v52, %s22028_s16 }
 0x439   : > { %4412 = vrot.lane.b32.xlu1 %v22370_v56, %s22028_s16 }
 0x43d   : > { %4564 = vrot.lane.b32.xlu1 %v22380_v60, %s22028_s16 }
 0x441   : > { %4716 = vrot.lane.b32.xlu1 %v22392_v0, %s22028_s16 }
 0x445   : > { %4792 = vrot.lane.b32.xlu1 %v22468_v25, %s22028_s16 }
 0x449   : > { %21180 = vrot.lane.b32.xlu1 %v22298_v38, %s22031_s8  ;;  %2922 = vmax.xlane.f32.xlu0 %v2921_v19 }
 0x44d   : > { %4916 = vrot.lane.b32.xlu1 %v22268_v30, %s22032_s7 }
 0x451   : > { %21190 = vrot.lane.b32.xlu1 %v22302_v39, %s22031_s8 }
 0x45f   : > { %3756 = vrot.lane.b32.xlu0 %v22370_v56, %s22027_s28 }
 0x463   : > { %3908 = vrot.lane.b32.xlu0 %v22380_v60, %s22027_s28 }
 0x467   : > { %4060 = vrot.lane.b32.xlu0 %v22392_v0, %s22027_s28  ;;  %s22043_s28 = smov 24  }
 0x46b   : > { %4336 = vrot.lane.b32.xlu0 %v22362_v54, %s22028_s16 }
 0x46f   : > { %4488 = vrot.lane.b32.xlu0 %v22374_v58, %s22028_s16 }
 0x473   : > { %4640 = vrot.lane.b32.xlu0 %v22386_v62, %s22028_s16 }
 0x477   : > { %21175 = vrot.lane.b32.xlu0 %v22276_v32, %s22031_s8 }
 0x47b   : > { %21185 = vrot.lane.b32.xlu0 %v22280_v33, %s22031_s8 }
 0x47f   : > { %4918 = vrot.lane.b32.xlu0 %v22264_v28, %s22032_s7 }
 0x494   : > { %v2902_v19 = vpop.xlane.xlu0 %2901 }
 0x495   : > { %v2924_v5 = vsub.f32 %v22748_v7, %v2902_v19 }
 0x497   : > { %v2905_v8 = vpop.xlane.xlu1 %2904  ;;  %v2932_v20 = vmul.f32 1.442695, %v2924_v5 }
 0x498   : > { %v2925_v29 = vsub.f32 %v22752_v23, %v2905_v8 }
 0x499   : > { %v2908_v2 = vpop.xlane.xlu0 %2907  ;;  %21446 = vpow2.f32 %v2932_v20 }
 0x49a   : > { %v2934_v4 = vmul.f32 1.442695, %v2925_v29  ;;  %v2926_v51 = vsub.f32 %v22756_v14, %v2908_v2 }
 0x49c   : > { %21448 = vpow2.f32 %v2934_v4  ;;  %v2936_v47 = vmul.f32 1.442695, %v2926_v51 }
 0x49d   : > { %v2911_v48 = vpop.xlane.xlu0 %2910  ;;  %v2914_v22 = vpop.xlane.xlu1 %2913 }
 0x49e   : > { %21450 = vpow2.f32 %v2936_v47  ;;  %v2927_v44 = vsub.f32 %v22760_v1, %v2911_v48  ;;  %v2928_v42 = vsub.f32 %v22764_v11, %v2914_v22 }
 0x4a0   : > { %v2938_v15 = vmul.f32 1.442695, %v2927_v44  ;;  %v2940_v7 = vmul.f32 1.442695, %v2928_v42  ;;  %v26484_v42 = vmov 0.0  }
 0x4a1   : > { %v2917_v19 = vpop.xlane.xlu0 %2916  ;;  %v2920_v5 = vpop.xlane.xlu1 %2919 }
 0x4a2   : > { %21452 = vpow2.f32 %v2938_v15  ;;  %v2929_v8 = vsub.f32 %v22768_v27, %v2917_v19  ;;  %v2930_v29 = vsub.f32 %v22772_v6, %v2920_v5 }
 0x4a3   : > { %21454 = vpow2.f32 %v2940_v7  ;;  %v22831_v2 = vpop.eup %21446 }
 0x4a4   : > { %26482 = vst [vmem:[#allocation61_spill] sm:$0xff] %v22831_v2  ;;  %v2942_v51 = vmul.f32 1.442695, %v2929_v8  ;;  %v2944_v4 = vmul.f32 1.442695, %v2930_v29  ;;  %19699 = vmatmul.mubr.msk.f32.vlgmr.msra.gmra.mrb[28].mxu0 %vm615_vm1, %v22831_v2 }
 0x4a5   : > { %19707 = vmatpush3.msra.mxu0 %v3101_v35  ;;  %19708 = vmatprep.mubr.msk.f32.mxu0 %vm22030_vm4, %v26484_v42  ;;  %v3605_v6 = vpop.permute.xlu0 %3604  ;;  %v3681_v11 = vpop.permute.xlu1 %3680 }
 0x4a6   : > { %v22835_v47 = vpop.eup %21448  ;;  %21456 = vpow2.f32 %v2942_v51  ;;  %19716 = vmatprep.subr.mxu0 %v26484_v42 }
 0x4a7   : > { %26483 = vst [vmem:[#allocation62_spill] sm:$0xff] %v22835_v47  ;;  %21458 = vpow2.f32 %v2944_v4  ;;  %19704 = vmatmul.mubr.msk.f32.vlgmr.msra.gmra.mrb[52].mxu1 %vm615_vm1, %v22835_v47  ;;  %v26507_v47 = vld [vmem:[#allocation20_spill] sm:$0xff] }
 0x4a8   : > { %v22842_v15 = vpop.eup %21450  ;;  %19712 = vmatpush3.msra.mxu1 %v3177_v17  ;;  %19713 = vmatprep.mubr.msk.f32.mxu1 %vm22030_vm4, %v26484_v42 }
 0x4a9   : > { %26485 = vst [vmem:[#allocation63_spill] sm:$0xff] %v22842_v15  ;;  %19709 = vmatmul.mubr.msk.f32.vlgmr.msra.gmra.mrb[30].mxu0 %vm615_vm1, %v22842_v15  ;;  %19721 = vmatprep.subr.mxu1 %v26484_v42  ;;  %v3833_v14 = vpop.permute.xlu1 %3832  ;;  %v26508_v15 = vld [vmem:[#allocation14_spill] sm:$0xff] }
 0x4aa   : > { %19717 = vmatpush3.msra.mxu0 %v3253_v18  ;;  %19718 = vmatprep.mubr.msk.f32.mxu0 %vm22030_vm4, %v26484_v42 }
 0x4ab   : > { %19726 = vmatprep.subr.mxu0 %v26484_v42 }
 0x4ac   : > { %v22852_v22 = vpop.eup %21452 }
 0x4ad   : > { %26486 = vst [vmem:[#allocation64_spill] sm:$0xff] %v22852_v22  ;;  %v22854_v44 = vpop.eup %21454  ;;  %19714 = vmatmul.mubr.msk.f32.vlgmr.msra.gmra.mrb[54].mxu1 %vm615_vm1, %v22852_v22  ;;  %v3985_v35 = vpop.permute.xlu1 %3984  ;;  %v26506_v22 = vld [vmem:[#allocation22_spill] sm:$0xff] }
 0x4ae   : > { %26487 = vst [vmem:[#allocation65_spill] sm:$0xff] %v22854_v44  ;;  %19719 = vmatmul.mubr.msk.f32.vlgmr.msra.gmra.mrb[32].mxu0 %vm615_vm1, %v22854_v44  ;;  %19722 = vmatpush3.msra.mxu1 %v3329_v21 }
 0x4af   : > { %19727 = vmatpush3.msra.mxu0 %v3405_v49  ;;  %19723 = vmatprep.mubr.msk.f32.mxu1 %vm22030_vm4, %v26484_v42 }
 0x4b0   : > { %v22862_v48 = vpop.eup %21456  ;;  %19728 = vmatprep.mubr.msk.f32.mxu0 %vm22030_vm4, %v26484_v42  ;;  %19731 = vmatprep.subr.mxu1 %v26484_v42 }
 0x4b1   : > { %26488 = vst [vmem:[#allocation66_spill] sm:$0xff] %v22862_v48  ;;  %v22867_v20 = vpop.eup %21458  ;;  %19724 = vmatmul.mubr.msk.f32.vlgmr.msra.gmra.mrb[56].mxu1 %vm615_vm1, %v22862_v48  ;;  %19736 = vmatprep.subr.mxu0 %v26484_v42  ;;  %v4137_v49 = vpop.permute.xlu1 %4136  ;;  %v26505_v48 = vld [vmem:[#allocation17_spill] sm:$0xff] }
 0x4b2   : > { %26489 = vst [vmem:[#allocation67_spill] sm:$0xff] %v22867_v20  ;;  %19729 = vmatmul.mubr.msk.f32.vlgmr.msra.gmra.mrb[34].mxu0 %vm615_vm1, %v22867_v20  ;;  %19732 = vmatpush3.msra.mxu1 %v3481_v3 }
 0x4b3   : > { %19738 = vmatprep.mubr.msk.f32.mxu0 %vm22030_vm4, %v26484_v42  ;;  %19733 = vmatprep.mubr.msk.f32.mxu1 %vm22030_vm4, %v26484_v42 }
 0x4b4   : > { %19741 = vmatprep.subr.mxu1 %v26484_v42 }
 0x4b5   : > { %v4261_v3 = vpop.permute.xlu1 %4260 }
 0x4b6   : > { %19737 = vmatpush3.xpose.msk.msra.mxu0 %vm615_vm1, %v3605_v6 }
 0x4b7   : > { %19746 = vmatprep.subr.mxu0 %v26484_v42 }
 0x4b9   : > { %19739 = vmatmul.mubr.msk.f32.vlgmr.msra.gmra.mrb[36].mxu0 %vm615_vm1, %v22360_v53  ;;  %v4413_v2 = vpop.permute.xlu1 %4412 }
 0x4ba   : > { %19748 = vmatprep.mubr.msk.f32.mxu0 %vm22030_vm4, %v26484_v42 }
 0x4d6   : > { %v2923_v1 = vpop.xlane.xlu0 %2922 }
 0x4d7   : > { %v2931_v23 = vsub.f32 %v22776_v40, %v2923_v1 }
 0x4d9   : > { %v2946_v27 = vmul.f32 1.442695, %v2931_v23 }
 0x4da   : > { %v3757_v18 = vpop.permute.xlu0 %3756 }
 0x4db   : > { %21460 = vpow2.f32 %v2946_v27  ;;  %19747 = vmatpush3.xpose.msk.msra.mxu0 %vm615_vm1, %v3757_v18 }
 0x4dc   : > { %19756 = vmatprep.subr.mxu0 %v26484_v42 }
 0x4de   : > { %v3909_v17 = vpop.permute.xlu0 %3908  ;;  %19749 = vmatmul.mubr.msk.f32.vlgmr.msra.gmra.mrb[38].mxu0 %vm615_vm1, %v22372_v57 }
 0x4df   : > { %19757 = vmatpush3.xpose.msk.msra.mxu0 %vm615_vm1, %v3909_v17  ;;  %19758 = vmatprep.mubr.msk.f32.mxu0 %vm22030_vm4, %v26484_v42 }
 0x4e0   : > { %19766 = vmatprep.subr.mxu0 %v26484_v42 }
 0x4e2   : > { %v4061_v40 = vpop.permute.xlu0 %4060  ;;  %19759 = vmatmul.mubr.msk.f32.vlgmr.msra.gmra.mrb[40].mxu0 %vm615_vm1, %v22382_v61 }
 0x4e3   : > { %19767 = vmatpush3.xpose.msk.msra.mxu0 %vm615_vm1, %v4061_v40  ;;  %19768 = vmatprep.mubr.msk.f32.mxu0 %vm22030_vm4, %v26484_v42 }
 0x4e4   : > { %19776 = vmatprep.subr.mxu0 %v26484_v42 }
 0x4e5   : > { %v22900_v21 = vpop.eup %21460 }
 0x4e6   : > { %26490 = vst [vmem:[#allocation68_spill] sm:$0xff] %v22900_v21  ;;  %19734 = vmatmul.mubr.msk.f32.vlgmr.msra.gmra.mrb[58].mxu1 %vm615_vm1, %v22900_v21  ;;  %19769 = vmatmul.mubr.msk.f32.vlgmr.msra.gmra.mrb[42].mxu0 %vm615_vm1, %v22466_v24  ;;  %v4337_v7 = vpop.permute.xlu0 %4336 }
 0x4e7   : > { %19742 = vmatpush3.xpose.msk.msra.mxu1 %vm615_vm1, %v3681_v11  ;;  %19777 = vmatpush3.msra.mxu0 %v4261_v3 }
 0x4e8   : > { %19743 = vmatprep.mubr.msk.f32.mxu1 %vm22030_vm4, %v26484_v42  ;;  %19751 = vmatprep.subr.mxu1 %v26484_v42 }
 0x4e9   : > { %19778 = vmatprep.mubr.msk.f32.mxu0 %vm22030_vm4, %v26484_v42  ;;  %19786 = vmatprep.subr.mxu0 %v26484_v42 }
 0x4ea   : > { %19744 = vmatmul.mubr.msk.f32.vlgmr.msra.gmra.mrb[60].mxu1 %vm615_vm1, %v22366_v55 }
 0x4eb   : > { %19752 = vmatpush3.xpose.msk.msra.mxu1 %vm615_vm1, %v3833_v14  ;;  %19753 = vmatprep.mubr.msk.f32.mxu1 %vm22030_vm4, %v26484_v42 }
 0x4ec   : > { %19761 = vmatprep.subr.mxu1 %v26484_v42 }
 0x4ee   : > { %19754 = vmatmul.mubr.msk.f32.vlgmr.msra.gmra.mrb[62].mxu1 %vm615_vm1, %v22378_v59 }
 0x4ef   : > { %19762 = vmatpush3.xpose.msk.msra.mxu1 %vm615_vm1, %v3985_v35  ;;  %19763 = vmatprep.mubr.msk.f32.mxu1 %vm22030_vm4, %v26484_v42 }
 0x4f0   : > { %19771 = vmatprep.subr.mxu1 %v26484_v42 }
 0x4f2   : > { %19764 = vmatmul.mubr.msk.f32.vlgmr.msra.gmra.mrb[64].mxu1 %vm615_vm1, %v22388_v63 }
 0x4f3   : > { %19772 = vmatpush3.xpose.msk.msra.mxu1 %vm615_vm1, %v4137_v49  ;;  %19773 = vmatprep.mubr.msk.f32.mxu1 %vm22030_vm4, %v26484_v42 }
 0x4f4   : > { %19781 = vmatprep.subr.mxu1 %v26484_v42 }
 0x4f6   : > { %19774 = vmatmul.mubr.msk.f32.vlgmr.msra.gmra.mrb[66].mxu1 %vm615_vm1, %v22470_v26 }
 0x4f7   : > { %19782 = vmatpush3.msra.mxu1 %v4337_v7  ;;  %19783 = vmatprep.mubr.msk.f32.mxu1 %vm22030_vm4, %v26484_v42 }
 0x4f8   : > { %19791 = vmatprep.subr.mxu1 %v26484_v42 }
 0x577   : > { %v22936_v19 = vpop.f32.mrb[28].mxu0 }
 0x578   : > { %26491 = vst [vmem:[#allocation69_spill] sm:$0xff] %v22936_v19  ;;  %v19700_v5 = vpop.f32.mrb[29].mxu0  ;;  %v26504_v19 = vld [vmem:[#allocation13_spill] sm:$0xff] }
 0x57a   : > { %v22938_v8 = vpop.f32.mrb[52].mxu1 }
 0x57b   : > { %26492 = vst [vmem:[#allocation70_spill] sm:$0xff] %v22938_v8  ;;  %v19705_v29 = vpop.f32.mrb[53].mxu1 }
 0x57c   : > { %v22940_v51 = vpop.f32.mrb[30].mxu0 }
 0x57d   : > { %26493 = vst [vmem:[#allocation71_spill] sm:$0xff] %v22940_v51  ;;  %v19710_v4 = vpop.f32.mrb[31].mxu0  ;;  %v26503_v51 = vld [vmem:[#allocation25_spill] sm:$0xff] }
 0x580   : > { %v22942_v6 = vpop.f32.mrb[54].mxu1 }
 0x581   : > { %26494 = vst [vmem:[#allocation72_spill] sm:$0xff] %v22942_v6  ;;  %v22944_v11 = vpop.f32.mrb[32].mxu0  ;;  %v19715_v14 = vpop.f32.mrb[55].mxu1  ;;  %v26502_v6 = vld [vmem:[#allocation9_spill] sm:$0xff] }
 0x582   : > { %26495 = vst [vmem:[#allocation73_spill] sm:$0xff] %v22944_v11  ;;  %v19720_v1 = vpop.f32.mrb[33].mxu0  ;;  %v26500_v11 = vld [vmem:[#allocation16_spill] sm:$0xff] }
 0x584   : > { %v22946_v23 = vpop.f32.mrb[56].mxu1 }
 0x585   : > { %26496 = vst [vmem:[#allocation74_spill] sm:$0xff] %v22946_v23  ;;  %v22948_v27 = vpop.f32.mrb[34].mxu0  ;;  %v19725_v35 = vpop.f32.mrb[57].mxu1 }
 0x586   : > { %26497 = vst [vmem:[#allocation75_spill] sm:$0xff] %v22948_v27  ;;  %v19730_v18 = vpop.f32.mrb[35].mxu0 }
 0x58c   : > { %v3676_v17 = vpop.f32.mrb[36].mxu0 }
 0x58d   : > { %v19740_v49 = vpop.f32.mrb[37].mxu0  ;;  %v4212_v40 = vsel %vm615_vm1, %v3676_v17, -inf }
 0x58e   : > { %4213 = vmax.xlane.f32.xlu0 %v4212_v40 }
 0x5b1   : > { %v22951_v3 = vpop.f32.mrb[38].mxu0 }
 0x5b2   : > { %v19750_v7 = vpop.f32.mrb[39].mxu0  ;;  %v4218_v5 = vsel %vm615_vm1, %v22951_v3, -inf }
 0x5b3   : > { %4219 = vmax.xlane.f32.xlu0 %v4218_v5 }
 0x5b5   : > { %v22955_v29 = vpop.f32.mrb[40].mxu0 }
 0x5b6   : > { %v19760_v4 = vpop.f32.mrb[41].mxu0  ;;  %v4224_v5 = vsel %vm615_vm1, %v22955_v29, -inf }
 0x5b9   : > { %v22957_v14 = vpop.f32.mrb[58].mxu1  ;;  %v22959_v1 = vpop.f32.mrb[42].mxu0 }
 0x5ba   : > { %26498 = vst [vmem:[#allocation76_spill] sm:$0xff] %v22957_v14  ;;  %v19735_v35 = vpop.f32.mrb[59].mxu1  ;;  %v19770_v18 = vpop.f32.mrb[43].mxu0 }
 0x5bd   : > { %v22961_v49 = vpop.f32.mrb[60].mxu1 }
 0x5be   : > { %v19745_v27 = vpop.f32.mrb[61].mxu1  ;;  %v4215_v40 = vsel %vm615_vm1, %v22961_v49, -inf }
 0x5bf   : > { %4216 = vmax.xlane.f32.xlu1 %v4215_v40 }
 0x5c1   : > { %v22965_v7 = vpop.f32.mrb[62].mxu1 }
 0x5c2   : > { %v19755_v23 = vpop.f32.mrb[63].mxu1  ;;  %v4221_v4 = vsel %vm615_vm1, %v22965_v7, -inf }
 0x5c3   : > { %4225 = vmax.xlane.f32.xlu1 %v4224_v5  ;;  %4222 = vmax.xlane.f32.xlu0 %v4221_v4  ;;  %v4230_v23 = vsel %vm615_vm1, %v22959_v1, -inf  ;;  %v22985_v4 = vpop.permute.xlu0 %4488 }
 0x5c5   : > { %v22971_v35 = vpop.f32.mrb[64].mxu1 }
 0x5c6   : > { %v19765_v18 = vpop.f32.mrb[65].mxu1  ;;  %v4227_v27 = vsel %vm615_vm1, %v22971_v35, -inf }
 0x5c7   : > { %4228 = vmax.xlane.f32.xlu0 %v4227_v27  ;;  %v22987_v18 = vpop.permute.xlu0 %4640 }
 0x5c9   : > { %v22975_v14 = vpop.f32.mrb[66].mxu1 }
 0x5ca   : > { %v19775_v40 = vpop.f32.mrb[67].mxu1  ;;  %v4233_v5 = vsel %vm615_vm1, %v22975_v14, -inf }
 0x5cb   : > { %v22991_v27 = vpop.permute.xlu0 %21175 }
 0x5cf   : > { %v22995_v40 = vpop.permute.xlu0 %21185 }
 0x5d3   : > { %v23005_v8 = vpop.permute.xlu0 %4918 }
 0x5d4   : > { %5009 = vrot.lane.b32.xlu1 %v22284_v34, %s22032_s7 }
 0x5dd   : > { %5007 = vrot.lane.b32.xlu0 %v22290_v36, %s22032_s7 }
 0x5f8   : > { %4231 = vmax.xlane.f32.xlu1 %v4230_v23  ;;  %v26499_v23 = vld [vmem:[#allocation11_spill] sm:$0xff] }
 0x5fc   : > { %4234 = vmax.xlane.f32.xlu0 %v4233_v5  ;;  %v26501_v5 = vld [vmem:[#allocation15_spill] sm:$0xff] }
 0x609   : > { %5098 = vrot.lane.b32.xlu1 %v22270_v31, %s22032_s7 }
 0x60d   : > { %21200 = vrot.lane.b32.xlu1 %v22324_v45, %s22031_s8 }
 0x611   : > { %5191 = vrot.lane.b32.xlu1 %v26499_v23, %s22032_s7 }
 0x612   : > { %21195 = vrot.lane.b32.xlu0 %v26500_v11, %s22031_s8 }
 0x615   : > { %5280 = vrot.lane.b32.xlu1 %v26501_v5, %s22032_s7 }
 0x616   : > { %5100 = vrot.lane.b32.xlu0 %v26502_v6, %s22032_s7 }
 0x619   : > { %21210 = vrot.lane.b32.xlu1 %v26503_v51, %s22031_s8 }
 0x61a   : > { %5189 = vrot.lane.b32.xlu0 %v26504_v19, %s22032_s7 }
 0x61b   : > { %v4214_v21 = vpop.xlane.xlu0 %4213 }
 0x61c   : > { %v4236_v20 = vsub.f32 %v3676_v17, %v4214_v21  ;;  %v26510_v21 = vld [vmem:[#allocation18_spill] sm:$0xff]  ;;  %v26512_v17 = vld [vmem:[#allocation21_spill] sm:$0xff] }
 0x61d   : > { %5373 = vrot.lane.b32.xlu1 %v26505_v48, %s22032_s7 }
 0x61e   : > { %v4244_v44 = vmul.f32 1.442695, %v4236_v20  ;;  %21205 = vrot.lane.b32.xlu0 %v26506_v22, %s22031_s8 }
 0x620   : > { %21462 = vpow2.f32 %v4244_v44  ;;  %v4565_v44 = vpop.permute.xlu1 %4564 }
 0x621   : > { %5464 = vrot.lane.b32.xlu1 %v26507_v47, %s22032_s7 }
 0x622   : > { %5282 = vrot.lane.b32.xlu0 %v26508_v15, %s22032_s7 }
 0x624   : > { %v4717_v9 = vpop.permute.xlu1 %4716 }
 0x625   : > { %5555 = vrot.lane.b32.xlu1 %v26509_v50, %s22032_s7 }
 0x626   : > { %5371 = vrot.lane.b32.xlu0 %v26510_v21, %s22032_s7 }
 0x629   : > { %21215 = vrot.lane.b32.xlu1 %v22276_v32, %s22033_s9 }
 0x62a   : > { %v23025_v20 = vpop.eup %21462  ;;  %5462 = vrot.lane.b32.xlu0 %v26512_v17, %s22032_s7 }
 0x62b   : > { %26511 = vst [vmem:[#allocation77_spill] sm:$0xff] %v23025_v20  ;;  %19779 = vmatmul.mubr.msk.f32.vlgmr.msra.gmra.mrb[44].mxu0 %vm615_vm1, %v23025_v20 }
 0x62c   : > { %19787 = vmatpush3.msra.mxu0 %v4413_v2  ;;  %19788 = vmatprep.mubr.msk.f32.mxu0 %vm22030_vm4, %v26484_v42  ;;  %v4793_v2 = vpop.permute.xlu1 %4792 }
 0x62d   : > { %21225 = vrot.lane.b32.xlu1 %v22280_v33, %s22033_s9  ;;  %19796 = vmatprep.subr.mxu0 %v26484_v42 }
 0x62e   : > { %5553 = vrot.lane.b32.xlu0 %v26513_v16, %s22032_s7 }
 0x630   : > { %v21181_v20 = vpop.permute.xlu1 %21180 }
 0x631   : > { %21230 = vrot.lane.b32.xlu1 %v22302_v39, %s22033_s9 }
 0x632   : > { %21220 = vrot.lane.b32.xlu0 %v22298_v38, %s22033_s9 }
 0x634   : > { %v23057_v41 = vpop.permute.xlu1 %4916 }
 0x635   : > { %21240 = vrot.lane.b32.xlu1 %v22324_v45, %s22033_s9 }
 0x636   : > { %21235 = vrot.lane.b32.xlu0 %v26500_v11, %s22033_s9 }
 0x638   : > { %v23065_v13 = vpop.permute.xlu1 %21190 }
 0x639   : > { %21250 = vrot.lane.b32.xlu1 %v26503_v51, %s22033_s9 }
 0x63a   : > { %21245 = vrot.lane.b32.xlu0 %v26506_v22, %s22033_s9 }
 0x63d   : > { %6597 = vrot.lane.b32.xlu1 %v22358_v52, %s22032_s7 }
 0x63e   : > { %6599 = vrot.lane.b32.xlu0 %v22360_v53, %s22031_s8 }
 0x640   : > { %v4220_v12 = vpop.xlane.xlu0 %4219 }
 0x641   : > { %v4238_v37 = vsub.f32 %v22951_v3, %v4220_v12  ;;  %6755 = vrot.lane.b32.xlu1 %v22372_v57, %s22031_s8 }
 0x642   : > { %6677 = vrot.lane.b32.xlu0 %v22366_v55, %s22031_s8 }
 0x643   : > { %v4248_v43 = vmul.f32 1.442695, %v4238_v37 }
 0x645   : > { %21464 = vpow2.f32 %v4248_v43  ;;  %6753 = vrot.lane.b32.xlu1 %v22370_v56, %s22032_s7 }
 0x646   : > { %6675 = vrot.lane.b32.xlu0 %v22362_v54, %s22032_s7 }
 0x64c   : > { %v4217_v10 = vpop.xlane.xlu1 %4216 }
 0x64d   : > { %v4237_v12 = vsub.f32 %v22961_v49, %v4217_v10 }
 0x64f   : > { %v23068_v3 = vpop.eup %21464  ;;  %v4246_v46 = vmul.f32 1.442695, %v4237_v12 }
 0x650   : > { %26514 = vst [vmem:[#allocation78_spill] sm:$0xff] %v23068_v3  ;;  %v4223_v16 = vpop.xlane.xlu0 %4222  ;;  %19789 = vmatmul.mubr.msk.f32.vlgmr.msra.gmra.mrb[46].mxu0 %vm615_vm1, %v23068_v3  ;;  %v4226_v37 = vpop.xlane.xlu1 %4225 }
 0x651   : > { %21466 = vpow2.f32 %v4246_v46  ;;  %v4239_v43 = vsub.f32 %v22965_v7, %v4223_v16  ;;  %19797 = vmatpush3.msra.mxu0 %v4565_v44  ;;  %v4240_v17 = vsub.f32 %v22955_v29, %v4226_v37  ;;  %19798 = vmatprep.mubr.msk.f32.mxu0 %vm22030_vm4, %v26484_v42  ;;  %v21178_v16 = vunpack.i.h.bf16 %v22991_v27 }
 0x652   : > { %19806 = vmatprep.subr.mxu0 %v26484_v42  ;;  %v21177_v29 = vunpack.i.l.bf16 %v22991_v27  ;;  %v21182_v44 = vunpack.i.l.bf16 %v21181_v20 }
 0x653   : > { %v4250_v10 = vmul.f32 1.442695, %v4239_v43  ;;  %v4252_v49 = vmul.f32 1.442695, %v4240_v17 }
 0x654   : > { %v4229_v21 = vpop.xlane.xlu0 %4228  ;;  %v20768_v17 = vpack.c.bf16 %v21178_v16, %v21177_v29 }
 0x655   : > { %21468 = vpow2.f32 %v4250_v10  ;;  %v4241_v12 = vsub.f32 %v22971_v35, %v4229_v21  ;;  %v21183_v21 = vunpack.i.h.bf16 %v21181_v20 }
 0x656   : > { %21470 = vpow2.f32 %v4252_v49 }
 0x657   : > { %v4254_v3 = vmul.f32 1.442695, %v4241_v12  ;;  %v20774_v20 = vpack.c.bf16 %v21183_v21, %v21182_v44  ;;  %v21188_v21 = vunpack.i.h.bf16 %v22995_v40  ;;  %v21187_v44 = vunpack.i.l.bf16 %v22995_v40 }
 0x659   : > { %21472 = vpow2.f32 %v4254_v3 }
 0x65b   : > { %v23078_v46 = vpop.eup %21466 }
 0x65c   : > { %26515 = vst [vmem:[#allocation79_spill] sm:$0xff] %v23078_v46  ;;  %19784 = vmatmul.mubr.msk.f32.vlgmr.msra.gmra.mrb[68].mxu1 %vm615_vm1, %v23078_v46 }
 0x65d   : > { %19792 = vmatpush3.msra.mxu1 %v22985_v4  ;;  %19793 = vmatprep.mubr.msk.f32.mxu1 %vm22030_vm4, %v26484_v42 }
 0x65e   : > { %19801 = vmatprep.subr.mxu1 %v26484_v42 }
 0x65f   : > { %v23088_v7 = vpop.eup %21468 }
 0x660   : > { %26516 = vst [vmem:[#allocation80_spill] sm:$0xff] %v23088_v7  ;;  %v23090_v35 = vpop.eup %21470  ;;  %19794 = vmatmul.mubr.msk.f32.vlgmr.msra.gmra.mrb[70].mxu1 %vm615_vm1, %v23088_v7 }
 0x661   : > { %26517 = vst [vmem:[#allocation81_spill] sm:$0xff] %v23090_v35  ;;  %19799 = vmatmul.mubr.msk.f32.vlgmr.msra.gmra.mrb[48].mxu0 %vm615_vm1, %v23090_v35  ;;  %19802 = vmatpush3.msra.mxu1 %v22987_v18  ;;  %v5008_v18 = vpop.permute.xlu0 %5007 }
 0x662   : > { %19807 = vmatpush3.msra.mxu0 %v4717_v9  ;;  %19803 = vmatprep.mubr.msk.f32.mxu1 %vm22030_vm4, %v26484_v42  ;;  %v5010_v9 = vpop.permute.xlu1 %5009 }
 0x663   : > { %v23099_v4 = vpop.eup %21472  ;;  %20770 = vmatprep.subr.msk.bf16.mxu0 %vm22396_vm2, %v20768_v17  ;;  %19811 = vmatprep.subr.mxu1 %v26484_v42 }
 0x664   : > { %26518 = vst [vmem:[#allocation82_spill] sm:$0xff] %v23099_v4  ;;  %19804 = vmatmul.mubr.msk.f32.vlgmr.msra.gmra.mrb[72].mxu1 %vm615_vm1, %v23099_v4  ;;  %19808 = vmatprep.mubr.msk.f32.mxu0 %vm22030_vm4, %v26484_v42 }
 0x665   : > { %19812 = vmatpush3.msra.mxu1 %v4793_v2  ;;  %19813 = vmatprep.mubr.msk.f32.mxu1 %vm22030_vm4, %v26484_v42 }
 0x666   : > { %20776 = vmatprep.subr.msk.bf16.mxu1 %vm22396_vm2, %v20774_v20 }
 0x685   : > { %v4232_v3 = vpop.xlane.xlu1 %4231 }
 0x686   : > { %v4242_v37 = vsub.f32 %v22959_v1, %v4232_v3  ;;  %v21193_v1 = vunpack.i.h.bf16 %v23065_v13  ;;  %v21192_v3 = vunpack.i.l.bf16 %v23065_v13 }
 0x688   : > { %v4256_v43 = vmul.f32 1.442695, %v4242_v37  ;;  %v20780_v37 = vpack.c.bf16 %v21188_v21, %v21187_v44 }
 0x689   : > { %v4235_v10 = vpop.xlane.xlu0 %4234  ;;  %v5099_v49 = vpop.permute.xlu1 %5098 }
 0x68a   : > { %21474 = vpow2.f32 %v4256_v43  ;;  %v4243_v12 = vsub.f32 %v22975_v14, %v4235_v10  ;;  %v20786_v10 = vpack.c.bf16 %v21193_v1, %v21192_v3 }
 0x68c   : > { %v4258_v16 = vmul.f32 1.442695, %v4243_v12 }
 0x68d   : > { %v21196_v29 = vpop.permute.xlu0 %21195  ;;  %v21201_v2 = vpop.permute.xlu1 %21200 }
 0x68e   : > { %21476 = vpow2.f32 %v4258_v16  ;;  %v21198_v12 = vunpack.i.h.bf16 %v21196_v29  ;;  %v21197_v13 = vunpack.i.l.bf16 %v21196_v29  ;;  %v21202_v44 = vunpack.i.l.bf16 %v21201_v2 }
 0x691   : > { %v5101_v4 = vpop.permute.xlu0 %5100  ;;  %v5192_v35 = vpop.permute.xlu1 %5191 }
 0x694   : > { %v23116_v7 = vpop.eup %21474 }
 0x695   : > { %26520 = vst [vmem:[#allocation83_spill] sm:$0xff] %v23116_v7  ;;  %v5190_v43 = vpop.permute.xlu0 %5189  ;;  %19809 = vmatmul.mubr.msk.f32.vlgmr.msra.gmra.mrb[50].mxu0 %vm615_vm1, %v23116_v7  ;;  %v5281_v14 = vpop.permute.xlu1 %5280 }
 0x696   : > { %20773 = vmatpush3.bf16.xpose.msk.msra.mxu0 %vm22396_vm2, %v20768_v17  ;;  %19820 = vmatprep.mubr.msk.f32.mxu0 %vm615_vm1, %v23057_v41  ;;  %v20792_v41 = vpack.c.bf16 %v21198_v12, %v21197_v13  ;;  %v21203_v17 = vunpack.i.h.bf16 %v21201_v2 }
 0x697   : > { %20782 = vmatprep.subr.msk.bf16.mxu0 %vm22396_vm2, %v20780_v37 }
 0x698   : > { %v23128_v40 = vpop.eup %21476 }
 0x699   : > { %26521 = vst [vmem:[#allocation84_spill] sm:$0xff] %v23128_v40  ;;  %v21206_v16 = vpop.permute.xlu0 %21205  ;;  %19814 = vmatmul.mubr.msk.f32.vlgmr.msra.gmra.mrb[74].mxu1 %vm615_vm1, %v23128_v40  ;;  %v21211_v21 = vpop.permute.xlu1 %21210 }
 0x69a   : > { %20779 = vmatpush3.bf16.xpose.msk.msra.mxu1 %vm22396_vm2, %v20774_v20  ;;  %19827 = vmatprep.mubr.msk.f32.mxu1 %vm615_vm1, %v5008_v18  ;;  %v20798_v20 = vpack.c.bf16 %v21203_v17, %v21202_v44  ;;  %v21208_v18 = vunpack.i.h.bf16 %v21206_v16  ;;  %v21207_v3 = vunpack.i.l.bf16 %v21206_v16 }
 0x69b   : > { %20788 = vmatprep.subr.msk.bf16.mxu1 %vm22396_vm2, %v20786_v10 }
 0x69d   : > { %19821 = vmatmul.mubr.msk.f32.vlgmr.msra.gmra.mrb[52].mxu0 %vm615_vm1, %v23005_v8  ;;  %v5283_v29 = vpop.permute.xlu0 %5282  ;;  %v5374_v1 = vpop.permute.xlu1 %5373  ;;  %v20804_v8 = vpack.c.bf16 %v21208_v18, %v21207_v3 }
 0x69e   : > { %20785 = vmatpush3.bf16.xpose.msk.msra.mxu0 %vm22396_vm2, %v20780_v37  ;;  %19834 = vmatprep.mubr.msk.f32.mxu0 %vm615_vm1, %v5099_v49  ;;  %v21213_v49 = vunpack.i.h.bf16 %v21211_v21  ;;  %v21212_v37 = vunpack.i.l.bf16 %v21211_v21 }
 0x69f   : > { %20794 = vmatprep.subr.msk.bf16.mxu0 %vm22396_vm2, %v20792_v41 }
 0x6a1   : > { %19828 = vmatmul.mubr.msk.f32.vlgmr.msra.gmra.mrb[76].mxu1 %vm615_vm1, %v5010_v9  ;;  %v5372_v12 = vpop.permute.xlu0 %5371  ;;  %v5465_v2 = vpop.permute.xlu1 %5464  ;;  %v20810_v9 = vpack.c.bf16 %v21213_v49, %v21212_v37 }
 0x6a2   : > { %20791 = vmatpush3.bf16.xpose.msk.msra.mxu1 %vm22396_vm2, %v20786_v10  ;;  %19841 = vmatprep.mubr.msk.f32.mxu1 %vm615_vm1, %v5190_v43 }
 0x6a3   : > { %20800 = vmatprep.subr.msk.bf16.mxu1 %vm22396_vm2, %v20798_v20 }
 0x6a5   : > { %19835 = vmatmul.mubr.msk.f32.vlgmr.msra.gmra.mrb[54].mxu0 %vm615_vm1, %v5101_v4  ;;  %v5463_v13 = vpop.permute.xlu0 %5462  ;;  %v5556_v17 = vpop.permute.xlu1 %5555 }
 0x6a6   : > { %20797 = vmatpush3.bf16.xpose.msk.msra.mxu0 %vm22396_vm2, %v20792_v41  ;;  %19848 = vmatprep.mubr.msk.f32.mxu0 %vm615_vm1, %v5281_v14 }
 0x6a7   : > { %20806 = vmatprep.subr.msk.bf16.mxu0 %vm22396_vm2, %v20804_v8 }
 0x6a9   : > { %19842 = vmatmul.mubr.msk.f32.vlgmr.msra.gmra.mrb[78].mxu1 %vm615_vm1, %v5192_v35  ;;  %v5554_v43 = vpop.permute.xlu0 %5553  ;;  %v21216_v10 = vpop.permute.xlu1 %21215 }
 0x6aa   : > { %v21218_v16 = vunpack.i.h.bf16 %v21216_v10  ;;  %v21217_v44 = vunpack.i.l.bf16 %v21216_v10  ;;  %20803 = vmatpush3.bf16.xpose.msk.msra.mxu1 %vm22396_vm2, %v20798_v20  ;;  %19855 = vmatprep.mubr.msk.f32.mxu1 %vm615_vm1, %v5372_v12 }
 0x6ab   : > { %20812 = vmatprep.subr.msk.bf16.mxu1 %vm22396_vm2, %v20810_v9 }
 0x6ac   : > { %v20816_v4 = vpack.c.bf16 %v21218_v16, %v21217_v44 }
 0x6ad   : > { %19849 = vmatmul.mubr.msk.f32.vlgmr.msra.gmra.mrb[56].mxu0 %vm615_vm1, %v5283_v29  ;;  %v21221_v14 = vpop.permute.xlu0 %21220  ;;  %v21226_v21 = vpop.permute.xlu1 %21225 }
 0x6ae   : > { %v21223_v41 = vunpack.i.h.bf16 %v21221_v14  ;;  %v21222_v18 = vunpack.i.l.bf16 %v21221_v14  ;;  %20809 = vmatpush3.bf16.xpose.msk.msra.mxu0 %vm22396_vm2, %v20804_v8  ;;  %19862 = vmatprep.mubr.msk.f32.mxu0 %vm615_vm1, %v5463_v13  ;;  %v21228_v20 = vunpack.i.h.bf16 %v21226_v21  ;;  %v21227_v3 = vunpack.i.l.bf16 %v21226_v21 }
 0x6af   : > { %20817 = vmatprep.subr.bf16.mxu0 %v20816_v4 }
 0x6b0   : > { %v20820_v35 = vpack.c.bf16 %v21223_v41, %v21222_v18  ;;  %v23171_v8 = vpack.c.bf16 %v21228_v20, %v21227_v3 }
 0x6b1   : > { %19856 = vmatmul.mubr.msk.f32.vlgmr.msra.gmra.mrb[80].mxu1 %vm615_vm1, %v5374_v1  ;;  %v21231_v12 = vpop.permute.xlu1 %21230 }
 0x6b2   : > { %20815 = vmatpush3.bf16.xpose.msk.msra.mxu1 %vm22396_vm2, %v20810_v9  ;;  %19869 = vmatprep.mubr.msk.f32.mxu1 %vm615_vm1, %v5554_v43  ;;  %v21233_v29 = vunpack.i.h.bf16 %v21231_v12  ;;  %v21232_v49 = vunpack.i.l.bf16 %v21231_v12 }
 0x6b3   : > { %20821 = vmatprep.subr.bf16.mxu1 %v20820_v35 }
 0x6b4   : > { %v23175_v37 = vpack.c.bf16 %v21233_v29, %v21232_v49 }
 0x6b5   : > { %19863 = vmatmul.mubr.msk.f32.vlgmr.msra.gmra.mrb[58].mxu0 %vm615_vm1, %v5465_v2 }
 0x6b6   : > { %20819 = vmatpush3.bf16.msra.mxu0 %v20816_v4 }
 0x6b7   : > { %20825 = vmatprep.subr.bf16.mxu0 %v23171_v8 }
 0x6b9   : > { %19870 = vmatmul.mubr.msk.f32.vlgmr.msra.gmra.mrb[82].mxu1 %vm615_vm1, %v5556_v17 }
 0x6ba   : > { %20823 = vmatpush3.bf16.msra.mxu1 %v20820_v35 }
 0x6bb   : > { %20829 = vmatprep.subr.bf16.mxu1 %v23175_v37 }
 0x6fe   : > { %v23178_v1 = vpop.f32.mrb[44].mxu0 }
 0x6ff   : > { %26522 = vst [vmem:[#allocation85_spill] sm:$0xff] %v23178_v1  ;;  %v19780_v13 = vpop.f32.mrb[45].mxu0 }
 0x723   : > { %v23180_v9 = vpop.f32.mrb[46].mxu0 }
 0x724   : > { %26523 = vst [vmem:[#allocation86_spill] sm:$0xff] %v23180_v9  ;;  %v19790_v43 = vpop.f32.mrb[47].mxu0 }
 0x72f   : > { %v23182_v10 = vpop.f32.mrb[68].mxu1 }
 0x730   : > { %26524 = vst [vmem:[#allocation87_spill] sm:$0xff] %v23182_v10  ;;  %v19785_v2 = vpop.f32.mrb[69].mxu1 }
 0x733   : > { %v23184_v16 = vpop.f32.mrb[70].mxu1 }
 0x734   : > { %26525 = vst [vmem:[#allocation88_spill] sm:$0xff] %v23184_v16  ;;  %v23186_v44 = vpop.f32.mrb[48].mxu0  ;;  %v19795_v4 = vpop.f32.mrb[71].mxu1 }
 0x735   : > { %26526 = vst [vmem:[#allocation89_spill] sm:$0xff] %v23186_v44  ;;  %v19800_v17 = vpop.f32.mrb[49].mxu0 }
 0x737   : > { %v23188_v14 = vpop.f32.mrb[72].mxu1 }
 0x738   : > { %26527 = vst [vmem:[#allocation90_spill] sm:$0xff] %v23188_v14  ;;  %v19805_v21 = vpop.f32.mrb[73].mxu1 }
 0x768   : > { %v23190_v41 = vpop.f32.mrb[50].mxu0 }
 0x769   : > { %26528 = vst [vmem:[#allocation91_spill] sm:$0xff] %v23190_v41  ;;  %v19810_v18 = vpop.f32.mrb[51].mxu0 }
 0x76c   : > { %v23192_v35 = vpop.f32.mrb[74].mxu1 }
 0x76d   : > { %26529 = vst [vmem:[#allocation92_spill] sm:$0xff] %v23192_v35  ;;  %v19815_v20 = vpop.f32.mrb[75].mxu1 }
 0x770   : > { %v23194_v3 = vpop.f32.mrb[52].mxu0 }
 0x771   : > { %v23196_v12 = vpop.f32.mrb[53].mxu0  ;;  %v5647_v29 = vsel %vm1322_vm3, %v23194_v3, -inf }
 0x772   : > { %5648 = vmax.xlane.f32.xlu1 %v5647_v29  ;;  %v5644_v49 = vsel %vm1322_vm3, %v23196_v12, -inf }
 0x773   : > { %5645 = vmax.xlane.f32.xlu0 %v5644_v49 }
 0x774   : > { %v23202_v13 = vpop.f32.mrb[76].mxu1 }
 0x775   : > { %v23204_v43 = vpop.f32.mrb[77].mxu1  ;;  %v5653_v2 = vsel %vm1322_vm3, %v23202_v13, -inf }
 0x776   : > { %5654 = vmax.xlane.f32.xlu1 %v5653_v2  ;;  %v5650_v4 = vsel %vm1322_vm3, %v23204_v43, -inf }
 0x777   : > { %5651 = vmax.xlane.f32.xlu0 %v5650_v4 }
 0x778   : > { %v23210_v17 = vpop.f32.mrb[54].mxu0 }
 0x779   : > { %v23212_v21 = vpop.f32.mrb[55].mxu0  ;;  %v5659_v18 = vsel %vm1322_vm3, %v23210_v17, -inf }
 0x77a   : > { %v5656_v2 = vsel %vm1322_vm3, %v23212_v21, -inf }
 0x77b   : > { %5660 = vmax.xlane.f32.xlu0 %v5659_v18 }
 0x77c   : > { %v23216_v20 = vpop.f32.mrb[78].mxu1 }
 0x77d   : > { %v23218_v29 = vpop.f32.mrb[79].mxu1  ;;  %v5665_v49 = vsel %vm1322_vm3, %v23216_v20, -inf }
 0x77e   : > { %5666 = vmax.xlane.f32.xlu1 %v5665_v49  ;;  %v5662_v35 = vsel %vm1322_vm3, %v23218_v29, -inf }
 0x77f   : > { %5657 = vmax.xlane.f32.xlu0 %v5656_v2 }
 0x780   : > { %v23224_v4 = vpop.f32.mrb[56].mxu0 }
 0x781   : > { %v23226_v41 = vpop.f32.mrb[57].mxu0  ;;  %v5671_v18 = vsel %vm1322_vm3, %v23224_v4, -inf }
 0x782   : > { %5663 = vmax.xlane.f32.xlu1 %v5662_v35  ;;  %v5668_v49 = vsel %vm1322_vm3, %v23226_v41, -inf }
 0x783   : > { %5672 = vmax.xlane.f32.xlu0 %v5671_v18 }
 0x784   : > { %v23232_v14 = vpop.f32.mrb[80].mxu1 }
 0x785   : > { %v23234_v44 = vpop.f32.mrb[81].mxu1  ;;  %v5677_v35 = vsel %vm1322_vm3, %v23232_v14, -inf }
 0x786   : > { %v5674_v2 = vsel %vm1322_vm3, %v23234_v44, -inf }
 0x787   : > { %5669 = vmax.xlane.f32.xlu0 %v5668_v49  ;;  %5675 = vmax.xlane.f32.xlu1 %v5674_v2 }
 0x788   : > { %v23240_v16 = vpop.f32.mrb[58].mxu0 }
 0x789   : > { %v23242_v9 = vpop.f32.mrb[59].mxu0  ;;  %v5683_v49 = vsel %vm1322_vm3, %v23240_v16, -inf }
 0x78a   : > { %v5680_v18 = vsel %vm1322_vm3, %v23242_v9, -inf }
 0x78b   : > { %5678 = vmax.xlane.f32.xlu0 %v5677_v35  ;;  %5681 = vmax.xlane.f32.xlu1 %v5680_v18  ;;  %v23292_v18 = vpop.permute.xlu1 %21240 }
 0x78c   : > { %v23248_v10 = vpop.f32.mrb[82].mxu1 }
 0x78d   : > { %v23250_v1 = vpop.f32.mrb[83].mxu1  ;;  %v5689_v2 = vsel %vm1322_vm3, %v23248_v10, -inf }
 0x78e   : > { %v5686_v35 = vsel %vm1322_vm3, %v23250_v1, -inf }
 0x78f   : > { %5684 = vmax.xlane.f32.xlu0 %v5683_v49  ;;  %v21236_v49 = vpop.permute.xlu0 %21235 }
 0x790   : > { %v21238_v36 = vunpack.i.h.bf16 %v21236_v49 }
 0x793   : > { %5690 = vmax.xlane.f32.xlu0 %v5689_v2  ;;  %v23296_v2 = vpop.permute.xlu1 %21250 }
 0x797   : > { %v23304_v40 = vpop.permute.xlu1 %6597 }
 0x79b   : > { %v23310_v46 = vpop.permute.xlu1 %6755 }
 0x79c   : > { %6911 = vrot.lane.b32.xlu1 %v22382_v61, %s22031_s8 }
 0x7a9   : > { %6833 = vrot.lane.b32.xlu0 %v22378_v59, %s22031_s8 }
 0x7ad   : > { %6831 = vrot.lane.b32.xlu0 %v22374_v58, %s22032_s7 }
 0x7b1   : > { %6989 = vrot.lane.b32.xlu0 %v22388_v63, %s22031_s8 }
 0x7b5   : > { %6987 = vrot.lane.b32.xlu0 %v22386_v62, %s22032_s7 }
 0x7b9   : > { %7145 = vrot.lane.b32.xlu0 %v22470_v26, %s22031_s8 }
 0x7bd   : > { %7345 = vrot.lane.b32.xlu0 %v22366_v55, %s22033_s9 }
 0x7c0   : > { %5687 = vmax.xlane.f32.xlu1 %v5686_v35  ;;  %v23300_v35 = vpop.permute.xlu0 %21245 }
 0x7c1   : > { %7497 = vrot.lane.b32.xlu0 %v22378_v59, %s22033_s9 }
 0x7c4   : > { %v23306_v7 = vpop.permute.xlu0 %6599 }
 0x7c5   : > { %7649 = vrot.lane.b32.xlu0 %v22388_v63, %s22033_s9 }
 0x7c8   : > { %v23314_v27 = vpop.permute.xlu0 %6677 }
 0x7c9   : > { %7960 = vrot.lane.b32.xlu0 %v22358_v52, %s22031_s8 }
 0x7cc   : > { %v23320_v50 = vpop.permute.xlu0 %6675 }
 0x7cd   : > { %8038 = vrot.lane.b32.xlu0 %v22362_v54, %s22031_s8 }
 0x7d1   : > { %8036 = vrot.lane.b32.xlu0 %v22366_v55, %s22032_s7  ;;  %6909 = vrot.lane.b32.xlu1 %v22380_v60, %s22032_s7  ;;  %v23318_v55 = vpop.permute.xlu1 %6753 }
 0x7d5   : > { %7067 = vrot.lane.b32.xlu1 %v22466_v24, %s22031_s8 }
 0x7d9   : > { %7065 = vrot.lane.b32.xlu1 %v22392_v0, %s22032_s7 }
 0x7dd   : > { %7143 = vrot.lane.b32.xlu1 %v22468_v25, %s22032_s7 }
 0x7e1   : > { %7269 = vrot.lane.b32.xlu1 %v22360_v53, %s22033_s9 }
 0x7e5   : > { %7421 = vrot.lane.b32.xlu1 %v22372_v57, %s22033_s9 }
 0x7e9   : > { %7573 = vrot.lane.b32.xlu1 %v22382_v61, %s22033_s9 }
 0x7ed   : > { %7725 = vrot.lane.b32.xlu1 %v22466_v24, %s22033_s9 }
 0x7f1   : > { %7801 = vrot.lane.b32.xlu1 %v22470_v26, %s22033_s9 }
 0x7f5   : > { %7958 = vrot.lane.b32.xlu1 %v22360_v53, %s22032_s7 }
 0x7f9   : > { %8116 = vrot.lane.b32.xlu1 %v22370_v56, %s22031_s8 }
 0x7ff   : > { %v5649_v15 = vpop.xlane.xlu1 %5648 }
 0x800   : > { %v5693_v47 = vsub.f32 %v23194_v3, %v5649_v15  ;;  %v5646_v22 = vpop.xlane.xlu0 %5645 }
 0x801   : > { %v5692_v48 = vsub.f32 %v23196_v12, %v5646_v22  ;;  %v21237_v22 = vunpack.i.l.bf16 %v21236_v49 }
 0x802   : > { %v5710_v19 = vmul.f32 1.442695, %v5693_v47 }
 0x803   : > { %v5708_v51 = vmul.f32 1.442695, %v5692_v48  ;;  %v5655_v6 = vpop.xlane.xlu1 %5654 }
 0x804   : > { %v5695_v53 = vsub.f32 %v23202_v13, %v5655_v6  ;;  %v5652_v5 = vpop.xlane.xlu0 %5651  ;;  %v21242_v13 = vunpack.i.l.bf16 %v23292_v18 }
 0x805   : > { %21478 = vpow2.f32 %v5708_v51  ;;  %v5694_v11 = vsub.f32 %v23204_v43, %v5652_v5 }
 0x806   : > { %21480 = vpow2.f32 %v5710_v19  ;;  %v5714_v23 = vmul.f32 1.442695, %v5695_v53 }
 0x807   : > { %v5712_v45 = vmul.f32 1.442695, %v5694_v11 }
 0x808   : > { %v5661_v31 = vpop.xlane.xlu0 %5660 }
 0x809   : > { %21482 = vpow2.f32 %v5712_v45  ;;  %v5697_v15 = vsub.f32 %v23210_v17, %v5661_v31  ;;  %v21243_v45 = vunpack.i.h.bf16 %v23292_v18 }
 0x80a   : > { %21484 = vpow2.f32 %v5714_v23  ;;  %v20832_v23 = vpack.c.bf16 %v21238_v36, %v21237_v22 }
 0x80b   : > { %v5667_v3 = vpop.xlane.xlu1 %5666  ;;  %v5718_v12 = vmul.f32 1.442695, %v5697_v15 }
 0x80c   : > { %v5658_v47 = vpop.xlane.xlu0 %5657  ;;  %v5699_v48 = vsub.f32 %v23216_v20, %v5667_v3 }
 0x80d   : > { %v5696_v6 = vsub.f32 %v23212_v21, %v5658_v47  ;;  %v21248_v47 = vunpack.i.h.bf16 %v23300_v35 }
 0x80e   : > { %v5722_v43 = vmul.f32 1.442695, %v5699_v48 }
 0x80f   : > { %v23329_v51 = vpop.eup %21478  ;;  %v5716_v5 = vmul.f32 1.442695, %v5696_v6  ;;  %v5664_v19 = vpop.xlane.xlu1 %5663 }
 0x810   : > { %26530 = vst [vmem:[#allocation93_spill] sm:$0xff] %v23329_v51  ;;  %v23331_v53 = vpop.eup %21480  ;;  %v5698_v11 = vsub.f32 %v23218_v29, %v5664_v19  ;;  %19876 = vmatprep.mubr.msk.f32.mxu0 %vm1322_vm3, %v23329_v51  ;;  %v5673_v31 = vpop.xlane.xlu0 %5672 }
 0x811   : > { %26531 = vst [vmem:[#allocation94_spill] sm:$0xff] %v23331_v53  ;;  %21486 = vpow2.f32 %v5716_v5  ;;  %v5701_v17 = vsub.f32 %v23224_v4, %v5673_v31  ;;  %19877 = vmatmul.mubr.msk.f32.vlgmr.msra.gmra.mrb[60].mxu0 %vm1322_vm3, %v23331_v53  ;;  %v21252_v31 = vunpack.i.l.bf16 %v23296_v2 }
 0x812   : > { %21488 = vpow2.f32 %v5718_v12  ;;  %v5720_v21 = vmul.f32 1.442695, %v5698_v11  ;;  %20827 = vmatpush3.bf16.msra.mxu0 %v23171_v8  ;;  %v20836_v8 = vpack.c.bf16 %v21243_v45, %v21242_v13  ;;  %v21247_v12 = vunpack.i.l.bf16 %v23300_v35 }
 0x813   : > { %v23342_v20 = vpop.eup %21482  ;;  %20833 = vmatprep.subr.bf16.mxu0 %v20832_v23  ;;  %v5726_v36 = vmul.f32 1.442695, %v5701_v17  ;;  %v21253_v11 = vunpack.i.h.bf16 %v23296_v2 }
 0x814   : > { %26532 = vst [vmem:[#allocation95_spill] sm:$0xff] %v23342_v20  ;;  %v23344_v29 = vpop.eup %21484  ;;  %21490 = vpow2.f32 %v5720_v21  ;;  %19883 = vmatprep.mubr.msk.f32.mxu1 %vm1322_vm3, %v23342_v20  ;;  %v5670_v18 = vpop.xlane.xlu0 %5669 }
 0x815   : > { %26533 = vst [vmem:[#allocation96_spill] sm:$0xff] %v23344_v29  ;;  %v5676_v49 = vpop.xlane.xlu1 %5675  ;;  %21492 = vpow2.f32 %v5722_v43  ;;  %v5700_v4 = vsub.f32 %v23226_v41, %v5670_v18  ;;  %19884 = vmatmul.mubr.msk.f32.vlgmr.msra.gmra.mrb[84].mxu1 %vm1322_vm3, %v23344_v29  ;;  %v20844_v2 = vpack.c.bf16 %v21253_v11, %v21252_v31 }
 0x816   : > { %v5702_v15 = vsub.f32 %v23234_v44, %v5676_v49  ;;  %20831 = vmatpush3.bf16.msra.mxu1 %v23175_v37  ;;  %21494 = vpow2.f32 %v5726_v36 }
 0x817   : > { %v5724_v3 = vmul.f32 1.442695, %v5700_v4  ;;  %20837 = vmatprep.subr.bf16.mxu1 %v20836_v8 }
 0x818   : > { %v5728_v22 = vmul.f32 1.442695, %v5702_v15  ;;  %v5679_v48 = vpop.xlane.xlu0 %5678 }
 0x819   : > { %v5682_v6 = vpop.xlane.xlu1 %5681  ;;  %21496 = vpow2.f32 %v5724_v3  ;;  %v5703_v41 = vsub.f32 %v23232_v14, %v5679_v48 }
 0x81a   : > { %v5704_v44 = vsub.f32 %v23242_v9, %v5682_v6  ;;  %21498 = vpow2.f32 %v5728_v22  ;;  %v20840_v9 = vpack.c.bf16 %v21248_v47, %v21247_v12 }
 0x81b   : > { %v23357_v5 = vpop.eup %21486  ;;  %v5730_v19 = vmul.f32 1.442695, %v5703_v41 }
 0x81c   : > { %26534 = vst [vmem:[#allocation97_spill] sm:$0xff] %v23357_v5  ;;  %v5732_v37 = vmul.f32 1.442695, %v5704_v44  ;;  %v23359_v45 = vpop.eup %21488  ;;  %19890 = vmatprep.mubr.msk.f32.mxu0 %vm1322_vm3, %v23357_v5  ;;  %v5685_v35 = vpop.xlane.xlu0 %5684 }
 0x81d   : > { %26535 = vst [vmem:[#allocation98_spill] sm:$0xff] %v23359_v45  ;;  %21500 = vpow2.f32 %v5730_v19  ;;  %v5705_v14 = vsub.f32 %v23240_v16, %v5685_v35  ;;  %19891 = vmatmul.mubr.msk.f32.vlgmr.msra.gmra.mrb[62].mxu0 %vm1322_vm3, %v23359_v45  ;;  %v6912_v4 = vpop.permute.xlu1 %6911 }
 0x81e   : > { %v23368_v13 = vpop.eup %21490  ;;  %21502 = vpow2.f32 %v5732_v37  ;;  %20835 = vmatpush3.bf16.msra.mxu0 %v20832_v23 }
 0x81f   : > { %26536 = vst [vmem:[#allocation99_spill] sm:$0xff] %v23368_v13  ;;  %v23370_v43 = vpop.eup %21492  ;;  %v5734_v17 = vmul.f32 1.442695, %v5705_v14  ;;  %20841 = vmatprep.subr.bf16.mxu0 %v20840_v9  ;;  %19897 = vmatprep.mubr.msk.f32.mxu1 %vm1322_vm3, %v23368_v13  ;;  %v26597_v13 = vld [vmem:[#allocation27_spill] sm:$0xff] }
 0x820   : > { %26537 = vst [vmem:[#allocation100_spill] sm:$0xff] %v23370_v43  ;;  %19898 = vmatmul.mubr.msk.f32.vlgmr.msra.gmra.mrb[86].mxu1 %vm1322_vm3, %v23370_v43  ;;  %v23376_v16 = vpop.eup %21494  ;;  %v26596_v43 = vld [vmem:[#allocation26_spill] sm:$0xff] }
 0x821   : > { %21504 = vpow2.f32 %v5734_v17  ;;  %20839 = vmatpush3.bf16.msra.mxu1 %v20836_v8  ;;  %26538 = vst [vmem:[#allocation101_spill] sm:$0xff] %v23376_v16 }
 0x822   : > { %20845 = vmatprep.subr.bf16.mxu1 %v20844_v2 }
 0x823   : > { %v23378_v21 = vpop.eup %21496 }
 0x824   : > { %26539 = vst [vmem:[#allocation102_spill] sm:$0xff] %v23378_v21  ;;  %v23380_v36 = vpop.eup %21498  ;;  %19904 = vmatprep.mubr.msk.f32.mxu0 %vm1322_vm3, %v23378_v21 }
 0x825   : > { %26540 = vst [vmem:[#allocation103_spill] sm:$0xff] %v23380_v36  ;;  %19911 = vmatprep.mubr.msk.f32.mxu1 %vm1322_vm3, %v23380_v36  ;;  %19905 = vmatmul.mubr.msk.f32.vlgmr.msra.gmra.mrb[64].mxu0 %vm1322_vm3, %v23376_v16  ;;  %v26591_v36 = vld [vmem:[#allocation23_spill] sm:$0xff]  ;;  %v26592_v16 = vld [vmem:[#allocation18_spill] sm:$0xff] }
 0x826   : > { %20843 = vmatpush3.bf16.msra.mxu0 %v20840_v9 }
 0x827   : > { %v23388_v23 = vpop.eup %21500  ;;  %19928 = vmatprep.subr.mxu0 %v26484_v42 }
 0x828   : > { %26541 = vst [vmem:[#allocation104_spill] sm:$0xff] %v23388_v23  ;;  %v23391_v18 = vpop.eup %21502  ;;  %19912 = vmatmul.mubr.msk.f32.vlgmr.msra.gmra.mrb[88].mxu1 %vm1322_vm3, %v23388_v23  ;;  %v26590_v23 = vld [vmem:[#allocation14_spill] sm:$0xff] }
 0x829   : > { %26542 = vst [vmem:[#allocation105_spill] sm:$0xff] %v23391_v18  ;;  %19918 = vmatprep.mubr.msk.f32.mxu0 %vm1322_vm3, %v23391_v18  ;;  %20847 = vmatpush3.bf16.msra.mxu1 %v20844_v2  ;;  %v26589_v18 = vld [vmem:[#allocation20_spill] sm:$0xff] }
 0x82a   : > { %19933 = vmatprep.subr.mxu1 %v26484_v42 }
 0x82b   : > { %v23398_v49 = vpop.eup %21504 }
 0x82c   : > { %26543 = vst [vmem:[#allocation106_spill] sm:$0xff] %v23398_v49  ;;  %19919 = vmatmul.mubr.msk.f32.vlgmr.msra.gmra.mrb[66].mxu0 %vm1322_vm3, %v23398_v49 }
 0x82d   : > { %19930 = vmatprep.mubr.msk.f32.mxu0 %vm22030_vm4, %v26484_v42 }
 0x82f   : > { %19929 = vmatpush3.xpose.msk.msra.mxu0 %vm615_vm1, %v23306_v7  ;;  %v5691_v7 = vpop.xlane.xlu0 %5690 }
 0x830   : > { %19938 = vmatprep.subr.mxu0 %v26484_v42 }
 0x832   : > { %19931 = vmatmul.mubr.msk.f32.vlgmr.msra.gmra.mrb[68].mxu0 %vm615_vm1, %v23304_v40  ;;  %v5707_v40 = vsub.f32 %v23248_v10, %v5691_v7 }
 0x833   : > { %19939 = vmatpush3.xpose.msk.msra.mxu0 %vm615_vm1, %v23310_v46  ;;  %19940 = vmatprep.mubr.msk.f32.mxu0 %vm22030_vm4, %v26484_v42  ;;  %v6834_v3 = vpop.permute.xlu0 %6833 }
 0x834   : > { %19948 = vmatprep.subr.mxu0 %v26484_v42  ;;  %v5738_v8 = vmul.f32 1.442695, %v5707_v40 }
 0x836   : > { %19941 = vmatmul.mubr.msk.f32.vlgmr.msra.gmra.mrb[70].mxu0 %vm615_vm1, %v23318_v55 }
 0x837   : > { %19949 = vmatpush3.xpose.msk.msra.mxu0 %vm615_vm1, %v6912_v4  ;;  %19950 = vmatprep.mubr.msk.f32.mxu0 %vm22030_vm4, %v26484_v42  ;;  %v6832_v48 = vpop.permute.xlu0 %6831 }
 0x838   : > { %19958 = vmatprep.subr.mxu0 %v26484_v42 }
 0x83b   : > { %v6990_v6 = vpop.permute.xlu0 %6989 }
 0x83f   : > { %v6988_v19 = vpop.permute.xlu0 %6987 }
 0x84d   : > { %v5688_v46 = vpop.xlane.xlu1 %5687 }
 0x84e   : > { %v5706_v15 = vsub.f32 %v23250_v1, %v5688_v46 }
 0x850   : > { %v5736_v22 = vmul.f32 1.442695, %v5706_v15 }
 0x851   : > { %v6910_v47 = vpop.permute.xlu1 %6909 }
 0x852   : > { %21506 = vpow2.f32 %v5736_v22  ;;  %19951 = vmatmul.mubr.msk.f32.vlgmr.msra.gmra.mrb[72].mxu0 %vm615_vm1, %v6910_v47 }
 0x853   : > { %21508 = vpow2.f32 %v5738_v8  ;;  %19960 = vmatprep.mubr.msk.f32.mxu0 %vm22030_vm4, %v26484_v42 }
 0x855   : > { %v7068_v55 = vpop.permute.xlu1 %7067 }
 0x856   : > { %19959 = vmatpush3.xpose.msk.msra.mxu0 %vm615_vm1, %v7068_v55 }
 0x857   : > { %19968 = vmatprep.subr.mxu0 %v26484_v42 }
 0x859   : > { %v7066_v10 = vpop.permute.xlu1 %7065 }
 0x85a   : > { %19961 = vmatmul.mubr.msk.f32.vlgmr.msra.gmra.mrb[74].mxu0 %vm615_vm1, %v7066_v10 }
 0x85b   : > { %19970 = vmatprep.mubr.msk.f32.mxu0 %vm22030_vm4, %v26484_v42 }
 0x85c   : > { %v23430_v1 = vpop.eup %21506 }
 0x85d   : > { %26544 = vst [vmem:[#allocation107_spill] sm:$0xff] %v23430_v1  ;;  %v23432_v12 = vpop.eup %21508  ;;  %19925 = vmatprep.mubr.msk.f32.mxu1 %vm1322_vm3, %v23430_v1  ;;  %v7144_v41 = vpop.permute.xlu1 %7143 }
 0x85e   : > { %26545 = vst [vmem:[#allocation108_spill] sm:$0xff] %v23432_v12  ;;  %19926 = vmatmul.mubr.msk.f32.vlgmr.msra.gmra.mrb[90].mxu1 %vm1322_vm3, %v23432_v12 }
 0x85f   : > { %19934 = vmatpush3.xpose.msk.msra.mxu1 %vm615_vm1, %v23314_v27  ;;  %19935 = vmatprep.mubr.msk.f32.mxu1 %vm22030_vm4, %v26484_v42  ;;  %v7146_v27 = vpop.permute.xlu0 %7145 }
 0x860   : > { %19943 = vmatprep.subr.mxu1 %v26484_v42 }
 0x861   : > { %v7270_v44 = vpop.permute.xlu1 %7269 }
 0x862   : > { %19936 = vmatmul.mubr.msk.f32.vlgmr.msra.gmra.mrb[92].mxu1 %vm615_vm1, %v23320_v50  ;;  %19969 = vmatpush3.msra.mxu0 %v7270_v44 }
 0x863   : > { %19944 = vmatpush3.xpose.msk.msra.mxu1 %vm615_vm1, %v6834_v3  ;;  %19945 = vmatprep.mubr.msk.f32.mxu1 %vm22030_vm4, %v26484_v42  ;;  %v7346_v50 = vpop.permute.xlu0 %7345 }
 0x864   : > { %19953 = vmatprep.subr.mxu1 %v26484_v42  ;;  %19978 = vmatprep.subr.mxu0 %v26484_v42 }
 0x866   : > { %19946 = vmatmul.mubr.msk.f32.vlgmr.msra.gmra.mrb[94].mxu1 %vm615_vm1, %v6832_v48 }
 0x867   : > { %19954 = vmatpush3.xpose.msk.msra.mxu1 %vm615_vm1, %v6990_v6  ;;  %19955 = vmatprep.mubr.msk.f32.mxu1 %vm22030_vm4, %v26484_v42 }
 0x868   : > { %19963 = vmatprep.subr.mxu1 %v26484_v42 }
 0x86a   : > { %19956 = vmatmul.mubr.msk.f32.vlgmr.msra.gmra.mrb[96].mxu1 %vm615_vm1, %v6988_v19 }
 0x86b   : > { %19964 = vmatpush3.xpose.msk.msra.mxu1 %vm615_vm1, %v7146_v27  ;;  %19965 = vmatprep.mubr.msk.f32.mxu1 %vm22030_vm4, %v26484_v42 }
 0x86c   : > { %19973 = vmatprep.subr.mxu1 %v26484_v42 }
 0x86e   : > { %19966 = vmatmul.mubr.msk.f32.vlgmr.msra.gmra.mrb[98].mxu1 %vm615_vm1, %v7144_v41 }
 0x86f   : > { %19974 = vmatpush3.msra.mxu1 %v7346_v50  ;;  %19975 = vmatprep.mubr.msk.f32.mxu1 %vm22030_vm4, %v26484_v42 }
 0x870   : > { %19983 = vmatprep.subr.mxu1 %v26484_v42 }
 0x8e4   : > { %v23464_v37 = vpop.f32.mrb[60].mxu0 }
 0x8e5   : > { %26546 = vst [vmem:[#allocation109_spill] sm:$0xff] %v23464_v37  ;;  %v23466_v11 = vpop.f32.mrb[61].mxu0 }
 0x8e6   : > { %26547 = vst [vmem:[#allocation110_spill] sm:$0xff] %v23466_v11 }
 0x8e8   : > { %v23468_v31 = vpop.f32.mrb[84].mxu1 }
 0x8e9   : > { %26548 = vst [vmem:[#allocation111_spill] sm:$0xff] %v23468_v31  ;;  %v23470_v35 = vpop.f32.mrb[85].mxu1 }
 0x8ea   : > { %26549 = vst [vmem:[#allocation112_spill] sm:$0xff] %v23470_v35 }
 0x8f0   : > { %v23472_v14 = vpop.f32.mrb[62].mxu0 }
 0x8f1   : > { %26550 = vst [vmem:[#allocation113_spill] sm:$0xff] %v23472_v14  ;;  %v23474_v9 = vpop.f32.mrb[63].mxu0 }
 0x8f2   : > { %26551 = vst [vmem:[#allocation114_spill] sm:$0xff] %v23474_v9 }
 0x8f3   : > { %v23476_v17 = vpop.f32.mrb[86].mxu1 }
 0x8f4   : > { %26552 = vst [vmem:[#allocation115_spill] sm:$0xff] %v23476_v17  ;;  %v23478_v2 = vpop.f32.mrb[87].mxu1 }
 0x8f5   : > { %26553 = vst [vmem:[#allocation116_spill] sm:$0xff] %v23478_v2 }
 0x8f8   : > { %v23480_v4 = vpop.f32.mrb[64].mxu0 }
 0x8f9   : > { %26554 = vst [vmem:[#allocation117_spill] sm:$0xff] %v23480_v4  ;;  %v23482_v7 = vpop.f32.mrb[65].mxu0  ;;  %v7422_v4 = vpop.permute.xlu1 %7421 }
 0x8fa   : > { %26555 = vst [vmem:[#allocation118_spill] sm:$0xff] %v23482_v7 }
 0x8fb   : > { %v23484_v40 = vpop.f32.mrb[88].mxu1 }
 0x8fc   : > { %26556 = vst [vmem:[#allocation119_spill] sm:$0xff] %v23484_v40  ;;  %v23486_v46 = vpop.f32.mrb[89].mxu1 }
 0x8fd   : > { %26557 = vst [vmem:[#allocation120_spill] sm:$0xff] %v23486_v46 }
 0x8ff   : > { %v23488_v15 = vpop.f32.mrb[66].mxu0 }
 0x900   : > { %26558 = vst [vmem:[#allocation121_spill] sm:$0xff] %v23488_v15  ;;  %v23490_v8 = vpop.f32.mrb[67].mxu0 }
 0x901   : > { %26559 = vst [vmem:[#allocation122_spill] sm:$0xff] %v23490_v8 }
 0x905   : > { %v6671_v3 = vpop.f32.mrb[68].mxu0 }
 0x906   : > { %v19932_v22 = vpop.f32.mrb[69].mxu0  ;;  %v7221_v47 = vsel %vm615_vm1, %v6671_v3, -inf }
 0x907   : > { %7222 = vmax.xlane.f32.xlu0 %v7221_v47 }
 0x909   : > { %v6827_v55 = vpop.f32.mrb[70].mxu0 }
 0x90a   : > { %v19942_v48 = vpop.f32.mrb[71].mxu0  ;;  %v7227_v10 = vsel %vm615_vm1, %v6827_v55, -inf }
 0x90b   : > { %7228 = vmax.xlane.f32.xlu0 %v7227_v10 }
 0x925   : > { %v23494_v6 = vpop.f32.mrb[72].mxu0 }
 0x926   : > { %v19952_v41 = vpop.f32.mrb[73].mxu0 }
 0x92d   : > { %v23496_v44 = vpop.f32.mrb[74].mxu0 }
 0x92e   : > { %v19962_v19 = vpop.f32.mrb[75].mxu0 }
 0x92f   : > { %v7233_v19 = vsel %vm615_vm1, %v23494_v6, -inf }
 0x931   : > { %v23498_v27 = vpop.f32.mrb[90].mxu1 }
 0x932   : > { %26560 = vst [vmem:[#allocation123_spill] sm:$0xff] %v23498_v27  ;;  %v23500_v50 = vpop.f32.mrb[91].mxu1 }
 0x933   : > { %26561 = vst [vmem:[#allocation124_spill] sm:$0xff] %v23500_v50 }
 0x935   : > { %v23502_v8 = vpop.f32.mrb[92].mxu1 }
 0x936   : > { %v19937_v22 = vpop.f32.mrb[93].mxu1  ;;  %v7224_v47 = vsel %vm615_vm1, %v23502_v8, -inf }
 0x937   : > { %7225 = vmax.xlane.f32.xlu1 %v7224_v47 }
 0x939   : > { %v23506_v48 = vpop.f32.mrb[94].mxu1 }
 0x93a   : > { %v19947_v10 = vpop.f32.mrb[95].mxu1  ;;  %v7230_v41 = vsel %vm615_vm1, %v23506_v48, -inf }
 0x93b   : > { %7231 = vmax.xlane.f32.xlu0 %v7230_v41  ;;  %7234 = vmax.xlane.f32.xlu1 %v7233_v19  ;;  %v23540_v41 = vpop.permute.xlu0 %7497 }
 0x93d   : > { %v23512_v46 = vpop.f32.mrb[96].mxu1 }
 0x93e   : > { %v19957_v7 = vpop.f32.mrb[97].mxu1  ;;  %v7236_v22 = vsel %vm615_vm1, %v23512_v46, -inf }
 0x93f   : > { %7237 = vmax.xlane.f32.xlu0 %v7236_v22  ;;  %v7239_v7 = vsel %vm615_vm1, %v23496_v44, -inf  ;;  %v23546_v19 = vpop.permute.xlu0 %7649 }
 0x941   : > { %v23516_v2 = vpop.f32.mrb[98].mxu1 }
 0x942   : > { %v19967_v47 = vpop.f32.mrb[99].mxu1  ;;  %v7242_v10 = vsel %vm615_vm1, %v23516_v2, -inf }
 0x943   : > { %7243 = vmax.xlane.f32.xlu0 %v7242_v10  ;;  %v23552_v22 = vpop.permute.xlu0 %7960 }
 0x947   : > { %v23558_v47 = vpop.permute.xlu0 %8038 }
 0x94b   : > { %v23562_v10 = vpop.permute.xlu0 %8036 }
 0x94c   : > { %8114 = vrot.lane.b32.xlu1 %v22372_v57, %s22032_s7 }
 0x959   : > { %8194 = vrot.lane.b32.xlu0 %v22374_v58, %s22031_s8 }
 0x95d   : > { %8192 = vrot.lane.b32.xlu0 %v22378_v59, %s22032_s7 }
 0x961   : > { %8350 = vrot.lane.b32.xlu0 %v22386_v62, %s22031_s8 }
 0x965   : > { %8428 = vrot.lane.b32.xlu0 %v22392_v0, %s22031_s8 }
 0x969   : > { %8506 = vrot.lane.b32.xlu0 %v22468_v25, %s22031_s8 }
 0x96d   : > { %8706 = vrot.lane.b32.xlu0 %v22362_v54, %s22033_s9 }
 0x970   : > { %7240 = vmax.xlane.f32.xlu1 %v7239_v7 }
 0x971   : > { %8858 = vrot.lane.b32.xlu0 %v22374_v58, %s22033_s9 }
 0x975   : > { %9010 = vrot.lane.b32.xlu0 %v22386_v62, %s22033_s9 }
 0x979   : > { %21255 = vrot.lane.b32.xlu0 %v22276_v32, %s22034_s10 }
 0x97d   : > { %21265 = vrot.lane.b32.xlu0 %v22280_v33, %s22034_s10 }
 0x981   : > { %8272 = vrot.lane.b32.xlu1 %v22380_v60, %s22031_s8  ;;  %9320 = vrot.lane.b32.xlu0 %v22264_v28, %s22035_s29 }
 0x985   : > { %8270 = vrot.lane.b32.xlu1 %v22382_v61, %s22032_s7 }
 0x989   : > { %8348 = vrot.lane.b32.xlu1 %v22388_v63, %s22032_s7 }
 0x98d   : > { %8426 = vrot.lane.b32.xlu1 %v22466_v24, %s22032_s7 }
 0x991   : > { %8504 = vrot.lane.b32.xlu1 %v22470_v26, %s22032_s7 }
 0x994   : > { %v7223_v7 = vpop.xlane.xlu0 %7222 }
 0x995   : > { %v7245_v9 = vsub.f32 %v6671_v3, %v7223_v7  ;;  %8630 = vrot.lane.b32.xlu1 %v22358_v52, %s22033_s9 }
 0x997   : > { %v7253_v27 = vmul.f32 1.442695, %v7245_v9 }
 0x998   : > { %v7229_v50 = vpop.xlane.xlu0 %7228 }
 0x999   : > { %21510 = vpow2.f32 %v7253_v27  ;;  %v7247_v15 = vsub.f32 %v6827_v55, %v7229_v50  ;;  %8782 = vrot.lane.b32.xlu1 %v22370_v56, %s22033_s9 }
 0x99b   : > { %v7257_v40 = vmul.f32 1.442695, %v7247_v15 }
 0x99d   : > { %21512 = vpow2.f32 %v7257_v40  ;;  %8934 = vrot.lane.b32.xlu1 %v22380_v60, %s22033_s9  ;;  %v7574_v40 = vpop.permute.xlu1 %7573 }
 0x9a1   : > { %9086 = vrot.lane.b32.xlu1 %v22392_v0, %s22033_s9 }
 0x9a3   : > { %v23574_v3 = vpop.eup %21510 }
 0x9a4   : > { %26562 = vst [vmem:[#allocation125_spill] sm:$0xff] %v23574_v3  ;;  %19971 = vmatmul.mubr.msk.f32.vlgmr.msra.gmra.mrb[76].mxu0 %vm615_vm1, %v23574_v3 }
 0x9a5   : > { %19979 = vmatpush3.msra.mxu0 %v7422_v4  ;;  %9162 = vrot.lane.b32.xlu1 %v22468_v25, %s22033_s9  ;;  %v7726_v4 = vpop.permute.xlu1 %7725 }
 0x9a6   : > { %19980 = vmatprep.mubr.msk.f32.mxu0 %vm22030_vm4, %v26484_v42  ;;  %19988 = vmatprep.subr.mxu0 %v26484_v42 }
 0x9a7   : > { %v23583_v9 = vpop.eup %21512 }
 0x9a8   : > { %26563 = vst [vmem:[#allocation126_spill] sm:$0xff] %v23583_v9  ;;  %19981 = vmatmul.mubr.msk.f32.vlgmr.msra.gmra.mrb[78].mxu0 %vm615_vm1, %v23583_v9 }
 0x9a9   : > { %19989 = vmatpush3.msra.mxu0 %v7574_v40  ;;  %21260 = vrot.lane.b32.xlu1 %v22298_v38, %s22034_s10  ;;  %v7802_v15 = vpop.permute.xlu1 %7801 }
 0x9aa   : > { %19990 = vmatprep.mubr.msk.f32.mxu0 %vm22030_vm4, %v26484_v42  ;;  %19998 = vmatprep.subr.mxu0 %v26484_v42 }
 0x9ad   : > { %9318 = vrot.lane.b32.xlu1 %v22268_v30, %s22035_s29  ;;  %v23596_v55 = vpop.permute.xlu1 %7958 }
 0x9b1   : > { %21270 = vrot.lane.b32.xlu1 %v22302_v39, %s22034_s10  ;;  %v23598_v27 = vpop.permute.xlu1 %8116 }
 0x9c4   : > { %v7226_v50 = vpop.xlane.xlu1 %7225 }
 0x9c5   : > { %v7246_v7 = vsub.f32 %v23502_v8, %v7226_v50 }
 0x9c7   : > { %v7255_v40 = vmul.f32 1.442695, %v7246_v7 }
 0x9c8   : > { %v7232_v9 = vpop.xlane.xlu0 %7231  ;;  %v7235_v3 = vpop.xlane.xlu1 %7234 }
 0x9c9   : > { %21514 = vpow2.f32 %v7255_v40  ;;  %v7248_v17 = vsub.f32 %v23506_v48, %v7232_v9  ;;  %v7249_v14 = vsub.f32 %v23494_v6, %v7235_v3 }
 0x9cb   : > { %v7259_v31 = vmul.f32 1.442695, %v7248_v17  ;;  %v7261_v35 = vmul.f32 1.442695, %v7249_v14 }
 0x9cc   : > { %v7238_v11 = vpop.xlane.xlu0 %7237  ;;  %v8115_v17 = vpop.permute.xlu1 %8114 }
 0x9cd   : > { %21516 = vpow2.f32 %v7259_v31  ;;  %v7250_v37 = vsub.f32 %v23512_v46, %v7238_v11 }
 0x9ce   : > { %21518 = vpow2.f32 %v7261_v35 }
 0x9cf   : > { %v7263_v12 = vmul.f32 1.442695, %v7250_v37 }
 0x9d0   : > { %v7244_v1 = vpop.xlane.xlu0 %7243 }
 0x9d1   : > { %21520 = vpow2.f32 %v7263_v12  ;;  %v7252_v8 = vsub.f32 %v23516_v2, %v7244_v1 }
 0x9d3   : > { %v23605_v50 = vpop.eup %21514  ;;  %v7267_v7 = vmul.f32 1.442695, %v7252_v8 }
 0x9d4   : > { %26564 = vst [vmem:[#allocation127_spill] sm:$0xff] %v23605_v50  ;;  %19976 = vmatmul.mubr.msk.f32.vlgmr.msra.gmra.mrb[100].mxu1 %vm615_vm1, %v23605_v50  ;;  %v8195_v31 = vpop.permute.xlu0 %8194 }
 0x9d5   : > { %21522 = vpow2.f32 %v7267_v7  ;;  %19984 = vmatpush3.msra.mxu1 %v23540_v41  ;;  %19985 = vmatprep.mubr.msk.f32.mxu1 %vm22030_vm4, %v26484_v42 }
 0x9d6   : > { %19993 = vmatprep.subr.mxu1 %v26484_v42 }
 0x9d7   : > { %v23613_v11 = vpop.eup %21516 }
 0x9d8   : > { %26565 = vst [vmem:[#allocation128_spill] sm:$0xff] %v23613_v11  ;;  %v23615_v37 = vpop.eup %21518  ;;  %19986 = vmatmul.mubr.msk.f32.vlgmr.msra.gmra.mrb[102].mxu1 %vm615_vm1, %v23613_v11  ;;  %v8193_v35 = vpop.permute.xlu0 %8192  ;;  %v26587_v11 = vld [vmem:[#allocation17_spill] sm:$0xff] }
 0x9d9   : > { %26566 = vst [vmem:[#allocation129_spill] sm:$0xff] %v23615_v37  ;;  %19991 = vmatmul.mubr.msk.f32.vlgmr.msra.gmra.mrb[80].mxu0 %vm615_vm1, %v23615_v37  ;;  %19994 = vmatpush3.msra.mxu1 %v23546_v19  ;;  %v26588_v37 = vld [vmem:[#allocation22_spill] sm:$0xff] }
 0x9da   : > { %19999 = vmatpush3.msra.mxu0 %v7726_v4  ;;  %19995 = vmatprep.mubr.msk.f32.mxu1 %vm22030_vm4, %v26484_v42 }
 0x9db   : > { %v23624_v1 = vpop.eup %21520  ;;  %20003 = vmatprep.subr.mxu1 %v26484_v42  ;;  %20000 = vmatprep.mubr.msk.f32.mxu0 %vm22030_vm4, %v26484_v42 }
 0x9dc   : > { %26567 = vst [vmem:[#allocation130_spill] sm:$0xff] %v23624_v1  ;;  %19996 = vmatmul.mubr.msk.f32.vlgmr.msra.gmra.mrb[104].mxu1 %vm615_vm1, %v23624_v1  ;;  %20008 = vmatprep.subr.mxu0 %v26484_v42  ;;  %v8351_v14 = vpop.permute.xlu0 %8350  ;;  %v26586_v1 = vld [vmem:[#allocation13_spill] sm:$0xff] }
 0x9dd   : > { %20004 = vmatpush3.msra.mxu1 %v7802_v15  ;;  %20005 = vmatprep.mubr.msk.f32.mxu1 %vm22030_vm4, %v26484_v42 }
 0x9de   : > { %20013 = vmatprep.subr.mxu1 %v26484_v42 }
 0x9df   : > { %v23635_v12 = vpop.eup %21522 }
 0x9e0   : > { %26568 = vst [vmem:[#allocation131_spill] sm:$0xff] %v23635_v12  ;;  %20006 = vmatmul.mubr.msk.f32.vlgmr.msra.gmra.mrb[106].mxu1 %vm615_vm1, %v23635_v12  ;;  %v8429_v41 = vpop.permute.xlu0 %8428 }
 0x9e1   : > { %20015 = vmatprep.mubr.msk.f32.mxu1 %vm22030_vm4, %v26484_v42 }
 0x9e4   : > { %20014 = vmatpush3.xpose.msk.msra.mxu1 %vm615_vm1, %v23558_v47 }
 0x9e5   : > { %20023 = vmatprep.subr.mxu1 %v26484_v42 }
 0x9e7   : > { %20016 = vmatmul.mubr.msk.f32.vlgmr.msra.gmra.mrb[108].mxu1 %vm615_vm1, %v23562_v10  ;;  %v8507_v10 = vpop.permute.xlu0 %8506 }
 0x9e8   : > { %20024 = vmatpush3.xpose.msk.msra.mxu1 %vm615_vm1, %v8195_v31  ;;  %20025 = vmatprep.mubr.msk.f32.mxu1 %vm22030_vm4, %v26484_v42 }
 0x9e9   : > { %20033 = vmatprep.subr.mxu1 %v26484_v42 }
 0x9eb   : > { %20026 = vmatmul.mubr.msk.f32.vlgmr.msra.gmra.mrb[110].mxu1 %vm615_vm1, %v8193_v35  ;;  %v8707_v4 = vpop.permute.xlu0 %8706 }
 0x9ec   : > { %20034 = vmatpush3.xpose.msk.msra.mxu1 %vm615_vm1, %v8351_v14  ;;  %20035 = vmatprep.mubr.msk.f32.mxu1 %vm22030_vm4, %v26484_v42 }
 0x9ed   : > { %20043 = vmatprep.subr.mxu1 %v26484_v42 }
 0x9fd   : > { %v7241_v2 = vpop.xlane.xlu1 %7240 }
 0x9fe   : > { %v7251_v46 = vsub.f32 %v23496_v44, %v7241_v2 }
 0xa00   : > { %v7265_v6 = vmul.f32 1.442695, %v7251_v46 }
 0xa01   : > { %v8273_v48 = vpop.permute.xlu1 %8272 }
 0xa02   : > { %21524 = vpow2.f32 %v7265_v6 }
 0xa05   : > { %v8271_v19 = vpop.permute.xlu1 %8270 }
 0xa09   : > { %v8349_v47 = vpop.permute.xlu1 %8348 }
 0xa0a   : > { %20036 = vmatmul.mubr.msk.f32.vlgmr.msra.gmra.mrb[112].mxu1 %vm615_vm1, %v8349_v47 }
 0xa0b   : > { %20044 = vmatpush3.xpose.msk.msra.mxu1 %vm615_vm1, %v8507_v10  ;;  %20045 = vmatprep.mubr.msk.f32.mxu1 %vm22030_vm4, %v26484_v42 }
 0xa0c   : > { %v23660_v3 = vpop.eup %21524  ;;  %20053 = vmatprep.subr.mxu1 %v26484_v42 }
 0xa0d   : > { %26569 = vst [vmem:[#allocation132_spill] sm:$0xff] %v23660_v3  ;;  %20001 = vmatmul.mubr.msk.f32.vlgmr.msra.gmra.mrb[82].mxu0 %vm615_vm1, %v23660_v3  ;;  %v8427_v44 = vpop.permute.xlu1 %8426 }
 0xa0e   : > { %20009 = vmatpush3.xpose.msk.msra.mxu0 %vm615_vm1, %v23552_v22  ;;  %20010 = vmatprep.mubr.msk.f32.mxu0 %vm22030_vm4, %v26484_v42 }
 0xa0f   : > { %20018 = vmatprep.subr.mxu0 %v26484_v42 }
 0xa11   : > { %20011 = vmatmul.mubr.msk.f32.vlgmr.msra.gmra.mrb[84].mxu0 %vm615_vm1, %v23596_v55  ;;  %v8505_v9 = vpop.permute.xlu1 %8504 }
 0xa12   : > { %20019 = vmatpush3.xpose.msk.msra.mxu0 %vm615_vm1, %v23598_v27  ;;  %20046 = vmatmul.mubr.msk.f32.vlgmr.msra.gmra.mrb[114].mxu1 %vm615_vm1, %v8505_v9 }
 0xa13   : > { %20054 = vmatpush3.msra.mxu1 %v8707_v4  ;;  %20020 = vmatprep.mubr.msk.f32.mxu0 %vm22030_vm4, %v26484_v42 }
 0xa14   : > { %20028 = vmatprep.subr.mxu0 %v26484_v42  ;;  %20055 = vmatprep.mubr.msk.f32.mxu1 %vm22030_vm4, %v26484_v42 }
 0xa15   : > { %20021 = vmatmul.mubr.msk.f32.vlgmr.msra.gmra.mrb[86].mxu0 %vm615_vm1, %v8115_v17  ;;  %20063 = vmatprep.subr.mxu1 %v26484_v42  ;;  %v8631_v22 = vpop.permute.xlu1 %8630 }
 0xa16   : > { %20029 = vmatpush3.xpose.msk.msra.mxu0 %vm615_vm1, %v8273_v48  ;;  %20030 = vmatprep.mubr.msk.f32.mxu0 %vm22030_vm4, %v26484_v42 }
 0xa17   : > { %20038 = vmatprep.subr.mxu0 %v26484_v42 }
 0xa19   : > { %20031 = vmatmul.mubr.msk.f32.vlgmr.msra.gmra.mrb[88].mxu0 %vm615_vm1, %v8271_v19 }
 0xa1a   : > { %20039 = vmatpush3.xpose.msk.msra.mxu0 %vm615_vm1, %v8429_v41  ;;  %20040 = vmatprep.mubr.msk.f32.mxu0 %vm22030_vm4, %v26484_v42 }
 0xa1b   : > { %20048 = vmatprep.subr.mxu0 %v26484_v42 }
 0xa1d   : > { %20041 = vmatmul.mubr.msk.f32.vlgmr.msra.gmra.mrb[90].mxu0 %vm615_vm1, %v8427_v44 }
 0xa1e   : > { %20049 = vmatpush3.msra.mxu0 %v8631_v22  ;;  %20050 = vmatprep.mubr.msk.f32.mxu0 %vm22030_vm4, %v26484_v42 }
 0xa1f   : > { %20058 = vmatprep.subr.mxu0 %v26484_v42 }
 0xa77   : > { %v23695_v15 = vpop.f32.mrb[76].mxu0 }
 0xa78   : > { %26570 = vst [vmem:[#allocation133_spill] sm:$0xff] %v23695_v15  ;;  %v19972_v55 = vpop.f32.mrb[77].mxu0  ;;  %v26582_v15 = vld [vmem:[#allocation16_spill] sm:$0xff] }
 0xa7b   : > { %v23697_v27 = vpop.f32.mrb[78].mxu0 }
 0xa7c   : > { %26571 = vst [vmem:[#allocation134_spill] sm:$0xff] %v23697_v27  ;;  %v19982_v40 = vpop.f32.mrb[79].mxu0 }
 0xaa7   : > { %v23699_v8 = vpop.f32.mrb[100].mxu1 }
 0xaa8   : > { %26572 = vst [vmem:[#allocation135_spill] sm:$0xff] %v23699_v8  ;;  %v19977_v7 = vpop.f32.mrb[101].mxu1  ;;  %v26585_v8 = vld [vmem:[#allocation25_spill] sm:$0xff] }
 0xaab   : > { %v23701_v31 = vpop.f32.mrb[102].mxu1 }
 0xaac   : > { %26573 = vst [vmem:[#allocation136_spill] sm:$0xff] %v23701_v31  ;;  %v23703_v35 = vpop.f32.mrb[80].mxu0  ;;  %v19987_v14 = vpop.f32.mrb[103].mxu1  ;;  %v26580_v31 = vld [vmem:[#allocation19_spill] sm:$0xff] }
 0xaad   : > { %26574 = vst [vmem:[#allocation137_spill] sm:$0xff] %v23703_v35  ;;  %v19992_v17 = vpop.f32.mrb[81].mxu0  ;;  %v26584_v35 = vld [vmem:[#allocation9_spill] sm:$0xff] }
 0xaaf   : > { %v23705_v2 = vpop.f32.mrb[104].mxu1 }
 0xab0   : > { %26575 = vst [vmem:[#allocation138_spill] sm:$0xff] %v23705_v2  ;;  %v19997_v46 = vpop.f32.mrb[105].mxu1  ;;  %v26579_v2 = vld [vmem:[#allocation10_spill] sm:$0xff] }
 0xab3   : > { %v23707_v6 = vpop.f32.mrb[106].mxu1 }
 0xab4   : > { %26576 = vst [vmem:[#allocation139_spill] sm:$0xff] %v23707_v6  ;;  %v20007_v48 = vpop.f32.mrb[107].mxu1 }
 0xaba   : > { %v8110_v41 = vpop.f32.mrb[108].mxu1 }
 0xabb   : > { %v20017_v19 = vpop.f32.mrb[109].mxu1  ;;  %v8585_v47 = vsel %vm615_vm1, %v8110_v41, -inf }
 0xabc   : > { %8586 = vmax.xlane.f32.xlu1 %v8585_v47 }
 0xabe   : > { %v23710_v10 = vpop.f32.mrb[110].mxu1 }
 0xabf   : > { %v20027_v44 = vpop.f32.mrb[111].mxu1 }
 0xadd   : > { %v23712_v9 = vpop.f32.mrb[112].mxu1 }
 0xade   : > { %v20037_v4 = vpop.f32.mrb[113].mxu1 }
 0xae0   : > { %v23714_v22 = vpop.f32.mrb[82].mxu0 }
 0xae1   : > { %26577 = vst [vmem:[#allocation140_spill] sm:$0xff] %v23714_v22  ;;  %v20002_v55 = vpop.f32.mrb[83].mxu0 }
 0xae2   : > { %v8591_v55 = vsel %vm615_vm1, %v23710_v10, -inf }
 0xae4   : > { %v23716_v40 = vpop.f32.mrb[84].mxu0 }
 0xae5   : > { %v20012_v7 = vpop.f32.mrb[85].mxu0  ;;  %v23718_v14 = vpop.f32.mrb[114].mxu1  ;;  %v8582_v17 = vsel %vm615_vm1, %v23716_v40, -inf }
 0xae6   : > { %8583 = vmax.xlane.f32.xlu0 %v8582_v17  ;;  %v20047_v46 = vpop.f32.mrb[115].mxu1 }
 0xae8   : > { %v23722_v48 = vpop.f32.mrb[86].mxu0 }
 0xae9   : > { %v20022_v19 = vpop.f32.mrb[87].mxu0  ;;  %v8588_v47 = vsel %vm615_vm1, %v23722_v48, -inf }
 0xaea   : > { %8589 = vmax.xlane.f32.xlu0 %v8588_v47  ;;  %v8597_v19 = vsel %vm615_vm1, %v23712_v9, -inf  ;;  %v26578_v47 = vld [vmem:[#allocation12_spill] sm:$0xff] }
 0xaec   : > { %v23726_v44 = vpop.f32.mrb[88].mxu0 }
 0xaed   : > { %v20032_v4 = vpop.f32.mrb[89].mxu0  ;;  %v8594_v7 = vsel %vm615_vm1, %v23726_v44, -inf }
 0xaee   : > { %8592 = vmax.xlane.f32.xlu0 %v8591_v55  ;;  %8595 = vmax.xlane.f32.xlu1 %v8594_v7  ;;  %v23740_v4 = vpop.permute.xlu1 %8782  ;;  %v8603_v55 = vsel %vm615_vm1, %v23718_v14, -inf }
 0xaf0   : > { %v23732_v17 = vpop.f32.mrb[90].mxu0 }
 0xaf1   : > { %v20042_v46 = vpop.f32.mrb[91].mxu0  ;;  %v8600_v6 = vsel %vm615_vm1, %v23732_v17, -inf }
 0xaf2   : > { %8598 = vmax.xlane.f32.xlu0 %v8597_v19  ;;  %v23746_v7 = vpop.permute.xlu1 %8934 }
 0xaf6   : > { %v23748_v46 = vpop.permute.xlu1 %9086 }
 0xafa   : > { %v23750_v19 = vpop.permute.xlu1 %9162 }
 0xafe   : > { %v23756_v27 = vpop.permute.xlu1 %21260 }
 0xaff   : > { %9411 = vrot.lane.b32.xlu1 %v22284_v34, %s22035_s29 }
 0xb02   : > { %v23762_v22 = vpop.permute.xlu1 %9318 }
 0xb06   : > { %v23770_v12 = vpop.permute.xlu1 %21270 }
 0xb08   : > { %9409 = vrot.lane.b32.xlu0 %v26578_v47, %s22035_s29 }
 0xb23   : > { %8601 = vmax.xlane.f32.xlu1 %v8600_v6  ;;  %v26581_v6 = vld [vmem:[#allocation11_spill] sm:$0xff] }
 0xb27   : > { %8604 = vmax.xlane.f32.xlu0 %v8603_v55  ;;  %v26583_v55 = vld [vmem:[#allocation15_spill] sm:$0xff] }
 0xb34   : > { %9500 = vrot.lane.b32.xlu1 %v26579_v2, %s22035_s29 }
 0xb38   : > { %21280 = vrot.lane.b32.xlu1 %v26580_v31, %s22034_s10 }
 0xb3c   : > { %9593 = vrot.lane.b32.xlu1 %v26581_v6, %s22035_s29 }
 0xb3d   : > { %21275 = vrot.lane.b32.xlu0 %v26582_v15, %s22034_s10 }
 0xb40   : > { %9682 = vrot.lane.b32.xlu1 %v26583_v55, %s22035_s29 }
 0xb41   : > { %9502 = vrot.lane.b32.xlu0 %v26584_v35, %s22035_s29 }
 0xb44   : > { %21290 = vrot.lane.b32.xlu1 %v26585_v8, %s22034_s10 }
 0xb45   : > { %9591 = vrot.lane.b32.xlu0 %v26586_v1, %s22035_s29 }
 0xb48   : > { %9775 = vrot.lane.b32.xlu1 %v26587_v11, %s22035_s29 }
 0xb49   : > { %v8587_v3 = vpop.xlane.xlu1 %8586  ;;  %21285 = vrot.lane.b32.xlu0 %v26588_v37, %s22034_s10 }
 0xb4a   : > { %v8607_v50 = vsub.f32 %v8110_v41, %v8587_v3  ;;  %v26593_v3 = vld [vmem:[#allocation21_spill] sm:$0xff] }
 0xb4c   : > { %v8616_v49 = vmul.f32 1.442695, %v8607_v50  ;;  %9866 = vrot.lane.b32.xlu1 %v26589_v18, %s22035_s29  ;;  %v8859_v50 = vpop.permute.xlu0 %8858 }
 0xb4d   : > { %9684 = vrot.lane.b32.xlu0 %v26590_v23, %s22035_s29 }
 0xb4e   : > { %21526 = vpow2.f32 %v8616_v49  ;;  %v26595_v49 = vld [vmem:[#allocation24_spill] sm:$0xff] }
 0xb50   : > { %9957 = vrot.lane.b32.xlu1 %v26591_v36, %s22035_s29  ;;  %v9011_v21 = vpop.permute.xlu0 %9010 }
 0xb51   : > { %9773 = vrot.lane.b32.xlu0 %v26592_v16, %s22035_s29 }
 0xb54   : > { %21295 = vrot.lane.b32.xlu1 %v22276_v32, %s22036_s11 }
 0xb55   : > { %9864 = vrot.lane.b32.xlu0 %v26593_v3, %s22035_s29 }
 0xb58   : > { %v23790_v41 = vpop.eup %21526  ;;  %21305 = vrot.lane.b32.xlu1 %v22280_v33, %s22036_s11 }
 0xb59   : > { %26594 = vst [vmem:[#allocation141_spill] sm:$0xff] %v23790_v41  ;;  %20056 = vmatmul.mubr.msk.f32.vlgmr.msra.gmra.mrb[116].mxu1 %vm615_vm1, %v23790_v41  ;;  %9955 = vrot.lane.b32.xlu0 %v26595_v49, %s22035_s29  ;;  %v21256_v41 = vpop.permute.xlu0 %21255 }
 0xb5a   : > { %20064 = vmatpush3.msra.mxu1 %v8859_v50  ;;  %20065 = vmatprep.mubr.msk.f32.mxu1 %vm22030_vm4, %v26484_v42 }
 0xb5b   : > { %20073 = vmatprep.subr.mxu1 %v26484_v42 }
 0xb5c   : > { %21310 = vrot.lane.b32.xlu1 %v22302_v39, %s22036_s11 }
 0xb5d   : > { %21300 = vrot.lane.b32.xlu0 %v22298_v38, %s22036_s11  ;;  %v23815_v50 = vpop.permute.xlu0 %21265 }
 0xb60   : > { %21320 = vrot.lane.b32.xlu1 %v26580_v31, %s22036_s11 }
 0xb61   : > { %21315 = vrot.lane.b32.xlu0 %v26582_v15, %s22036_s11  ;;  %v23823_v45 = vpop.permute.xlu0 %9320 }
 0xb64   : > { %21330 = vrot.lane.b32.xlu1 %v26585_v8, %s22036_s11 }
 0xb65   : > { %21325 = vrot.lane.b32.xlu0 %v26588_v37, %s22036_s11 }
 0xb68   : > { %10999 = vrot.lane.b32.xlu1 %v22358_v52, %s22035_s29 }
 0xb69   : > { %11001 = vrot.lane.b32.xlu0 %v26596_v43, %s22034_s10 }
 0xb6c   : > { %11157 = vrot.lane.b32.xlu1 %v22372_v57, %s22034_s10 }
 0xb6d   : > { %11079 = vrot.lane.b32.xlu0 %v26597_v13, %s22034_s10 }
 0xb70   : > { %11155 = vrot.lane.b32.xlu1 %v22370_v56, %s22035_s29 }
 0xb71   : > { %11077 = vrot.lane.b32.xlu0 %v22362_v54, %s22035_s29 }
 0xb73   : > { %v8584_v5 = vpop.xlane.xlu0 %8583 }
 0xb74   : > { %v8606_v29 = vsub.f32 %v23716_v40, %v8584_v5  ;;  %v21257_v5 = vunpack.i.l.bf16 %v21256_v41 }
 0xb76   : > { %v8614_v20 = vmul.f32 1.442695, %v8606_v29 }
 0xb77   : > { %v8590_v53 = vpop.xlane.xlu0 %8589 }
 0xb78   : > { %21528 = vpow2.f32 %v8614_v20  ;;  %v8608_v51 = vsub.f32 %v23722_v48, %v8590_v53  ;;  %v21258_v53 = vunpack.i.h.bf16 %v21256_v41  ;;  %v21268_v41 = vunpack.i.h.bf16 %v23815_v50 }
 0xb7a   : > { %v8618_v49 = vmul.f32 1.442695, %v8608_v51 }
 0xb7b   : > { %v8593_v3 = vpop.xlane.xlu0 %8592  ;;  %v8596_v16 = vpop.xlane.xlu1 %8595 }
 0xb7c   : > { %21530 = vpow2.f32 %v8618_v49  ;;  %v8609_v36 = vsub.f32 %v23710_v10, %v8593_v3  ;;  %v8610_v23 = vsub.f32 %v23726_v44, %v8596_v16  ;;  %v21267_v49 = vunpack.i.l.bf16 %v23815_v50 }
 0xb7e   : > { %v8620_v18 = vmul.f32 1.442695, %v8609_v36  ;;  %v8622_v37 = vmul.f32 1.442695, %v8610_v23  ;;  %v21263_v23 = vunpack.i.h.bf16 %v23756_v27 }
 0xb7f   : > { %v8599_v11 = vpop.xlane.xlu0 %8598 }
 0xb80   : > { %21532 = vpow2.f32 %v8620_v18  ;;  %v8611_v1 = vsub.f32 %v23712_v9, %v8599_v11  ;;  %v21262_v18 = vunpack.i.l.bf16 %v23756_v27  ;;  %v20848_v11 = vpack.c.bf16 %v21258_v53, %v21257_v5 }
 0xb81   : > { %21534 = vpow2.f32 %v8622_v37 }
 0xb82   : > { %v23834_v29 = vpop.eup %21528  ;;  %v8624_v20 = vmul.f32 1.442695, %v8611_v1  ;;  %v20854_v27 = vpack.c.bf16 %v21263_v23, %v21262_v18  ;;  %v20860_v23 = vpack.c.bf16 %v21268_v41, %v21267_v49  ;;  %v21272_v18 = vunpack.i.l.bf16 %v23770_v12 }
 0xb83   : > { %26598 = vst [vmem:[#allocation142_spill] sm:$0xff] %v23834_v29  ;;  %20051 = vmatmul.mubr.msk.f32.vlgmr.msra.gmra.mrb[92].mxu0 %vm615_vm1, %v23834_v29  ;;  %v9410_v10 = vpop.permute.xlu0 %9409 }
 0xb84   : > { %21536 = vpow2.f32 %v8624_v20  ;;  %20059 = vmatpush3.msra.mxu0 %v23740_v4  ;;  %20060 = vmatprep.mubr.msk.f32.mxu0 %vm22030_vm4, %v26484_v42 }
 0xb85   : > { %20068 = vmatprep.subr.mxu0 %v26484_v42 }
 0xb86   : > { %v23842_v51 = vpop.eup %21530 }
 0xb87   : > { %26599 = vst [vmem:[#allocation143_spill] sm:$0xff] %v23842_v51  ;;  %20061 = vmatmul.mubr.msk.f32.vlgmr.msra.gmra.mrb[94].mxu0 %vm615_vm1, %v23842_v51 }
 0xb88   : > { %20069 = vmatpush3.msra.mxu0 %v23746_v7  ;;  %20070 = vmatprep.mubr.msk.f32.mxu0 %vm22030_vm4, %v26484_v42 }
 0xb89   : > { %20078 = vmatprep.subr.mxu0 %v26484_v42 }
 0xb8a   : > { %v23850_v16 = vpop.eup %21532 }
 0xb8b   : > { %26600 = vst [vmem:[#allocation144_spill] sm:$0xff] %v23850_v16  ;;  %v23852_v36 = vpop.eup %21534  ;;  %20066 = vmatmul.mubr.msk.f32.vlgmr.msra.gmra.mrb[118].mxu1 %vm615_vm1, %v23850_v16 }
 0xb8c   : > { %26601 = vst [vmem:[#allocation145_spill] sm:$0xff] %v23852_v36  ;;  %20071 = vmatmul.mubr.msk.f32.vlgmr.msra.gmra.mrb[96].mxu0 %vm615_vm1, %v23852_v36  ;;  %20074 = vmatpush3.msra.mxu1 %v9011_v21  ;;  %v9412_v21 = vpop.permute.xlu1 %9411 }
 0xb8d   : > { %20079 = vmatpush3.msra.mxu0 %v23748_v46  ;;  %20075 = vmatprep.mubr.msk.f32.mxu1 %vm22030_vm4, %v26484_v42 }
 0xb8e   : > { %v23863_v37 = vpop.eup %21536  ;;  %20850 = vmatprep.subr.msk.bf16.mxu0 %vm22396_vm2, %v20848_v11  ;;  %20083 = vmatprep.subr.mxu1 %v26484_v42 }
 0xb8f   : > { %26602 = vst [vmem:[#allocation146_spill] sm:$0xff] %v23863_v37  ;;  %20076 = vmatmul.mubr.msk.f32.vlgmr.msra.gmra.mrb[120].mxu1 %vm615_vm1, %v23863_v37  ;;  %20080 = vmatprep.mubr.msk.f32.mxu0 %vm22030_vm4, %v26484_v42 }
 0xb90   : > { %20084 = vmatpush3.msra.mxu1 %v23750_v19  ;;  %20085 = vmatprep.mubr.msk.f32.mxu1 %vm22030_vm4, %v26484_v42 }
 0xb91   : > { %20856 = vmatprep.subr.msk.bf16.mxu1 %vm22396_vm2, %v20854_v27 }
 0xbb0   : > { %v8602_v9 = vpop.xlane.xlu1 %8601 }
 0xbb1   : > { %v8612_v40 = vsub.f32 %v23732_v17, %v8602_v9  ;;  %v21273_v17 = vunpack.i.h.bf16 %v23770_v12 }
 0xbb3   : > { %v8626_v48 = vmul.f32 1.442695, %v8612_v40  ;;  %v20866_v40 = vpack.c.bf16 %v21273_v17, %v21272_v18 }
 0xbb4   : > { %v8605_v44 = vpop.xlane.xlu0 %8604  ;;  %v9501_v4 = vpop.permute.xlu1 %9500 }
 0xbb5   : > { %21538 = vpow2.f32 %v8626_v48  ;;  %v8613_v7 = vsub.f32 %v23718_v14, %v8605_v44 }
 0xbb7   : > { %v8628_v46 = vmul.f32 1.442695, %v8613_v7 }
 0xbb8   : > { %v21276_v3 = vpop.permute.xlu0 %21275  ;;  %v21281_v19 = vpop.permute.xlu1 %21280 }
 0xbb9   : > { %21540 = vpow2.f32 %v8628_v46  ;;  %v21278_v48 = vunpack.i.h.bf16 %v21276_v3  ;;  %v21277_v44 = vunpack.i.l.bf16 %v21276_v3  ;;  %v21282_v46 = vunpack.i.l.bf16 %v21281_v19 }
 0xbbc   : > { %v9503_v20 = vpop.permute.xlu0 %9502  ;;  %v9594_v53 = vpop.permute.xlu1 %9593 }
 0xbbf   : > { %v23881_v5 = vpop.eup %21538 }
 0xbc0   : > { %26604 = vst [vmem:[#allocation147_spill] sm:$0xff] %v23881_v5  ;;  %v9592_v9 = vpop.permute.xlu0 %9591  ;;  %20081 = vmatmul.mubr.msk.f32.vlgmr.msra.gmra.mrb[98].mxu0 %vm615_vm1, %v23881_v5  ;;  %v9683_v14 = vpop.permute.xlu1 %9682 }
 0xbc1   : > { %20853 = vmatpush3.bf16.xpose.msk.msra.mxu0 %vm22396_vm2, %v20848_v11  ;;  %20092 = vmatprep.mubr.msk.f32.mxu0 %vm615_vm1, %v23762_v22  ;;  %v20872_v22 = vpack.c.bf16 %v21278_v48, %v21277_v44  ;;  %v21283_v11 = vunpack.i.h.bf16 %v21281_v19 }
 0xbc2   : > { %20862 = vmatprep.subr.msk.bf16.mxu0 %vm22396_vm2, %v20860_v23 }
 0xbc3   : > { %v23893_v50 = vpop.eup %21540 }
 0xbc4   : > { %26605 = vst [vmem:[#allocation148_spill] sm:$0xff] %v23893_v50  ;;  %v21286_v12 = vpop.permute.xlu0 %21285  ;;  %20086 = vmatmul.mubr.msk.f32.vlgmr.msra.gmra.mrb[122].mxu1 %vm615_vm1, %v23893_v50  ;;  %v21291_v7 = vpop.permute.xlu1 %21290 }
 0xbc5   : > { %20859 = vmatpush3.bf16.xpose.msk.msra.mxu1 %vm22396_vm2, %v20854_v27  ;;  %20099 = vmatprep.mubr.msk.f32.mxu1 %vm615_vm1, %v9410_v10  ;;  %v20878_v27 = vpack.c.bf16 %v21283_v11, %v21282_v46  ;;  %v21288_v10 = vunpack.i.h.bf16 %v21286_v12  ;;  %v21287_v49 = vunpack.i.l.bf16 %v21286_v12 }
 0xbc6   : > { %20868 = vmatprep.subr.msk.bf16.mxu1 %vm22396_vm2, %v20866_v40 }
 0xbc8   : > { %20093 = vmatmul.mubr.msk.f32.vlgmr.msra.gmra.mrb[100].mxu0 %vm615_vm1, %v23823_v45  ;;  %v9685_v3 = vpop.permute.xlu0 %9684  ;;  %v9776_v41 = vpop.permute.xlu1 %9775  ;;  %v20884_v45 = vpack.c.bf16 %v21288_v10, %v21287_v49 }
 0xbc9   : > { %20865 = vmatpush3.bf16.xpose.msk.msra.mxu0 %vm22396_vm2, %v20860_v23  ;;  %20106 = vmatprep.mubr.msk.f32.mxu0 %vm615_vm1, %v9501_v4  ;;  %v21293_v4 = vunpack.i.h.bf16 %v21291_v7  ;;  %v21292_v23 = vunpack.i.l.bf16 %v21291_v7 }
 0xbca   : > { %20874 = vmatprep.subr.msk.bf16.mxu0 %vm22396_vm2, %v20872_v22 }
 0xbcc   : > { %20100 = vmatmul.mubr.msk.f32.vlgmr.msra.gmra.mrb[124].mxu1 %vm615_vm1, %v9412_v21  ;;  %v9774_v17 = vpop.permute.xlu0 %9773  ;;  %v9867_v19 = vpop.permute.xlu1 %9866  ;;  %v20890_v21 = vpack.c.bf16 %v21293_v4, %v21292_v23 }
 0xbcd   : > { %20871 = vmatpush3.bf16.xpose.msk.msra.mxu1 %vm22396_vm2, %v20866_v40  ;;  %20113 = vmatprep.mubr.msk.f32.mxu1 %vm615_vm1, %v9592_v9 }
 0xbce   : > { %20880 = vmatprep.subr.msk.bf16.mxu1 %vm22396_vm2, %v20878_v27 }
 0xbd0   : > { %20107 = vmatmul.mubr.msk.f32.vlgmr.msra.gmra.mrb[102].mxu0 %vm615_vm1, %v9503_v20  ;;  %v9865_v18 = vpop.permute.xlu0 %9864  ;;  %v9958_v48 = vpop.permute.xlu1 %9957 }
 0xbd1   : > { %20877 = vmatpush3.bf16.xpose.msk.msra.mxu0 %vm22396_vm2, %v20872_v22  ;;  %20120 = vmatprep.mubr.msk.f32.mxu0 %vm615_vm1, %v9683_v14 }
 0xbd2   : > { %20886 = vmatprep.subr.msk.bf16.mxu0 %vm22396_vm2, %v20884_v45 }
 0xbd4   : > { %20114 = vmatmul.mubr.msk.f32.vlgmr.msra.gmra.mrb[126].mxu1 %vm615_vm1, %v9594_v53  ;;  %v9956_v9 = vpop.permute.xlu0 %9955  ;;  %v21296_v40 = vpop.permute.xlu1 %21295 }
 0xbd5   : > { %v21298_v44 = vunpack.i.h.bf16 %v21296_v40  ;;  %v21297_v12 = vunpack.i.l.bf16 %v21296_v40  ;;  %20883 = vmatpush3.bf16.xpose.msk.msra.mxu1 %vm22396_vm2, %v20878_v27  ;;  %20127 = vmatprep.mubr.msk.f32.mxu1 %vm615_vm1, %v9774_v17 }
 0xbd6   : > { %20892 = vmatprep.subr.msk.bf16.mxu1 %vm22396_vm2, %v20890_v21 }
 0xbd7   : > { %v20896_v20 = vpack.c.bf16 %v21298_v44, %v21297_v12 }
 0xbd8   : > { %20121 = vmatmul.mubr.msk.f32.vlgmr.msra.gmra.mrb[104].mxu0 %vm615_vm1, %v9685_v3  ;;  %v21301_v14 = vpop.permute.xlu0 %21300  ;;  %v21306_v7 = vpop.permute.xlu1 %21305 }
 0xbd9   : > { %v21303_v22 = vunpack.i.h.bf16 %v21301_v14  ;;  %v21302_v11 = vunpack.i.l.bf16 %v21301_v14  ;;  %20889 = vmatpush3.bf16.xpose.msk.msra.mxu0 %vm22396_vm2, %v20884_v45  ;;  %20134 = vmatprep.mubr.msk.f32.mxu0 %vm615_vm1, %v9865_v18  ;;  %v21308_v46 = vunpack.i.h.bf16 %v21306_v7  ;;  %v21307_v27 = vunpack.i.l.bf16 %v21306_v7 }
 0xbda   : > { %20897 = vmatprep.subr.bf16.mxu0 %v20896_v20 }
 0xbdb   : > { %v20900_v53 = vpack.c.bf16 %v21303_v22, %v21302_v11  ;;  %v23936_v17 = vpack.c.bf16 %v21308_v46, %v21307_v27 }
 0xbdc   : > { %20128 = vmatmul.mubr.msk.f32.vlgmr.msra.gmra.mrb[128].mxu1 %vm615_vm1, %v9776_v41  ;;  %v21311_v10 = vpop.permute.xlu1 %21310 }
 0xbdd   : > { %20895 = vmatpush3.bf16.xpose.msk.msra.mxu1 %vm22396_vm2, %v20890_v21  ;;  %20141 = vmatprep.mubr.msk.f32.mxu1 %vm615_vm1, %v9956_v9  ;;  %v21313_v3 = vunpack.i.h.bf16 %v21311_v10  ;;  %v21312_v49 = vunpack.i.l.bf16 %v21311_v10 }
 0xbde   : > { %20901 = vmatprep.subr.bf16.mxu1 %v20900_v53 }
 0xbdf   : > { %v23940_v45 = vpack.c.bf16 %v21313_v3, %v21312_v49 }
 0xbe0   : > { %20135 = vmatmul.mubr.msk.f32.vlgmr.msra.gmra.mrb[106].mxu0 %vm615_vm1, %v9867_v19 }
 0xbe1   : > { %20899 = vmatpush3.bf16.msra.mxu0 %v20896_v20 }
 0xbe2   : > { %20905 = vmatprep.subr.bf16.mxu0 %v23936_v17 }
 0xbe4   : > { %20142 = vmatmul.mubr.msk.f32.vlgmr.msra.gmra.mrb[130].mxu1 %vm615_vm1, %v9958_v48 }
 0xbe5   : > { %20903 = vmatpush3.bf16.msra.mxu1 %v20900_v53 }
 0xbe6   : > { %20909 = vmatprep.subr.bf16.mxu1 %v23940_v45 }
 0xc2c   : > { %v23943_v41 = vpop.f32.mrb[116].mxu1 }
 0xc2d   : > { %26606 = vst [vmem:[#allocation149_spill] sm:$0xff] %v23943_v41  ;;  %v20057_v4 = vpop.f32.mrb[117].mxu1 }
 0xc56   : > { %v23945_v23 = vpop.f32.mrb[92].mxu0 }
 0xc57   : > { %26607 = vst [vmem:[#allocation150_spill] sm:$0xff] %v23945_v23  ;;  %v20052_v18 = vpop.f32.mrb[93].mxu0 }
 0xc5a   : > { %v23947_v21 = vpop.f32.mrb[94].mxu0 }
 0xc5b   : > { %26608 = vst [vmem:[#allocation151_spill] sm:$0xff] %v23947_v21  ;;  %v20062_v19 = vpop.f32.mrb[95].mxu0 }
 0xc5e   : > { %v23949_v9 = vpop.f32.mrb[118].mxu1 }
 0xc5f   : > { %26609 = vst [vmem:[#allocation152_spill] sm:$0xff] %v23949_v9  ;;  %v23951_v40 = vpop.f32.mrb[96].mxu0  ;;  %v20067_v44 = vpop.f32.mrb[119].mxu1 }
 0xc60   : > { %26610 = vst [vmem:[#allocation153_spill] sm:$0xff] %v23951_v40  ;;  %v20072_v48 = vpop.f32.mrb[97].mxu0 }
 0xc62   : > { %v23953_v12 = vpop.f32.mrb[120].mxu1 }
 0xc63   : > { %26611 = vst [vmem:[#allocation154_spill] sm:$0xff] %v23953_v12  ;;  %v20077_v20 = vpop.f32.mrb[121].mxu1 }
 0xc93   : > { %v23955_v14 = vpop.f32.mrb[98].mxu0 }
 0xc94   : > { %26612 = vst [vmem:[#allocation155_spill] sm:$0xff] %v23955_v14  ;;  %v20082_v7 = vpop.f32.mrb[99].mxu0 }
 0xc97   : > { %v23957_v22 = vpop.f32.mrb[122].mxu1 }
 0xc98   : > { %26613 = vst [vmem:[#allocation156_spill] sm:$0xff] %v23957_v22  ;;  %v20087_v11 = vpop.f32.mrb[123].mxu1 }
 0xc9b   : > { %v23959_v53 = vpop.f32.mrb[100].mxu0 }
 0xc9c   : > { %v23961_v46 = vpop.f32.mrb[101].mxu0  ;;  %v10049_v27 = vsel %vm1322_vm3, %v23959_v53, -inf }
 0xc9d   : > { %10050 = vmax.xlane.f32.xlu1 %v10049_v27  ;;  %v10046_v10 = vsel %vm1322_vm3, %v23961_v46, -inf }
 0xc9e   : > { %10047 = vmax.xlane.f32.xlu0 %v10046_v10 }
 0xc9f   : > { %v23967_v3 = vpop.f32.mrb[124].mxu1 }
 0xca0   : > { %v23969_v49 = vpop.f32.mrb[125].mxu1  ;;  %v10055_v4 = vsel %vm1322_vm3, %v23967_v3, -inf }
 0xca1   : > { %10056 = vmax.xlane.f32.xlu1 %v10055_v4  ;;  %v10052_v18 = vsel %vm1322_vm3, %v23969_v49, -inf }
 0xca2   : > { %10053 = vmax.xlane.f32.xlu0 %v10052_v18 }
 0xca3   : > { %v23975_v19 = vpop.f32.mrb[102].mxu0 }
 0xca4   : > { %v23977_v44 = vpop.f32.mrb[103].mxu0  ;;  %v10061_v48 = vsel %vm1322_vm3, %v23975_v19, -inf }
 0xca5   : > { %v10058_v27 = vsel %vm1322_vm3, %v23977_v44, -inf }
 0xca6   : > { %10062 = vmax.xlane.f32.xlu0 %v10061_v48 }
 0xca7   : > { %v23981_v20 = vpop.f32.mrb[126].mxu1 }
 0xca8   : > { %v23983_v7 = vpop.f32.mrb[127].mxu1  ;;  %v10067_v11 = vsel %vm1322_vm3, %v23981_v20, -inf }
 0xca9   : > { %10068 = vmax.xlane.f32.xlu1 %v10067_v11  ;;  %v10064_v18 = vsel %vm1322_vm3, %v23983_v7, -inf }
 0xcaa   : > { %10059 = vmax.xlane.f32.xlu0 %v10058_v27 }
 0xcab   : > { %v23989_v10 = vpop.f32.mrb[104].mxu0 }
 0xcac   : > { %v23991_v4 = vpop.f32.mrb[105].mxu0  ;;  %v10073_v48 = vsel %vm1322_vm3, %v23989_v10, -inf }
 0xcad   : > { %10065 = vmax.xlane.f32.xlu1 %v10064_v18  ;;  %v10070_v11 = vsel %vm1322_vm3, %v23991_v4, -inf }
 0xcae   : > { %10074 = vmax.xlane.f32.xlu0 %v10073_v48 }
 0xcaf   : > { %v23997_v14 = vpop.f32.mrb[128].mxu1 }
 0xcb0   : > { %v23999_v40 = vpop.f32.mrb[129].mxu1  ;;  %v10079_v18 = vsel %vm1322_vm3, %v23997_v14, -inf }
 0xcb1   : > { %v10076_v27 = vsel %vm1322_vm3, %v23999_v40, -inf }
 0xcb2   : > { %10071 = vmax.xlane.f32.xlu0 %v10070_v11  ;;  %10077 = vmax.xlane.f32.xlu1 %v10076_v27 }
 0xcb3   : > { %v24005_v41 = vpop.f32.mrb[106].mxu0 }
 0xcb4   : > { %v24007_v22 = vpop.f32.mrb[107].mxu0  ;;  %v10085_v11 = vsel %vm1322_vm3, %v24005_v41, -inf }
 0xcb5   : > { %v10082_v48 = vsel %vm1322_vm3, %v24007_v22, -inf }
 0xcb6   : > { %10080 = vmax.xlane.f32.xlu0 %v10079_v18  ;;  %10083 = vmax.xlane.f32.xlu1 %v10082_v48  ;;  %v24057_v48 = vpop.permute.xlu1 %21320 }
 0xcb7   : > { %v24013_v12 = vpop.f32.mrb[130].mxu1 }
 0xcb8   : > { %v24015_v9 = vpop.f32.mrb[131].mxu1  ;;  %v10091_v27 = vsel %vm1322_vm3, %v24013_v12, -inf }
 0xcb9   : > { %v10088_v18 = vsel %vm1322_vm3, %v24015_v9, -inf }
 0xcba   : > { %10086 = vmax.xlane.f32.xlu0 %v10085_v11  ;;  %v21316_v11 = vpop.permute.xlu0 %21315 }
 0xcbb   : > { %v21318_v47 = vunpack.i.h.bf16 %v21316_v11 }
 0xcbe   : > { %10092 = vmax.xlane.f32.xlu0 %v10091_v27  ;;  %v24061_v27 = vpop.permute.xlu1 %21330 }
 0xcc2   : > { %v24069_v21 = vpop.permute.xlu1 %10999 }
 0xcc6   : > { %v24075_v5 = vpop.permute.xlu1 %11157 }
 0xcc7   : > { %11313 = vrot.lane.b32.xlu1 %v22382_v61, %s22034_s10 }
 0xcca   : > { %v24083_v50 = vpop.permute.xlu1 %11155 }
 0xcd4   : > { %11235 = vrot.lane.b32.xlu0 %v22378_v59, %s22034_s10 }
 0xcd8   : > { %11233 = vrot.lane.b32.xlu0 %v22374_v58, %s22035_s29 }
 0xcdc   : > { %11391 = vrot.lane.b32.xlu0 %v22388_v63, %s22034_s10 }
 0xce0   : > { %11389 = vrot.lane.b32.xlu0 %v22386_v62, %s22035_s29 }
 0xce4   : > { %11547 = vrot.lane.b32.xlu0 %v22470_v26, %s22034_s10 }
 0xce8   : > { %11747 = vrot.lane.b32.xlu0 %v26597_v13, %s22036_s11 }
 0xceb   : > { %10089 = vmax.xlane.f32.xlu1 %v10088_v18  ;;  %v24065_v18 = vpop.permute.xlu0 %21325 }
 0xcec   : > { %11899 = vrot.lane.b32.xlu0 %v22378_v59, %s22036_s11 }
 0xcef   : > { %v24071_v23 = vpop.permute.xlu0 %11001 }
 0xcf0   : > { %12051 = vrot.lane.b32.xlu0 %v22388_v63, %s22036_s11 }
 0xcf3   : > { %v24079_v36 = vpop.permute.xlu0 %11079 }
 0xcf4   : > { %12362 = vrot.lane.b32.xlu0 %v22358_v52, %s22034_s10 }
 0xcf7   : > { %v24085_v37 = vpop.permute.xlu0 %11077 }
 0xcf8   : > { %12440 = vrot.lane.b32.xlu0 %v22362_v54, %s22034_s10 }
 0xcfc   : > { %12438 = vrot.lane.b32.xlu0 %v26597_v13, %s22035_s29  ;;  %11311 = vrot.lane.b32.xlu1 %v22380_v60, %s22035_s29 }
 0xd00   : > { %11469 = vrot.lane.b32.xlu1 %v22466_v24, %s22034_s10 }
 0xd04   : > { %11467 = vrot.lane.b32.xlu1 %v22392_v0, %s22035_s29 }
 0xd08   : > { %11545 = vrot.lane.b32.xlu1 %v22468_v25, %s22035_s29 }
 0xd0c   : > { %11671 = vrot.lane.b32.xlu1 %v26596_v43, %s22036_s11 }
 0xd10   : > { %11823 = vrot.lane.b32.xlu1 %v22372_v57, %s22036_s11 }
 0xd14   : > { %11975 = vrot.lane.b32.xlu1 %v22382_v61, %s22036_s11 }
 0xd18   : > { %12127 = vrot.lane.b32.xlu1 %v22466_v24, %s22036_s11 }
 0xd1c   : > { %12203 = vrot.lane.b32.xlu1 %v22470_v26, %s22036_s11 }
 0xd20   : > { %12360 = vrot.lane.b32.xlu1 %v26596_v43, %s22035_s29 }
 0xd24   : > { %12518 = vrot.lane.b32.xlu1 %v22370_v56, %s22034_s10 }
 0xd2a   : > { %v10051_v16 = vpop.xlane.xlu1 %10050 }
 0xd2b   : > { %v10095_v51 = vsub.f32 %v23959_v53, %v10051_v16  ;;  %v10048_v29 = vpop.xlane.xlu0 %10047 }
 0xd2c   : > { %v10094_v1 = vsub.f32 %v23961_v46, %v10048_v29  ;;  %v21317_v29 = vunpack.i.l.bf16 %v21316_v11 }
 0xd2d   : > { %v10112_v13 = vmul.f32 1.442695, %v10095_v51 }
 0xd2e   : > { %v10110_v8 = vmul.f32 1.442695, %v10094_v1  ;;  %v10057_v35 = vpop.xlane.xlu1 %10056 }
 0xd2f   : > { %v10097_v43 = vsub.f32 %v23967_v3, %v10057_v35  ;;  %v10054_v55 = vpop.xlane.xlu0 %10053  ;;  %v21322_v3 = vunpack.i.l.bf16 %v24057_v48 }
 0xd30   : > { %21542 = vpow2.f32 %v10110_v8  ;;  %v10096_v15 = vsub.f32 %v23969_v49, %v10054_v55 }
 0xd31   : > { %21544 = vpow2.f32 %v10112_v13  ;;  %v10116_v6 = vmul.f32 1.442695, %v10097_v43 }
 0xd32   : > { %v10114_v31 = vmul.f32 1.442695, %v10096_v15  ;;  %v21323_v15 = vunpack.i.h.bf16 %v24057_v48 }
 0xd33   : > { %v10063_v2 = vpop.xlane.xlu0 %10062 }
 0xd34   : > { %21546 = vpow2.f32 %v10114_v31  ;;  %v10099_v16 = vsub.f32 %v23975_v19, %v10063_v2 }
 0xd35   : > { %21548 = vpow2.f32 %v10116_v6  ;;  %v20912_v6 = vpack.c.bf16 %v21318_v47, %v21317_v29 }
 0xd36   : > { %v10069_v53 = vpop.xlane.xlu1 %10068  ;;  %v10120_v46 = vmul.f32 1.442695, %v10099_v16 }
 0xd37   : > { %v10060_v51 = vpop.xlane.xlu0 %10059  ;;  %v10101_v1 = vsub.f32 %v23981_v20, %v10069_v53 }
 0xd38   : > { %v10098_v35 = vsub.f32 %v23977_v44, %v10060_v51  ;;  %v21328_v51 = vunpack.i.h.bf16 %v24065_v18 }
 0xd39   : > { %v10124_v49 = vmul.f32 1.442695, %v10101_v1 }
 0xd3a   : > { %v24094_v8 = vpop.eup %21542  ;;  %v10118_v55 = vmul.f32 1.442695, %v10098_v35  ;;  %v10066_v13 = vpop.xlane.xlu1 %10065 }
 0xd3b   : > { %v24096_v43 = vpop.eup %21544  ;;  %v10100_v31 = vsub.f32 %v23983_v7, %v10066_v13  ;;  %20148 = vmatprep.mubr.msk.f32.mxu0 %vm1322_vm3, %v24094_v8  ;;  %v10075_v2 = vpop.xlane.xlu0 %10074 }
 0xd3c   : > { %21550 = vpow2.f32 %v10118_v55  ;;  %v10103_v19 = vsub.f32 %v23989_v10, %v10075_v2  ;;  %20149 = vmatmul.mubr.msk.f32.vlgmr.msra.gmra.mrb[108].mxu0 %vm1322_vm3, %v24096_v43  ;;  %v21332_v2 = vunpack.i.l.bf16 %v24061_v27 }
 0xd3d   : > { %21552 = vpow2.f32 %v10120_v46  ;;  %v10122_v44 = vmul.f32 1.442695, %v10100_v31  ;;  %20907 = vmatpush3.bf16.msra.mxu0 %v23936_v17  ;;  %v20916_v17 = vpack.c.bf16 %v21323_v15, %v21322_v3  ;;  %v21327_v46 = vunpack.i.l.bf16 %v24065_v18 }
 0xd3e   : > { %v24107_v20 = vpop.eup %21546  ;;  %20913 = vmatprep.subr.bf16.mxu0 %v20912_v6  ;;  %v10128_v47 = vmul.f32 1.442695, %v10103_v19  ;;  %v21333_v31 = vunpack.i.h.bf16 %v24061_v27 }
 0xd3f   : > { %v24109_v7 = vpop.eup %21548  ;;  %21554 = vpow2.f32 %v10122_v44  ;;  %20155 = vmatprep.mubr.msk.f32.mxu1 %vm1322_vm3, %v24107_v20  ;;  %v10072_v48 = vpop.xlane.xlu0 %10071 }
 0xd40   : > { %26614 = vst [vmem:[#allocation157_spill] sm:$0xff] %v24109_v7  ;;  %v10078_v11 = vpop.xlane.xlu1 %10077  ;;  %21556 = vpow2.f32 %v10124_v49  ;;  %v10102_v10 = vsub.f32 %v23991_v4, %v10072_v48  ;;  %20156 = vmatmul.mubr.msk.f32.vlgmr.msra.gmra.mrb[132].mxu1 %vm1322_vm3, %v24109_v7  ;;  %v20924_v27 = vpack.c.bf16 %v21333_v31, %v21332_v2 }
 0xd41   : > { %v10104_v16 = vsub.f32 %v23999_v40, %v10078_v11  ;;  %20911 = vmatpush3.bf16.msra.mxu1 %v23940_v45  ;;  %21558 = vpow2.f32 %v10128_v47 }
 0xd42   : > { %v10126_v53 = vmul.f32 1.442695, %v10102_v10  ;;  %20917 = vmatprep.subr.bf16.mxu1 %v20916_v17 }
 0xd43   : > { %v10130_v29 = vmul.f32 1.442695, %v10104_v16  ;;  %v10081_v1 = vpop.xlane.xlu0 %10080 }
 0xd44   : > { %v10084_v35 = vpop.xlane.xlu1 %10083  ;;  %21560 = vpow2.f32 %v10126_v53  ;;  %v10105_v4 = vsub.f32 %v23997_v14, %v10081_v1 }
 0xd45   : > { %v10106_v40 = vsub.f32 %v24007_v22, %v10084_v35  ;;  %21562 = vpow2.f32 %v10130_v29  ;;  %v20920_v22 = vpack.c.bf16 %v21328_v51, %v21327_v46 }
 0xd46   : > { %v24122_v55 = vpop.eup %21550  ;;  %v10132_v13 = vmul.f32 1.442695, %v10105_v4 }
 0xd47   : > { %v10134_v45 = vmul.f32 1.442695, %v10106_v40  ;;  %v24124_v15 = vpop.eup %21552  ;;  %20162 = vmatprep.mubr.msk.f32.mxu0 %vm1322_vm3, %v24122_v55  ;;  %v10087_v18 = vpop.xlane.xlu0 %10086 }
 0xd48   : > { %26615 = vst [vmem:[#allocation158_spill] sm:$0xff] %v24124_v15  ;;  %21564 = vpow2.f32 %v10132_v13  ;;  %v10107_v14 = vsub.f32 %v24005_v41, %v10087_v18  ;;  %20163 = vmatmul.mubr.msk.f32.vlgmr.msra.gmra.mrb[110].mxu0 %vm1322_vm3, %v24124_v15  ;;  %v11314_v10 = vpop.permute.xlu1 %11313 }
 0xd49   : > { %v24133_v3 = vpop.eup %21554  ;;  %21566 = vpow2.f32 %v10134_v45  ;;  %20915 = vmatpush3.bf16.msra.mxu0 %v20912_v6 }
 0xd4a   : > { %v24135_v49 = vpop.eup %21556  ;;  %v10136_v19 = vmul.f32 1.442695, %v10107_v14  ;;  %20921 = vmatprep.subr.bf16.mxu0 %v20920_v22  ;;  %20169 = vmatprep.mubr.msk.f32.mxu1 %vm1322_vm3, %v24133_v3 }
 0xd4b   : > { %26616 = vst [vmem:[#allocation159_spill] sm:$0xff] %v24135_v49  ;;  %20170 = vmatmul.mubr.msk.f32.vlgmr.msra.gmra.mrb[134].mxu1 %vm1322_vm3, %v24135_v49  ;;  %v24141_v41 = vpop.eup %21558 }
 0xd4c   : > { %21568 = vpow2.f32 %v10136_v19  ;;  %20919 = vmatpush3.bf16.msra.mxu1 %v20916_v17  ;;  %26617 = vst [vmem:[#allocation160_spill] sm:$0xff] %v24141_v41 }
 0xd4d   : > { %20925 = vmatprep.subr.bf16.mxu1 %v20924_v27 }
 0xd4e   : > { %v24143_v44 = vpop.eup %21560 }
 0xd4f   : > { %v24145_v47 = vpop.eup %21562  ;;  %20176 = vmatprep.mubr.msk.f32.mxu0 %vm1322_vm3, %v24143_v44 }
 0xd50   : > { %20183 = vmatprep.mubr.msk.f32.mxu1 %vm1322_vm3, %v24145_v47  ;;  %20177 = vmatmul.mubr.msk.f32.vlgmr.msra.gmra.mrb[112].mxu0 %vm1322_vm3, %v24141_v41 }
 0xd51   : > { %20923 = vmatpush3.bf16.msra.mxu0 %v20920_v22 }
 0xd52   : > { %v24153_v6 = vpop.eup %21564  ;;  %20200 = vmatprep.subr.mxu0 %v26484_v42 }
 0xd53   : > { %26618 = vst [vmem:[#allocation161_spill] sm:$0xff] %v24153_v6  ;;  %v24156_v48 = vpop.eup %21566  ;;  %20184 = vmatmul.mubr.msk.f32.vlgmr.msra.gmra.mrb[136].mxu1 %vm1322_vm3, %v24153_v6 }
 0xd54   : > { %20190 = vmatprep.mubr.msk.f32.mxu0 %vm1322_vm3, %v24156_v48  ;;  %20927 = vmatpush3.bf16.msra.mxu1 %v20924_v27 }
 0xd55   : > { %20205 = vmatprep.subr.mxu1 %v26484_v42 }
 0xd56   : > { %v24163_v11 = vpop.eup %21568 }
 0xd57   : > { %26619 = vst [vmem:[#allocation162_spill] sm:$0xff] %v24163_v11  ;;  %20191 = vmatmul.mubr.msk.f32.vlgmr.msra.gmra.mrb[114].mxu0 %vm1322_vm3, %v24163_v11 }
 0xd58   : > { %20202 = vmatprep.mubr.msk.f32.mxu0 %vm22030_vm4, %v26484_v42 }
 0xd5a   : > { %20201 = vmatpush3.xpose.msk.msra.mxu0 %vm615_vm1, %v24071_v23  ;;  %v10093_v23 = vpop.xlane.xlu0 %10092 }
 0xd5b   : > { %20210 = vmatprep.subr.mxu0 %v26484_v42 }
 0xd5d   : > { %20203 = vmatmul.mubr.msk.f32.vlgmr.msra.gmra.mrb[116].mxu0 %vm615_vm1, %v24069_v21  ;;  %v10109_v21 = vsub.f32 %v24013_v12, %v10093_v23 }
 0xd5e   : > { %20211 = vmatpush3.xpose.msk.msra.mxu0 %vm615_vm1, %v24075_v5  ;;  %20212 = vmatprep.mubr.msk.f32.mxu0 %vm22030_vm4, %v26484_v42  ;;  %v11236_v53 = vpop.permute.xlu0 %11235 }
 0xd5f   : > { %20220 = vmatprep.subr.mxu0 %v26484_v42  ;;  %v10140_v17 = vmul.f32 1.442695, %v10109_v21 }
 0xd61   : > { %20213 = vmatmul.mubr.msk.f32.vlgmr.msra.gmra.mrb[118].mxu0 %vm615_vm1, %v24083_v50 }
 0xd62   : > { %20221 = vmatpush3.xpose.msk.msra.mxu0 %vm615_vm1, %v11314_v10  ;;  %20222 = vmatprep.mubr.msk.f32.mxu0 %vm22030_vm4, %v26484_v42  ;;  %v11234_v1 = vpop.permute.xlu0 %11233 }
 0xd63   : > { %20230 = vmatprep.subr.mxu0 %v26484_v42 }
 0xd66   : > { %v11392_v35 = vpop.permute.xlu0 %11391 }
 0xd6a   : > { %v11390_v13 = vpop.permute.xlu0 %11389 }
 0xd78   : > { %v10090_v5 = vpop.xlane.xlu1 %10089 }
 0xd79   : > { %v10108_v16 = vsub.f32 %v24015_v9, %v10090_v5 }
 0xd7b   : > { %v10138_v29 = vmul.f32 1.442695, %v10108_v16 }
 0xd7c   : > { %v11312_v51 = vpop.permute.xlu1 %11311 }
 0xd7d   : > { %21570 = vpow2.f32 %v10138_v29  ;;  %20223 = vmatmul.mubr.msk.f32.vlgmr.msra.gmra.mrb[120].mxu0 %vm615_vm1, %v11312_v51 }
 0xd7e   : > { %21572 = vpow2.f32 %v10140_v17  ;;  %20232 = vmatprep.mubr.msk.f32.mxu0 %vm22030_vm4, %v26484_v42 }
 0xd80   : > { %v11470_v50 = vpop.permute.xlu1 %11469 }
 0xd81   : > { %20231 = vmatpush3.xpose.msk.msra.mxu0 %vm615_vm1, %v11470_v50 }
 0xd82   : > { %20240 = vmatprep.subr.mxu0 %v26484_v42 }
 0xd84   : > { %v11468_v12 = vpop.permute.xlu1 %11467 }
 0xd85   : > { %20233 = vmatmul.mubr.msk.f32.vlgmr.msra.gmra.mrb[122].mxu0 %vm615_vm1, %v11468_v12 }
 0xd86   : > { %20242 = vmatprep.mubr.msk.f32.mxu0 %vm22030_vm4, %v26484_v42 }
 0xd87   : > { %v24195_v9 = vpop.eup %21570 }
 0xd88   : > { %26620 = vst [vmem:[#allocation163_spill] sm:$0xff] %v24195_v9  ;;  %v24197_v46 = vpop.eup %21572  ;;  %20197 = vmatprep.mubr.msk.f32.mxu1 %vm1322_vm3, %v24195_v9  ;;  %v11546_v4 = vpop.permute.xlu1 %11545 }
 0xd89   : > { %26621 = vst [vmem:[#allocation164_spill] sm:$0xff] %v24197_v46  ;;  %20198 = vmatmul.mubr.msk.f32.vlgmr.msra.gmra.mrb[138].mxu1 %vm1322_vm3, %v24197_v46 }
 0xd8a   : > { %20206 = vmatpush3.xpose.msk.msra.mxu1 %vm615_vm1, %v24079_v36  ;;  %20207 = vmatprep.mubr.msk.f32.mxu1 %vm22030_vm4, %v26484_v42  ;;  %v11548_v36 = vpop.permute.xlu0 %11547 }
 0xd8b   : > { %20215 = vmatprep.subr.mxu1 %v26484_v42 }
 0xd8c   : > { %v11672_v40 = vpop.permute.xlu1 %11671 }
 0xd8d   : > { %20208 = vmatmul.mubr.msk.f32.vlgmr.msra.gmra.mrb[140].mxu1 %vm615_vm1, %v24085_v37  ;;  %20241 = vmatpush3.msra.mxu0 %v11672_v40 }
 0xd8e   : > { %20216 = vmatpush3.xpose.msk.msra.mxu1 %vm615_vm1, %v11236_v53  ;;  %20217 = vmatprep.mubr.msk.f32.mxu1 %vm22030_vm4, %v26484_v42  ;;  %v11748_v37 = vpop.permute.xlu0 %11747 }
 0xd8f   : > { %20225 = vmatprep.subr.mxu1 %v26484_v42  ;;  %20250 = vmatprep.subr.mxu0 %v26484_v42 }
 0xd91   : > { %20218 = vmatmul.mubr.msk.f32.vlgmr.msra.gmra.mrb[142].mxu1 %vm615_vm1, %v11234_v1 }
 0xd92   : > { %20226 = vmatpush3.xpose.msk.msra.mxu1 %vm615_vm1, %v11392_v35  ;;  %20227 = vmatprep.mubr.msk.f32.mxu1 %vm22030_vm4, %v26484_v42 }
 0xd93   : > { %20235 = vmatprep.subr.mxu1 %v26484_v42 }
 0xd95   : > { %20228 = vmatmul.mubr.msk.f32.vlgmr.msra.gmra.mrb[144].mxu1 %vm615_vm1, %v11390_v13 }
 0xd96   : > { %20236 = vmatpush3.xpose.msk.msra.mxu1 %vm615_vm1, %v11548_v36  ;;  %20237 = vmatprep.mubr.msk.f32.mxu1 %vm22030_vm4, %v26484_v42 }
 0xd97   : > { %20245 = vmatprep.subr.mxu1 %v26484_v42 }
 0xd99   : > { %20238 = vmatmul.mubr.msk.f32.vlgmr.msra.gmra.mrb[146].mxu1 %vm615_vm1, %v11546_v4 }
 0xd9a   : > { %20246 = vmatpush3.msra.mxu1 %v11748_v37  ;;  %20247 = vmatprep.mubr.msk.f32.mxu1 %vm22030_vm4, %v26484_v42 }
 0xd9b   : > { %20255 = vmatprep.subr.mxu1 %v26484_v42 }
 0xe0f   : > { %v24229_v45 = vpop.f32.mrb[108].mxu0 }
 0xe10   : > { %26622 = vst [vmem:[#allocation165_spill] sm:$0xff] %v24229_v45  ;;  %v24231_v31 = vpop.f32.mrb[109].mxu0 }
 0xe11   : > { %26623 = vst [vmem:[#allocation166_spill] sm:$0xff] %v24231_v31 }
 0xe13   : > { %v24233_v2 = vpop.f32.mrb[132].mxu1 }
 0xe14   : > { %26624 = vst [vmem:[#allocation167_spill] sm:$0xff] %v24233_v2  ;;  %v24235_v18 = vpop.f32.mrb[133].mxu1 }
 0xe15   : > { %26625 = vst [vmem:[#allocation168_spill] sm:$0xff] %v24235_v18 }
 0xe1b   : > { %v24237_v14 = vpop.f32.mrb[110].mxu0 }
 0xe1c   : > { %26626 = vst [vmem:[#allocation169_spill] sm:$0xff] %v24237_v14  ;;  %v24239_v22 = vpop.f32.mrb[111].mxu0 }
 0xe1d   : > { %26627 = vst [vmem:[#allocation170_spill] sm:$0xff] %v24239_v22 }
 0xe1e   : > { %v24241_v19 = vpop.f32.mrb[134].mxu1 }
 0xe1f   : > { %26628 = vst [vmem:[#allocation171_spill] sm:$0xff] %v24241_v19  ;;  %v24243_v27 = vpop.f32.mrb[135].mxu1  ;;  %v11824_v19 = vpop.permute.xlu1 %11823 }
 0xe20   : > { %26629 = vst [vmem:[#allocation172_spill] sm:$0xff] %v24243_v27 }
 0xe23   : > { %v24245_v10 = vpop.f32.mrb[112].mxu0 }
 0xe24   : > { %26630 = vst [vmem:[#allocation173_spill] sm:$0xff] %v24245_v10  ;;  %v24247_v23 = vpop.f32.mrb[113].mxu0 }
 0xe25   : > { %26631 = vst [vmem:[#allocation174_spill] sm:$0xff] %v24247_v23 }
 0xe26   : > { %v24249_v21 = vpop.f32.mrb[136].mxu1 }
 0xe27   : > { %26632 = vst [vmem:[#allocation175_spill] sm:$0xff] %v24249_v21  ;;  %v24251_v5 = vpop.f32.mrb[137].mxu1 }
 0xe28   : > { %26633 = vst [vmem:[#allocation176_spill] sm:$0xff] %v24251_v5 }
 0xe2a   : > { %v24253_v16 = vpop.f32.mrb[114].mxu0 }
 0xe2b   : > { %26634 = vst [vmem:[#allocation177_spill] sm:$0xff] %v24253_v16  ;;  %v24255_v17 = vpop.f32.mrb[115].mxu0 }
 0xe2c   : > { %26635 = vst [vmem:[#allocation178_spill] sm:$0xff] %v24255_v17 }
 0xe30   : > { %v11073_v53 = vpop.f32.mrb[116].mxu0 }
 0xe31   : > { %v20204_v29 = vpop.f32.mrb[117].mxu0  ;;  %v11623_v51 = vsel %vm615_vm1, %v11073_v53, -inf }
 0xe32   : > { %11624 = vmax.xlane.f32.xlu0 %v11623_v51 }
 0xe34   : > { %v11229_v50 = vpop.f32.mrb[118].mxu0 }
 0xe35   : > { %v20214_v1 = vpop.f32.mrb[119].mxu0  ;;  %v11629_v12 = vsel %vm615_vm1, %v11229_v50, -inf }
 0xe36   : > { %11630 = vmax.xlane.f32.xlu0 %v11629_v12 }
 0xe50   : > { %v24259_v35 = vpop.f32.mrb[120].mxu0 }
 0xe51   : > { %v20224_v4 = vpop.f32.mrb[121].mxu0 }
 0xe58   : > { %v24261_v40 = vpop.f32.mrb[122].mxu0 }
 0xe59   : > { %v20234_v13 = vpop.f32.mrb[123].mxu0 }
 0xe5a   : > { %v11635_v13 = vsel %vm615_vm1, %v24259_v35, -inf }
 0xe5c   : > { %v24263_v36 = vpop.f32.mrb[138].mxu1 }
 0xe5d   : > { %26636 = vst [vmem:[#allocation179_spill] sm:$0xff] %v24263_v36  ;;  %v24265_v37 = vpop.f32.mrb[139].mxu1 }
 0xe5e   : > { %26637 = vst [vmem:[#allocation180_spill] sm:$0xff] %v24265_v37 }
 0xe60   : > { %v24267_v16 = vpop.f32.mrb[140].mxu1 }
 0xe61   : > { %v20209_v29 = vpop.f32.mrb[141].mxu1  ;;  %v11626_v51 = vsel %vm615_vm1, %v24267_v16, -inf }
 0xe62   : > { %11627 = vmax.xlane.f32.xlu1 %v11626_v51 }
 0xe64   : > { %v24271_v1 = vpop.f32.mrb[142].mxu1 }
 0xe65   : > { %v20219_v12 = vpop.f32.mrb[143].mxu1  ;;  %v11632_v4 = vsel %vm615_vm1, %v24271_v1, -inf }
 0xe66   : > { %11633 = vmax.xlane.f32.xlu0 %v11632_v4  ;;  %11636 = vmax.xlane.f32.xlu1 %v11635_v13  ;;  %v24305_v4 = vpop.permute.xlu0 %11899 }
 0xe68   : > { %v24277_v17 = vpop.f32.mrb[144].mxu1 }
 0xe69   : > { %v20229_v21 = vpop.f32.mrb[145].mxu1  ;;  %v11638_v29 = vsel %vm615_vm1, %v24277_v17, -inf }
 0xe6a   : > { %11639 = vmax.xlane.f32.xlu0 %v11638_v29  ;;  %v11641_v21 = vsel %vm615_vm1, %v24261_v40, -inf  ;;  %v24311_v13 = vpop.permute.xlu0 %12051 }
 0xe6c   : > { %v24281_v5 = vpop.f32.mrb[146].mxu1 }
 0xe6d   : > { %v20239_v51 = vpop.f32.mrb[147].mxu1  ;;  %v11644_v12 = vsel %vm615_vm1, %v24281_v5, -inf }
 0xe6e   : > { %11645 = vmax.xlane.f32.xlu0 %v11644_v12  ;;  %v24317_v29 = vpop.permute.xlu0 %12362 }
 0xe72   : > { %v24323_v51 = vpop.permute.xlu0 %12440 }
 0xe76   : > { %v24327_v12 = vpop.permute.xlu0 %12438 }
 0xe77   : > { %12516 = vrot.lane.b32.xlu1 %v22372_v57, %s22035_s29 }
 0xe84   : > { %12596 = vrot.lane.b32.xlu0 %v22374_v58, %s22034_s10 }
 0xe88   : > { %12594 = vrot.lane.b32.xlu0 %v22378_v59, %s22035_s29 }
 0xe8c   : > { %12752 = vrot.lane.b32.xlu0 %v22386_v62, %s22034_s10 }
 0xe90   : > { %12830 = vrot.lane.b32.xlu0 %v22392_v0, %s22034_s10 }
 0xe94   : > { %12908 = vrot.lane.b32.xlu0 %v22468_v25, %s22034_s10 }
 0xe98   : > { %13108 = vrot.lane.b32.xlu0 %v22362_v54, %s22036_s11 }
 0xe9b   : > { %11642 = vmax.xlane.f32.xlu1 %v11641_v21 }
 0xe9c   : > { %13260 = vrot.lane.b32.xlu0 %v22374_v58, %s22036_s11 }
 0xea0   : > { %13412 = vrot.lane.b32.xlu0 %v22386_v62, %s22036_s11 }
 0xea4   : > { %21335 = vrot.lane.b32.xlu0 %v22276_v32, %s22037_s13 }
 0xea8   : > { %21345 = vrot.lane.b32.xlu0 %v22280_v33, %s22037_s13 }
 0xeac   : > { %12674 = vrot.lane.b32.xlu1 %v22380_v60, %s22034_s10  ;;  %13722 = vrot.lane.b32.xlu0 %v22264_v28, %s22038_s17 }
 0xeb0   : > { %12672 = vrot.lane.b32.xlu1 %v22382_v61, %s22035_s29 }
 0xeb4   : > { %12750 = vrot.lane.b32.xlu1 %v22388_v63, %s22035_s29 }
 0xeb8   : > { %12828 = vrot.lane.b32.xlu1 %v22466_v24, %s22035_s29 }
 0xebc   : > { %12906 = vrot.lane.b32.xlu1 %v22470_v26, %s22035_s29 }
 0xebf   : > { %v11625_v21 = vpop.xlane.xlu0 %11624 }
 0xec0   : > { %v11647_v28 = vsub.f32 %v11073_v53, %v11625_v21  ;;  %13032 = vrot.lane.b32.xlu1 %v22358_v52, %s22036_s11 }
 0xec2   : > { %v11655_v36 = vmul.f32 1.442695, %v11647_v28 }
 0xec3   : > { %v11631_v10 = vpop.xlane.xlu0 %11630 }
 0xec4   : > { %21574 = vpow2.f32 %v11655_v36  ;;  %v11649_v37 = vsub.f32 %v11229_v50, %v11631_v10  ;;  %13184 = vrot.lane.b32.xlu1 %v22370_v56, %s22036_s11 }
 0xec6   : > { %v11659_v23 = vmul.f32 1.442695, %v11649_v37 }
 0xec8   : > { %21576 = vpow2.f32 %v11659_v23  ;;  %13336 = vrot.lane.b32.xlu1 %v22380_v60, %s22036_s11  ;;  %v11976_v23 = vpop.permute.xlu1 %11975 }
 0xecc   : > { %13488 = vrot.lane.b32.xlu1 %v22392_v0, %s22036_s11 }
 0xece   : > { %v24339_v53 = vpop.eup %21574 }
 0xecf   : > { %20243 = vmatmul.mubr.msk.f32.vlgmr.msra.gmra.mrb[124].mxu0 %vm615_vm1, %v24339_v53 }
 0xed0   : > { %20251 = vmatpush3.msra.mxu0 %v11824_v19  ;;  %13564 = vrot.lane.b32.xlu1 %v22468_v25, %s22036_s11  ;;  %v12128_v19 = vpop.permute.xlu1 %12127 }
 0xed1   : > { %20252 = vmatprep.mubr.msk.f32.mxu0 %vm22030_vm4, %v26484_v42  ;;  %20260 = vmatprep.subr.mxu0 %v26484_v42 }
 0xed2   : > { %v24348_v10 = vpop.eup %21576 }
 0xed3   : > { %26638 = vst [vmem:[#allocation181_spill] sm:$0xff] %v24348_v10  ;;  %20253 = vmatmul.mubr.msk.f32.vlgmr.msra.gmra.mrb[126].mxu0 %vm615_vm1, %v24348_v10 }
 0xed4   : > { %20261 = vmatpush3.msra.mxu0 %v11976_v23  ;;  %21340 = vrot.lane.b32.xlu1 %v22298_v38, %s22037_s13  ;;  %v12204_v50 = vpop.permute.xlu1 %12203 }
 0xed5   : > { %20262 = vmatprep.mubr.msk.f32.mxu0 %vm22030_vm4, %v26484_v42  ;;  %20270 = vmatprep.subr.mxu0 %v26484_v42 }
 0xed8   : > { %13720 = vrot.lane.b32.xlu1 %v22268_v30, %s22038_s17  ;;  %v24361_v36 = vpop.permute.xlu1 %12360 }
 0xedc   : > { %21350 = vrot.lane.b32.xlu1 %v22302_v39, %s22037_s13  ;;  %v24363_v37 = vpop.permute.xlu1 %12518 }
 0xeef   : > { %v11628_v21 = vpop.xlane.xlu1 %11627 }
 0xef0   : > { %v11648_v28 = vsub.f32 %v24267_v16, %v11628_v21 }
 0xef2   : > { %v11657_v23 = vmul.f32 1.442695, %v11648_v28 }
 0xef3   : > { %v11634_v27 = vpop.xlane.xlu0 %11633  ;;  %v11637_v14 = vpop.xlane.xlu1 %11636 }
 0xef4   : > { %21578 = vpow2.f32 %v11657_v23  ;;  %v11650_v22 = vsub.f32 %v24271_v1, %v11634_v27  ;;  %v11651_v30 = vsub.f32 %v24259_v35, %v11637_v14 }
 0xef6   : > { %v11661_v2 = vmul.f32 1.442695, %v11650_v22  ;;  %v11663_v18 = vmul.f32 1.442695, %v11651_v30 }
 0xef7   : > { %v11640_v31 = vpop.xlane.xlu0 %11639  ;;  %v12517_v22 = vpop.permute.xlu1 %12516 }
 0xef8   : > { %21580 = vpow2.f32 %v11661_v2  ;;  %v11652_v45 = vsub.f32 %v24277_v17, %v11640_v31 }
 0xef9   : > { %21582 = vpow2.f32 %v11663_v18 }
 0xefa   : > { %v11665_v46 = vmul.f32 1.442695, %v11652_v45 }
 0xefb   : > { %v11646_v9 = vpop.xlane.xlu0 %11645 }
 0xefc   : > { %21584 = vpow2.f32 %v11665_v46  ;;  %v11654_v16 = vsub.f32 %v24281_v5, %v11646_v9 }
 0xefe   : > { %v24370_v21 = vpop.eup %21578  ;;  %v11669_v28 = vmul.f32 1.442695, %v11654_v16 }
 0xeff   : > { %26639 = vst [vmem:[#allocation182_spill] sm:$0xff] %v24370_v21  ;;  %20248 = vmatmul.mubr.msk.f32.vlgmr.msra.gmra.mrb[148].mxu1 %vm615_vm1, %v24370_v21  ;;  %v12597_v2 = vpop.permute.xlu0 %12596  ;;  %v26691_v21 = vld [vmem:[#allocation32_spill] sm:$0xff] }
 0xf00   : > { %21586 = vpow2.f32 %v11669_v28  ;;  %20256 = vmatpush3.msra.mxu1 %v24305_v4  ;;  %20257 = vmatprep.mubr.msk.f32.mxu1 %vm22030_vm4, %v26484_v42  ;;  %v2124_v49 = vsel %vm1322_vm3, %v26691_v21, 0.0 }
 0xf01   : > { %20265 = vmatprep.subr.mxu1 %v26484_v42 }
 0xf02   : > { %v24378_v31 = vpop.eup %21580 }
 0xf03   : > { %26640 = vst [vmem:[#allocation183_spill] sm:$0xff] %v24378_v31  ;;  %v24380_v45 = vpop.eup %21582  ;;  %20258 = vmatmul.mubr.msk.f32.vlgmr.msra.gmra.mrb[150].mxu1 %vm615_vm1, %v24378_v31  ;;  %v12595_v18 = vpop.permute.xlu0 %12594 }
 0xf04   : > { %26641 = vst [vmem:[#allocation184_spill] sm:$0xff] %v24380_v45  ;;  %20263 = vmatmul.mubr.msk.f32.vlgmr.msra.gmra.mrb[128].mxu0 %vm615_vm1, %v24380_v45  ;;  %20266 = vmatpush3.msra.mxu1 %v24311_v13  ;;  %v26666_v45 = vld [vmem:[#allocation23_spill] sm:$0xff] }
 0xf05   : > { %20271 = vmatpush3.msra.mxu0 %v12128_v19  ;;  %20267 = vmatprep.mubr.msk.f32.mxu1 %vm22030_vm4, %v26484_v42 }
 0xf06   : > { %v24389_v9 = vpop.eup %21584  ;;  %20275 = vmatprep.subr.mxu1 %v26484_v42  ;;  %20272 = vmatprep.mubr.msk.f32.mxu0 %vm22030_vm4, %v26484_v42 }
 0xf07   : > { %26642 = vst [vmem:[#allocation185_spill] sm:$0xff] %v24389_v9  ;;  %20268 = vmatmul.mubr.msk.f32.vlgmr.msra.gmra.mrb[152].mxu1 %vm615_vm1, %v24389_v9  ;;  %20280 = vmatprep.subr.mxu0 %v26484_v42  ;;  %v12753_v14 = vpop.permute.xlu0 %12752  ;;  %v26664_v9 = vld [vmem:[#allocation20_spill] sm:$0xff] }
 0xf08   : > { %20276 = vmatpush3.msra.mxu1 %v12204_v50  ;;  %20277 = vmatprep.mubr.msk.f32.mxu1 %vm22030_vm4, %v26484_v42 }
 0xf09   : > { %20285 = vmatprep.subr.mxu1 %v26484_v42 }
 0xf0a   : > { %v24400_v46 = vpop.eup %21586 }
 0xf0b   : > { %26643 = vst [vmem:[#allocation186_spill] sm:$0xff] %v24400_v46  ;;  %20278 = vmatmul.mubr.msk.f32.vlgmr.msra.gmra.mrb[154].mxu1 %vm615_vm1, %v24400_v46  ;;  %v12831_v1 = vpop.permute.xlu0 %12830  ;;  %v26663_v46 = vld [vmem:[#allocation22_spill] sm:$0xff] }
 0xf0c   : > { %20287 = vmatprep.mubr.msk.f32.mxu1 %vm22030_vm4, %v26484_v42 }
 0xf0f   : > { %20286 = vmatpush3.xpose.msk.msra.mxu1 %vm615_vm1, %v24323_v51  ;;  %v12909_v51 = vpop.permute.xlu0 %12908 }
 0xf10   : > { %20295 = vmatprep.subr.mxu1 %v26484_v42 }
 0xf12   : > { %20288 = vmatmul.mubr.msk.f32.vlgmr.msra.gmra.mrb[156].mxu1 %vm615_vm1, %v24327_v12 }
 0xf13   : > { %20296 = vmatpush3.xpose.msk.msra.mxu1 %vm615_vm1, %v12597_v2  ;;  %20297 = vmatprep.mubr.msk.f32.mxu1 %vm22030_vm4, %v26484_v42  ;;  %v13109_v50 = vpop.permute.xlu0 %13108 }
 0xf14   : > { %20305 = vmatprep.subr.mxu1 %v26484_v42 }
 0xf16   : > { %20298 = vmatmul.mubr.msk.f32.vlgmr.msra.gmra.mrb[158].mxu1 %vm615_vm1, %v12595_v18 }
 0xf17   : > { %20306 = vmatpush3.xpose.msk.msra.mxu1 %vm615_vm1, %v12753_v14  ;;  %20307 = vmatprep.mubr.msk.f32.mxu1 %vm22030_vm4, %v26484_v42 }
 0xf18   : > { %20315 = vmatprep.subr.mxu1 %v26484_v42 }
 0xf28   : > { %v11643_v27 = vpop.xlane.xlu1 %11642 }
 0xf29   : > { %v11653_v5 = vsub.f32 %v24261_v40, %v11643_v27 }
 0xf2b   : > { %v11667_v17 = vmul.f32 1.442695, %v11653_v5 }
 0xf2c   : > { %v12675_v35 = vpop.permute.xlu1 %12674 }
 0xf2d   : > { %21588 = vpow2.f32 %v11667_v17 }
 0xf30   : > { %v12673_v4 = vpop.permute.xlu1 %12672 }
 0xf34   : > { %v12751_v13 = vpop.permute.xlu1 %12750 }
 0xf35   : > { %20308 = vmatmul.mubr.msk.f32.vlgmr.msra.gmra.mrb[160].mxu1 %vm615_vm1, %v12751_v13 }
 0xf36   : > { %20316 = vmatpush3.xpose.msk.msra.mxu1 %vm615_vm1, %v12909_v51  ;;  %20317 = vmatprep.mubr.msk.f32.mxu1 %vm22030_vm4, %v26484_v42 }
 0xf37   : > { %v24425_v12 = vpop.eup %21588  ;;  %20325 = vmatprep.subr.mxu1 %v26484_v42 }
 0xf38   : > { %26644 = vst [vmem:[#allocation187_spill] sm:$0xff] %v24425_v12  ;;  %20273 = vmatmul.mubr.msk.f32.vlgmr.msra.gmra.mrb[130].mxu0 %vm615_vm1, %v24425_v12  ;;  %v12829_v40 = vpop.permute.xlu1 %12828 }
 0xf39   : > { %20281 = vmatpush3.xpose.msk.msra.mxu0 %vm615_vm1, %v24317_v29  ;;  %20282 = vmatprep.mubr.msk.f32.mxu0 %vm22030_vm4, %v26484_v42 }
 0xf3a   : > { %20290 = vmatprep.subr.mxu0 %v26484_v42 }
 0xf3c   : > { %20283 = vmatmul.mubr.msk.f32.vlgmr.msra.gmra.mrb[132].mxu0 %vm615_vm1, %v24361_v36  ;;  %v12907_v19 = vpop.permute.xlu1 %12906 }
 0xf3d   : > { %20291 = vmatpush3.xpose.msk.msra.mxu0 %vm615_vm1, %v24363_v37  ;;  %20318 = vmatmul.mubr.msk.f32.vlgmr.msra.gmra.mrb[162].mxu1 %vm615_vm1, %v12907_v19 }
 0xf3e   : > { %20326 = vmatpush3.msra.mxu1 %v13109_v50  ;;  %20292 = vmatprep.mubr.msk.f32.mxu0 %vm22030_vm4, %v26484_v42 }
 0xf3f   : > { %20300 = vmatprep.subr.mxu0 %v26484_v42  ;;  %20327 = vmatprep.mubr.msk.f32.mxu1 %vm22030_vm4, %v26484_v42 }
 0xf40   : > { %20293 = vmatmul.mubr.msk.f32.vlgmr.msra.gmra.mrb[134].mxu0 %vm615_vm1, %v12517_v22  ;;  %20335 = vmatprep.subr.mxu1 %v26484_v42  ;;  %v13033_v29 = vpop.permute.xlu1 %13032 }
 0xf41   : > { %20301 = vmatpush3.xpose.msk.msra.mxu0 %vm615_vm1, %v12675_v35  ;;  %20302 = vmatprep.mubr.msk.f32.mxu0 %vm22030_vm4, %v26484_v42 }
 0xf42   : > { %20310 = vmatprep.subr.mxu0 %v26484_v42 }
 0xf44   : > { %20303 = vmatmul.mubr.msk.f32.vlgmr.msra.gmra.mrb[136].mxu0 %vm615_vm1, %v12673_v4 }
 0xf45   : > { %20311 = vmatpush3.xpose.msk.msra.mxu0 %vm615_vm1, %v12831_v1  ;;  %20312 = vmatprep.mubr.msk.f32.mxu0 %vm22030_vm4, %v26484_v42 }
 0xf46   : > { %20320 = vmatprep.subr.mxu0 %v26484_v42 }
 0xf48   : > { %20313 = vmatmul.mubr.msk.f32.vlgmr.msra.gmra.mrb[138].mxu0 %vm615_vm1, %v12829_v40 }
 0xf49   : > { %20321 = vmatpush3.msra.mxu0 %v13033_v29  ;;  %20322 = vmatprep.mubr.msk.f32.mxu0 %vm22030_vm4, %v26484_v42 }
 0xf4a   : > { %20330 = vmatprep.subr.mxu0 %v26484_v42 }
 0xfa2   : > { %v24460_v36 = vpop.f32.mrb[124].mxu0 }
 0xfa3   : > { %26645 = vst [vmem:[#allocation188_spill] sm:$0xff] %v24460_v36  ;;  %v20244_v37 = vpop.f32.mrb[125].mxu0 }
 0xfa6   : > { %v24462_v23 = vpop.f32.mrb[126].mxu0 }
 0xfa7   : > { %26646 = vst [vmem:[#allocation189_spill] sm:$0xff] %v24462_v23  ;;  %v20254_v30 = vpop.f32.mrb[127].mxu0 }
 0xfd2   : > { %v24464_v16 = vpop.f32.mrb[148].mxu1 }
 0xfd3   : > { %26647 = vst [vmem:[#allocation190_spill] sm:$0xff] %v24464_v16  ;;  %v20249_v28 = vpop.f32.mrb[149].mxu1  ;;  %v26661_v16 = vld [vmem:[#allocation13_spill] sm:$0xff] }
 0xfd6   : > { %v24466_v2 = vpop.f32.mrb[150].mxu1 }
 0xfd7   : > { %26648 = vst [vmem:[#allocation191_spill] sm:$0xff] %v24466_v2  ;;  %v24468_v18 = vpop.f32.mrb[128].mxu0  ;;  %v20259_v14 = vpop.f32.mrb[151].mxu1  ;;  %v26659_v2 = vld [vmem:[#allocation9_spill] sm:$0xff] }
 0xfd8   : > { %26649 = vst [vmem:[#allocation192_spill] sm:$0xff] %v24468_v18  ;;  %v20264_v22 = vpop.f32.mrb[129].mxu0 }
 0xfda   : > { %v24470_v27 = vpop.f32.mrb[152].mxu1 }
 0xfdb   : > { %26650 = vst [vmem:[#allocation193_spill] sm:$0xff] %v24470_v27  ;;  %v20269_v5 = vpop.f32.mrb[153].mxu1 }
 0xfde   : > { %v24472_v17 = vpop.f32.mrb[154].mxu1 }
 0xfdf   : > { %26651 = vst [vmem:[#allocation194_spill] sm:$0xff] %v24472_v17  ;;  %v20279_v35 = vpop.f32.mrb[155].mxu1 }
 0xfe5   : > { %v12512_v1 = vpop.f32.mrb[156].mxu1 }
 0xfe6   : > { %v20289_v4 = vpop.f32.mrb[157].mxu1  ;;  %v12987_v13 = vsel %vm615_vm1, %v12512_v1, -inf }
 0xfe7   : > { %12988 = vmax.xlane.f32.xlu1 %v12987_v13 }
 0xfe9   : > { %v24475_v51 = vpop.f32.mrb[158].mxu1 }
 0xfea   : > { %v20299_v40 = vpop.f32.mrb[159].mxu1 }
0x1008   : > { %v24477_v19 = vpop.f32.mrb[160].mxu1 }
0x1009   : > { %v20309_v50 = vpop.f32.mrb[161].mxu1 }
0x100b   : > { %v24479_v29 = vpop.f32.mrb[130].mxu0 }
0x100c   : > { %26652 = vst [vmem:[#allocation195_spill] sm:$0xff] %v24479_v29  ;;  %v20274_v37 = vpop.f32.mrb[131].mxu0  ;;  %v26657_v29 = vld [vmem:[#allocation16_spill] sm:$0xff] }
0x100d   : > { %v12993_v37 = vsel %vm615_vm1, %v24475_v51, -inf }
0x100f   : > { %v24481_v30 = vpop.f32.mrb[132].mxu0 }
0x1010   : > { %v20284_v28 = vpop.f32.mrb[133].mxu0  ;;  %v24483_v14 = vpop.f32.mrb[162].mxu1  ;;  %v12984_v22 = vsel %vm615_vm1, %v24481_v30, -inf }
0x1011   : > { %12985 = vmax.xlane.f32.xlu0 %v12984_v22  ;;  %v20319_v5 = vpop.f32.mrb[163].mxu1 }
0x1013   : > { %v24487_v35 = vpop.f32.mrb[134].mxu0 }
0x1014   : > { %v20294_v4 = vpop.f32.mrb[135].mxu0  ;;  %v12990_v13 = vsel %vm615_vm1, %v24487_v35, -inf }
0x1015   : > { %12991 = vmax.xlane.f32.xlu0 %v12990_v13  ;;  %v12999_v4 = vsel %vm615_vm1, %v24477_v19, -inf  ;;  %v26653_v13 = vld [vmem:[#allocation12_spill] sm:$0xff] }
0x1017   : > { %v24491_v40 = vpop.f32.mrb[136].mxu0 }
0x1018   : > { %v20304_v50 = vpop.f32.mrb[137].mxu0  ;;  %v12996_v28 = vsel %vm615_vm1, %v24491_v40, -inf }
0x1019   : > { %12994 = vmax.xlane.f32.xlu0 %v12993_v37  ;;  %12997 = vmax.xlane.f32.xlu1 %v12996_v28  ;;  %v24505_v50 = vpop.permute.xlu1 %13184  ;;  %v13005_v37 = vsel %vm615_vm1, %v24483_v14, -inf }
0x101b   : > { %v24497_v22 = vpop.f32.mrb[138].mxu0 }
0x101c   : > { %v20314_v5 = vpop.f32.mrb[139].mxu0  ;;  %v13002_v27 = vsel %vm615_vm1, %v24497_v22, -inf }
0x101d   : > { %13000 = vmax.xlane.f32.xlu0 %v12999_v4  ;;  %v24511_v28 = vpop.permute.xlu1 %13336 }
0x1021   : > { %v24513_v5 = vpop.permute.xlu1 %13488 }
0x1025   : > { %v24515_v4 = vpop.permute.xlu1 %13564 }
0x1029   : > { %v24521_v17 = vpop.permute.xlu1 %21340 }
0x102a   : > { %13813 = vrot.lane.b32.xlu1 %v22284_v34, %s22038_s17  ;;  %v26654_v34 = vld [vmem:[#allocation10_spill] sm:$0xff] }
0x102d   : > { %v24527_v18 = vpop.permute.xlu1 %13720 }
0x1031   : > { %v24535_v23 = vpop.permute.xlu1 %21350 }
0x1033   : > { %13811 = vrot.lane.b32.xlu0 %v26653_v13, %s22038_s17  ;;  %v26655_v13 = vld [vmem:[#allocation19_spill] sm:$0xff] }
0x104e   : > { %13003 = vmax.xlane.f32.xlu1 %v13002_v27  ;;  %v26656_v27 = vld [vmem:[#allocation11_spill] sm:$0xff] }
0x1052   : > { %13006 = vmax.xlane.f32.xlu0 %v13005_v37  ;;  %v26658_v37 = vld [vmem:[#allocation15_spill] sm:$0xff] }
0x105f   : > { %13902 = vrot.lane.b32.xlu1 %v26654_v34, %s22038_s17  ;;  %v26660_v34 = vld [vmem:[#allocation25_spill] sm:$0xff] }
0x1063   : > { %21360 = vrot.lane.b32.xlu1 %v26655_v13, %s22037_s13 }
0x1067   : > { %13995 = vrot.lane.b32.xlu1 %v26656_v27, %s22038_s17  ;;  %v26662_v27 = vld [vmem:[#allocation17_spill] sm:$0xff] }
0x1068   : > { %21355 = vrot.lane.b32.xlu0 %v26657_v29, %s22037_s13 }
0x106b   : > { %14084 = vrot.lane.b32.xlu1 %v26658_v37, %s22038_s17 }
0x106c   : > { %13904 = vrot.lane.b32.xlu0 %v26659_v2, %s22038_s17  ;;  %v26665_v2 = vld [vmem:[#allocation14_spill] sm:$0xff] }
0x106f   : > { %21370 = vrot.lane.b32.xlu1 %v26660_v34, %s22037_s13 }
0x1070   : > { %13993 = vrot.lane.b32.xlu0 %v26661_v16, %s22038_s17  ;;  %v26667_v16 = vld [vmem:[#allocation18_spill] sm:$0xff] }
0x1073   : > { %14177 = vrot.lane.b32.xlu1 %v26662_v27, %s22038_s17 }
0x1074   : > { %v12989_v36 = vpop.xlane.xlu1 %12988  ;;  %21365 = vrot.lane.b32.xlu0 %v26663_v46, %s22037_s13 }
0x1075   : > { %v13009_v12 = vsub.f32 %v12512_v1, %v12989_v36  ;;  %v26668_v36 = vld [vmem:[#allocation21_spill] sm:$0xff] }
0x1077   : > { %v13018_v37 = vmul.f32 1.442695, %v13009_v12  ;;  %14268 = vrot.lane.b32.xlu1 %v26664_v9, %s22038_s17  ;;  %v13261_v12 = vpop.permute.xlu0 %13260  ;;  %v26672_v9 = vld [vmem:[#allocation27_spill] sm:$0xff] }
0x1078   : > { %14086 = vrot.lane.b32.xlu0 %v26665_v2, %s22038_s17 }
0x1079   : > { %21590 = vpow2.f32 %v13018_v37 }
0x107b   : > { %14359 = vrot.lane.b32.xlu1 %v26666_v45, %s22038_s17  ;;  %v26670_v45 = vld [vmem:[#allocation24_spill] sm:$0xff] }
0x107c   : > { %14175 = vrot.lane.b32.xlu0 %v26667_v16, %s22038_s17 }
0x107f   : > { %21375 = vrot.lane.b32.xlu1 %v22276_v32, %s22039_s26  ;;  %v13413_v32 = vpop.permute.xlu0 %13412 }
0x1080   : > { %14266 = vrot.lane.b32.xlu0 %v26668_v36, %s22038_s17 }
0x1083   : > { %v24555_v1 = vpop.eup %21590  ;;  %21385 = vrot.lane.b32.xlu1 %v22280_v33, %s22039_s26  ;;  %v21336_v33 = vpop.permute.xlu0 %21335 }
0x1084   : > { %26669 = vst [vmem:[#allocation12_spill] sm:$0xff] %v24555_v1  ;;  %20328 = vmatmul.mubr.msk.f32.vlgmr.msra.gmra.mrb[164].mxu1 %vm615_vm1, %v24555_v1  ;;  %14357 = vrot.lane.b32.xlu0 %v26670_v45, %s22038_s17 }
0x1085   : > { %20336 = vmatpush3.msra.mxu1 %v13261_v12  ;;  %20337 = vmatprep.mubr.msk.f32.mxu1 %vm22030_vm4, %v26484_v42 }
0x1086   : > { %20345 = vmatprep.subr.mxu1 %v26484_v42 }
0x1087   : > { %21390 = vrot.lane.b32.xlu1 %v22302_v39, %s22039_s26  ;;  %v24580_v39 = vpop.permute.xlu0 %21345 }
0x1088   : > { %21380 = vrot.lane.b32.xlu0 %v22298_v38, %s22039_s26  ;;  %v26671_v38 = vld [vmem:[#allocation26_spill] sm:$0xff] }
0x108b   : > { %21400 = vrot.lane.b32.xlu1 %v26655_v13, %s22039_s26 }
0x108c   : > { %21395 = vrot.lane.b32.xlu0 %v26657_v29, %s22039_s26  ;;  %v24588_v29 = vpop.permute.xlu0 %13722 }
0x108f   : > { %21410 = vrot.lane.b32.xlu1 %v26660_v34, %s22039_s26 }
0x1090   : > { %21405 = vrot.lane.b32.xlu0 %v26663_v46, %s22039_s26 }
0x1093   : > { %15401 = vrot.lane.b32.xlu1 %v22358_v52, %s22038_s17 }
0x1094   : > { %15403 = vrot.lane.b32.xlu0 %v26671_v38, %s22037_s13 }
0x1097   : > { %15559 = vrot.lane.b32.xlu1 %v22372_v57, %s22037_s13 }
0x1098   : > { %15481 = vrot.lane.b32.xlu0 %v26672_v9, %s22037_s13 }
0x109b   : > { %15557 = vrot.lane.b32.xlu1 %v22370_v56, %s22038_s17 }
0x109c   : > { %15479 = vrot.lane.b32.xlu0 %v22362_v54, %s22038_s17 }
0x109e   : > { %v12986_v46 = vpop.xlane.xlu0 %12985 }
0x109f   : > { %v13008_v13 = vsub.f32 %v24481_v30, %v12986_v46  ;;  %15715 = vrot.lane.b32.xlu1 %v22382_v61, %s22037_s13 }
0x10a0   : > { %15637 = vrot.lane.b32.xlu0 %v22378_v59, %s22037_s13 }
0x10a1   : > { %v13016_v34 = vmul.f32 1.442695, %v13008_v13 }
0x10a2   : > { %v12992_v27 = vpop.xlane.xlu0 %12991 }
0x10a3   : > { %21592 = vpow2.f32 %v13016_v34  ;;  %v13010_v37 = vsub.f32 %v24487_v35, %v12992_v27  ;;  %v21343_v27 = vunpack.i.h.bf16 %v24521_v17 }
0x10a4   : > { %15635 = vrot.lane.b32.xlu0 %v22374_v58, %s22038_s17 }
0x10a5   : > { %v13020_v2 = vmul.f32 1.442695, %v13010_v37  ;;  %v21342_v37 = vunpack.i.l.bf16 %v24521_v17 }
0x10a6   : > { %v12995_v16 = vpop.xlane.xlu0 %12994  ;;  %v12998_v36 = vpop.xlane.xlu1 %12997 }
0x10a7   : > { %21594 = vpow2.f32 %v13020_v2  ;;  %v13011_v30 = vsub.f32 %v24475_v51, %v12995_v16  ;;  %v13012_v12 = vsub.f32 %v24491_v40, %v12998_v36  ;;  %v21337_v40 = vunpack.i.l.bf16 %v21336_v33 }
0x10a8   : > { %v20934_v17 = vpack.c.bf16 %v21343_v27, %v21342_v37 }
0x10a9   : > { %v13022_v45 = vmul.f32 1.442695, %v13011_v30  ;;  %v13024_v46 = vmul.f32 1.442695, %v13012_v12 }
0x10aa   : > { %v13001_v1 = vpop.xlane.xlu0 %13000 }
0x10ab   : > { %21596 = vpow2.f32 %v13022_v45  ;;  %v13013_v13 = vsub.f32 %v24477_v19, %v13001_v1  ;;  %v21338_v19 = vunpack.i.h.bf16 %v21336_v33 }
0x10ac   : > { %21598 = vpow2.f32 %v13024_v46 }
0x10ad   : > { %v24605_v34 = vpop.eup %21592  ;;  %v13026_v35 = vmul.f32 1.442695, %v13013_v13  ;;  %v20928_v2 = vpack.c.bf16 %v21338_v19, %v21337_v40  ;;  %v21348_v19 = vunpack.i.h.bf16 %v24580_v39  ;;  %v21347_v40 = vunpack.i.l.bf16 %v24580_v39 }
0x10ae   : > { %26673 = vst [vmem:[#allocation10_spill] sm:$0xff] %v24605_v34  ;;  %20323 = vmatmul.mubr.msk.f32.vlgmr.msra.gmra.mrb[140].mxu0 %vm615_vm1, %v24605_v34 }
0x10af   : > { %21600 = vpow2.f32 %v13026_v35  ;;  %20331 = vmatpush3.msra.mxu0 %v24505_v50  ;;  %20332 = vmatprep.mubr.msk.f32.mxu0 %vm22030_vm4, %v26484_v42 }
0x10b0   : > { %20340 = vmatprep.subr.mxu0 %v26484_v42 }
0x10b1   : > { %v24613_v51 = vpop.eup %21594 }
0x10b2   : > { %26674 = vst [vmem:[#allocation19_spill] sm:$0xff] %v24613_v51  ;;  %20333 = vmatmul.mubr.msk.f32.vlgmr.msra.gmra.mrb[142].mxu0 %vm615_vm1, %v24613_v51 }
0x10b3   : > { %20341 = vmatpush3.msra.mxu0 %v24511_v28  ;;  %20342 = vmatprep.mubr.msk.f32.mxu0 %vm22030_vm4, %v26484_v42 }
0x10b4   : > { %20350 = vmatprep.subr.mxu0 %v26484_v42 }
0x10b5   : > { %v24621_v50 = vpop.eup %21596 }
0x10b6   : > { %26675 = vst [vmem:[#allocation11_spill] sm:$0xff] %v24621_v50  ;;  %v24623_v1 = vpop.eup %21598  ;;  %20338 = vmatmul.mubr.msk.f32.vlgmr.msra.gmra.mrb[166].mxu1 %vm615_vm1, %v24621_v50  ;;  %v26690_v50 = vld [vmem:[#allocation31_spill] sm:$0xff] }
0x10b7   : > { %26676 = vst [vmem:[#allocation16_spill] sm:$0xff] %v24623_v1  ;;  %20343 = vmatmul.mubr.msk.f32.vlgmr.msra.gmra.mrb[144].mxu0 %vm615_vm1, %v24623_v1  ;;  %20346 = vmatpush3.msra.mxu1 %v13413_v32  ;;  %v13812_v32 = vpop.permute.xlu0 %13811  ;;  %v20940_v1 = vpack.c.bf16 %v21348_v19, %v21347_v40  ;;  %v2121_v51 = vsel %vm1322_vm3, %v26690_v50, 0.0 }
0x10b8   : > { %20351 = vmatpush3.msra.mxu0 %v24513_v5  ;;  %20347 = vmatprep.mubr.msk.f32.mxu1 %vm22030_vm4, %v26484_v42  ;;  %v13814_v5 = vpop.permute.xlu1 %13813 }
0x10b9   : > { %v24634_v28 = vpop.eup %21600  ;;  %20930 = vmatprep.subr.msk.bf16.mxu0 %vm22396_vm2, %v20928_v2  ;;  %20355 = vmatprep.subr.mxu1 %v26484_v42 }
0x10ba   : > { %26677 = vst [vmem:[#allocation15_spill] sm:$0xff] %v24634_v28  ;;  %20348 = vmatmul.mubr.msk.f32.vlgmr.msra.gmra.mrb[168].mxu1 %vm615_vm1, %v24634_v28  ;;  %20352 = vmatprep.mubr.msk.f32.mxu0 %vm22030_vm4, %v26484_v42 }
0x10bb   : > { %20356 = vmatpush3.msra.mxu1 %v24515_v4  ;;  %20357 = vmatprep.mubr.msk.f32.mxu1 %vm22030_vm4, %v26484_v42 }
0x10bc   : > { %20936 = vmatprep.subr.msk.bf16.mxu1 %vm22396_vm2, %v20934_v17 }
0x10db   : > { %v13004_v16 = vpop.xlane.xlu1 %13003 }
0x10dc   : > { %v13014_v36 = vsub.f32 %v24497_v22, %v13004_v16  ;;  %v21353_v22 = vunpack.i.h.bf16 %v24535_v23  ;;  %v21352_v16 = vunpack.i.l.bf16 %v24535_v23 }
0x10de   : > { %v13028_v30 = vmul.f32 1.442695, %v13014_v36 }
0x10df   : > { %v13007_v12 = vpop.xlane.xlu0 %13006  ;;  %v13903_v45 = vpop.permute.xlu1 %13902 }
0x10e0   : > { %21602 = vpow2.f32 %v13028_v30  ;;  %v13015_v46 = vsub.f32 %v24483_v14, %v13007_v12  ;;  %v20946_v30 = vpack.c.bf16 %v21353_v22, %v21352_v16 }
0x10e2   : > { %v13030_v13 = vmul.f32 1.442695, %v13015_v46 }
0x10e3   : > { %v21356_v35 = vpop.permute.xlu0 %21355  ;;  %v21361_v4 = vpop.permute.xlu1 %21360 }
0x10e4   : > { %21604 = vpow2.f32 %v13030_v13  ;;  %v21358_v12 = vunpack.i.h.bf16 %v21356_v35  ;;  %v21357_v46 = vunpack.i.l.bf16 %v21356_v35  ;;  %v21362_v19 = vunpack.i.l.bf16 %v21361_v4 }
0x10e7   : > { %v13905_v27 = vpop.permute.xlu0 %13904  ;;  %v13996_v37 = vpop.permute.xlu1 %13995 }
0x10ea   : > { %v24652_v28 = vpop.eup %21602 }
0x10eb   : > { %26679 = vst [vmem:[#allocation9_spill] sm:$0xff] %v24652_v28  ;;  %v13994_v36 = vpop.permute.xlu0 %13993  ;;  %20353 = vmatmul.mubr.msk.f32.vlgmr.msra.gmra.mrb[146].mxu0 %vm615_vm1, %v24652_v28  ;;  %v14085_v14 = vpop.permute.xlu1 %14084 }
0x10ec   : > { %20933 = vmatpush3.bf16.xpose.msk.msra.mxu0 %vm22396_vm2, %v20928_v2  ;;  %20364 = vmatprep.mubr.msk.f32.mxu0 %vm615_vm1, %v24527_v18  ;;  %v20952_v18 = vpack.c.bf16 %v21358_v12, %v21357_v46  ;;  %v21363_v2 = vunpack.i.h.bf16 %v21361_v4 }
0x10ed   : > { %20942 = vmatprep.subr.msk.bf16.mxu0 %vm22396_vm2, %v20940_v1 }
0x10ee   : > { %v24664_v39 = vpop.eup %21604 }
0x10ef   : > { %26680 = vst [vmem:[#allocation25_spill] sm:$0xff] %v24664_v39  ;;  %v21366_v23 = vpop.permute.xlu0 %21365  ;;  %20358 = vmatmul.mubr.msk.f32.vlgmr.msra.gmra.mrb[170].mxu1 %vm615_vm1, %v24664_v39  ;;  %v21371_v13 = vpop.permute.xlu1 %21370 }
0x10f0   : > { %20939 = vmatpush3.bf16.xpose.msk.msra.mxu1 %vm22396_vm2, %v20934_v17  ;;  %20371 = vmatprep.mubr.msk.f32.mxu1 %vm615_vm1, %v13812_v32  ;;  %v20958_v17 = vpack.c.bf16 %v21363_v2, %v21362_v19  ;;  %v21368_v32 = vunpack.i.h.bf16 %v21366_v23  ;;  %v21367_v22 = vunpack.i.l.bf16 %v21366_v23 }
0x10f1   : > { %20948 = vmatprep.subr.msk.bf16.mxu1 %vm22396_vm2, %v20946_v30 }
0x10f3   : > { %20365 = vmatmul.mubr.msk.f32.vlgmr.msra.gmra.mrb[148].mxu0 %vm615_vm1, %v24588_v29  ;;  %v14087_v35 = vpop.permute.xlu0 %14086  ;;  %v14178_v40 = vpop.permute.xlu1 %14177  ;;  %v20964_v29 = vpack.c.bf16 %v21368_v32, %v21367_v22 }
0x10f4   : > { %20945 = vmatpush3.bf16.xpose.msk.msra.mxu0 %vm22396_vm2, %v20940_v1  ;;  %20378 = vmatprep.mubr.msk.f32.mxu0 %vm615_vm1, %v13903_v45  ;;  %v21373_v1 = vunpack.i.h.bf16 %v21371_v13  ;;  %v21372_v45 = vunpack.i.l.bf16 %v21371_v13 }
0x10f5   : > { %20954 = vmatprep.subr.msk.bf16.mxu0 %vm22396_vm2, %v20952_v18 }
0x10f7   : > { %20372 = vmatmul.mubr.msk.f32.vlgmr.msra.gmra.mrb[172].mxu1 %vm615_vm1, %v13814_v5  ;;  %v14176_v16 = vpop.permute.xlu0 %14175  ;;  %v14269_v4 = vpop.permute.xlu1 %14268  ;;  %v20970_v5 = vpack.c.bf16 %v21373_v1, %v21372_v45 }
0x10f8   : > { %20951 = vmatpush3.bf16.xpose.msk.msra.mxu1 %vm22396_vm2, %v20946_v30  ;;  %20385 = vmatprep.mubr.msk.f32.mxu1 %vm615_vm1, %v13994_v36 }
0x10f9   : > { %20960 = vmatprep.subr.msk.bf16.mxu1 %vm22396_vm2, %v20958_v17 }
0x10fb   : > { %20379 = vmatmul.mubr.msk.f32.vlgmr.msra.gmra.mrb[150].mxu0 %vm615_vm1, %v13905_v27  ;;  %v14267_v12 = vpop.permute.xlu0 %14266  ;;  %v14360_v46 = vpop.permute.xlu1 %14359 }
0x10fc   : > { %20957 = vmatpush3.bf16.xpose.msk.msra.mxu0 %vm22396_vm2, %v20952_v18  ;;  %20392 = vmatprep.mubr.msk.f32.mxu0 %vm615_vm1, %v14085_v14 }
0x10fd   : > { %20966 = vmatprep.subr.msk.bf16.mxu0 %vm22396_vm2, %v20964_v29 }
0x10ff   : > { %20386 = vmatmul.mubr.msk.f32.vlgmr.msra.gmra.mrb[174].mxu1 %vm615_vm1, %v13996_v37  ;;  %v14358_v36 = vpop.permute.xlu0 %14357  ;;  %v21376_v30 = vpop.permute.xlu1 %21375 }
0x1100   : > { %v21378_v23 = vunpack.i.h.bf16 %v21376_v30  ;;  %v21377_v2 = vunpack.i.l.bf16 %v21376_v30  ;;  %20963 = vmatpush3.bf16.xpose.msk.msra.mxu1 %vm22396_vm2, %v20958_v17  ;;  %20399 = vmatprep.mubr.msk.f32.mxu1 %vm615_vm1, %v14176_v16 }
0x1101   : > { %20972 = vmatprep.subr.msk.bf16.mxu1 %vm22396_vm2, %v20970_v5 }
0x1102   : > { %v20976_v27 = vpack.c.bf16 %v21378_v23, %v21377_v2 }
0x1103   : > { %20393 = vmatmul.mubr.msk.f32.vlgmr.msra.gmra.mrb[152].mxu0 %vm615_vm1, %v14087_v35  ;;  %v21381_v14 = vpop.permute.xlu0 %21380  ;;  %v21386_v13 = vpop.permute.xlu1 %21385 }
0x1104   : > { %v21383_v18 = vunpack.i.h.bf16 %v21381_v14  ;;  %v21382_v19 = vunpack.i.l.bf16 %v21381_v14  ;;  %20969 = vmatpush3.bf16.xpose.msk.msra.mxu0 %vm22396_vm2, %v20964_v29  ;;  %20406 = vmatprep.mubr.msk.f32.mxu0 %vm615_vm1, %v14267_v12  ;;  %v21388_v17 = vunpack.i.h.bf16 %v21386_v13  ;;  %v21387_v32 = vunpack.i.l.bf16 %v21386_v13 }
0x1105   : > { %20977 = vmatprep.subr.bf16.mxu0 %v20976_v27 }
0x1106   : > { %v20980_v37 = vpack.c.bf16 %v21383_v18, %v21382_v19  ;;  %v24707_v29 = vpack.c.bf16 %v21388_v17, %v21387_v32 }
0x1107   : > { %20400 = vmatmul.mubr.msk.f32.vlgmr.msra.gmra.mrb[176].mxu1 %vm615_vm1, %v14178_v40  ;;  %v21391_v22 = vpop.permute.xlu1 %21390 }
0x1108   : > { %20975 = vmatpush3.bf16.xpose.msk.msra.mxu1 %vm22396_vm2, %v20970_v5  ;;  %20413 = vmatprep.mubr.msk.f32.mxu1 %vm615_vm1, %v14358_v36  ;;  %v21393_v35 = vunpack.i.h.bf16 %v21391_v22  ;;  %v21392_v16 = vunpack.i.l.bf16 %v21391_v22 }
0x1109   : > { %20981 = vmatprep.subr.bf16.mxu1 %v20980_v37 }
0x110a   : > { %v24711_v1 = vpack.c.bf16 %v21393_v35, %v21392_v16 }
0x110b   : > { %20407 = vmatmul.mubr.msk.f32.vlgmr.msra.gmra.mrb[154].mxu0 %vm615_vm1, %v14269_v4 }
0x110c   : > { %20979 = vmatpush3.bf16.msra.mxu0 %v20976_v27 }
0x110d   : > { %20985 = vmatprep.subr.bf16.mxu0 %v24707_v29 }
0x110f   : > { %20414 = vmatmul.mubr.msk.f32.vlgmr.msra.gmra.mrb[178].mxu1 %vm615_vm1, %v14360_v46 }
0x1110   : > { %20983 = vmatpush3.bf16.msra.mxu1 %v20980_v37 }
0x1111   : > { %20989 = vmatprep.subr.bf16.mxu1 %v24711_v1 }
0x1157   : > { %v24714_v33 = vpop.f32.mrb[164].mxu1 }
0x1158   : > { %26681 = vst [vmem:[#allocation13_spill] sm:$0xff] %v24714_v33  ;;  %v20329_v40 = vpop.f32.mrb[165].mxu1 }
0x1181   : > { %v24716_v45 = vpop.f32.mrb[140].mxu0 }
0x1182   : > { %26682 = vst [vmem:[#allocation17_spill] sm:$0xff] %v24716_v45  ;;  %v20324_v12 = vpop.f32.mrb[141].mxu0  ;;  %v26689_v45 = vld [vmem:[#allocation29_spill] sm:$0xff] }
0x1185   : > { %v24718_v5 = vpop.f32.mrb[142].mxu0 }
0x1186   : > { %26683 = vst [vmem:[#allocation22_spill] sm:$0xff] %v24718_v5  ;;  %v20334_v4 = vpop.f32.mrb[143].mxu0 }
0x1189   : > { %v24720_v36 = vpop.f32.mrb[166].mxu1 }
0x118a   : > { %26684 = vst [vmem:[#allocation20_spill] sm:$0xff] %v24720_v36  ;;  %v24722_v30 = vpop.f32.mrb[144].mxu0  ;;  %v20339_v23 = vpop.f32.mrb[167].mxu1 }
0x118b   : > { %26685 = vst [vmem:[#allocation14_spill] sm:$0xff] %v24722_v30  ;;  %v20344_v46 = vpop.f32.mrb[145].mxu0 }
0x118d   : > { %v24724_v2 = vpop.f32.mrb[168].mxu1 }
0x118e   : > { %26686 = vst [vmem:[#allocation23_spill] sm:$0xff] %v24724_v2  ;;  %v20349_v27 = vpop.f32.mrb[169].mxu1 }
0x11be   : > { %v24726_v14 = vpop.f32.mrb[146].mxu0 }
0x11bf   : > { %26687 = vst [vmem:[#allocation18_spill] sm:$0xff] %v24726_v14  ;;  %v20354_v13 = vpop.f32.mrb[147].mxu0 }
0x11c2   : > { %v24728_v18 = vpop.f32.mrb[170].mxu1 }
0x11c3   : > { %26688 = vst [vmem:[#allocation21_spill] sm:$0xff] %v24728_v18  ;;  %v20359_v19 = vpop.f32.mrb[171].mxu1 }
0x11c6   : > { %v24730_v37 = vpop.f32.mrb[148].mxu0 }
0x11c7   : > { %v24732_v17 = vpop.f32.mrb[149].mxu0  ;;  %v14451_v32 = vsel %vm1322_vm3, %v24730_v37, -inf }
0x11c8   : > { %14452 = vmax.xlane.f32.xlu1 %v14451_v32  ;;  %v14448_v22 = vsel %vm1322_vm3, %v24732_v17, -inf }
0x11c9   : > { %14449 = vmax.xlane.f32.xlu0 %v14448_v22 }
0x11ca   : > { %v24738_v35 = vpop.f32.mrb[172].mxu1 }
0x11cb   : > { %v24740_v16 = vpop.f32.mrb[173].mxu1  ;;  %v14457_v40 = vsel %vm1322_vm3, %v24738_v35, -inf }
0x11cc   : > { %14458 = vmax.xlane.f32.xlu1 %v14457_v40  ;;  %v14454_v12 = vsel %vm1322_vm3, %v24740_v16, -inf }
0x11cd   : > { %14455 = vmax.xlane.f32.xlu0 %v14454_v12 }
0x11ce   : > { %v24746_v4 = vpop.f32.mrb[150].mxu0 }
0x11cf   : > { %v24748_v23 = vpop.f32.mrb[151].mxu0  ;;  %v14463_v46 = vsel %vm1322_vm3, %v24746_v4, -inf }
0x11d0   : > { %v14460_v32 = vsel %vm1322_vm3, %v24748_v23, -inf }
0x11d1   : > { %14464 = vmax.xlane.f32.xlu0 %v14463_v46 }
0x11d2   : > { %v24752_v27 = vpop.f32.mrb[174].mxu1 }
0x11d3   : > { %v24754_v13 = vpop.f32.mrb[175].mxu1  ;;  %v14469_v19 = vsel %vm1322_vm3, %v24752_v27, -inf }
0x11d4   : > { %14470 = vmax.xlane.f32.xlu1 %v14469_v19  ;;  %v14466_v12 = vsel %vm1322_vm3, %v24754_v13, -inf }
0x11d5   : > { %14461 = vmax.xlane.f32.xlu0 %v14460_v32 }
0x11d6   : > { %v24760_v22 = vpop.f32.mrb[152].mxu0 }
0x11d7   : > { %v24762_v40 = vpop.f32.mrb[153].mxu0  ;;  %v14475_v46 = vsel %vm1322_vm3, %v24760_v22, -inf }
0x11d8   : > { %14467 = vmax.xlane.f32.xlu1 %v14466_v12  ;;  %v14472_v19 = vsel %vm1322_vm3, %v24762_v40, -inf }
0x11d9   : > { %14476 = vmax.xlane.f32.xlu0 %v14475_v46 }
0x11da   : > { %v24768_v18 = vpop.f32.mrb[176].mxu1 }
0x11db   : > { %v24770_v14 = vpop.f32.mrb[177].mxu1  ;;  %v14481_v12 = vsel %vm1322_vm3, %v24768_v18, -inf }
0x11dc   : > { %v14478_v32 = vsel %vm1322_vm3, %v24770_v14, -inf }
0x11dd   : > { %14473 = vmax.xlane.f32.xlu0 %v14472_v19  ;;  %14479 = vmax.xlane.f32.xlu1 %v14478_v32 }
0x11de   : > { %v24776_v36 = vpop.f32.mrb[154].mxu0 }
0x11df   : > { %v24778_v2 = vpop.f32.mrb[155].mxu0  ;;  %v14487_v19 = vsel %vm1322_vm3, %v24776_v36, -inf }
0x11e0   : > { %v14484_v46 = vsel %vm1322_vm3, %v24778_v2, -inf }
0x11e1   : > { %14482 = vmax.xlane.f32.xlu0 %v14481_v12  ;;  %14485 = vmax.xlane.f32.xlu1 %v14484_v46 }
0x11e2   : > { %v24784_v30 = vpop.f32.mrb[178].mxu1 }
0x11e3   : > { %v24786_v5 = vpop.f32.mrb[179].mxu1  ;;  %v14493_v33 = vsel %vm1322_vm3, %v24784_v30, -inf }
0x11e4   : > { %v14490_v32 = vsel %vm1322_vm3, %v24786_v5, -inf }
0x11e5   : > { %14488 = vmax.xlane.f32.xlu0 %v14487_v19  ;;  %14491 = vmax.xlane.f32.xlu1 %v14490_v32 }
0x11e9   : > { %14494 = vmax.xlane.f32.xlu0 %v14493_v33 }
0x11f6   : > { %15713 = vrot.lane.b32.xlu1 %v22380_v60, %s22038_s17 }
0x11fa   : > { %15871 = vrot.lane.b32.xlu1 %v22466_v24, %s22037_s13 }
0x11fe   : > { %15869 = vrot.lane.b32.xlu1 %v22392_v0, %s22038_s17 }
0x11ff   : > { %15793 = vrot.lane.b32.xlu0 %v22388_v63, %s22037_s13 }
0x1202   : > { %15947 = vrot.lane.b32.xlu1 %v22468_v25, %s22038_s17 }
0x1203   : > { %15791 = vrot.lane.b32.xlu0 %v22386_v62, %s22038_s17 }
0x1206   : > { %16073 = vrot.lane.b32.xlu1 %v26671_v38, %s22039_s26 }
0x1207   : > { %15949 = vrot.lane.b32.xlu0 %v22470_v26, %s22037_s13 }
0x120a   : > { %16225 = vrot.lane.b32.xlu1 %v22372_v57, %s22039_s26 }
0x120b   : > { %16149 = vrot.lane.b32.xlu0 %v26672_v9, %s22039_s26 }
0x120e   : > { %16377 = vrot.lane.b32.xlu1 %v22382_v61, %s22039_s26 }
0x120f   : > { %16301 = vrot.lane.b32.xlu0 %v22378_v59, %s22039_s26 }
0x1212   : > { %16529 = vrot.lane.b32.xlu1 %v22466_v24, %s22039_s26 }
0x1213   : > { %16453 = vrot.lane.b32.xlu0 %v22388_v63, %s22039_s26 }
0x1216   : > { %16605 = vrot.lane.b32.xlu1 %v22470_v26, %s22039_s26 }
0x1217   : > { %16764 = vrot.lane.b32.xlu0 %v22358_v52, %s22037_s13 }
0x121a   : > { %16762 = vrot.lane.b32.xlu1 %v26671_v38, %s22038_s17  ;;  %v24846_v38 = vpop.permute.xlu0 %21395 }
0x121b   : > { %16842 = vrot.lane.b32.xlu0 %v22362_v54, %s22037_s13 }
0x121e   : > { %16840 = vrot.lane.b32.xlu1 %v26672_v9, %s22038_s17 }
0x121f   : > { %16920 = vrot.lane.b32.xlu0 %v22370_v56, %s22037_s13 }
0x1222   : > { %16918 = vrot.lane.b32.xlu1 %v22372_v57, %s22038_s17  ;;  %v24854_v57 = vpop.permute.xlu1 %21400 }
0x1223   : > { %16998 = vrot.lane.b32.xlu0 %v22374_v58, %s22037_s13 }
0x1226   : > { %16996 = vrot.lane.b32.xlu1 %v22378_v59, %s22038_s17  ;;  %v24858_v59 = vpop.permute.xlu0 %21405 }
0x1227   : > { %17076 = vrot.lane.b32.xlu0 %v22380_v60, %s22037_s13 }
0x122a   : > { %17074 = vrot.lane.b32.xlu1 %v22382_v61, %s22038_s17  ;;  %v24862_v61 = vpop.permute.xlu1 %21410  ;;  %v24864_v9 = vpop.permute.xlu0 %15403 }
0x122b   : > { %17154 = vrot.lane.b32.xlu0 %v22386_v62, %s22037_s13 }
0x122e   : > { %17152 = vrot.lane.b32.xlu1 %v22388_v63, %s22038_s17  ;;  %v24866_v63 = vpop.permute.xlu1 %15401  ;;  %v24868_v33 = vpop.permute.xlu0 %15481 }
0x122f   : > { %17232 = vrot.lane.b32.xlu0 %v22392_v0, %s22037_s13 }
0x1232   : > { %17230 = vrot.lane.b32.xlu1 %v22466_v24, %s22038_s17  ;;  %v24870_v12 = vpop.permute.xlu1 %15559  ;;  %v24872_v24 = vpop.permute.xlu0 %15479 }
0x1233   : > { %17310 = vrot.lane.b32.xlu0 %v22468_v25, %s22037_s13 }
0x1236   : > { %17308 = vrot.lane.b32.xlu1 %v22470_v26, %s22038_s17  ;;  %v24874_v46 = vpop.permute.xlu1 %15557  ;;  %v24876_v19 = vpop.permute.xlu0 %15637  ;;  %v2115_v26 = vsel %vm1322_vm3, %v26689_v45, 0.0  ;;  %v26692_v45 = vld [vmem:[#allocation30_spill] sm:$0xff] }
0x1237   : > { %v2118_v15 = vsel %vm1322_vm3, %v26692_v45, 0.0 }
0x123a   : > { %v24878_v32 = vpop.permute.xlu1 %15715  ;;  %v24882_v39 = vpop.permute.xlu0 %15635 }
0x1252   : > { %2116 = vadd.xlane.f32.xlu0 %v2115_v26 }
0x1255   : > { %v14453_v28 = vpop.xlane.xlu1 %14452 }
0x1256   : > { %v14497_v31 = vsub.f32 %v24730_v37, %v14453_v28  ;;  %v14450_v34 = vpop.xlane.xlu0 %14449  ;;  %2122 = vadd.xlane.f32.xlu0 %v2121_v51  ;;  %v26694_v28 = vld [vmem:[#allocation33_spill] sm:$0xff] }
0x1257   : > { %v14496_v10 = vsub.f32 %v24732_v17, %v14450_v34  ;;  %v2127_v21 = vsel %vm1322_vm3, %v26694_v28, 0.0  ;;  %v21398_v17 = vunpack.i.h.bf16 %v24846_v38 }
0x1258   : > { %v14514_v11 = vmul.f32 1.442695, %v14497_v31  ;;  %v26693_v31 = vld [vmem:[#allocation34_spill] sm:$0xff] }
0x1259   : > { %v14512_v6 = vmul.f32 1.442695, %v14496_v10  ;;  %v14459_v41 = vpop.xlane.xlu1 %14458  ;;  %v2130_v10 = vsel %vm1322_vm3, %v26693_v31, 0.0  ;;  %v26698_v31 = vld [vmem:[#allocation39_spill] sm:$0xff] }
0x125a   : > { %v14499_v26 = vsub.f32 %v24738_v35, %v14459_v41  ;;  %v14456_v7 = vpop.xlane.xlu0 %14455  ;;  %2125 = vadd.xlane.f32.xlu0 %v2124_v49  ;;  %2119 = vadd.xlane.f32.xlu1 %v2118_v15  ;;  %v26695_v41 = vld [vmem:[#allocation36_spill] sm:$0xff]  ;;  %v21397_v35 = vunpack.i.l.bf16 %v24846_v38 }
0x125b   : > { %21606 = vpow2.f32 %v14512_v6  ;;  %v14498_v50 = vsub.f32 %v24740_v16, %v14456_v7  ;;  %v2136_v7 = vsel %vm1322_vm3, %v26695_v41, 0.0  ;;  %v26696_v6 = vld [vmem:[#allocation35_spill] sm:$0xff] }
0x125c   : > { %21608 = vpow2.f32 %v14514_v11  ;;  %v14518_v51 = vmul.f32 1.442695, %v14499_v26  ;;  %v2133_v11 = vsel %vm1322_vm3, %v26696_v6, 0.0 }
0x125d   : > { %v14516_v34 = vmul.f32 1.442695, %v14498_v50 }
0x125e   : > { %v14465_v37 = vpop.xlane.xlu0 %14464  ;;  %2131 = vadd.xlane.f32.xlu0 %v2130_v10  ;;  %2128 = vadd.xlane.f32.xlu1 %v2127_v21  ;;  %v2142_v10 = vsel %vm1322_vm3, %v26698_v31, 0.0  ;;  %v21403_v21 = vunpack.i.h.bf16 %v24854_v57 }
0x125f   : > { %21610 = vpow2.f32 %v14516_v34  ;;  %v14501_v49 = vsub.f32 %v24746_v4, %v14465_v37 }
0x1260   : > { %21612 = vpow2.f32 %v14518_v51 }
0x1261   : > { %v14471_v15 = vpop.xlane.xlu1 %14470  ;;  %v14522_v50 = vmul.f32 1.442695, %v14501_v49  ;;  %v24919_v49 = vpack.c.bf16 %v21398_v17, %v21397_v35 }
0x1262   : > { %v14462_v16 = vpop.xlane.xlu0 %14461  ;;  %2137 = vadd.xlane.f32.xlu0 %v2136_v7  ;;  %2134 = vadd.xlane.f32.xlu1 %v2133_v11  ;;  %v14503_v45 = vsub.f32 %v24752_v27, %v14471_v15  ;;  %v21402_v15 = vunpack.i.l.bf16 %v24854_v57  ;;  %v26702_v11 = vld [vmem:[#allocation40_spill] sm:$0xff] }
0x1263   : > { %v14500_v26 = vsub.f32 %v24748_v23, %v14462_v16  ;;  %v26700_v23 = vld [vmem:[#allocation38_spill] sm:$0xff]  ;;  %v2148_v17 = vsel %vm1322_vm3, %v26702_v11, 0.0  ;;  %v26708_v11 = vld [vmem:[#allocation44_spill] sm:$0xff] }
0x1264   : > { %v2139_v37 = vsel %vm1322_vm3, %v26700_v23, 0.0  ;;  %v14526_v41 = vmul.f32 1.442695, %v14503_v45  ;;  %v26704_v45 = vld [vmem:[#allocation37_spill] sm:$0xff] }
0x1265   : > { %v24907_v4 = vpop.eup %21606  ;;  %v14520_v51 = vmul.f32 1.442695, %v14500_v26  ;;  %v14468_v34 = vpop.xlane.xlu1 %14467 }
0x1266   : > { %26697 = vst [vmem:[#allocation24_spill] sm:$0xff] %v24907_v4  ;;  %v24911_v28 = vpop.eup %21608  ;;  %v14502_v38 = vsub.f32 %v24754_v13, %v14468_v34  ;;  %20420 = vmatprep.mubr.msk.f32.mxu0 %vm1322_vm3, %v24907_v4  ;;  %v14477_v27 = vpop.xlane.xlu0 %14476  ;;  %2143 = vadd.xlane.f32.xlu0 %v2142_v10  ;;  %v26705_v10 = vld [vmem:[#allocation42_spill] sm:$0xff] }
0x1267   : > { %26699 = vst [vmem:[#allocation26_spill] sm:$0xff] %v24911_v28  ;;  %21614 = vpow2.f32 %v14520_v51  ;;  %v14505_v7 = vsub.f32 %v24760_v22, %v14477_v27  ;;  %2140 = vadd.xlane.f32.xlu1 %v2139_v37  ;;  %20421 = vmatmul.mubr.msk.f32.vlgmr.msra.gmra.mrb[156].mxu0 %vm1322_vm3, %v24911_v28  ;;  %v20996_v51 = vpack.c.bf16 %v21403_v21, %v21402_v15  ;;  %v21408_v27 = vunpack.i.h.bf16 %v24858_v59  ;;  %v26782_v28 = vld [vmem:[#allocation106_spill] sm:$0xff] }
0x1268   : > { %21616 = vpow2.f32 %v14522_v50  ;;  %v14524_v13 = vmul.f32 1.442695, %v14502_v38  ;;  %20987 = vmatpush3.bf16.msra.mxu0 %v24707_v29  ;;  %v2145_v29 = vsel %vm1322_vm3, %v26704_v45, 0.0  ;;  %v2154_v38 = vsel %vm1322_vm3, %v26705_v10, 0.0 }
0x1269   : > { %v24926_v6 = vpop.eup %21610  ;;  %20993 = vmatprep.subr.bf16.mxu0 %v24919_v49  ;;  %v14530_v35 = vmul.f32 1.442695, %v14505_v7 }
0x126a   : > { %26701 = vst [vmem:[#allocation27_spill] sm:$0xff] %v24926_v6  ;;  %v24931_v57 = vpop.eup %21612  ;;  %21618 = vpow2.f32 %v14524_v13  ;;  %20427 = vmatprep.mubr.msk.f32.mxu1 %vm1322_vm3, %v24926_v6  ;;  %v14474_v22 = vpop.xlane.xlu0 %14473  ;;  %2149 = vadd.xlane.f32.xlu0 %v2148_v17  ;;  %v2160_v17 = vsel %vm1322_vm3, %v26708_v11, 0.0 }
0x126b   : > { %26703 = vst [vmem:[#allocation28_spill] sm:$0xff] %v24931_v57  ;;  %v14480_v16 = vpop.xlane.xlu1 %14479  ;;  %21620 = vpow2.f32 %v14526_v41  ;;  %v14504_v26 = vsub.f32 %v24762_v40, %v14474_v22  ;;  %2146 = vadd.xlane.f32.xlu1 %v2145_v29  ;;  %20428 = vmatmul.mubr.msk.f32.vlgmr.msra.gmra.mrb[180].mxu1 %vm1322_vm3, %v24931_v57  ;;  %v21407_v41 = vunpack.i.l.bf16 %v24858_v59  ;;  %v21413_v22 = vunpack.i.h.bf16 %v24862_v61  ;;  %v26768_v57 = vld [vmem:[#allocation84_spill] sm:$0xff] }
0x126c   : > { %v14506_v50 = vsub.f32 %v24770_v14, %v14480_v16  ;;  %20991 = vmatpush3.bf16.msra.mxu1 %v24711_v1  ;;  %21622 = vpow2.f32 %v14530_v35  ;;  %v26706_v14 = vld [vmem:[#allocation41_spill] sm:$0xff]  ;;  %v21412_v59 = vunpack.i.l.bf16 %v24862_v61 }
0x126d   : > { %v14528_v34 = vmul.f32 1.442695, %v14504_v26  ;;  %20997 = vmatprep.subr.bf16.mxu1 %v20996_v51  ;;  %v2151_v37 = vsel %vm1322_vm3, %v26706_v14, 0.0 }
0x126e   : > { %v14532_v31 = vmul.f32 1.442695, %v14506_v50  ;;  %v14483_v23 = vpop.xlane.xlu0 %14482  ;;  %2155 = vadd.xlane.f32.xlu0 %v2154_v38  ;;  %v21000_v50 = vpack.c.bf16 %v21408_v27, %v21407_v41 }
0x126f   : > { %v14486_v40 = vpop.xlane.xlu1 %14485  ;;  %21624 = vpow2.f32 %v14528_v34  ;;  %v14507_v1 = vsub.f32 %v24768_v18, %v14483_v23  ;;  %2152 = vadd.xlane.f32.xlu1 %v2151_v37 }
0x1270   : > { %v14508_v21 = vsub.f32 %v24778_v2, %v14486_v40  ;;  %21626 = vpow2.f32 %v14532_v31  ;;  %v26710_v2 = vld [vmem:[#allocation43_spill] sm:$0xff] }
0x1271   : > { %v24950_v15 = vpop.eup %21614  ;;  %v14534_v7 = vmul.f32 1.442695, %v14507_v1  ;;  %v2157_v16 = vsel %vm1322_vm3, %v26710_v2, 0.0 }
0x1272   : > { %26707 = vst [vmem:[#allocation29_spill] sm:$0xff] %v24950_v15  ;;  %v14536_v13 = vmul.f32 1.442695, %v14508_v21  ;;  %v24954_v35 = vpop.eup %21616  ;;  %20434 = vmatprep.mubr.msk.f32.mxu0 %vm1322_vm3, %v24950_v15  ;;  %v14489_v18 = vpop.xlane.xlu0 %14488  ;;  %2161 = vadd.xlane.f32.xlu0 %v2160_v17 }
0x1273   : > { %26709 = vst [vmem:[#allocation31_spill] sm:$0xff] %v24954_v35  ;;  %v14492_v45 = vpop.xlane.xlu1 %14491  ;;  %21628 = vpow2.f32 %v14534_v7  ;;  %v14509_v29 = vsub.f32 %v24776_v36, %v14489_v18  ;;  %2158 = vadd.xlane.f32.xlu1 %v2157_v16  ;;  %20435 = vmatmul.mubr.msk.f32.vlgmr.msra.gmra.mrb[158].mxu0 %vm1322_vm3, %v24954_v35  ;;  %v21004_v36 = vpack.c.bf16 %v21413_v22, %v21412_v59 }
0x1274   : > { %v14510_v26 = vsub.f32 %v24786_v5, %v14492_v45  ;;  %v24966_v61 = vpop.eup %21618  ;;  %21630 = vpow2.f32 %v14536_v13  ;;  %20995 = vmatpush3.bf16.msra.mxu0 %v24919_v49 }
0x1275   : > { %26711 = vst [vmem:[#allocation32_spill] sm:$0xff] %v24966_v61  ;;  %v24969_v34 = vpop.eup %21620  ;;  %v14538_v31 = vmul.f32 1.442695, %v14509_v29  ;;  %21001 = vmatprep.subr.bf16.mxu0 %v21000_v50  ;;  %20441 = vmatprep.mubr.msk.f32.mxu1 %vm1322_vm3, %v24966_v61 }
0x1276   : > { %26712 = vst [vmem:[#allocation30_spill] sm:$0xff] %v24969_v34  ;;  %v14540_v10 = vmul.f32 1.442695, %v14510_v26  ;;  %20442 = vmatmul.mubr.msk.f32.vlgmr.msra.gmra.mrb[182].mxu1 %vm1322_vm3, %v24969_v34  ;;  %v14495_v5 = vpop.xlane.xlu0 %14494  ;;  %v24976_v27 = vpop.eup %21622 }
0x1277   : > { %21632 = vpow2.f32 %v14538_v31  ;;  %20999 = vmatpush3.bf16.msra.mxu1 %v20996_v51  ;;  %v14511_v38 = vsub.f32 %v24784_v30, %v14495_v5  ;;  %26713 = vst [vmem:[#allocation34_spill] sm:$0xff] %v24976_v27  ;;  %v15714_v30 = vpop.permute.xlu1 %15713 }
0x1278   : > { %21634 = vpow2.f32 %v14540_v10  ;;  %21005 = vmatprep.subr.bf16.mxu1 %v21004_v36 }
0x1279   : > { %v24978_v49 = vpop.eup %21624  ;;  %v14542_v23 = vmul.f32 1.442695, %v14511_v38 }
0x127a   : > { %26714 = vst [vmem:[#allocation33_spill] sm:$0xff] %v24978_v49  ;;  %v24980_v40 = vpop.eup %21626  ;;  %20448 = vmatprep.mubr.msk.f32.mxu0 %vm1322_vm3, %v24978_v49  ;;  %v15794_v7 = vpop.permute.xlu0 %15793 }
0x127b   : > { %26715 = vst [vmem:[#allocation36_spill] sm:$0xff] %v24980_v40  ;;  %21636 = vpow2.f32 %v14542_v23  ;;  %20455 = vmatprep.mubr.msk.f32.mxu1 %vm1322_vm3, %v24980_v40  ;;  %20449 = vmatmul.mubr.msk.f32.vlgmr.msra.gmra.mrb[160].mxu0 %vm1322_vm3, %v24976_v27  ;;  %v15872_v1 = vpop.permute.xlu1 %15871 }
0x127c   : > { %21003 = vmatpush3.bf16.msra.mxu0 %v21000_v50 }
0x127d   : > { %v24988_v51 = vpop.eup %21628  ;;  %20472 = vmatprep.subr.mxu0 %v26484_v42 }
0x127e   : > { %26716 = vst [vmem:[#allocation35_spill] sm:$0xff] %v24988_v51  ;;  %v24991_v14 = vpop.eup %21630  ;;  %20456 = vmatmul.mubr.msk.f32.vlgmr.msra.gmra.mrb[184].mxu1 %vm1322_vm3, %v24988_v51  ;;  %v26722_v51 = vld [vmem:[#allocation48_spill] sm:$0xff] }
0x127f   : > { %26717 = vst [vmem:[#allocation39_spill] sm:$0xff] %v24991_v14  ;;  %20462 = vmatprep.mubr.msk.f32.mxu0 %vm1322_vm3, %v24991_v14  ;;  %21007 = vmatpush3.bf16.msra.mxu1 %v21004_v36  ;;  %v15870_v13 = vpop.permute.xlu1 %15869  ;;  %v26723_v14 = vld [vmem:[#allocation47_spill] sm:$0xff] }
0x1280   : > { %20477 = vmatprep.subr.mxu1 %v26484_v42 }
0x1281   : > { %v24998_v37 = vpop.eup %21632 }
0x1282   : > { %26718 = vst [vmem:[#allocation38_spill] sm:$0xff] %v24998_v37  ;;  %v25000_v41 = vpop.eup %21634  ;;  %20463 = vmatmul.mubr.msk.f32.vlgmr.msra.gmra.mrb[162].mxu0 %vm1322_vm3, %v24998_v37 }
0x1283   : > { %26719 = vst [vmem:[#allocation40_spill] sm:$0xff] %v25000_v41  ;;  %20469 = vmatprep.mubr.msk.f32.mxu1 %vm1322_vm3, %v25000_v41  ;;  %20474 = vmatprep.mubr.msk.f32.mxu0 %vm22030_vm4, %v26484_v42 }
0x1285   : > { %v25008_v21 = vpop.eup %21636  ;;  %20473 = vmatpush3.xpose.msk.msra.mxu0 %vm615_vm1, %v24864_v9  ;;  %v15792_v9 = vpop.permute.xlu0 %15791 }
0x1286   : > { %26720 = vst [vmem:[#allocation37_spill] sm:$0xff] %v25008_v21  ;;  %20470 = vmatmul.mubr.msk.f32.vlgmr.msra.gmra.mrb[186].mxu1 %vm1322_vm3, %v25008_v21  ;;  %20482 = vmatprep.subr.mxu0 %v26484_v42 }
0x1287   : > { %20479 = vmatprep.mubr.msk.f32.mxu1 %vm22030_vm4, %v26484_v42 }
0x1288   : > { %20475 = vmatmul.mubr.msk.f32.vlgmr.msra.gmra.mrb[164].mxu0 %vm615_vm1, %v24866_v63  ;;  %20478 = vmatpush3.xpose.msk.msra.mxu1 %vm615_vm1, %v24868_v33  ;;  %v15948_v63 = vpop.permute.xlu1 %15947 }
0x1289   : > { %20483 = vmatpush3.xpose.msk.msra.mxu0 %vm615_vm1, %v24870_v12  ;;  %20484 = vmatprep.mubr.msk.f32.mxu0 %vm22030_vm4, %v26484_v42  ;;  %v15950_v33 = vpop.permute.xlu0 %15949 }
0x128a   : > { %20487 = vmatprep.subr.mxu1 %v26484_v42  ;;  %20492 = vmatprep.subr.mxu0 %v26484_v42 }
0x128b   : > { %20480 = vmatmul.mubr.msk.f32.vlgmr.msra.gmra.mrb[188].mxu1 %vm615_vm1, %v24872_v24 }
0x128c   : > { %20485 = vmatmul.mubr.msk.f32.vlgmr.msra.gmra.mrb[166].mxu0 %vm615_vm1, %v24874_v46  ;;  %20488 = vmatpush3.xpose.msk.msra.mxu1 %vm615_vm1, %v24876_v19 }
0x128d   : > { %20493 = vmatpush3.xpose.msk.msra.mxu0 %vm615_vm1, %v24878_v32  ;;  %20489 = vmatprep.mubr.msk.f32.mxu1 %vm22030_vm4, %v26484_v42  ;;  %v16150_v12 = vpop.permute.xlu0 %16149 }
0x128e   : > { %20494 = vmatprep.mubr.msk.f32.mxu0 %vm22030_vm4, %v26484_v42  ;;  %20497 = vmatprep.subr.mxu1 %v26484_v42 }
0x128f   : > { %20490 = vmatmul.mubr.msk.f32.vlgmr.msra.gmra.mrb[190].mxu1 %vm615_vm1, %v24882_v39  ;;  %20502 = vmatprep.subr.mxu0 %v26484_v42  ;;  %v16074_v39 = vpop.permute.xlu1 %16073 }
0x1290   : > { %20495 = vmatmul.mubr.msk.f32.vlgmr.msra.gmra.mrb[168].mxu0 %vm615_vm1, %v15714_v30  ;;  %20498 = vmatpush3.xpose.msk.msra.mxu1 %vm615_vm1, %v15794_v7 }
0x1291   : > { %20503 = vmatpush3.xpose.msk.msra.mxu0 %vm615_vm1, %v15872_v1  ;;  %20499 = vmatprep.mubr.msk.f32.mxu1 %vm22030_vm4, %v26484_v42  ;;  %v25067_v46 = vpop.permute.xlu0 %16301 }
0x1292   : > { %20504 = vmatprep.mubr.msk.f32.mxu0 %vm22030_vm4, %v26484_v42  ;;  %20507 = vmatprep.subr.mxu1 %v26484_v42 }
0x1293   : > { %20500 = vmatmul.mubr.msk.f32.vlgmr.msra.gmra.mrb[192].mxu1 %vm615_vm1, %v15792_v9  ;;  %20512 = vmatprep.subr.mxu0 %v26484_v42  ;;  %v25065_v24 = vpop.permute.xlu1 %16225 }
0x1294   : > { %20505 = vmatmul.mubr.msk.f32.vlgmr.msra.gmra.mrb[170].mxu0 %vm615_vm1, %v15870_v13  ;;  %20508 = vmatpush3.xpose.msk.msra.mxu1 %vm615_vm1, %v15950_v33 }
0x1295   : > { %20513 = vmatpush3.msra.mxu0 %v16074_v39  ;;  %20509 = vmatprep.mubr.msk.f32.mxu1 %vm22030_vm4, %v26484_v42  ;;  %v25071_v32 = vpop.permute.xlu0 %16453 }
0x1296   : > { %20517 = vmatprep.subr.mxu1 %v26484_v42  ;;  %20514 = vmatprep.mubr.msk.f32.mxu0 %vm22030_vm4, %v26484_v42 }
0x1297   : > { %20510 = vmatmul.mubr.msk.f32.vlgmr.msra.gmra.mrb[194].mxu1 %vm615_vm1, %v15948_v63  ;;  %20522 = vmatprep.subr.mxu0 %v26484_v42  ;;  %v25069_v19 = vpop.permute.xlu1 %16377 }
0x1298   : > { %20518 = vmatpush3.msra.mxu1 %v16150_v12  ;;  %20519 = vmatprep.mubr.msk.f32.mxu1 %vm22030_vm4, %v26484_v42  ;;  %v26721_v12 = vld [vmem:[#allocation46_spill] sm:$0xff] }
0x1299   : > { %20527 = vmatprep.subr.mxu1 %v26484_v42  ;;  %v25075_v17 = vpop.permute.xlu0 %16764 }
0x129b   : > { %v25073_v11 = vpop.permute.xlu1 %16529 }
0x129d   : > { %v25079_v59 = vpop.permute.xlu0 %16842 }
0x129f   : > { %v25077_v22 = vpop.permute.xlu1 %16605 }
0x12a1   : > { %v25083_v2 = vpop.permute.xlu0 %16920 }
0x12a3   : > { %v25081_v18 = vpop.permute.xlu1 %16762 }
0x12a5   : > { %v25087_v45 = vpop.permute.xlu0 %16998 }
0x12a7   : > { %v25085_v16 = vpop.permute.xlu1 %16840 }
0x12a9   : > { %v25091_v26 = vpop.permute.xlu0 %17076 }
0x12ab   : > { %v25089_v29 = vpop.permute.xlu1 %16918 }
0x12ad   : > { %v25095_v31 = vpop.permute.xlu0 %17154 }
0x12af   : > { %v25093_v50 = vpop.permute.xlu1 %16996 }
0x12b1   : > { %v25099_v5 = vpop.permute.xlu0 %17232 }
0x12b3   : > { %v25097_v10 = vpop.permute.xlu1 %17074 }
0x12b5   : > { %v25103_v38 = vpop.permute.xlu0 %17310 }
0x12b7   : > { %v25101_v36 = vpop.permute.xlu1 %17152 }
0x12bb   : > { %v25105_v23 = vpop.permute.xlu1 %17230 }
0x12bf   : > { %v25107_v1 = vpop.permute.xlu1 %17308 }
0x12df   : > { %v2117_v30 = vpop.xlane.xlu0 %2116 }
0x12e0   : > { %21638 = vrcp.f32 %v2117_v30 }
0x12e3   : > { %v2123_v7 = vpop.xlane.xlu0 %2122 }
0x12e4   : > { %21640 = vrcp.f32 %v2123_v7 }
0x12e7   : > { %v2126_v13 = vpop.xlane.xlu0 %2125  ;;  %v2120_v9 = vpop.xlane.xlu1 %2119 }
0x12e8   : > { %21642 = vrcp.f32 %v2126_v13 }
0x12e9   : > { %21644 = vrcp.f32 %v2120_v9 }
0x12ea   : > { %v21639_v63 = vpop.eup %21638 }
0x12eb   : > { %v2132_v33 = vpop.xlane.xlu0 %2131  ;;  %v2129_v39 = vpop.xlane.xlu1 %2128  ;;  %v2179_v21 = vmul.f32 %v21639_v63, %v26721_v12 }
0x12ec   : > { %21646 = vrcp.f32 %v2132_v33  ;;  %v26724_v33 = vld [vmem:[#allocation45_spill] sm:$0xff] }
0x12ed   : > { %21648 = vrcp.f32 %v2129_v39  ;;  %2211 = vrot.lane.b32.xlu1 %v2179_v21, %s22040_s12 }
0x12ee   : > { %v21641_v37 = vpop.eup %21640 }
0x12ef   : > { %v2138_v30 = vpop.xlane.xlu0 %2137  ;;  %v2135_v41 = vpop.xlane.xlu1 %2134  ;;  %v2181_v27 = vmul.f32 %v21641_v37, %v26722_v51 }
0x12f0   : > { %21650 = vrcp.f32 %v2138_v30  ;;  %v26726_v30 = vld [vmem:[#allocation50_spill] sm:$0xff] }
0x12f1   : > { %21652 = vrcp.f32 %v2135_v41  ;;  %2215 = vrot.lane.b32.xlu1 %v2181_v27, %s22040_s12  ;;  %v26725_v41 = vld [vmem:[#allocation49_spill] sm:$0xff] }
0x12f2   : > { %v21643_v7 = vpop.eup %21642 }
0x12f3   : > { %v21645_v13 = vpop.eup %21644  ;;  %v2144_v9 = vpop.xlane.xlu0 %2143  ;;  %v2182_v34 = vmul.f32 %v21643_v7, %v26723_v14 }
0x12f4   : > { %21654 = vrcp.f32 %v2144_v9  ;;  %v2141_v63 = vpop.xlane.xlu1 %2140  ;;  %v2180_v39 = vmul.f32 %v21645_v13, %v26724_v33  ;;  %v26728_v33 = vld [vmem:[#allocation52_spill] sm:$0xff] }
0x12f5   : > { %21656 = vrcp.f32 %v2141_v63  ;;  %2217 = vrot.lane.b32.xlu1 %v2182_v34, %s22040_s12  ;;  %v26727_v34 = vld [vmem:[#allocation51_spill] sm:$0xff] }
0x12f6   : > { %v21647_v21 = vpop.eup %21646  ;;  %2213 = vrot.lane.b32.xlu0 %v2180_v39, %s22040_s12 }
0x12f7   : > { %v21649_v51 = vpop.eup %21648  ;;  %v2150_v37 = vpop.xlane.xlu0 %2149  ;;  %v2184_v12 = vmul.f32 %v21647_v21, %v26725_v41  ;;  %v26729_v41 = vld [vmem:[#allocation53_spill] sm:$0xff] }
0x12f8   : > { %21658 = vrcp.f32 %v2150_v37  ;;  %v2147_v27 = vpop.xlane.xlu1 %2146  ;;  %v2183_v40 = vmul.f32 %v21649_v51, %v26726_v30 }
0x12f9   : > { %21660 = vrcp.f32 %v2147_v27  ;;  %2221 = vrot.lane.b32.xlu1 %v2184_v12, %s22040_s12  ;;  %v26730_v27 = vld [vmem:[#allocation54_spill] sm:$0xff] }
0x12fa   : > { %v21651_v14 = vpop.eup %21650  ;;  %2219 = vrot.lane.b32.xlu0 %v2183_v40, %s22040_s12 }
0x12fb   : > { %v21653_v7 = vpop.eup %21652  ;;  %v2156_v13 = vpop.xlane.xlu0 %2155  ;;  %v2186_v9 = vmul.f32 %v21651_v14, %v26727_v34 }
0x12fc   : > { %21662 = vrcp.f32 %v2156_v13  ;;  %v2153_v63 = vpop.xlane.xlu1 %2152  ;;  %v2185_v39 = vmul.f32 %v21653_v7, %v26728_v33  ;;  %v26731_v13 = vld [vmem:[#allocation55_spill] sm:$0xff] }
0x12fd   : > { %21664 = vrcp.f32 %v2153_v63  ;;  %2225 = vrot.lane.b32.xlu1 %v2186_v9, %s22040_s12  ;;  %v26732_v9 = vld [vmem:[#allocation56_spill] sm:$0xff] }
0x12fe   : > { %v21655_v21 = vpop.eup %21654  ;;  %2223 = vrot.lane.b32.xlu0 %v2185_v39, %s22040_s12 }
0x12ff   : > { %v21657_v51 = vpop.eup %21656  ;;  %v2162_v37 = vpop.xlane.xlu0 %2161  ;;  %v2188_v12 = vmul.f32 %v21655_v21, %v26729_v41  ;;  %v26733_v21 = vld [vmem:[#allocation57_spill] sm:$0xff] }
0x1300   : > { %21666 = vrcp.f32 %v2162_v37  ;;  %v2159_v40 = vpop.xlane.xlu1 %2158  ;;  %v2187_v30 = vmul.f32 %v21657_v51, %v26730_v27  ;;  %v26734_v51 = vld [vmem:[#allocation58_spill] sm:$0xff]  ;;  %v26735_v27 = vld [vmem:[#allocation59_spill] sm:$0xff] }
0x1301   : > { %21668 = vrcp.f32 %v2159_v40  ;;  %2229 = vrot.lane.b32.xlu1 %v2188_v12, %s22040_s12 }
0x1302   : > { %v21659_v14 = vpop.eup %21658  ;;  %2227 = vrot.lane.b32.xlu0 %v2187_v30, %s22040_s12 }
0x1303   : > { %v21661_v7 = vpop.eup %21660  ;;  %v2190_v34 = vmul.f32 %v21659_v14, %v26731_v13  ;;  %v26736_v14 = vld [vmem:[#allocation60_spill] sm:$0xff]  ;;  %v26737_v13 = vld [vmem:[#allocation61_spill] sm:$0xff] }
0x1304   : > { %v2189_v63 = vmul.f32 %v21661_v7, %v26732_v9  ;;  %v26738_v9 = vld [vmem:[#allocation63_spill] sm:$0xff] }
0x1305   : > { %2233 = vrot.lane.b32.xlu1 %v2190_v34, %s22040_s12  ;;  %v3556_v34 = vsel %vm615_vm1, %v26737_v13, 0.0  ;;  %v26746_v13 = vld [vmem:[#allocation68_spill] sm:$0xff] }
0x1306   : > { %v21663_v33 = vpop.eup %21662  ;;  %2231 = vrot.lane.b32.xlu0 %v2189_v63, %s22040_s12  ;;  %v3562_v63 = vsel %vm615_vm1, %v26738_v9, 0.0  ;;  %v26747_v9 = vld [vmem:[#allocation77_spill] sm:$0xff] }
0x1307   : > { %v21665_v39 = vpop.eup %21664  ;;  %v2192_v37 = vmul.f32 %v21663_v33, %v26733_v21  ;;  %v26739_v33 = vld [vmem:[#allocation62_spill] sm:$0xff]  ;;  %v26740_v21 = vld [vmem:[#allocation64_spill] sm:$0xff] }
0x1308   : > { %v2191_v41 = vmul.f32 %v21665_v39, %v26734_v51  ;;  %v3559_v39 = vsel %vm615_vm1, %v26739_v33, 0.0  ;;  %v26741_v51 = vld [vmem:[#allocation65_spill] sm:$0xff] }
0x1309   : > { %2237 = vrot.lane.b32.xlu1 %v2192_v37, %s22040_s12  ;;  %v3565_v37 = vsel %vm615_vm1, %v26740_v21, 0.0  ;;  %v26750_v21 = vld [vmem:[#allocation79_spill] sm:$0xff] }
0x130a   : > { %v21667_v12 = vpop.eup %21666  ;;  %2235 = vrot.lane.b32.xlu0 %v2191_v41, %s22040_s12  ;;  %v3568_v41 = vsel %vm615_vm1, %v26741_v51, 0.0  ;;  %v26751_v51 = vld [vmem:[#allocation78_spill] sm:$0xff] }
0x130b   : > { %v21669_v40 = vpop.eup %21668  ;;  %v2194_v30 = vmul.f32 %v21667_v12, %v26735_v27  ;;  %v26742_v12 = vld [vmem:[#allocation66_spill] sm:$0xff]  ;;  %v26743_v27 = vld [vmem:[#allocation67_spill] sm:$0xff] }
0x130c   : > { %v2193_v7 = vmul.f32 %v21669_v40, %v26736_v14  ;;  %v3571_v40 = vsel %vm615_vm1, %v26742_v12, 0.0  ;;  %v26752_v12 = vld [vmem:[#allocation80_spill] sm:$0xff] }
0x130d   : > { %2241 = vrot.lane.b32.xlu1 %v2194_v30, %s22040_s12  ;;  %v3574_v30 = vsel %vm615_vm1, %v26743_v27, 0.0  ;;  %v26753_v27 = vld [vmem:[#allocation81_spill] sm:$0xff] }
0x130e   : > { %2239 = vrot.lane.b32.xlu0 %v2193_v7, %s22040_s12 }
0x132d   : > { %3557 = vadd.xlane.f32.xlu0 %v3556_v34  ;;  %v3577_v34 = vsel %vm615_vm1, %v26746_v13, 0.0 }
0x1331   : > { %3563 = vadd.xlane.f32.xlu0 %v3562_v63  ;;  %3560 = vadd.xlane.f32.xlu1 %v3559_v39  ;;  %v4868_v63 = vsel %vm615_vm1, %v26747_v9, 0.0  ;;  %v26756_v9 = vld [vmem:[#allocation82_spill] sm:$0xff] }
0x1335   : > { %3566 = vadd.xlane.f32.xlu0 %v3565_v37  ;;  %3569 = vadd.xlane.f32.xlu1 %v3568_v41  ;;  %v4871_v37 = vsel %vm615_vm1, %v26750_v21, 0.0  ;;  %v4874_v41 = vsel %vm615_vm1, %v26751_v51, 0.0 }
0x1339   : > { %3572 = vadd.xlane.f32.xlu0 %v3571_v40  ;;  %3575 = vadd.xlane.f32.xlu1 %v3574_v30  ;;  %v4877_v40 = vsel %vm615_vm1, %v26752_v12, 0.0  ;;  %v4880_v30 = vsel %vm615_vm1, %v26753_v27, 0.0 }
0x133a   : > { %v25155_v14 = vpop.f32.mrb[156].mxu0 }
0x133b   : > { %26744 = vst [vmem:[#allocation42_spill] sm:$0xff] %v25155_v14  ;;  %v25157_v7 = vpop.f32.mrb[157].mxu0 }
0x133c   : > { %26745 = vst [vmem:[#allocation41_spill] sm:$0xff] %v25157_v7 }
0x133d   : > { %3578 = vadd.xlane.f32.xlu0 %v3577_v34  ;;  %4869 = vadd.xlane.f32.xlu1 %v4868_v63  ;;  %v4883_v63 = vsel %vm615_vm1, %v26756_v9, 0.0 }
0x133e   : > { %v25163_v33 = vpop.f32.mrb[180].mxu1 }
0x133f   : > { %26748 = vst [vmem:[#allocation44_spill] sm:$0xff] %v25163_v33  ;;  %v25165_v39 = vpop.f32.mrb[181].mxu1 }
0x1340   : > { %26749 = vst [vmem:[#allocation43_spill] sm:$0xff] %v25165_v39 }
0x1341   : > { %4872 = vadd.xlane.f32.xlu0 %v4871_v37  ;;  %4875 = vadd.xlane.f32.xlu1 %v4874_v41 }
0x1345   : > { %4878 = vadd.xlane.f32.xlu0 %v4877_v40  ;;  %4881 = vadd.xlane.f32.xlu1 %v4880_v30 }
0x1346   : > { %v25175_v13 = vpop.f32.mrb[158].mxu0 }
0x1347   : > { %26754 = vst [vmem:[#allocation46_spill] sm:$0xff] %v25175_v13  ;;  %v25177_v34 = vpop.f32.mrb[159].mxu0 }
0x1348   : > { %26755 = vst [vmem:[#allocation48_spill] sm:$0xff] %v25177_v34 }
0x1349   : > { %4884 = vadd.xlane.f32.xlu0 %v4883_v63  ;;  %v25181_v21 = vpop.f32.mrb[182].mxu1 }
0x134a   : > { %26757 = vst [vmem:[#allocation47_spill] sm:$0xff] %v25181_v21  ;;  %v25183_v37 = vpop.f32.mrb[183].mxu1 }
0x134b   : > { %26758 = vst [vmem:[#allocation45_spill] sm:$0xff] %v25183_v37 }
0x134e   : > { %v25185_v51 = vpop.f32.mrb[160].mxu0 }
0x134f   : > { %26759 = vst [vmem:[#allocation49_spill] sm:$0xff] %v25185_v51  ;;  %v25187_v41 = vpop.f32.mrb[161].mxu0 }
0x1350   : > { %26760 = vst [vmem:[#allocation50_spill] sm:$0xff] %v25187_v41 }
0x1351   : > { %v25189_v12 = vpop.f32.mrb[184].mxu1 }
0x1352   : > { %26761 = vst [vmem:[#allocation51_spill] sm:$0xff] %v25189_v12  ;;  %v25191_v40 = vpop.f32.mrb[185].mxu1 }
0x1353   : > { %26762 = vst [vmem:[#allocation52_spill] sm:$0xff] %v25191_v40 }
0x1355   : > { %v25193_v27 = vpop.f32.mrb[162].mxu0 }
0x1356   : > { %26763 = vst [vmem:[#allocation53_spill] sm:$0xff] %v25193_v27  ;;  %v25195_v30 = vpop.f32.mrb[163].mxu0 }
0x1357   : > { %26764 = vst [vmem:[#allocation54_spill] sm:$0xff] %v25195_v30 }
0x1359   : > { %v25197_v13 = vpop.f32.mrb[186].mxu1 }
0x135a   : > { %26765 = vst [vmem:[#allocation55_spill] sm:$0xff] %v25197_v13  ;;  %v25199_v9 = vpop.f32.mrb[187].mxu1 }
0x135b   : > { %26766 = vst [vmem:[#allocation56_spill] sm:$0xff] %v25199_v9  ;;  %v25201_v63 = vpop.f32.mrb[164].mxu0 }
0x135c   : > { %v20476_v21 = vpop.f32.mrb[165].mxu0  ;;  %v16025_v51 = vsel %vm615_vm1, %v25201_v63, -inf }
0x135d   : > { %16026 = vmax.xlane.f32.xlu0 %v16025_v51 }
0x135e   : > { %v25205_v41 = vpop.f32.mrb[188].mxu1 }
0x135f   : > { %v20481_v12 = vpop.f32.mrb[189].mxu1  ;;  %v25207_v40 = vpop.f32.mrb[166].mxu0  ;;  %v16028_v27 = vsel %vm615_vm1, %v25205_v41, -inf }
0x1360   : > { %v20486_v30 = vpop.f32.mrb[167].mxu0  ;;  %16029 = vmax.xlane.f32.xlu1 %v16028_v27  ;;  %v2212_v13 = vpop.permute.xlu1 %2211  ;;  %v16031_v9 = vsel %vm615_vm1, %v25207_v40, -inf }
0x1361   : > { %2260 = vst.msk [vmem:[#allocation2] sm:$0xff] %vm2259_vm5, %v2212_v13  ;;  %16032 = vmax.xlane.f32.xlu0 %v16031_v9 }
0x1362   : > { %v25214_v21 = vpop.f32.mrb[190].mxu1 }
0x1363   : > { %v20491_v51 = vpop.f32.mrb[191].mxu1  ;;  %v25216_v33 = vpop.f32.mrb[168].mxu0  ;;  %v16034_v12 = vsel %vm615_vm1, %v25214_v21, -inf }
0x1364   : > { %v20496_v14 = vpop.f32.mrb[169].mxu0  ;;  %v2216_v37 = vpop.permute.xlu1 %2215  ;;  %v16037_v27 = vsel %vm615_vm1, %v25216_v33, -inf }
0x1365   : > { %2262 = vst.msk [vmem:[#allocation2 + $0x10] sm:$0xff] %vm2259_vm5, %v2216_v37  ;;  %16038 = vmax.xlane.f32.xlu1 %v16037_v27  ;;  %16035 = vmax.xlane.f32.xlu0 %v16034_v12 }
0x1366   : > { %v25223_v30 = vpop.f32.mrb[192].mxu1 }
0x1367   : > { %v20501_v13 = vpop.f32.mrb[193].mxu1  ;;  %v25225_v9 = vpop.f32.mrb[170].mxu0  ;;  %v16040_v51 = vsel %vm615_vm1, %v25223_v30, -inf }
0x1368   : > { %v20506_v34 = vpop.f32.mrb[171].mxu0  ;;  %v2214_v39 = vpop.permute.xlu0 %2213  ;;  %v16043_v14 = vsel %vm615_vm1, %v25225_v9, -inf  ;;  %v26767_v13 = vld [vmem:[#allocation83_spill] sm:$0xff] }
0x1369   : > { %2261 = vst.msk [vmem:[#allocation2 + $0x8] sm:$0xff] %vm2259_vm5, %v2214_v39  ;;  %v2218_v7 = vpop.permute.xlu1 %2217  ;;  %16044 = vmax.xlane.f32.xlu1 %v16043_v14  ;;  %16041 = vmax.xlane.f32.xlu0 %v16040_v51  ;;  %v4886_v35 = vsel %vm615_vm1, %v26767_v13, 0.0  ;;  %v4889_v34 = vsel %vm615_vm1, %v26768_v57, 0.0  ;;  %v26769_v51 = vld [vmem:[#allocation93_spill] sm:$0xff]  ;;  %v26770_v14 = vld [vmem:[#allocation94_spill] sm:$0xff] }
0x136a   : > { %2263 = vst.msk [vmem:[#allocation2 + $0x18] sm:$0xff] %vm2259_vm5, %v2218_v7  ;;  %v25233_v37 = vpop.f32.mrb[194].mxu1  ;;  %v6436_v7 = vsel %vm1322_vm3, %v26769_v51, 0.0 }
0x136b   : > { %v20511_v12 = vpop.f32.mrb[195].mxu1 }
0x136c   : > { %v2220_v27 = vpop.permute.xlu0 %2219  ;;  %v6439_v12 = vsel %vm1322_vm3, %v26770_v14, 0.0  ;;  %v26773_v14 = vld [vmem:[#allocation97_spill] sm:$0xff] }
0x136d   : > { %2264 = vst.msk [vmem:[#allocation2 + $0x20] sm:$0xff] %vm2259_vm5, %v2220_v27  ;;  %v2222_v49 = vpop.permute.xlu1 %2221  ;;  %4887 = vadd.xlane.f32.xlu1 %v4886_v35  ;;  %4890 = vadd.xlane.f32.xlu0 %v4889_v34  ;;  %v26771_v27 = vld [vmem:[#allocation95_spill] sm:$0xff]  ;;  %v26772_v34 = vld [vmem:[#allocation96_spill] sm:$0xff] }
0x136e   : > { %2265 = vst.msk [vmem:[#allocation2 + $0x28] sm:$0xff] %vm2259_vm5, %v2222_v49  ;;  %v6442_v35 = vsel %vm1322_vm3, %v26771_v27, 0.0  ;;  %v6445_v49 = vsel %vm1322_vm3, %v26772_v34, 0.0  ;;  %v26775_v34 = vld [vmem:[#allocation99_spill] sm:$0xff] }
0x1370   : > { %v2224_v39 = vpop.permute.xlu0 %2223 }
0x1371   : > { %2266 = vst.msk [vmem:[#allocation2 + $0x30] sm:$0xff] %vm2259_vm5, %v2224_v39  ;;  %v2226_v13 = vpop.permute.xlu1 %2225  ;;  %6437 = vadd.xlane.f32.xlu1 %v6436_v7  ;;  %6440 = vadd.xlane.f32.xlu0 %v6439_v12  ;;  %v6448_v7 = vsel %vm1322_vm3, %v26773_v14, 0.0  ;;  %v26774_v12 = vld [vmem:[#allocation98_spill] sm:$0xff] }
0x1372   : > { %2267 = vst.msk [vmem:[#allocation2 + $0x38] sm:$0xff] %vm2259_vm5, %v2226_v13  ;;  %v6451_v13 = vsel %vm1322_vm3, %v26774_v12, 0.0  ;;  %v26777_v12 = vld [vmem:[#allocation102_spill] sm:$0xff] }
0x1374   : > { %v2228_v57 = vpop.permute.xlu0 %2227 }
0x1375   : > { %2268 = vst.msk [vmem:[#allocation2 + $0x40] sm:$0xff] %vm2259_vm5, %v2228_v57  ;;  %v2230_v51 = vpop.permute.xlu1 %2229  ;;  %6443 = vadd.xlane.f32.xlu1 %v6442_v35  ;;  %6446 = vadd.xlane.f32.xlu0 %v6445_v49  ;;  %v6454_v35 = vsel %vm1322_vm3, %v26775_v34, 0.0  ;;  %v26776_v49 = vld [vmem:[#allocation100_spill] sm:$0xff] }
0x1376   : > { %2269 = vst.msk [vmem:[#allocation2 + $0x48] sm:$0xff] %vm2259_vm5, %v2230_v51  ;;  %v6457_v51 = vsel %vm1322_vm3, %v26776_v49, 0.0  ;;  %v26780_v49 = vld [vmem:[#allocation104_spill] sm:$0xff] }
0x1378   : > { %v2232_v39 = vpop.permute.xlu0 %2231 }
0x1379   : > { %2270 = vst.msk [vmem:[#allocation2 + $0x50] sm:$0xff] %vm2259_vm5, %v2232_v39  ;;  %v2234_v27 = vpop.permute.xlu1 %2233  ;;  %6449 = vadd.xlane.f32.xlu1 %v6448_v7  ;;  %6452 = vadd.xlane.f32.xlu0 %v6451_v13  ;;  %v6460_v7 = vsel %vm1322_vm3, %v26777_v12, 0.0  ;;  %v26778_v13 = vld [vmem:[#allocation101_spill] sm:$0xff] }
0x137a   : > { %2271 = vst.msk [vmem:[#allocation2 + $0x58] sm:$0xff] %vm2259_vm5, %v2234_v27  ;;  %v6463_v27 = vsel %vm1322_vm3, %v26778_v13, 0.0  ;;  %v6475_v13 = vsel %vm1322_vm3, %v26782_v28, 0.0 }
0x137c   : > { %v2236_v57 = vpop.permute.xlu0 %2235 }
0x137d   : > { %2272 = vst.msk [vmem:[#allocation2 + $0x60] sm:$0xff] %vm2259_vm5, %v2236_v57  ;;  %v2238_v14 = vpop.permute.xlu1 %2237  ;;  %6455 = vadd.xlane.f32.xlu1 %v6454_v35  ;;  %6458 = vadd.xlane.f32.xlu0 %v6457_v51  ;;  %v26779_v57 = vld [vmem:[#allocation103_spill] sm:$0xff]  ;;  %v6469_v51 = vsel %vm1322_vm3, %v26780_v49, 0.0 }
0x137e   : > { %2273 = vst.msk [vmem:[#allocation2 + $0x68] sm:$0xff] %vm2259_vm5, %v2238_v14  ;;  %v6466_v35 = vsel %vm1322_vm3, %v26779_v57, 0.0  ;;  %v26781_v14 = vld [vmem:[#allocation105_spill] sm:$0xff] }
0x137f   : > { %v6472_v12 = vsel %vm1322_vm3, %v26781_v14, 0.0 }
0x1380   : > { %v2240_v39 = vpop.permute.xlu0 %2239 }
0x1381   : > { %2274 = vst.msk [vmem:[#allocation2 + $0x70] sm:$0xff] %vm2259_vm5, %v2240_v39  ;;  %v2242_v34 = vpop.permute.xlu1 %2241  ;;  %6461 = vadd.xlane.f32.xlu1 %v6460_v7  ;;  %6464 = vadd.xlane.f32.xlu0 %v6463_v27  ;;  %v26783_v39 = vld [vmem:[#allocation107_spill] sm:$0xff]  ;;  %v26784_v27 = vld [vmem:[#allocation108_spill] sm:$0xff] }
0x1382   : > { %2275 = vst.msk [vmem:[#allocation2 + $0x78] sm:$0xff] %vm2259_vm5, %v2242_v34  ;;  %v6478_v7 = vsel %vm1322_vm3, %v26783_v39, 0.0  ;;  %v6481_v34 = vsel %vm1322_vm3, %v26784_v27, 0.0 }
0x1385   : > { %6467 = vadd.xlane.f32.xlu1 %v6466_v35  ;;  %6470 = vadd.xlane.f32.xlu0 %v6469_v51 }
0x1389   : > { %6473 = vadd.xlane.f32.xlu1 %v6472_v12  ;;  %6476 = vadd.xlane.f32.xlu0 %v6475_v13  ;;  %v26785_v12 = vld [vmem:[#allocation69_spill] sm:$0xff] }
0x138d   : > { %6479 = vadd.xlane.f32.xlu1 %v6478_v7  ;;  %6482 = vadd.xlane.f32.xlu0 %v6481_v34  ;;  %v26786_v34 = vld [vmem:[#allocation71_spill] sm:$0xff] }
0x13ba   : > { %v3558_v57 = vpop.xlane.xlu0 %3557 }
0x13bb   : > { %21670 = vrcp.f32 %v3558_v57 }
0x13be   : > { %v3564_v35 = vpop.xlane.xlu0 %3563  ;;  %v3561_v49 = vpop.xlane.xlu1 %3560 }
0x13bf   : > { %21672 = vrcp.f32 %v3564_v35 }
0x13c0   : > { %21674 = vrcp.f32 %v3561_v49  ;;  %v26787_v49 = vld [vmem:[#allocation70_spill] sm:$0xff] }
0x13c2   : > { %v3567_v51 = vpop.xlane.xlu0 %3566  ;;  %v3570_v14 = vpop.xlane.xlu1 %3569 }
0x13c3   : > { %21676 = vrcp.f32 %v3567_v51 }
0x13c4   : > { %21678 = vrcp.f32 %v3570_v14 }
0x13c5   : > { %v21671_v28 = vpop.eup %21670 }
0x13c6   : > { %v3588_v13 = vmul.f32 %v21671_v28, %v26785_v12  ;;  %v3573_v61 = vpop.xlane.xlu0 %3572  ;;  %v3576_v39 = vpop.xlane.xlu1 %3575 }
0x13c7   : > { %21680 = vrcp.f32 %v3573_v61  ;;  %v26788_v61 = vld [vmem:[#allocation72_spill] sm:$0xff] }
0x13c8   : > { %3596 = vst.msk [vmem:[#allocation2] sm:$0xff] %vm615_vm1, %v3588_v13  ;;  %21682 = vrcp.f32 %v3576_v39  ;;  %v26789_v39 = vld [vmem:[#allocation73_spill] sm:$0xff] }
0x13c9   : > { %v21673_v7 = vpop.eup %21672 }
0x13ca   : > { %v21675_v27 = vpop.eup %21674  ;;  %v3590_v57 = vmul.f32 %v21673_v7, %v26786_v34  ;;  %v3579_v15 = vpop.xlane.xlu0 %3578 }
0x13cb   : > { %v4870_v35 = vpop.xlane.xlu1 %4869  ;;  %v3589_v6 = vmul.f32 %v21675_v27, %v26787_v49  ;;  %21684 = vrcp.f32 %v3579_v15  ;;  %v26790_v27 = vld [vmem:[#allocation74_spill] sm:$0xff] }
0x13cc   : > { %3598 = vst.msk [vmem:[#allocation2 + $0x20] sm:$0xff] %vm615_vm1, %v3590_v57  ;;  %21686 = vrcp.f32 %v4870_v35 }
0x13cd   : > { %v21677_v51 = vpop.eup %21676  ;;  %3597 = vst.msk [vmem:[#allocation2 + $0x10] sm:$0xff] %vm615_vm1, %v3589_v6  ;;  %v26791_v6 = vld [vmem:[#allocation75_spill] sm:$0xff] }
0x13ce   : > { %v21679_v14 = vpop.eup %21678  ;;  %v3591_v28 = vmul.f32 %v21677_v51, %v26788_v61  ;;  %v4873_v12 = vpop.xlane.xlu0 %4872  ;;  %v26792_v61 = vld [vmem:[#allocation76_spill] sm:$0xff] }
0x13cf   : > { %v4876_v13 = vpop.xlane.xlu1 %4875  ;;  %v3592_v4 = vmul.f32 %v21679_v14, %v26789_v39  ;;  %21688 = vrcp.f32 %v4873_v12 }
0x13d0   : > { %3599 = vst.msk [vmem:[#allocation2 + $0x30] sm:$0xff] %vm615_vm1, %v3591_v28  ;;  %21690 = vrcp.f32 %v4876_v13  ;;  %v26793_v13 = vld [vmem:[#allocation85_spill] sm:$0xff] }
0x13d1   : > { %v21681_v7 = vpop.eup %21680  ;;  %3600 = vst.msk [vmem:[#allocation2 + $0x40] sm:$0xff] %vm615_vm1, %v3592_v4 }
0x13d2   : > { %v21683_v15 = vpop.eup %21682  ;;  %v3593_v34 = vmul.f32 %v21681_v7, %v26790_v27  ;;  %v4879_v57 = vpop.xlane.xlu0 %4878 }
0x13d3   : > { %v4882_v35 = vpop.xlane.xlu1 %4881  ;;  %v3594_v49 = vmul.f32 %v21683_v15, %v26791_v6  ;;  %21692 = vrcp.f32 %v4879_v57  ;;  %v26794_v15 = vld [vmem:[#allocation87_spill] sm:$0xff] }
0x13d4   : > { %3601 = vst.msk [vmem:[#allocation2 + $0x50] sm:$0xff] %vm615_vm1, %v3593_v34  ;;  %21694 = vrcp.f32 %v4882_v35  ;;  %v26795_v34 = vld [vmem:[#allocation86_spill] sm:$0xff] }
0x13d5   : > { %v21685_v51 = vpop.eup %21684  ;;  %3602 = vst.msk [vmem:[#allocation2 + $0x60] sm:$0xff] %vm615_vm1, %v3594_v49  ;;  %v26796_v49 = vld [vmem:[#allocation88_spill] sm:$0xff] }
0x13d6   : > { %v21687_v14 = vpop.eup %21686  ;;  %v3595_v28 = vmul.f32 %v21685_v51, %v26792_v61  ;;  %v4885_v12 = vpop.xlane.xlu0 %4884 }
0x13d7   : > { %v4900_v4 = vmul.f32 %v21687_v14, %v26793_v13  ;;  %21696 = vrcp.f32 %v4885_v12  ;;  %v26797_v14 = vld [vmem:[#allocation89_spill] sm:$0xff]  ;;  %v26798_v12 = vld [vmem:[#allocation90_spill] sm:$0xff] }
0x13d8   : > { %3603 = vst.msk [vmem:[#allocation2 + $0x70] sm:$0xff] %vm615_vm1, %v3595_v28 }
0x13d9   : > { %v21689_v39 = vpop.eup %21688  ;;  %4908 = vst.msk [vmem:[#allocation2 + $0x8] sm:$0xff] %vm615_vm1, %v4900_v4 }
0x13da   : > { %v21691_v7 = vpop.eup %21690  ;;  %v4901_v27 = vmul.f32 %v21689_v39, %v26794_v15 }
0x13db   : > { %v4902_v57 = vmul.f32 %v21691_v7, %v26795_v34 }
0x13dc   : > { %4909 = vst.msk [vmem:[#allocation2 + $0x18] sm:$0xff] %vm615_vm1, %v4901_v27 }
0x13dd   : > { %v21693_v35 = vpop.eup %21692  ;;  %4910 = vst.msk [vmem:[#allocation2 + $0x28] sm:$0xff] %vm615_vm1, %v4902_v57 }
0x13de   : > { %v21695_v6 = vpop.eup %21694  ;;  %v4903_v51 = vmul.f32 %v21693_v35, %v26796_v49 }
0x13df   : > { %v4904_v61 = vmul.f32 %v21695_v6, %v26797_v14 }
0x13e0   : > { %4911 = vst.msk [vmem:[#allocation2 + $0x38] sm:$0xff] %vm615_vm1, %v4903_v51 }
0x13e1   : > { %v21697_v28 = vpop.eup %21696  ;;  %4912 = vst.msk [vmem:[#allocation2 + $0x48] sm:$0xff] %vm615_vm1, %v4904_v61 }
0x13e2   : > { %v4905_v13 = vmul.f32 %v21697_v28, %v26798_v12 }
0x13e4   : > { %4913 = vst.msk [vmem:[#allocation2 + $0x58] sm:$0xff] %vm615_vm1, %v4905_v13 }
0x13ea   : > { %v16027_v4 = vpop.xlane.xlu0 %16026 }
0x13eb   : > { %v16049_v39 = vsub.f32 %v25201_v63, %v16027_v4 }
0x13ed   : > { %v16057_v7 = vmul.f32 1.442695, %v16049_v39  ;;  %v16030_v15 = vpop.xlane.xlu1 %16029 }
0x13ee   : > { %v16050_v27 = vsub.f32 %v25205_v41, %v16030_v15  ;;  %v16033_v34 = vpop.xlane.xlu0 %16032 }
0x13ef   : > { %21698 = vpow2.f32 %v16057_v7  ;;  %v16051_v57 = vsub.f32 %v25207_v40, %v16033_v34 }
0x13f0   : > { %v16059_v35 = vmul.f32 1.442695, %v16050_v27 }
0x13f1   : > { %v16061_v6 = vmul.f32 1.442695, %v16051_v57 }
0x13f2   : > { %21700 = vpow2.f32 %v16059_v35  ;;  %v16036_v49 = vpop.xlane.xlu0 %16035  ;;  %v16039_v51 = vpop.xlane.xlu1 %16038 }
0x13f3   : > { %21702 = vpow2.f32 %v16061_v6  ;;  %v16052_v14 = vsub.f32 %v25214_v21, %v16036_v49  ;;  %v16053_v61 = vsub.f32 %v25216_v33, %v16039_v51  ;;  %v26799_v49 = vld [vmem:[#allocation92_spill] sm:$0xff] }
0x13f5   : > { %v16063_v28 = vmul.f32 1.442695, %v16052_v14  ;;  %v16065_v63 = vmul.f32 1.442695, %v16053_v61  ;;  %v26800_v61 = vld [vmem:[#allocation91_spill] sm:$0xff] }
0x13f6   : > { %v16042_v12 = vpop.xlane.xlu0 %16041  ;;  %v16045_v13 = vpop.xlane.xlu1 %16044 }
0x13f7   : > { %21704 = vpow2.f32 %v16063_v28  ;;  %v16054_v41 = vsub.f32 %v25223_v30, %v16042_v12  ;;  %v16055_v4 = vsub.f32 %v25225_v9, %v16045_v13  ;;  %v26801_v13 = vld [vmem:[#allocation109_spill] sm:$0xff] }
0x13f8   : > { %21706 = vpow2.f32 %v16065_v63 }
0x13f9   : > { %v25318_v40 = vpop.eup %21698  ;;  %v16067_v39 = vmul.f32 1.442695, %v16054_v41  ;;  %v16069_v7 = vmul.f32 1.442695, %v16055_v4  ;;  %v26802_v4 = vld [vmem:[#allocation110_spill] sm:$0xff] }
0x13fa   : > { %20515 = vmatmul.mubr.msk.f32.vlgmr.msra.gmra.mrb[172].mxu0 %vm615_vm1, %v25318_v40  ;;  %v4891_v21 = vpop.xlane.xlu0 %4890  ;;  %v4888_v15 = vpop.xlane.xlu1 %4887 }
0x13fb   : > { %21708 = vpow2.f32 %v16067_v39  ;;  %20523 = vmatpush3.msra.mxu0 %v25065_v24  ;;  %20524 = vmatprep.mubr.msk.f32.mxu0 %vm22030_vm4, %v26484_v42 }
0x13fc   : > { %v25325_v33 = vpop.eup %21700  ;;  %21710 = vpow2.f32 %v16069_v7  ;;  %20532 = vmatprep.subr.mxu0 %v26484_v42 }
0x13fd   : > { %v25328_v30 = vpop.eup %21702  ;;  %21712 = vrcp.f32 %v4891_v21  ;;  %20520 = vmatmul.mubr.msk.f32.vlgmr.msra.gmra.mrb[196].mxu1 %vm615_vm1, %v25325_v33 }
0x13fe   : > { %21714 = vrcp.f32 %v4888_v15  ;;  %20528 = vmatpush3.msra.mxu1 %v25067_v46  ;;  %20525 = vmatmul.mubr.msk.f32.vlgmr.msra.gmra.mrb[174].mxu0 %vm615_vm1, %v25328_v30  ;;  %v6441_v24 = vpop.xlane.xlu0 %6440  ;;  %v6438_v9 = vpop.xlane.xlu1 %6437 }
0x13ff   : > { %20533 = vmatpush3.msra.mxu0 %v25069_v19  ;;  %21716 = vrcp.f32 %v6441_v24  ;;  %20529 = vmatprep.mubr.msk.f32.mxu1 %vm22030_vm4, %v26484_v42 }
0x1400   : > { %21718 = vrcp.f32 %v6438_v9  ;;  %20534 = vmatprep.mubr.msk.f32.mxu0 %vm22030_vm4, %v26484_v42  ;;  %20537 = vmatprep.subr.mxu1 %v26484_v42 }
0x1401   : > { %v25341_v27 = vpop.eup %21704  ;;  %20542 = vmatprep.subr.mxu0 %v26484_v42 }
0x1402   : > { %v25344_v46 = vpop.eup %21706  ;;  %v6447_v34 = vpop.xlane.xlu0 %6446  ;;  %20530 = vmatmul.mubr.msk.f32.vlgmr.msra.gmra.mrb[198].mxu1 %vm615_vm1, %v25341_v27 }
0x1403   : > { %v6444_v19 = vpop.xlane.xlu1 %6443  ;;  %20535 = vmatmul.mubr.msk.f32.vlgmr.msra.gmra.mrb[176].mxu0 %vm615_vm1, %v25344_v46  ;;  %20538 = vmatpush3.msra.mxu1 %v25071_v32 }
0x1404   : > { %20543 = vmatpush3.msra.mxu0 %v25073_v11  ;;  %21720 = vrcp.f32 %v6444_v19  ;;  %20539 = vmatprep.mubr.msk.f32.mxu1 %vm22030_vm4, %v26484_v42 }
0x1405   : > { %v25354_v57 = vpop.eup %21708  ;;  %20544 = vmatprep.mubr.msk.f32.mxu0 %vm22030_vm4, %v26484_v42  ;;  %20547 = vmatprep.subr.mxu1 %v26484_v42  ;;  %21722 = vrcp.f32 %v6447_v34 }
0x1406   : > { %v25359_v35 = vpop.eup %21710  ;;  %v6453_v6 = vpop.xlane.xlu0 %6452  ;;  %20540 = vmatmul.mubr.msk.f32.vlgmr.msra.gmra.mrb[200].mxu1 %vm615_vm1, %v25354_v57  ;;  %20552 = vmatprep.subr.mxu0 %v26484_v42 }
0x1407   : > { %v21713_v32 = vpop.eup %21712  ;;  %20545 = vmatmul.mubr.msk.f32.vlgmr.msra.gmra.mrb[178].mxu0 %vm615_vm1, %v25359_v35  ;;  %20548 = vmatpush3.msra.mxu1 %v25077_v22  ;;  %v25373_v63 = vpop.xlane.xlu1 %6449  ;;  %21724 = vrcp.f32 %v6453_v6 }
0x1408   : > { %v21715_v11 = vpop.eup %21714  ;;  %v4907_v51 = vmul.f32 %v21713_v32, %v26799_v49  ;;  %20554 = vmatprep.mubr.msk.f32.mxu0 %vm22030_vm4, %v26484_v42  ;;  %20549 = vmatprep.mubr.msk.f32.mxu1 %vm22030_vm4, %v26484_v42  ;;  %v26806_v49 = vld [vmem:[#allocation115_spill] sm:$0xff] }
0x1409   : > { %v21717_v14 = vpop.eup %21716  ;;  %v4906_v28 = vmul.f32 %v21715_v11, %v26800_v61  ;;  %20557 = vmatprep.subr.mxu1 %v26484_v42 }
0x140a   : > { %v21719_v12 = vpop.eup %21718  ;;  %4915 = vst.msk [vmem:[#allocation2 + $0x78] sm:$0xff] %vm615_vm1, %v4907_v51  ;;  %v6459_v22 = vpop.xlane.xlu0 %6458  ;;  %v6501_v41 = vmul.f32 %v21717_v14, %v26801_v13 }
0x140b   : > { %4914 = vst.msk [vmem:[#allocation2 + $0x68] sm:$0xff] %vm615_vm1, %v4906_v28  ;;  %20553 = vmatpush3.xpose.msk.msra.mxu0 %vm615_vm1, %v25075_v17  ;;  %v6500_v39 = vmul.f32 %v21719_v12, %v26802_v4  ;;  %21726 = vrcp.f32 %v6459_v22  ;;  %v6456_v15 = vpop.xlane.xlu1 %6455  ;;  %v26803_v17 = vld [vmem:[#allocation112_spill] sm:$0xff]  ;;  %v26808_v22 = vld [vmem:[#allocation119_spill] sm:$0xff] }
0x140c   : > { %6534 = vrot.lane.b32.xlu0 %v6501_v41, %s22039_s26  ;;  %20562 = vmatprep.subr.mxu0 %v26484_v42  ;;  %v16046_v41 = vsel %vm615_vm1, %v25233_v37, -inf }
0x140d   : > { %6532 = vrot.lane.b32.xlu1 %v6500_v39, %s22039_s26 }
0x140e   : > { %v21721_v7 = vpop.eup %21720  ;;  %20555 = vmatmul.mubr.msk.f32.vlgmr.msra.gmra.mrb[180].mxu0 %vm615_vm1, %v25081_v18  ;;  %v6465_v21 = vpop.xlane.xlu0 %6464 }
0x140f   : > { %20563 = vmatpush3.xpose.msk.msra.mxu0 %vm615_vm1, %v25083_v2  ;;  %20564 = vmatprep.mubr.msk.f32.mxu0 %vm22030_vm4, %v26484_v42  ;;  %v6502_v24 = vmul.f32 %v21721_v7, %v26803_v17  ;;  %v21723_v9 = vpop.eup %21722  ;;  %21728 = vrcp.f32 %v6465_v21  ;;  %v26804_v2 = vld [vmem:[#allocation111_spill] sm:$0xff]  ;;  %v6462_v6 = vpop.xlane.xlu1 %6461  ;;  %v26809_v7 = vld [vmem:[#allocation121_spill] sm:$0xff] }
0x1410   : > { %20572 = vmatprep.subr.mxu0 %v26484_v42  ;;  %v6503_v34 = vmul.f32 %v21723_v9, %v26804_v2 }
0x1411   : > { %6536 = vrot.lane.b32.xlu1 %v6502_v24, %s22039_s26  ;;  %v21725_v19 = vpop.eup %21724 }
0x1412   : > { %20565 = vmatmul.mubr.msk.f32.vlgmr.msra.gmra.mrb[182].mxu0 %vm615_vm1, %v25089_v29  ;;  %v6471_v18 = vpop.xlane.xlu0 %6470  ;;  %v26805_v29 = vld [vmem:[#allocation113_spill] sm:$0xff] }
0x1413   : > { %20573 = vmatpush3.xpose.msk.msra.mxu0 %vm615_vm1, %v25091_v26  ;;  %20574 = vmatprep.mubr.msk.f32.mxu0 %vm22030_vm4, %v26484_v42  ;;  %21730 = vrcp.f32 %v6471_v18  ;;  %v6505_v26 = vmul.f32 %v21725_v19, %v26805_v29  ;;  %v6468_v11 = vpop.xlane.xlu1 %6467  ;;  %v26813_v19 = vld [vmem:[#allocation116_spill] sm:$0xff] }
0x1414   : > { %20582 = vmatprep.subr.mxu0 %v26484_v42 }
0x1415   : > { %6538 = vrot.lane.b32.xlu1 %v6503_v34, %s22039_s26  ;;  %v21727_v32 = vpop.eup %21726 }
0x1416   : > { %20575 = vmatmul.mubr.msk.f32.vlgmr.msra.gmra.mrb[184].mxu0 %vm615_vm1, %v25097_v10  ;;  %v6507_v51 = vmul.f32 %v21727_v32, %v26806_v49  ;;  %v6477_v12 = vpop.xlane.xlu0 %6476  ;;  %v26815_v49 = vld [vmem:[#allocation120_spill] sm:$0xff] }
0x1417   : > { %20583 = vmatpush3.xpose.msk.msra.mxu0 %vm615_vm1, %v25099_v5  ;;  %20584 = vmatprep.mubr.msk.f32.mxu0 %vm22030_vm4, %v26484_v42  ;;  %v26807_v5 = vld [vmem:[#allocation117_spill] sm:$0xff]  ;;  %v6474_v28 = vpop.xlane.xlu1 %6473  ;;  %21732 = vrcp.f32 %v6477_v12 }
0x1418   : > { %20592 = vmatprep.subr.mxu0 %v26484_v42 }
0x1419   : > { %6542 = vrot.lane.b32.xlu1 %v6505_v26, %s22039_s26  ;;  %v21729_v10 = vpop.eup %21728  ;;  %v26814_v26 = vld [vmem:[#allocation118_spill] sm:$0xff] }
0x141a   : > { %20585 = vmatmul.mubr.msk.f32.vlgmr.msra.gmra.mrb[186].mxu0 %vm615_vm1, %v25105_v23  ;;  %v6509_v14 = vmul.f32 %v21729_v10, %v26807_v5  ;;  %v6483_v4 = vpop.xlane.xlu0 %6482 }
0x141b   : > { %20594 = vmatprep.mubr.msk.f32.mxu0 %vm22030_vm4, %v26484_v42  ;;  %v6480_v23 = vpop.xlane.xlu1 %6479 }
0x141c   : > { %21734 = vrcp.f32 %v6480_v23 }
0x141d   : > { %6546 = vrot.lane.b32.xlu1 %v6507_v51, %s22039_s26  ;;  %v21731_v61 = vpop.eup %21730  ;;  %21736 = vrcp.f32 %v6483_v4 }
0x141e   : > { %v6511_v13 = vmul.f32 %v21731_v61, %v26808_v22  ;;  %21738 = vrcp.f32 %v25373_v63 }
0x141f   : > { %21740 = vrcp.f32 %v6456_v15 }
0x1420   : > { %21742 = vrcp.f32 %v6462_v6 }
0x1421   : > { %6550 = vrot.lane.b32.xlu1 %v6509_v14, %s22039_s26  ;;  %v21733_v39 = vpop.eup %21732  ;;  %21744 = vrcp.f32 %v6468_v11  ;;  %v26816_v11 = vld [vmem:[#allocation122_spill] sm:$0xff]  ;;  %v26817_v14 = vld [vmem:[#allocation127_spill] sm:$0xff] }
0x1422   : > { %v6513_v21 = vmul.f32 %v21733_v39, %v26809_v7  ;;  %21746 = vrcp.f32 %v6474_v28  ;;  %v7880_v61 = vsel %vm615_vm1, %v26817_v14, 0.0  ;;  %v26818_v28 = vld [vmem:[#allocation129_spill] sm:$0xff]  ;;  %v26822_v7 = vld [vmem:[#allocation128_spill] sm:$0xff] }
0x1423   : > { %v7889_v12 = vsel %vm615_vm1, %v26818_v28, 0.0 }
0x1425   : > { %6554 = vrot.lane.b32.xlu1 %v6511_v13, %s22039_s26 }
0x1426   : > { %v21735_v17 = vpop.eup %21734 }
0x1427   : > { %v21737_v9 = vpop.eup %21736 }
0x1428   : > { %v21739_v2 = vpop.eup %21738 }
0x1429   : > { %17510 = vrot.lane.b32.xlu1 %v22362_v54, %s22039_s26  ;;  %v26810_v54 = vld [vmem:[#allocation124_spill] sm:$0xff]  ;;  %v21741_v34 = vpop.eup %21740 }
0x142a   : > { %v6514_v24 = vmul.f32 %v21735_v17, %v26810_v54  ;;  %v6506_v15 = vmul.f32 %v21741_v34, %v26813_v19  ;;  %v21743_v29 = vpop.eup %21742  ;;  %v26823_v54 = vld [vmem:[#allocation130_spill] sm:$0xff] }
0x142b   : > { %16047 = vmax.xlane.f32.xlu0 %v16046_v41  ;;  %v6508_v32 = vmul.f32 %v21743_v29, %v26814_v26  ;;  %v21745_v6 = vpop.eup %21744 }
0x142c   : > { %v6510_v51 = vmul.f32 %v21745_v6, %v26815_v49  ;;  %v21747_v10 = vpop.eup %21746 }
0x142d   : > { %17586 = vrot.lane.b32.xlu1 %v22370_v56, %s22039_s26  ;;  %v26811_v56 = vld [vmem:[#allocation123_spill] sm:$0xff]  ;;  %v6512_v5 = vmul.f32 %v21747_v10, %v26816_v11 }
0x142e   : > { %v6515_v18 = vmul.f32 %v21737_v9, %v26811_v56  ;;  %v26824_v56 = vld [vmem:[#allocation131_spill] sm:$0xff] }
0x1431   : > { %17738 = vrot.lane.b32.xlu1 %v22380_v60, %s22039_s26  ;;  %v26812_v60 = vld [vmem:[#allocation114_spill] sm:$0xff] }
0x1432   : > { %v6504_v63 = vmul.f32 %v21739_v2, %v26812_v60 }
0x1435   : > { %6558 = vrot.lane.b32.xlu1 %v6513_v21, %s22039_s26  ;;  %v7886_v21 = vsel %vm615_vm1, %v26822_v7, 0.0 }
0x1439   : > { %6560 = vrot.lane.b32.xlu1 %v6514_v24, %s22039_s26  ;;  %v7892_v24 = vsel %vm615_vm1, %v26823_v54, 0.0 }
0x143d   : > { %6562 = vrot.lane.b32.xlu1 %v6515_v18, %s22039_s26  ;;  %v7898_v18 = vsel %vm615_vm1, %v26824_v56, 0.0 }
0x1441   : > { %6540 = vrot.lane.b32.xlu0 %v6504_v63, %s22039_s26 }
0x1445   : > { %6544 = vrot.lane.b32.xlu0 %v6506_v15, %s22039_s26 }
0x1449   : > { %6548 = vrot.lane.b32.xlu0 %v6508_v32, %s22039_s26 }
0x144d   : > { %6552 = vrot.lane.b32.xlu0 %v6510_v51, %s22039_s26 }
0x1451   : > { %6556 = vrot.lane.b32.xlu0 %v6512_v5, %s22039_s26 }
0x1455   : > { %17434 = vrot.lane.b32.xlu0 %v22358_v52, %s22039_s26  ;;  %v26819_v52 = vld [vmem:[#allocation132_spill] sm:$0xff] }
0x1459   : > { %17662 = vrot.lane.b32.xlu0 %v22374_v58, %s22039_s26  ;;  %v7895_v58 = vsel %vm615_vm1, %v26819_v52, 0.0 }
0x145d   : > { %17814 = vrot.lane.b32.xlu0 %v22386_v62, %s22039_s26 }
0x1461   : > { %7881 = vadd.xlane.f32.xlu1 %v7880_v61  ;;  %17890 = vrot.lane.b32.xlu0 %v22392_v0, %s22039_s26  ;;  %v26820_v0 = vld [vmem:[#allocation125_spill] sm:$0xff] }
0x1462   : > { %v7877_v23 = vsel %vm615_vm1, %v26820_v0, 0.0 }
0x1465   : > { %7890 = vadd.xlane.f32.xlu1 %v7889_v12  ;;  %17966 = vrot.lane.b32.xlu0 %v22468_v25, %s22039_s26  ;;  %v26821_v25 = vld [vmem:[#allocation126_spill] sm:$0xff] }
0x1466   : > { %v7883_v4 = vsel %vm615_vm1, %v26821_v25, 0.0 }
0x1469   : > { %7896 = vadd.xlane.f32.xlu1 %v7895_v58 }
0x147e   : > { %v6535_v62 = vpop.permute.xlu0 %6534 }
0x147f   : > { %6582 = vst.msk [vmem:[#allocation2 + $0x8] sm:$0xff] %vm6580_vm6, %v6535_v62  ;;  %v6533_v22 = vpop.permute.xlu1 %6532 }
0x1480   : > { %6581 = vst.msk [vmem:[#allocation2] sm:$0xff] %vm6580_vm6, %v6533_v22 }
0x1483   : > { %v6537_v13 = vpop.permute.xlu1 %6536 }
0x1484   : > { %6583 = vst.msk [vmem:[#allocation2 + $0x10] sm:$0xff] %vm6580_vm6, %v6537_v13  ;;  %7878 = vadd.xlane.f32.xlu0 %v7877_v23 }
0x1487   : > { %v6539_v41 = vpop.permute.xlu1 %6538 }
0x1488   : > { %6584 = vst.msk [vmem:[#allocation2 + $0x18] sm:$0xff] %vm6580_vm6, %v6539_v41  ;;  %7884 = vadd.xlane.f32.xlu0 %v7883_v4 }
0x148b   : > { %v6543_v39 = vpop.permute.xlu1 %6542 }
0x148c   : > { %6586 = vst.msk [vmem:[#allocation2 + $0x28] sm:$0xff] %vm6580_vm6, %v6543_v39  ;;  %7887 = vadd.xlane.f32.xlu0 %v7886_v21 }
0x148f   : > { %v6547_v17 = vpop.permute.xlu1 %6546 }
0x1490   : > { %6588 = vst.msk [vmem:[#allocation2 + $0x38] sm:$0xff] %vm6580_vm6, %v6547_v17  ;;  %7893 = vadd.xlane.f32.xlu0 %v7892_v24  ;;  %v26825_v24 = vld [vmem:[#allocation135_spill] sm:$0xff] }
0x1493   : > { %v6551_v9 = vpop.permute.xlu1 %6550 }
0x1494   : > { %6590 = vst.msk [vmem:[#allocation2 + $0x48] sm:$0xff] %vm6580_vm6, %v6551_v9  ;;  %7899 = vadd.xlane.f32.xlu0 %v7898_v18 }
0x1497   : > { %v6555_v2 = vpop.permute.xlu1 %6554 }
0x1498   : > { %6592 = vst.msk [vmem:[#allocation2 + $0x58] sm:$0xff] %vm6580_vm6, %v6555_v2  ;;  %v26826_v2 = vld [vmem:[#allocation137_spill] sm:$0xff] }
0x149b   : > { %v17511_v60 = vpop.permute.xlu1 %17510 }
0x149f   : > { %v25481_v63 = vpop.permute.xlu1 %17586 }
0x14a3   : > { %v25483_v34 = vpop.permute.xlu1 %17738 }
0x14a7   : > { %v6559_v19 = vpop.permute.xlu1 %6558 }
0x14a8   : > { %6594 = vst.msk [vmem:[#allocation2 + $0x68] sm:$0xff] %vm6580_vm6, %v6559_v19 }
0x14ab   : > { %v6561_v15 = vpop.permute.xlu1 %6560 }
0x14ac   : > { %6595 = vst.msk [vmem:[#allocation2 + $0x70] sm:$0xff] %vm6580_vm6, %v6561_v15 }
0x14af   : > { %v6563_v29 = vpop.permute.xlu1 %6562 }
0x14b0   : > { %6596 = vst.msk [vmem:[#allocation2 + $0x78] sm:$0xff] %vm6580_vm6, %v6563_v29  ;;  %v26827_v29 = vld [vmem:[#allocation140_spill] sm:$0xff] }
0x14b8   : > { %v16048_v26 = vpop.xlane.xlu0 %16047 }
0x14b9   : > { %v16056_v32 = vsub.f32 %v25233_v37, %v16048_v26 }
0x14bb   : > { %v16071_v6 = vmul.f32 1.442695, %v16056_v32 }
0x14bc   : > { %v6541_v49 = vpop.permute.xlu0 %6540 }
0x14bd   : > { %21748 = vpow2.f32 %v16071_v6  ;;  %6585 = vst.msk [vmem:[#allocation2 + $0x20] sm:$0xff] %vm6580_vm6, %v6541_v49 }
0x14c0   : > { %v6545_v51 = vpop.permute.xlu0 %6544 }
0x14c1   : > { %6587 = vst.msk [vmem:[#allocation2 + $0x30] sm:$0xff] %vm6580_vm6, %v6545_v51 }
0x14c4   : > { %v6549_v10 = vpop.permute.xlu0 %6548 }
0x14c5   : > { %6589 = vst.msk [vmem:[#allocation2 + $0x40] sm:$0xff] %vm6580_vm6, %v6549_v10 }
0x14c7   : > { %v25492_v11 = vpop.eup %21748 }
0x14c8   : > { %20550 = vmatmul.mubr.msk.f32.vlgmr.msra.gmra.mrb[202].mxu1 %vm615_vm1, %v25492_v11  ;;  %v6553_v5 = vpop.permute.xlu0 %6552 }
0x14c9   : > { %20558 = vmatpush3.xpose.msk.msra.mxu1 %vm615_vm1, %v25079_v59  ;;  %6591 = vst.msk [vmem:[#allocation2 + $0x50] sm:$0xff] %vm6580_vm6, %v6553_v5  ;;  %20559 = vmatprep.mubr.msk.f32.mxu1 %vm22030_vm4, %v26484_v42 }
0x14ca   : > { %20567 = vmatprep.subr.mxu1 %v26484_v42 }
0x14cc   : > { %20560 = vmatmul.mubr.msk.f32.vlgmr.msra.gmra.mrb[204].mxu1 %vm615_vm1, %v25085_v16  ;;  %v6557_v37 = vpop.permute.xlu0 %6556 }
0x14cd   : > { %20568 = vmatpush3.xpose.msk.msra.mxu1 %vm615_vm1, %v25087_v45  ;;  %6593 = vst.msk [vmem:[#allocation2 + $0x60] sm:$0xff] %vm6580_vm6, %v6557_v37  ;;  %v25507_v14 = vpop.f32.mrb[172].mxu0  ;;  %20569 = vmatprep.mubr.msk.f32.mxu1 %vm22030_vm4, %v26484_v42 }
0x14ce   : > { %v20516_v59 = vpop.f32.mrb[173].mxu0  ;;  %20577 = vmatprep.subr.mxu1 %v26484_v42 }
0x14cf   : > { %v26828_v59 = vld [vmem:[#allocation133_spill] sm:$0xff] }
0x14d0   : > { %v25512_v61 = vpop.f32.mrb[196].mxu1  ;;  %20570 = vmatmul.mubr.msk.f32.vlgmr.msra.gmra.mrb[206].mxu1 %vm615_vm1, %v25093_v50  ;;  %v17435_v16 = vpop.permute.xlu0 %17434 }
0x14d1   : > { %20578 = vmatpush3.xpose.msk.msra.mxu1 %vm615_vm1, %v25095_v31  ;;  %v20521_v45 = vpop.f32.mrb[197].mxu1  ;;  %v25518_v28 = vpop.f32.mrb[174].mxu0  ;;  %20593 = vmatpush3.msra.mxu0 %v17435_v16 }
0x14d2   : > { %v20526_v12 = vpop.f32.mrb[175].mxu0  ;;  %20579 = vmatprep.mubr.msk.f32.mxu1 %vm22030_vm4, %v26484_v42  ;;  %20587 = vmatprep.subr.mxu1 %v26484_v42 }
0x14d3   : > { %20602 = vmatprep.subr.mxu0 %v26484_v42 }
0x14d4   : > { %20580 = vmatmul.mubr.msk.f32.vlgmr.msra.gmra.mrb[208].mxu1 %vm615_vm1, %v25101_v36  ;;  %v25553_v56 = vpop.permute.xlu0 %17662 }
0x14d5   : > { %20588 = vmatpush3.xpose.msk.msra.mxu1 %vm615_vm1, %v25103_v38  ;;  %v25528_v50 = vpop.f32.mrb[198].mxu1  ;;  %20589 = vmatprep.mubr.msk.f32.mxu1 %vm22030_vm4, %v26484_v42 }
0x14d6   : > { %v25532_v31 = vpop.f32.mrb[176].mxu0  ;;  %v20531_v52 = vpop.f32.mrb[199].mxu1  ;;  %20597 = vmatprep.subr.mxu1 %v26484_v42 }
0x14d7   : > { %v20536_v58 = vpop.f32.mrb[177].mxu0  ;;  %v26829_v52 = vld [vmem:[#allocation134_spill] sm:$0xff] }
0x14d8   : > { %20590 = vmatmul.mubr.msk.f32.vlgmr.msra.gmra.mrb[210].mxu1 %vm615_vm1, %v25107_v1  ;;  %v25558_v15 = vpop.permute.xlu0 %17814 }
0x14d9   : > { %20598 = vmatpush3.msra.mxu1 %v17511_v60  ;;  %v25537_v62 = vpop.f32.mrb[200].mxu1  ;;  %20599 = vmatprep.mubr.msk.f32.mxu1 %vm22030_vm4, %v26484_v42 }
0x14da   : > { %v25541_v36 = vpop.f32.mrb[178].mxu0  ;;  %v20541_v38 = vpop.f32.mrb[201].mxu1  ;;  %20607 = vmatprep.subr.mxu1 %v26484_v42 }
0x14db   : > { %v20546_v22 = vpop.f32.mrb[179].mxu0  ;;  %v26830_v38 = vld [vmem:[#allocation142_spill] sm:$0xff] }
0x14dc   : > { %v25562_v32 = vpop.permute.xlu0 %17890  ;;  %v9238_v22 = vsel %vm615_vm1, %v26830_v38, 0.0 }
0x14e0   : > { %v25564_v6 = vpop.permute.xlu0 %17966 }
0x14e1   : > { %v25544_v13 = vpop.f32.mrb[180].mxu0 }
0x14e2   : > { %v20556_v0 = vpop.f32.mrb[181].mxu0 }
0x14e5   : > { %v25546_v23 = vpop.f32.mrb[182].mxu0 }
0x14e6   : > { %v20566_v41 = vpop.f32.mrb[183].mxu0 }
0x14e7   : > { %v26831_v41 = vld [vmem:[#allocation136_spill] sm:$0xff] }
0x14e9   : > { %v25548_v25 = vpop.f32.mrb[184].mxu0 }
0x14ea   : > { %v20576_v1 = vpop.f32.mrb[185].mxu0 }
0x14ed   : > { %v25550_v4 = vpop.f32.mrb[186].mxu0 }
0x14ee   : > { %v20586_v39 = vpop.f32.mrb[187].mxu0  ;;  %v7882_v7 = vpop.xlane.xlu1 %7881 }
0x14ef   : > { %21750 = vrcp.f32 %v7882_v7  ;;  %v26832_v39 = vld [vmem:[#allocation143_spill] sm:$0xff] }
0x14f0   : > { %v9244_v7 = vsel %vm615_vm1, %v26832_v39, 0.0 }
0x14f2   : > { %v7891_v21 = vpop.xlane.xlu1 %7890 }
0x14f3   : > { %21752 = vrcp.f32 %v7891_v21 }
0x14f6   : > { %v7897_v17 = vpop.xlane.xlu1 %7896 }
0x14f7   : > { %21754 = vrcp.f32 %v7897_v17  ;;  %v26833_v17 = vld [vmem:[#allocation138_spill] sm:$0xff] }
0x14f9   : > { %v21751_v54 = vpop.eup %21750 }
0x14fa   : > { %v7910_v9 = vmul.f32 %v21751_v54, %v26825_v24  ;;  %v26834_v24 = vld [vmem:[#allocation144_spill] sm:$0xff] }
0x14fc   : > { %7927 = vrot.lane.b32.xlu0 %v7910_v9, %s22041_s14  ;;  %v9247_v9 = vsel %vm615_vm1, %v26834_v24, 0.0 }
0x14fd   : > { %v21753_v18 = vpop.eup %21752 }
0x14fe   : > { %v7913_v60 = vmul.f32 %v21753_v18, %v26826_v2  ;;  %v26835_v2 = vld [vmem:[#allocation139_spill] sm:$0xff] }
0x1500   : > { %7933 = vrot.lane.b32.xlu0 %v7913_v60, %s22041_s14 }
0x1501   : > { %v21755_v19 = vpop.eup %21754 }
0x1502   : > { %v7915_v26 = vmul.f32 %v21755_v19, %v26827_v29  ;;  %v26836_v19 = vld [vmem:[#allocation146_spill] sm:$0xff] }
0x1503   : > { %v9253_v29 = vsel %vm615_vm1, %v26836_v19, 0.0 }
0x1504   : > { %7937 = vrot.lane.b32.xlu0 %v7915_v26, %s22041_s14  ;;  %v26837_v26 = vld [vmem:[#allocation148_spill] sm:$0xff] }
0x1511   : > { %v7879_v49 = vpop.xlane.xlu0 %7878 }
0x1512   : > { %21756 = vrcp.f32 %v7879_v49  ;;  %v9259_v49 = vsel %vm615_vm1, %v26837_v26, 0.0 }
0x1515   : > { %v7885_v51 = vpop.xlane.xlu0 %7884 }
0x1516   : > { %21758 = vrcp.f32 %v7885_v51  ;;  %v26838_v51 = vld [vmem:[#allocation141_spill] sm:$0xff] }
0x1519   : > { %v7888_v10 = vpop.xlane.xlu0 %7887 }
0x151a   : > { %21760 = vrcp.f32 %v7888_v10  ;;  %v9241_v10 = vsel %vm615_vm1, %v26838_v51, 0.0  ;;  %v26841_v51 = vld [vmem:[#allocation150_spill] sm:$0xff] }
0x151c   : > { %v21757_v5 = vpop.eup %21756 }
0x151d   : > { %v7894_v37 = vpop.xlane.xlu0 %7893  ;;  %v7909_v16 = vmul.f32 %v21757_v5, %v26828_v59  ;;  %v26839_v5 = vld [vmem:[#allocation145_spill] sm:$0xff]  ;;  %v26840_v59 = vld [vmem:[#allocation147_spill] sm:$0xff] }
0x151e   : > { %21762 = vrcp.f32 %v7894_v37  ;;  %v9250_v37 = vsel %vm615_vm1, %v26839_v5, 0.0 }
0x151f   : > { %7925 = vrot.lane.b32.xlu1 %v7909_v16, %s22041_s14  ;;  %v9256_v16 = vsel %vm615_vm1, %v26840_v59, 0.0  ;;  %v26842_v59 = vld [vmem:[#allocation151_spill] sm:$0xff] }
0x1520   : > { %v21759_v45 = vpop.eup %21758 }
0x1521   : > { %v7900_v12 = vpop.xlane.xlu0 %7899  ;;  %v7911_v58 = vmul.f32 %v21759_v45, %v26829_v52 }
0x1522   : > { %21764 = vrcp.f32 %v7900_v12 }
0x1523   : > { %9239 = vadd.xlane.f32.xlu0 %v9238_v22  ;;  %7929 = vrot.lane.b32.xlu1 %v7911_v58, %s22041_s14 }
0x1524   : > { %v21761_v0 = vpop.eup %21760 }
0x1525   : > { %v7912_v1 = vmul.f32 %v21761_v0, %v26831_v41 }
0x1527   : > { %9245 = vadd.xlane.f32.xlu0 %v9244_v7  ;;  %7931 = vrot.lane.b32.xlu1 %v7912_v1, %s22041_s14 }
0x1528   : > { %v21763_v21 = vpop.eup %21762 }
0x1529   : > { %v7914_v54 = vmul.f32 %v21763_v21, %v26833_v17 }
0x152b   : > { %9248 = vadd.xlane.f32.xlu0 %v9247_v9  ;;  %7935 = vrot.lane.b32.xlu1 %v7914_v54, %s22041_s14 }
0x152c   : > { %v21765_v18 = vpop.eup %21764 }
0x152d   : > { %v7916_v60 = vmul.f32 %v21765_v18, %v26835_v2 }
0x152f   : > { %9254 = vadd.xlane.f32.xlu0 %v9253_v29  ;;  %7939 = vrot.lane.b32.xlu1 %v7916_v60, %s22041_s14 }
0x1533   : > { %9260 = vadd.xlane.f32.xlu0 %v9259_v49 }
0x1553   : > { %9242 = vadd.xlane.f32.xlu1 %v9241_v10 }
0x1557   : > { %9251 = vadd.xlane.f32.xlu1 %v9250_v37 }
0x155b   : > { %9257 = vadd.xlane.f32.xlu1 %v9256_v16 }
0x156e   : > { %v7928_v45 = vpop.permute.xlu0 %7927 }
0x156f   : > { %7951 = vst.msk [vmem:[#allocation2 + $0x10] sm:$0xff] %vm7949_vm7, %v7928_v45 }
0x1572   : > { %v7934_v12 = vpop.permute.xlu0 %7933 }
0x1573   : > { %7954 = vst.msk [vmem:[#allocation2 + $0x40] sm:$0xff] %vm7949_vm7, %v7934_v12  ;;  %v26843_v12 = vld [vmem:[#allocation152_spill] sm:$0xff] }
0x1576   : > { %v7938_v52 = vpop.permute.xlu0 %7937 }
0x1577   : > { %7956 = vst.msk [vmem:[#allocation2 + $0x60] sm:$0xff] %vm7949_vm7, %v7938_v52 }
0x1591   : > { %v7926_v58 = vpop.permute.xlu1 %7925 }
0x1592   : > { %7950 = vst.msk [vmem:[#allocation2] sm:$0xff] %vm7949_vm7, %v7926_v58 }
0x1595   : > { %v7930_v38 = vpop.permute.xlu1 %7929 }
0x1596   : > { %7952 = vst.msk [vmem:[#allocation2 + $0x20] sm:$0xff] %vm7949_vm7, %v7930_v38  ;;  %v26844_v38 = vld [vmem:[#allocation154_spill] sm:$0xff] }
0x1599   : > { %v7932_v22 = vpop.permute.xlu1 %7931 }
0x159a   : > { %7953 = vst.msk [vmem:[#allocation2 + $0x30] sm:$0xff] %vm7949_vm7, %v7932_v22 }
0x159b   : > { %v25598_v0 = vpop.f32.mrb[202].mxu1 }
0x159c   : > { %v20551_v41 = vpop.f32.mrb[203].mxu1 }
0x159d   : > { %v7936_v1 = vpop.permute.xlu1 %7935 }
0x159e   : > { %7955 = vst.msk [vmem:[#allocation2 + $0x50] sm:$0xff] %vm7949_vm7, %v7936_v1  ;;  %v26845_v1 = vld [vmem:[#allocation156_spill] sm:$0xff] }
0x159f   : > { %v25601_v39 = vpop.f32.mrb[204].mxu1 }
0x15a0   : > { %v20561_v7 = vpop.f32.mrb[205].mxu1 }
0x15a1   : > { %v7940_v21 = vpop.permute.xlu1 %7939 }
0x15a2   : > { %7957 = vst.msk [vmem:[#allocation2 + $0x70] sm:$0xff] %vm7949_vm7, %v7940_v21 }
0x15a3   : > { %v25604_v17 = vpop.f32.mrb[206].mxu1 }
0x15a4   : > { %v20571_v54 = vpop.f32.mrb[207].mxu1 }
0x15a7   : > { %v25606_v24 = vpop.f32.mrb[208].mxu1 }
0x15a8   : > { %v20581_v9 = vpop.f32.mrb[209].mxu1 }
0x15ab   : > { %v25608_v18 = vpop.f32.mrb[210].mxu1 }
0x15ac   : > { %v20591_v2 = vpop.f32.mrb[211].mxu1 }
0x15b0   : > { %v9240_v60 = vpop.xlane.xlu0 %9239 }
0x15b1   : > { %21766 = vrcp.f32 %v9240_v60  ;;  %v26846_v60 = vld [vmem:[#allocation149_spill] sm:$0xff] }
0x15b4   : > { %v9246_v19 = vpop.xlane.xlu0 %9245 }
0x15b5   : > { %21768 = vrcp.f32 %v9246_v19 }
0x15b8   : > { %v9249_v29 = vpop.xlane.xlu0 %9248 }
0x15b9   : > { %21770 = vrcp.f32 %v9249_v29 }
0x15bb   : > { %v21767_v26 = vpop.eup %21766 }
0x15bc   : > { %v9255_v49 = vpop.xlane.xlu0 %9254  ;;  %v9270_v10 = vmul.f32 %v21767_v26, %v26841_v51  ;;  %v26847_v26 = vld [vmem:[#allocation153_spill] sm:$0xff]  ;;  %v10841_v51 = vsel %vm1322_vm3, %v24096_v43, 0.0  ;;  %v17386_v43 = vsel %vm615_vm1, %v25544_v13, -inf }
0x15bd   : > { %21772 = vrcp.f32 %v9255_v49 }
0x15be   : > { %9286 = vrot.lane.b32.xlu1 %v9270_v10, %s22041_s14 }
0x15bf   : > { %v21769_v5 = vpop.eup %21768 }
0x15c0   : > { %v9261_v37 = vpop.xlane.xlu0 %9260  ;;  %v9272_v16 = vmul.f32 %v21769_v5, %v26842_v59  ;;  %v26848_v5 = vld [vmem:[#allocation155_spill] sm:$0xff]  ;;  %v10850_v59 = vsel %vm1322_vm3, %v24122_v55, 0.0  ;;  %v10874_v55 = vsel %vm1322_vm3, %v24156_v48, 0.0  ;;  %v26849_v48 = vld [vmem:[#allocation24_spill] sm:$0xff] }
0x15c1   : > { %21774 = vrcp.f32 %v9261_v37 }
0x15c2   : > { %9290 = vrot.lane.b32.xlu1 %v9272_v16, %s22041_s14  ;;  %v10856_v16 = vsel %vm1322_vm3, %v24133_v3, 0.0  ;;  %v17395_v3 = vsel %vm615_vm1, %v25604_v17, -inf }
0x15c3   : > { %v21771_v45 = vpop.eup %21770 }
0x15c4   : > { %v9273_v52 = vmul.f32 %v21771_v45, %v26843_v12  ;;  %v10862_v45 = vsel %vm1322_vm3, %v24143_v44, 0.0  ;;  %v10868_v12 = vsel %vm1322_vm3, %v24145_v47, 0.0  ;;  %v12279_v44 = vsel %vm615_vm1, %v24339_v53, 0.0 }
0x15c5   : > { %v10844_v47 = vsel %vm1322_vm3, %v24107_v20, 0.0  ;;  %v26852_v20 = vld [vmem:[#allocation159_spill] sm:$0xff] }
0x15c6   : > { %9292 = vrot.lane.b32.xlu1 %v9273_v52, %s22041_s14  ;;  %v10838_v52 = vsel %vm1322_vm3, %v24094_v8, 0.0  ;;  %v26851_v8 = vld [vmem:[#allocation158_spill] sm:$0xff] }
0x15c7   : > { %v21773_v58 = vpop.eup %21772 }
0x15c8   : > { %v9275_v22 = vmul.f32 %v21773_v58, %v26844_v38  ;;  %v17401_v58 = vsel %vm615_vm1, %v25606_v24, -inf  ;;  %v15240_v38 = vsel %vm1322_vm3, %v26849_v48, 0.0 }
0x15ca   : > { %9296 = vrot.lane.b32.xlu1 %v9275_v22, %s22041_s14  ;;  %v26850_v22 = vld [vmem:[#allocation157_spill] sm:$0xff] }
0x15cb   : > { %v21775_v41 = vpop.eup %21774  ;;  %v10847_v53 = vsel %vm1322_vm3, %v26850_v22, 0.0  ;;  %v17398_v22 = vsel %vm615_vm1, %v25548_v25, -inf }
0x15cc   : > { %v9277_v7 = vmul.f32 %v21775_v41, %v26845_v1  ;;  %v17407_v41 = vsel %vm615_vm1, %v25608_v18, -inf  ;;  %v10853_v1 = vsel %vm1322_vm3, %v26851_v8, 0.0 }
0x15ce   : > { %9300 = vrot.lane.b32.xlu1 %v9277_v7, %s22041_s14  ;;  %v16681_v7 = vsel %vm615_vm1, %v25318_v40, 0.0 }
0x15e0   : > { %v9243_v21 = vpop.xlane.xlu1 %9242 }
0x15e1   : > { %21776 = vrcp.f32 %v9243_v21  ;;  %v10859_v21 = vsel %vm1322_vm3, %v26852_v20, 0.0  ;;  %v26864_v20 = vld [vmem:[#allocation184_spill] sm:$0xff] }
0x15e4   : > { %v9252_v54 = vpop.xlane.xlu1 %9251 }
0x15e5   : > { %21778 = vrcp.f32 %v9252_v54  ;;  %v26853_v54 = vld [vmem:[#allocation182_spill] sm:$0xff] }
0x15e8   : > { %v9258_v9 = vpop.xlane.xlu1 %9257 }
0x15e9   : > { %21780 = vrcp.f32 %v9258_v9  ;;  %v12282_v9 = vsel %vm615_vm1, %v26853_v54, 0.0  ;;  %v26865_v54 = vld [vmem:[#allocation12_spill] sm:$0xff] }
0x15eb   : > { %v21777_v2 = vpop.eup %21776 }
0x15ec   : > { %v9271_v19 = vmul.f32 %v21777_v2, %v26846_v60  ;;  %v26854_v2 = vld [vmem:[#allocation160_spill] sm:$0xff] }
0x15ed   : > { %v10865_v60 = vsel %vm1322_vm3, %v26854_v2, 0.0  ;;  %v26866_v2 = vld [vmem:[#allocation33_spill] sm:$0xff] }
0x15ee   : > { %9288 = vrot.lane.b32.xlu0 %v9271_v19, %s22041_s14  ;;  %v26855_v19 = vld [vmem:[#allocation27_spill] sm:$0xff] }
0x15ef   : > { %v21779_v29 = vpop.eup %21778 }
0x15f0   : > { %v9274_v49 = vmul.f32 %v21779_v29, %v26847_v26  ;;  %v15246_v29 = vsel %vm1322_vm3, %v26855_v19, 0.0  ;;  %v26856_v26 = vld [vmem:[#allocation161_spill] sm:$0xff]  ;;  %v26867_v19 = vld [vmem:[#allocation28_spill] sm:$0xff] }
0x15f1   : > { %v10871_v40 = vsel %vm1322_vm3, %v26856_v26, 0.0  ;;  %v26868_v26 = vld [vmem:[#allocation19_spill] sm:$0xff] }
0x15f2   : > { %10842 = vadd.xlane.f32.xlu1 %v10841_v51  ;;  %9294 = vrot.lane.b32.xlu0 %v9274_v49, %s22041_s14  ;;  %v16684_v49 = vsel %vm615_vm1, %v25325_v33, 0.0  ;;  %v26859_v33 = vld [vmem:[#allocation29_spill] sm:$0xff] }
0x15f3   : > { %v21781_v10 = vpop.eup %21780 }
0x15f4   : > { %v9276_v37 = vmul.f32 %v21781_v10, %v26848_v5  ;;  %v26857_v10 = vld [vmem:[#allocation162_spill] sm:$0xff] }
0x15f5   : > { %v10877_v5 = vsel %vm1322_vm3, %v26857_v10, 0.0  ;;  %v26870_v10 = vld [vmem:[#allocation31_spill] sm:$0xff] }
0x15f6   : > { %10851 = vadd.xlane.f32.xlu1 %v10850_v59  ;;  %9298 = vrot.lane.b32.xlu0 %v9276_v37, %s22041_s14  ;;  %v26858_v37 = vld [vmem:[#allocation181_spill] sm:$0xff] }
0x15f7   : > { %v12285_v59 = vsel %vm615_vm1, %v26858_v37, 0.0  ;;  %v26871_v37 = vld [vmem:[#allocation36_spill] sm:$0xff] }
0x15fa   : > { %10857 = vadd.xlane.f32.xlu1 %v10856_v16 }
0x15fe   : > { %10863 = vadd.xlane.f32.xlu1 %v10862_v45  ;;  %v17389_v45 = vsel %vm615_vm1, %v25601_v39, -inf }
0x1602   : > { %17387 = vmax.xlane.f32.xlu1 %v17386_v43  ;;  %v15252_v43 = vsel %vm1322_vm3, %v26859_v33, 0.0 }
0x1606   : > { %10869 = vadd.xlane.f32.xlu1 %v10868_v12 }
0x160a   : > { %10875 = vadd.xlane.f32.xlu1 %v10874_v55  ;;  %v17392_v55 = vsel %vm615_vm1, %v25546_v23, -inf }
0x160e   : > { %17396 = vmax.xlane.f32.xlu1 %v17395_v3  ;;  %v16687_v3 = vsel %vm615_vm1, %v25328_v30, 0.0  ;;  %v26862_v30 = vld [vmem:[#allocation32_spill] sm:$0xff] }
0x1612   : > { %12280 = vadd.xlane.f32.xlu1 %v12279_v44 }
0x1615   : > { %10839 = vadd.xlane.f32.xlu0 %v10838_v52  ;;  %v26860_v52 = vld [vmem:[#allocation10_spill] sm:$0xff] }
0x1616   : > { %17402 = vmax.xlane.f32.xlu1 %v17401_v58  ;;  %v13640_v58 = vsel %vm615_vm1, %v26860_v52, 0.0  ;;  %v26875_v52 = vld [vmem:[#allocation16_spill] sm:$0xff] }
0x1619   : > { %10845 = vadd.xlane.f32.xlu0 %v10844_v47  ;;  %v26861_v47 = vld [vmem:[#allocation183_spill] sm:$0xff] }
0x161a   : > { %15241 = vadd.xlane.f32.xlu1 %v15240_v38  ;;  %v12288_v48 = vsel %vm615_vm1, %v26861_v47, 0.0 }
0x161d   : > { %10848 = vadd.xlane.f32.xlu0 %v10847_v53  ;;  %v15258_v53 = vsel %vm1322_vm3, %v26862_v30, 0.0  ;;  %v16699_v30 = vsel %vm615_vm1, %v25359_v35, 0.0 }
0x161e   : > { %17408 = vmax.xlane.f32.xlu1 %v17407_v41  ;;  %v26863_v41 = vld [vmem:[#allocation26_spill] sm:$0xff] }
0x161f   : > { %v15243_v8 = vsel %vm1322_vm3, %v26863_v41, 0.0 }
0x1621   : > { %10854 = vadd.xlane.f32.xlu0 %v10853_v1  ;;  %v16690_v1 = vsel %vm615_vm1, %v25341_v27, 0.0  ;;  %v15249_v27 = vsel %vm1322_vm3, %v26867_v19, 0.0 }
0x1622   : > { %16682 = vadd.xlane.f32.xlu1 %v16681_v7  ;;  %v17404_v7 = vsel %vm615_vm1, %v25550_v4, -inf }
0x1625   : > { %10860 = vadd.xlane.f32.xlu0 %v10859_v21  ;;  %v12291_v21 = vsel %vm615_vm1, %v26864_v20, 0.0 }
0x1626   : > { %12283 = vadd.xlane.f32.xlu1 %v12282_v9  ;;  %v13643_v9 = vsel %vm615_vm1, %v26865_v54, 0.0 }
0x1629   : > { %10866 = vadd.xlane.f32.xlu0 %v10865_v60  ;;  %v15264_v60 = vsel %vm1322_vm3, %v26866_v2, 0.0  ;;  %v16702_v2 = vsel %vm615_vm1, %v25492_v11, 0.0 }
0x162a   : > { %15247 = vadd.xlane.f32.xlu1 %v15246_v29  ;;  %v16693_v29 = vsel %vm615_vm1, %v25344_v46, 0.0 }
0x162d   : > { %10872 = vadd.xlane.f32.xlu0 %v10871_v40  ;;  %v13646_v40 = vsel %vm615_vm1, %v26868_v26, 0.0 }
0x162e   : > { %16685 = vadd.xlane.f32.xlu1 %v16684_v49  ;;  %v26869_v49 = vld [vmem:[#allocation185_spill] sm:$0xff] }
0x1630   : > { %v9287_v51 = vpop.permute.xlu1 %9286 }
0x1631   : > { %9310 = vst.msk [vmem:[#allocation2 + $0x8] sm:$0xff] %vm7949_vm7, %v9287_v51  ;;  %10878 = vadd.xlane.f32.xlu0 %v10877_v5  ;;  %v12294_v51 = vsel %vm615_vm1, %v26869_v49, 0.0  ;;  %v15255_v5 = vsel %vm1322_vm3, %v26870_v10, 0.0  ;;  %v26886_v10 = vld [vmem:[#allocation25_spill] sm:$0xff] }
0x1632   : > { %12286 = vadd.xlane.f32.xlu1 %v12285_v59  ;;  %v15270_v59 = vsel %vm1322_vm3, %v26871_v37, 0.0  ;;  %v13661_v11 = vsel %vm615_vm1, %v26886_v10, 0.0  ;;  %v26887_v37 = vld [vmem:[#allocation37_spill] sm:$0xff] }
0x1634   : > { %v9291_v16 = vpop.permute.xlu1 %9290 }
0x1635   : > { %9312 = vst.msk [vmem:[#allocation2 + $0x28] sm:$0xff] %vm7949_vm7, %v9291_v16  ;;  %17390 = vmax.xlane.f32.xlu0 %v17389_v45  ;;  %v26872_v16 = vld [vmem:[#allocation11_spill] sm:$0xff]  ;;  %v16696_v45 = vsel %vm615_vm1, %v25354_v57, 0.0 }
0x1636   : > { %15253 = vadd.xlane.f32.xlu1 %v15252_v43  ;;  %v13649_v46 = vsel %vm615_vm1, %v26872_v16, 0.0  ;;  %v26873_v43 = vld [vmem:[#allocation30_spill] sm:$0xff]  ;;  %v26876_v57 = vld [vmem:[#allocation39_spill] sm:$0xff] }
0x1637   : > { %v15276_v47 = vsel %vm1322_vm3, %v26876_v57, 0.0 }
0x1638   : > { %v9293_v12 = vpop.permute.xlu1 %9292 }
0x1639   : > { %9313 = vst.msk [vmem:[#allocation2 + $0x38] sm:$0xff] %vm7949_vm7, %v9293_v12  ;;  %17393 = vmax.xlane.f32.xlu0 %v17392_v55  ;;  %v15261_v12 = vsel %vm1322_vm3, %v26873_v43, 0.0  ;;  %v26874_v55 = vld [vmem:[#allocation187_spill] sm:$0xff] }
0x163a   : > { %16688 = vadd.xlane.f32.xlu1 %v16687_v3  ;;  %v12297_v3 = vsel %vm615_vm1, %v26874_v55, 0.0 }
0x163c   : > { %v9297_v44 = vpop.permute.xlu1 %9296 }
0x163d   : > { %9315 = vst.msk [vmem:[#allocation2 + $0x58] sm:$0xff] %vm7949_vm7, %v9297_v44  ;;  %13641 = vadd.xlane.f32.xlu0 %v13640_v58  ;;  %v13652_v58 = vsel %vm615_vm1, %v26875_v52, 0.0 }
0x163e   : > { %12289 = vadd.xlane.f32.xlu1 %v12288_v48 }
0x1640   : > { %v9301_v38 = vpop.permute.xlu1 %9300 }
0x1641   : > { %9317 = vst.msk [vmem:[#allocation2 + $0x78] sm:$0xff] %vm7949_vm7, %v9301_v38  ;;  %17399 = vmax.xlane.f32.xlu0 %v17398_v22  ;;  %v26877_v38 = vld [vmem:[#allocation34_spill] sm:$0xff] }
0x1642   : > { %15259 = vadd.xlane.f32.xlu1 %v15258_v53  ;;  %v15267_v22 = vsel %vm1322_vm3, %v26877_v38, 0.0  ;;  %v26878_v53 = vld [vmem:[#allocation15_spill] sm:$0xff] }
0x1643   : > { %v13655_v41 = vsel %vm615_vm1, %v26878_v53, 0.0 }
0x1645   : > { %15244 = vadd.xlane.f32.xlu0 %v15243_v8  ;;  %v26879_v8 = vld [vmem:[#allocation186_spill] sm:$0xff] }
0x1646   : > { %16691 = vadd.xlane.f32.xlu1 %v16690_v1  ;;  %v12300_v1 = vsel %vm615_vm1, %v26879_v8, 0.0 }
0x1649   : > { %17405 = vmax.xlane.f32.xlu0 %v17404_v7  ;;  %v26880_v7 = vld [vmem:[#allocation35_spill] sm:$0xff] }
0x164a   : > { %12292 = vadd.xlane.f32.xlu1 %v12291_v21  ;;  %v15273_v20 = vsel %vm1322_vm3, %v26880_v7, 0.0  ;;  %v26881_v21 = vld [vmem:[#allocation40_spill] sm:$0xff] }
0x164b   : > { %v15282_v54 = vsel %vm1322_vm3, %v26881_v21, 0.0  ;;  %v26890_v21 = vld [vmem:[#allocation188_spill] sm:$0xff] }
0x164d   : > { %13644 = vadd.xlane.f32.xlu0 %v13643_v9  ;;  %v26882_v9 = vld [vmem:[#allocation9_spill] sm:$0xff] }
0x164e   : > { %15265 = vadd.xlane.f32.xlu1 %v15264_v60  ;;  %v13658_v35 = vsel %vm615_vm1, %v26882_v9, 0.0  ;;  %v26883_v60 = vld [vmem:[#allocation38_spill] sm:$0xff] }
0x164f   : > { %v15279_v19 = vsel %vm1322_vm3, %v26883_v60, 0.0 }
0x1651   : > { %15250 = vadd.xlane.f32.xlu0 %v15249_v27  ;;  %v26884_v27 = vld [vmem:[#allocation163_spill] sm:$0xff] }
0x1652   : > { %16694 = vadd.xlane.f32.xlu1 %v16693_v29  ;;  %v10880_v29 = vsel %vm1322_vm3, %v26884_v27, 0.0 }
0x1655   : > { %13647 = vadd.xlane.f32.xlu0 %v13646_v40  ;;  %v26885_v40 = vld [vmem:[#allocation164_spill] sm:$0xff] }
0x1656   : > { %12295 = vadd.xlane.f32.xlu1 %v12294_v51  ;;  %v10883_v49 = vsel %vm1322_vm3, %v26885_v40, 0.0 }
0x1659   : > { %15256 = vadd.xlane.f32.xlu0 %v15255_v5 }
0x165a   : > { %15271 = vadd.xlane.f32.xlu1 %v15270_v59  ;;  %v15285_v59 = vsel %vm1322_vm3, %v26887_v37, 0.0 }
0x165d   : > { %13650 = vadd.xlane.f32.xlu0 %v13649_v46 }
0x165e   : > { %16697 = vadd.xlane.f32.xlu1 %v16696_v45 }
0x1660   : > { %v9289_v33 = vpop.permute.xlu0 %9288 }
0x1661   : > { %9311 = vst.msk [vmem:[#allocation2 + $0x18] sm:$0xff] %vm7949_vm7, %v9289_v33  ;;  %15262 = vadd.xlane.f32.xlu0 %v15261_v12 }
0x1662   : > { %12298 = vadd.xlane.f32.xlu1 %v12297_v3 }
0x1664   : > { %v9295_v44 = vpop.permute.xlu0 %9294 }
0x1665   : > { %9314 = vst.msk [vmem:[#allocation2 + $0x48] sm:$0xff] %vm7949_vm7, %v9295_v44  ;;  %13653 = vadd.xlane.f32.xlu0 %v13652_v58  ;;  %v26888_v44 = vld [vmem:[#allocation165_spill] sm:$0xff] }
0x1666   : > { %15277 = vadd.xlane.f32.xlu1 %v15276_v47 }
0x1668   : > { %v9299_v48 = vpop.permute.xlu0 %9298 }
0x1669   : > { %9316 = vst.msk [vmem:[#allocation2 + $0x68] sm:$0xff] %vm7949_vm7, %v9299_v48  ;;  %15268 = vadd.xlane.f32.xlu0 %v15267_v22 }
0x166a   : > { %16700 = vadd.xlane.f32.xlu1 %v16699_v30 }
0x166d   : > { %13656 = vadd.xlane.f32.xlu0 %v13655_v41  ;;  %v26889_v41 = vld [vmem:[#allocation166_spill] sm:$0xff] }
0x166e   : > { %12301 = vadd.xlane.f32.xlu1 %v12300_v1 }
0x1671   : > { %15274 = vadd.xlane.f32.xlu0 %v15273_v20 }
0x1672   : > { %15283 = vadd.xlane.f32.xlu1 %v15282_v54 }
0x1675   : > { %13659 = vadd.xlane.f32.xlu0 %v13658_v35 }
0x1676   : > { %16703 = vadd.xlane.f32.xlu1 %v16702_v2  ;;  %v26891_v2 = vld [vmem:[#allocation41_spill] sm:$0xff] }
0x1679   : > { %15280 = vadd.xlane.f32.xlu0 %v15279_v19 }
0x167d   : > { %10881 = vadd.xlane.f32.xlu0 %v10880_v29 }
0x167f   : > { %v10843_v26 = vpop.xlane.xlu1 %10842 }
0x1680   : > { %21782 = vrcp.f32 %v10843_v26 }
0x1681   : > { %10884 = vadd.xlane.f32.xlu0 %v10883_v49 }
0x1683   : > { %v25758_v51 = vpop.xlane.xlu1 %10851 }
0x1685   : > { %13662 = vadd.xlane.f32.xlu0 %v13661_v11 }
0x1687   : > { %v25762_v5 = vpop.xlane.xlu1 %10857 }
0x1689   : > { %15286 = vadd.xlane.f32.xlu0 %v15285_v59  ;;  %v26892_v59 = vld [vmem:[#allocation190_spill] sm:$0xff] }
0x168a   : > { %v21783_v55 = vpop.eup %21782 }
0x168b   : > { %v25766_v16 = vpop.xlane.xlu1 %10863  ;;  %v10903_v52 = vmul.f32 %v21783_v55, %v26888_v44 }
0x168f   : > { %v17388_v46 = vpop.xlane.xlu1 %17387 }
0x1690   : > { %v17410_v45 = vsub.f32 %v25544_v13, %v17388_v46 }
0x1692   : > { %v17418_v33 = vmul.f32 1.442695, %v17410_v45 }
0x1693   : > { %v25769_v43 = vpop.xlane.xlu1 %10869 }
0x1694   : > { %21784 = vpow2.f32 %v17418_v33 }
0x1697   : > { %v25771_v12 = vpop.xlane.xlu1 %10875 }
0x169b   : > { %v17397_v3 = vpop.xlane.xlu1 %17396 }
0x169c   : > { %v17413_v33 = vsub.f32 %v25604_v17, %v17397_v3 }
0x169e   : > { %v25774_v58 = vpop.eup %21784 }
0x169f   : > { %20595 = vmatmul.mubr.msk.f32.vlgmr.msra.gmra.mrb[188].mxu0 %vm615_vm1, %v25774_v58  ;;  %v12281_v57 = vpop.xlane.xlu1 %12280  ;;  %10936 = vrot.lane.b32.xlu0 %v10903_v52, %s22036_s11 }
0x16a0   : > { %20603 = vmatpush3.msra.mxu0 %v25481_v63  ;;  %20604 = vmatprep.mubr.msk.f32.mxu0 %vm22030_vm4, %v26484_v42 }
0x16a1   : > { %20612 = vmatprep.subr.mxu0 %v26484_v42 }
0x16a2   : > { %v10840_v13 = vpop.xlane.xlu0 %10839 }
0x16a3   : > { %21786 = vrcp.f32 %v10840_v13  ;;  %v25783_v47 = vpop.xlane.xlu1 %17402 }
0x16a4   : > { %21788 = vrcp.f32 %v12281_v57 }
0x16a6   : > { %v25785_v48 = vpop.xlane.xlu0 %10845 }
0x16a7   : > { %v15242_v38 = vpop.xlane.xlu1 %15241 }
0x16a8   : > { %21790 = vrcp.f32 %v15242_v38 }
0x16aa   : > { %v25787_v22 = vpop.xlane.xlu0 %10848 }
0x16ab   : > { %v25789_v30 = vpop.xlane.xlu1 %17408 }
0x16ad   : > { %v21787_v53 = vpop.eup %21786 }
0x16ae   : > { %v25791_v63 = vpop.xlane.xlu0 %10854  ;;  %v10902_v8 = vmul.f32 %v21787_v53, %v26889_v41  ;;  %v21789_v1 = vpop.eup %21788  ;;  %v17424_v53 = vmul.f32 1.442695, %v17413_v33 }
0x16af   : > { %v16683_v7 = vpop.xlane.xlu1 %16682  ;;  %v12311_v54 = vmul.f32 %v21789_v1, %v26890_v21  ;;  %v17417_v21 = vsub.f32 %v25608_v18, %v25789_v30  ;;  %v26895_v18 = vld [vmem:[#allocation48_spill] sm:$0xff] }
0x16b0   : > { %10934 = vrot.lane.b32.xlu1 %v10902_v8, %s22036_s11  ;;  %21792 = vrcp.f32 %v16683_v7  ;;  %v17415_v8 = vsub.f32 %v25606_v24, %v25783_v47  ;;  %v26894_v24 = vld [vmem:[#allocation189_spill] sm:$0xff] }
0x16b2   : > { %v25795_v20 = vpop.xlane.xlu0 %10860  ;;  %v21791_v9 = vpop.eup %21790 }
0x16b3   : > { %v12284_v35 = vpop.xlane.xlu1 %12283  ;;  %v15304_v60 = vmul.f32 %v21791_v9, %v26891_v2  ;;  %v17428_v9 = vmul.f32 1.442695, %v17415_v8  ;;  %v17432_v2 = vmul.f32 1.442695, %v17417_v21 }
0x16b4   : > { %21794 = vrcp.f32 %v12284_v35  ;;  %12327 = vrot.lane.b32.xlu1 %v12311_v54, %s22042_s15 }
0x16b5   : > { %15336 = vrot.lane.b32.xlu0 %v15304_v60, %s22033_s9 }
0x16b6   : > { %v25801_v19 = vpop.xlane.xlu0 %10866 }
0x16b7   : > { %v15248_v27 = vpop.xlane.xlu1 %15247 }
0x16b8   : > { %21796 = vrcp.f32 %v15248_v27 }
0x16ba   : > { %v25803_v29 = vpop.xlane.xlu0 %10872  ;;  %v21793_v26 = vpop.eup %21792 }
0x16bb   : > { %v16686_v40 = vpop.xlane.xlu1 %16685  ;;  %v16713_v49 = vmul.f32 %v21793_v26, %v25507_v14  ;;  %v26893_v14 = vld [vmem:[#allocation43_spill] sm:$0xff] }
0x16bc   : > { %21798 = vrcp.f32 %v16686_v40 }
0x16bd   : > { %16729 = vrot.lane.b32.xlu0 %v16713_v49, %s22043_s28 }
0x16be   : > { %v21795_v10 = vpop.eup %21794  ;;  %v25807_v11 = vpop.xlane.xlu0 %10878 }
0x16bf   : > { %v12287_v37 = vpop.xlane.xlu1 %12286  ;;  %v12312_v46 = vmul.f32 %v21795_v10, %v26892_v59 }
0x16c0   : > { %21800 = vrcp.f32 %v12287_v37 }
0x16c1   : > { %12329 = vrot.lane.b32.xlu0 %v12312_v46, %s22042_s15 }
0x16c2   : > { %v21797_v45 = vpop.eup %21796  ;;  %v17391_v55 = vpop.xlane.xlu0 %17390 }
0x16c3   : > { %v17411_v44 = vsub.f32 %v25601_v39, %v17391_v55  ;;  %v15254_v52 = vpop.xlane.xlu1 %15253  ;;  %v15306_v57 = vmul.f32 %v21797_v45, %v26893_v14 }
0x16c4   : > { %21802 = vrcp.f32 %v15254_v52 }
0x16c5   : > { %v17420_v13 = vmul.f32 1.442695, %v17411_v44  ;;  %15340 = vrot.lane.b32.xlu0 %v15306_v57, %s22033_s9  ;;  %v26896_v44 = vld [vmem:[#allocation17_spill] sm:$0xff] }
0x16c6   : > { %v21799_v38 = vpop.eup %21798  ;;  %v17394_v41 = vpop.xlane.xlu0 %17393 }
0x16c7   : > { %21804 = vpow2.f32 %v17420_v13  ;;  %v17412_v17 = vsub.f32 %v25546_v23, %v17394_v41  ;;  %v16689_v3 = vpop.xlane.xlu1 %16688  ;;  %v16714_v1 = vmul.f32 %v21799_v38, %v25512_v61  ;;  %v26898_v38 = vld [vmem:[#allocation45_spill] sm:$0xff] }
0x16c8   : > { %21806 = vrcp.f32 %v16689_v3 }
0x16c9   : > { %v17422_v39 = vmul.f32 1.442695, %v17412_v17  ;;  %21808 = vpow2.f32 %v17424_v53  ;;  %16731 = vrot.lane.b32.xlu0 %v16714_v1, %s22043_s28  ;;  %v26899_v1 = vld [vmem:[#allocation42_spill] sm:$0xff] }
0x16ca   : > { %v21801_v7 = vpop.eup %21800  ;;  %v13642_v54 = vpop.xlane.xlu0 %13641 }
0x16cb   : > { %21810 = vpow2.f32 %v17422_v39  ;;  %v12290_v35 = vpop.xlane.xlu1 %12289  ;;  %v12313_v47 = vmul.f32 %v21801_v7, %v26894_v24 }
0x16cc   : > { %21812 = vrcp.f32 %v13642_v54 }
0x16cd   : > { %21814 = vrcp.f32 %v12290_v35  ;;  %12331 = vrot.lane.b32.xlu0 %v12313_v47, %s22042_s15  ;;  %v26900_v35 = vld [vmem:[#allocation168_spill] sm:$0xff] }
0x16ce   : > { %v21803_v23 = vpop.eup %21802  ;;  %v17400_v61 = vpop.xlane.xlu0 %17399  ;;  %21816 = vpow2.f32 %v17428_v9  ;;  %v26901_v47 = vld [vmem:[#allocation192_spill] sm:$0xff] }
0x16cf   : > { %v17414_v60 = vsub.f32 %v25548_v25, %v17400_v61  ;;  %v15260_v27 = vpop.xlane.xlu1 %15259  ;;  %v15308_v30 = vmul.f32 %v21803_v23, %v26895_v18 }
0x16d0   : > { %21818 = vrcp.f32 %v15260_v27 }
0x16d1   : > { %v25826_v26 = vpop.eup %21804  ;;  %v17426_v40 = vmul.f32 1.442695, %v17414_v60  ;;  %21820 = vpow2.f32 %v17432_v2  ;;  %15344 = vrot.lane.b32.xlu0 %v15308_v30, %s22033_s9  ;;  %v26902_v60 = vld [vmem:[#allocation167_spill] sm:$0xff] }
0x16d2   : > { %v21807_v49 = vpop.eup %21806  ;;  %20600 = vmatmul.mubr.msk.f32.vlgmr.msra.gmra.mrb[212].mxu1 %vm615_vm1, %v25826_v26  ;;  %v15245_v10 = vpop.xlane.xlu0 %15244 }
0x16d3   : > { %21822 = vpow2.f32 %v17426_v40  ;;  %20608 = vmatpush3.msra.mxu1 %v25553_v56  ;;  %v16692_v37 = vpop.xlane.xlu1 %16691  ;;  %v16715_v25 = vmul.f32 %v21807_v49, %v25518_v28  ;;  %20609 = vmatprep.mubr.msk.f32.mxu1 %vm22030_vm4, %v26484_v42  ;;  %v25835_v59 = vpop.eup %21808  ;;  %v26903_v49 = vld [vmem:[#allocation13_spill] sm:$0xff] }
0x16d4   : > { %21824 = vrcp.f32 %v15245_v10  ;;  %20617 = vmatprep.subr.mxu1 %v26484_v42 }
0x16d5   : > { %v25838_v46 = vpop.eup %21810  ;;  %21826 = vrcp.f32 %v16692_v37  ;;  %16733 = vrot.lane.b32.xlu0 %v16715_v25, %s22043_s28 }
0x16d6   : > { %v21813_v45 = vpop.eup %21812  ;;  %21828 = vrcp.f32 %v25785_v48  ;;  %v17406_v56 = vpop.xlane.xlu0 %17405  ;;  %20605 = vmatmul.mubr.msk.f32.vlgmr.msra.gmra.mrb[190].mxu0 %vm615_vm1, %v25838_v46  ;;  %20610 = vmatmul.mubr.msk.f32.vlgmr.msra.gmra.mrb[214].mxu1 %vm615_vm1, %v25835_v59  ;;  %v26897_v48 = vld [vmem:[#allocation191_spill] sm:$0xff] }
0x16d7   : > { %v21815_v28 = vpop.eup %21814  ;;  %v17416_v33 = vsub.f32 %v25550_v4, %v17406_v56  ;;  %20613 = vmatpush3.msra.mxu0 %v25483_v34  ;;  %v12293_v55 = vpop.xlane.xlu1 %12292  ;;  %v13672_v52 = vmul.f32 %v21813_v45, %v26896_v44  ;;  %20618 = vmatpush3.msra.mxu1 %v25558_v15  ;;  %v26904_v45 = vld [vmem:[#allocation44_spill] sm:$0xff]  ;;  %v26905_v44 = vld [vmem:[#allocation170_spill] sm:$0xff] }
0x16d8   : > { %21830 = vrcp.f32 %v12293_v55  ;;  %v12314_v14 = vmul.f32 %v21815_v28, %v26897_v48  ;;  %20619 = vmatprep.mubr.msk.f32.mxu1 %vm22030_vm4, %v26484_v42  ;;  %v25853_v57 = vpop.eup %21816  ;;  %20627 = vmatprep.subr.mxu1 %v26484_v42  ;;  %v26906_v48 = vld [vmem:[#allocation52_spill] sm:$0xff] }
0x16d9   : > { %v17430_v13 = vmul.f32 1.442695, %v17416_v33  ;;  %13688 = vrot.lane.b32.xlu1 %v13672_v52, %s22042_s15  ;;  %21832 = vrcp.f32 %v25787_v22  ;;  %20614 = vmatprep.mubr.msk.f32.mxu0 %vm22030_vm4, %v26484_v42 }
0x16da   : > { %v21819_v4 = vpop.eup %21818  ;;  %12333 = vrot.lane.b32.xlu0 %v12314_v14, %s22042_s15  ;;  %v13645_v34 = vpop.xlane.xlu0 %13644  ;;  %20620 = vmatmul.mubr.msk.f32.vlgmr.msra.gmra.mrb[216].mxu1 %vm615_vm1, %v25853_v57 }
0x16db   : > { %21834 = vpow2.f32 %v17430_v13  ;;  %v25863_v15 = vpop.xlane.xlu1 %15265  ;;  %v15310_v53 = vmul.f32 %v21819_v4, %v26898_v38  ;;  %20622 = vmatprep.subr.mxu0 %v26484_v42  ;;  %v25867_v41 = vpop.eup %21820  ;;  %20628 = vmatpush3.msra.mxu1 %v25564_v6 }
0x16dc   : > { %20629 = vmatprep.mubr.msk.f32.mxu1 %vm22030_vm4, %v26484_v42  ;;  %21836 = vrcp.f32 %v13645_v34 }
0x16dd   : > { %v25872_v22 = vpop.eup %21822 }
0x16de   : > { %v21825_v8 = vpop.eup %21824  ;;  %15348 = vrot.lane.b32.xlu0 %v15310_v53, %s22033_s9  ;;  %v15251_v17 = vpop.xlane.xlu0 %15250  ;;  %20615 = vmatmul.mubr.msk.f32.vlgmr.msra.gmra.mrb[192].mxu0 %vm615_vm1, %v25872_v22  ;;  %v26907_v53 = vld [vmem:[#allocation169_spill] sm:$0xff] }
0x16df   : > { %v21827_v3 = vpop.eup %21826  ;;  %20623 = vmatpush3.msra.mxu0 %v25562_v32  ;;  %20630 = vmatmul.mubr.msk.f32.vlgmr.msra.gmra.mrb[218].mxu1 %vm615_vm1, %v25867_v41  ;;  %v25880_v6 = vpop.xlane.xlu1 %16694  ;;  %v15305_v39 = vmul.f32 %v21825_v8, %v26899_v1  ;;  %21838 = vrcp.f32 %v15251_v17 }
0x16e0   : > { %v21829_v7 = vpop.eup %21828  ;;  %v16716_v21 = vmul.f32 %v21827_v3, %v25528_v50  ;;  %20624 = vmatprep.mubr.msk.f32.mxu0 %vm22030_vm4, %v26484_v42  ;;  %21840 = vrcp.f32 %v25758_v51 }
0x16e1   : > { %15338 = vrot.lane.b32.xlu1 %v15305_v39, %s22033_s9  ;;  %v10904_v24 = vmul.f32 %v21829_v7, %v26900_v35 }
0x16e2   : > { %v21831_v54 = vpop.eup %21830  ;;  %16735 = vrot.lane.b32.xlu0 %v16716_v21, %s22043_s28  ;;  %v13648_v32 = vpop.xlane.xlu0 %13647  ;;  %v26908_v21 = vld [vmem:[#allocation22_spill] sm:$0xff] }
0x16e3   : > { %v25888_v9 = vpop.xlane.xlu1 %12295  ;;  %v12315_v23 = vmul.f32 %v21831_v54, %v26901_v47  ;;  %v21833_v2 = vpop.eup %21832  ;;  %v26909_v54 = vld [vmem:[#allocation195_spill] sm:$0xff] }
0x16e4   : > { %v10905_v27 = vmul.f32 %v21833_v2, %v26902_v60  ;;  %v26912_v60 = vld [vmem:[#allocation54_spill] sm:$0xff] }
0x16e5   : > { %v25892_v61 = vpop.eup %21834  ;;  %10938 = vrot.lane.b32.xlu1 %v10904_v24, %s22036_s11 }
0x16e6   : > { %12335 = vrot.lane.b32.xlu0 %v12315_v23, %s22042_s15  ;;  %v15257_v42 = vpop.xlane.xlu0 %15256  ;;  %20625 = vmatmul.mubr.msk.f32.vlgmr.msra.gmra.mrb[194].mxu0 %vm615_vm1, %v25892_v61  ;;  %v21837_v18 = vpop.eup %21836  ;;  %v26910_v23 = vld [vmem:[#allocation14_spill] sm:$0xff] }
0x16e7   : > { %v15272_v50 = vpop.xlane.xlu1 %15271  ;;  %v13673_v10 = vmul.f32 %v21837_v18, %v26903_v49 }
0x16e8   : > { %21842 = vrcp.f32 %v15272_v50 }
0x16e9   : > { %10940 = vrot.lane.b32.xlu1 %v10905_v27, %s22036_s11  ;;  %21844 = vrcp.f32 %v25791_v63  ;;  %v21839_v51 = vpop.eup %21838 }
0x16ea   : > { %v13651_v30 = vpop.xlane.xlu0 %13650  ;;  %v15307_v56 = vmul.f32 %v21839_v51, %v26904_v45  ;;  %v21841_v28 = vpop.eup %21840  ;;  %v26914_v45 = vld [vmem:[#allocation172_spill] sm:$0xff] }
0x16eb   : > { %v16698_v40 = vpop.xlane.xlu1 %16697  ;;  %v10906_v52 = vmul.f32 %v21841_v28, %v26905_v44 }
0x16ec   : > { %21846 = vrcp.f32 %v16698_v40 }
0x16ed   : > { %13690 = vrot.lane.b32.xlu1 %v13673_v10, %s22042_s15  ;;  %21848 = vrcp.f32 %v13648_v32 }
0x16ee   : > { %v15263_v37 = vpop.xlane.xlu0 %15262 }
0x16ef   : > { %v12299_v25 = vpop.xlane.xlu1 %12298 }
0x16f0   : > { %21850 = vrcp.f32 %v12299_v25 }
0x16f1   : > { %15342 = vrot.lane.b32.xlu1 %v15307_v56, %s22033_s9  ;;  %21852 = vrcp.f32 %v15257_v42  ;;  %v26911_v42 = vld [vmem:[#allocation46_spill] sm:$0xff] }
0x16f2   : > { %v21843_v33 = vpop.eup %21842  ;;  %v13654_v63 = vpop.xlane.xlu0 %13653 }
0x16f3   : > { %21854 = vrcp.f32 %v13654_v63  ;;  %v15278_v55 = vpop.xlane.xlu1 %15277  ;;  %v25908_v14 = vmul.f32 %v21843_v33, %v26906_v48  ;;  %v21845_v13 = vpop.eup %21844  ;;  %v18042_v63 = vsel %vm615_vm1, %v25774_v58, 0.0  ;;  %v18045_v58 = vsel %vm615_vm1, %v25826_v26, 0.0 }
0x16f4   : > { %21856 = vrcp.f32 %v15278_v55  ;;  %v10907_v8 = vmul.f32 %v21845_v13, %v26907_v53  ;;  %v26916_v13 = vld [vmem:[#allocation171_spill] sm:$0xff]  ;;  %v18048_v26 = vsel %vm615_vm1, %v25838_v46, 0.0 }
0x16f5   : > { %10942 = vrot.lane.b32.xlu1 %v10906_v52, %s22036_s11  ;;  %21858 = vrcp.f32 %v25762_v5  ;;  %v26915_v52 = vld [vmem:[#allocation23_spill] sm:$0xff] }
0x16f6   : > { %v21847_v4 = vpop.eup %21846  ;;  %v15269_v34 = vpop.xlane.xlu0 %15268 }
0x16f7   : > { %21860 = vrcp.f32 %v15269_v34  ;;  %v16701_v38 = vpop.xlane.xlu1 %16700  ;;  %v25914_v17 = vmul.f32 %v21847_v4, %v25537_v62  ;;  %v21849_v3 = vpop.eup %21848  ;;  %v26917_v4 = vld [vmem:[#allocation194_spill] sm:$0xff] }
0x16f8   : > { %21862 = vrcp.f32 %v16701_v38  ;;  %v13674_v5 = vmul.f32 %v21849_v3, %v26908_v21  ;;  %v26918_v3 = vld [vmem:[#allocation51_spill] sm:$0xff]  ;;  %v26920_v21 = vld [vmem:[#allocation56_spill] sm:$0xff] }
0x16f9   : > { %10944 = vrot.lane.b32.xlu1 %v10907_v8, %s22036_s11  ;;  %21864 = vrcp.f32 %v25795_v20 }
0x16fa   : > { %v21851_v1 = vpop.eup %21850  ;;  %v13657_v39 = vpop.xlane.xlu0 %13656 }
0x16fb   : > { %21866 = vrcp.f32 %v13657_v39  ;;  %v12302_v7 = vpop.xlane.xlu1 %12301  ;;  %v25920_v32 = vmul.f32 %v21851_v1, %v26909_v54  ;;  %v21853_v35 = vpop.eup %21852  ;;  %v26919_v39 = vld [vmem:[#allocation20_spill] sm:$0xff] }
0x16fc   : > { %21868 = vrcp.f32 %v12302_v7  ;;  %v15309_v50 = vmul.f32 %v21853_v35, %v26911_v42 }
0x16fd   : > { %v21855_v24 = vpop.eup %21854  ;;  %13692 = vrot.lane.b32.xlu1 %v13674_v5, %s22042_s15  ;;  %21870 = vrcp.f32 %v13651_v30  ;;  %v26913_v30 = vld [vmem:[#allocation49_spill] sm:$0xff] }
0x16fe   : > { %v21857_v62 = vpop.eup %21856  ;;  %v15275_v47 = vpop.xlane.xlu0 %15274  ;;  %v25924_v2 = vmul.f32 %v21855_v24, %v26910_v23  ;;  %v26922_v23 = vld [vmem:[#allocation47_spill] sm:$0xff] }
0x16ff   : > { %21872 = vrcp.f32 %v15275_v47  ;;  %v15284_v20 = vpop.xlane.xlu1 %15283  ;;  %v25928_v27 = vmul.f32 %v21857_v62, %v26912_v60  ;;  %v21859_v18 = vpop.eup %21858  ;;  %v26921_v62 = vld [vmem:[#allocation18_spill] sm:$0xff]  ;;  %v18051_v60 = vsel %vm615_vm1, %v25835_v59, 0.0 }
0x1700   : > { %21874 = vrcp.f32 %v15284_v20  ;;  %v10908_v56 = vmul.f32 %v21859_v18, %v26914_v45 }
0x1701   : > { %v21861_v40 = vpop.eup %21860  ;;  %15346 = vrot.lane.b32.xlu1 %v15309_v50, %s22033_s9  ;;  %21876 = vrcp.f32 %v15263_v37 }
0x1702   : > { %v21863_v49 = vpop.eup %21862  ;;  %v13660_v10 = vpop.xlane.xlu0 %13659  ;;  %v25932_v51 = vmul.f32 %v21861_v40, %v26913_v30  ;;  %v26923_v40 = vld [vmem:[#allocation53_spill] sm:$0xff] }
0x1703   : > { %21878 = vrcp.f32 %v13660_v10  ;;  %v16704_v25 = vpop.xlane.xlu1 %16703  ;;  %v25936_v28 = vmul.f32 %v21863_v49, %v25541_v36  ;;  %v21865_v33 = vpop.eup %21864  ;;  %v26924_v10 = vld [vmem:[#allocation174_spill] sm:$0xff] }
0x1704   : > { %21880 = vrcp.f32 %v16704_v25  ;;  %v10909_v36 = vmul.f32 %v21865_v33, %v26916_v13 }
0x1705   : > { %v21867_v55 = vpop.eup %21866  ;;  %18043 = vadd.xlane.f32.xlu0 %v18042_v63  ;;  %10946 = vrot.lane.b32.xlu1 %v10908_v56, %s22036_s11  ;;  %21882 = vrcp.f32 %v25766_v16  ;;  %v26925_v56 = vld [vmem:[#allocation180_spill] sm:$0xff]  ;;  %v26926_v63 = vld [vmem:[#allocation173_spill] sm:$0xff] }
0x1706   : > { %v21869_v37 = vpop.eup %21868  ;;  %v15281_v44 = vpop.xlane.xlu0 %15280  ;;  %v25943_v48 = vmul.f32 %v21867_v55, %v26915_v52  ;;  %v26927_v52 = vld [vmem:[#allocation179_spill] sm:$0xff] }
0x1707   : > { %21884 = vrcp.f32 %v15281_v44  ;;  %v25947_v34 = vmul.f32 %v21869_v37, %v26917_v4  ;;  %v21871_v38 = vpop.eup %21870  ;;  %v18057_v37 = vsel %vm615_vm1, %v25853_v57, 0.0  ;;  %v26928_v4 = vld [vmem:[#allocation21_spill] sm:$0xff]  ;;  %v26929_v57 = vld [vmem:[#allocation55_spill] sm:$0xff] }
0x1708   : > { %21886 = vrcp.f32 %v25801_v19  ;;  %v13675_v7 = vmul.f32 %v21871_v38, %v26919_v39  ;;  %v26930_v39 = vld [vmem:[#allocation50_spill] sm:$0xff] }
0x1709   : > { %v21873_v53 = vpop.eup %21872  ;;  %18046 = vadd.xlane.f32.xlu0 %v18045_v58  ;;  %10948 = vrot.lane.b32.xlu1 %v10909_v36, %s22036_s11 }
0x170a   : > { %v21875_v8 = vpop.eup %21874  ;;  %v10882_v16 = vpop.xlane.xlu0 %10881  ;;  %v25954_v1 = vmul.f32 %v21873_v53, %v26918_v3 }
0x170b   : > { %21888 = vrcp.f32 %v10882_v16  ;;  %v25958_v5 = vmul.f32 %v21875_v8, %v26920_v21  ;;  %v21877_v54 = vpop.eup %21876 }
0x170c   : > { %v15311_v20 = vmul.f32 %v21877_v54, %v26922_v23 }
0x170d   : > { %v21879_v35 = vpop.eup %21878  ;;  %18049 = vadd.xlane.f32.xlu0 %v18048_v26  ;;  %13694 = vrot.lane.b32.xlu1 %v13675_v7, %s22042_s15 }
0x170e   : > { %v21881_v24 = vpop.eup %21880  ;;  %v10885_v19 = vpop.xlane.xlu0 %10884  ;;  %v25964_v47 = vmul.f32 %v21879_v35, %v26921_v62  ;;  %v26931_v35 = vld [vmem:[#allocation193_spill] sm:$0xff] }
0x170f   : > { %21890 = vrcp.f32 %v10885_v19  ;;  %v25968_v42 = vmul.f32 %v21881_v24, %v25598_v0  ;;  %v21883_v50 = vpop.eup %21882  ;;  %v18054_v0 = vsel %vm615_vm1, %v25872_v22, 0.0  ;;  %v18060_v19 = vsel %vm615_vm1, %v25892_v61, 0.0  ;;  %v26932_v61 = vld [vmem:[#allocation176_spill] sm:$0xff] }
0x1710   : > { %v10910_v30 = vmul.f32 %v21883_v50, %v26924_v10 }
0x1711   : > { %v21885_v46 = vpop.eup %21884  ;;  %18052 = vadd.xlane.f32.xlu0 %v18051_v60  ;;  %15350 = vrot.lane.b32.xlu1 %v15311_v20, %s22033_s9 }
0x1712   : > { %v13663_v18 = vpop.xlane.xlu0 %13662  ;;  %v25974_v49 = vmul.f32 %v21885_v46, %v26923_v40  ;;  %v21887_v25 = vpop.eup %21886 }
0x1713   : > { %21892 = vrcp.f32 %v13663_v18  ;;  %v10911_v55 = vmul.f32 %v21887_v25, %v26926_v63  ;;  %v26933_v18 = vld [vmem:[#allocation175_spill] sm:$0xff] }
0x1715   : > { %v21889_v45 = vpop.eup %21888  ;;  %18055 = vadd.xlane.f32.xlu0 %v18054_v0  ;;  %10950 = vrot.lane.b32.xlu1 %v10910_v30, %s22036_s11 }
0x1716   : > { %v15287_v59 = vpop.xlane.xlu0 %15286  ;;  %v25981_v33 = vmul.f32 %v21889_v45, %v26925_v56 }
0x1717   : > { %21894 = vrcp.f32 %v15287_v59 }
0x1718   : > { %21896 = vrcp.f32 %v25863_v15 }
0x1719   : > { %v21891_v44 = vpop.eup %21890  ;;  %18058 = vadd.xlane.f32.xlu0 %v18057_v37  ;;  %10952 = vrot.lane.b32.xlu1 %v10911_v55, %s22036_s11  ;;  %21898 = vrcp.f32 %v25880_v6 }
0x171a   : > { %v10937_v22 = vpop.permute.xlu0 %10936  ;;  %v25988_v13 = vmul.f32 %v21891_v44, %v26927_v52  ;;  %21900 = vrcp.f32 %v25888_v9 }
0x171b   : > { %10984 = vst.msk [vmem:[#allocation2 + $0x8] sm:$0xff] %vm10982_vm8, %v10937_v22  ;;  %21902 = vrcp.f32 %v25769_v43 }
0x171c   : > { %21904 = vrcp.f32 %v25803_v29  ;;  %v18063_v29 = vsel %vm615_vm1, %v25867_v41, 0.0 }
0x171d   : > { %v21893_v36 = vpop.eup %21892  ;;  %21906 = vrcp.f32 %v25771_v12 }
0x171e   : > { %v25992_v38 = vmul.f32 %v21893_v36, %v26928_v4  ;;  %21908 = vrcp.f32 %v25807_v11  ;;  %v26934_v11 = vld [vmem:[#allocation178_spill] sm:$0xff] }
0x1721   : > { %v21895_v58 = vpop.eup %21894 }
0x1722   : > { %v10935_v53 = vpop.permute.xlu1 %10934  ;;  %v25996_v8 = vmul.f32 %v21895_v58, %v26929_v57  ;;  %v21897_v15 = vpop.eup %21896  ;;  %v18143_v57 = vld [vmem:[%s26263_s3 + $0x28] sm:$0xff] }
0x1723   : > { %10983 = vst.msk [vmem:[#allocation2] sm:$0xff] %vm10982_vm8, %v10935_v53  ;;  %v15312_v7 = vmul.f32 %v21897_v15, %v26930_v39  ;;  %v21899_v21 = vpop.eup %21898  ;;  %v18145_v15 = vld [vmem:[%s26263_s3 + $0x38] sm:$0xff] }
0x1724   : > { %v16717_v6 = vmul.f32 %v21899_v21, %v25532_v31  ;;  %v21901_v26 = vpop.eup %21900 }
0x1725   : > { %v12316_v9 = vmul.f32 %v21901_v26, %v26931_v35  ;;  %v21903_v20 = vpop.eup %21902 }
0x1726   : > { %v12328_v16 = vpop.permute.xlu1 %12327  ;;  %v10912_v60 = vmul.f32 %v21903_v20, %v26932_v61  ;;  %v21905_v43 = vpop.eup %21904 }
0x1727   : > { %12352 = vst.msk [vmem:[#allocation2] sm:$0xff] %vm12351_vm9, %v12328_v16  ;;  %v15337_v3 = vpop.permute.xlu0 %15336  ;;  %v21907_v10 = vpop.eup %21906 }
0x1728   : > { %15385 = vst.msk [vmem:[#allocation2] sm:$0xff] %vm15384_vm10, %v15337_v3  ;;  %v10914_v0 = vmul.f32 %v21907_v10, %v26934_v11  ;;  %v21909_v45 = vpop.eup %21908  ;;  %v18144_v3 = vld [vmem:[%s26263_s3 + $0x30] sm:$0xff] }
0x1729   : > { %v21020_v39 = vpack.c.bf16 %v18145_v15, %v18144_v3 }
0x172f   : > { %15352 = vrot.lane.b32.xlu0 %v15312_v7, %s22033_s9  ;;  %v16730_v54 = vpop.permute.xlu0 %16729 }
0x1730   : > { %16754 = vst.msk [vmem:[#allocation2] sm:$0xff] %vm16753_vm11, %v16730_v54 }
0x1733   : > { %16737 = vrot.lane.b32.xlu0 %v16717_v6, %s22043_s28  ;;  %v12330_v62 = vpop.permute.xlu0 %12329 }
0x1737   : > { %12337 = vrot.lane.b32.xlu0 %v12316_v9, %s22042_s15  ;;  %v18122_v24 = vld [vmem:[#allocation2] sm:$0xff]  ;;  %v15341_v23 = vpop.permute.xlu0 %15340 }
0x1738   : > { %20648 = vmatprep.mubr.msk.f32.mxu0 %vm18153_vm12, %v18122_v24 }
0x173b   : > { %v16732_v46 = vpop.permute.xlu0 %16731 }
0x173d   : > { %18061 = vadd.xlane.f32.xlu1 %v18060_v19 }
0x173f   : > { %v12332_v40 = vpop.permute.xlu0 %12331 }
0x1743   : > { %v15345_v30 = vpop.permute.xlu0 %15344 }
0x1747   : > { %v16734_v56 = vpop.permute.xlu0 %16733 }
0x174b   : > { %v13689_v31 = vpop.permute.xlu1 %13688 }
0x174c   : > { %13712 = vst.msk [vmem:[#allocation2 + $0x8] sm:$0xff] %vm12351_vm9, %v13689_v31  ;;  %v12334_v55 = vpop.permute.xlu0 %12333 }
0x174e   : > { %13696 = vrot.lane.b32.xlu1 %v25924_v2, %s22042_s15 }
0x1750   : > { %v15349_v36 = vpop.permute.xlu0 %15348 }
0x1752   : > { %15354 = vrot.lane.b32.xlu1 %v25932_v51, %s22033_s9  ;;  %v10913_v51 = vmul.f32 %v21905_v43, %v26933_v18 }
0x1753   : > { %v15339_v50 = vpop.permute.xlu1 %15338 }
0x1754   : > { %15386 = vst.msk [vmem:[#allocation2 + $0x8] sm:$0xff] %vm15384_vm10, %v15339_v50 }
0x1756   : > { %18064 = vadd.xlane.f32.xlu0 %v18063_v29  ;;  %10954 = vrot.lane.b32.xlu1 %v10912_v60, %s22036_s11 }
0x1757   : > { %v10939_v2 = vpop.permute.xlu1 %10938 }
0x1758   : > { %10985 = vst.msk [vmem:[#allocation2 + $0x10] sm:$0xff] %vm10982_vm8, %v10939_v2 }
0x1759   : > { %12353 = vst.msk [vmem:[#allocation2 + $0x10] sm:$0xff] %vm12351_vm9, %v12330_v62 }
0x175a   : > { %15387 = vst.msk [vmem:[#allocation2 + $0x10] sm:$0xff] %vm15384_vm10, %v15341_v23  ;;  %10956 = vrot.lane.b32.xlu1 %v10913_v51, %s22036_s11 }
0x175b   : > { %16755 = vst.msk [vmem:[#allocation2 + $0x10] sm:$0xff] %vm16753_vm11, %v16732_v46  ;;  %v10941_v41 = vpop.permute.xlu1 %10940 }
0x175c   : > { %10986 = vst.msk [vmem:[#allocation2 + $0x18] sm:$0xff] %vm10982_vm8, %v10941_v41 }
0x175e   : > { %13698 = vrot.lane.b32.xlu1 %v25943_v48, %s22042_s15  ;;  %v26935_v48 = vld [vmem:[#allocation177_spill] sm:$0xff] }
0x175f   : > { %v13691_v12 = vpop.permute.xlu1 %13690  ;;  %v10915_v63 = vmul.f32 %v21909_v45, %v26935_v48 }
0x1760   : > { %13713 = vst.msk [vmem:[#allocation2 + $0x18] sm:$0xff] %vm12351_vm9, %v13691_v12 }
0x1762   : > { %15358 = vrot.lane.b32.xlu1 %v25954_v1, %s22033_s9 }
0x1763   : > { %v15343_v25 = vpop.permute.xlu1 %15342 }
0x1764   : > { %15388 = vst.msk [vmem:[#allocation2 + $0x18] sm:$0xff] %vm15384_vm10, %v15343_v25 }
0x1766   : > { %10958 = vrot.lane.b32.xlu1 %v10914_v0, %s22036_s11 }
0x1767   : > { %v10943_v59 = vpop.permute.xlu1 %10942 }
0x1768   : > { %10987 = vst.msk [vmem:[#allocation2 + $0x20] sm:$0xff] %vm10982_vm8, %v10943_v59 }
0x1769   : > { %12354 = vst.msk [vmem:[#allocation2 + $0x20] sm:$0xff] %vm12351_vm9, %v12332_v40 }
0x176a   : > { %15389 = vst.msk [vmem:[#allocation2 + $0x20] sm:$0xff] %vm15384_vm10, %v15345_v30  ;;  %10960 = vrot.lane.b32.xlu1 %v10915_v63, %s22036_s11 }
0x176b   : > { %16756 = vst.msk [vmem:[#allocation2 + $0x20] sm:$0xff] %vm16753_vm11, %v16734_v56  ;;  %v10945_v1 = vpop.permute.xlu1 %10944 }
0x176c   : > { %15356 = vrot.lane.b32.xlu0 %v25908_v14, %s22033_s9  ;;  %10988 = vst.msk [vmem:[#allocation2 + $0x28] sm:$0xff] %vm10982_vm8, %v10945_v1 }
0x176e   : > { %13700 = vrot.lane.b32.xlu1 %v25964_v47, %s22042_s15 }
0x176f   : > { %v13693_v37 = vpop.permute.xlu1 %13692 }
0x1770   : > { %16739 = vrot.lane.b32.xlu0 %v25914_v17, %s22043_s28  ;;  %13714 = vst.msk [vmem:[#allocation2 + $0x28] sm:$0xff] %vm12351_vm9, %v13693_v37  ;;  %v16736_v17 = vpop.permute.xlu0 %16735 }
0x1772   : > { %v17506_v44 = vpop.f32.mrb[188].mxu0  ;;  %15362 = vrot.lane.b32.xlu1 %v25974_v49, %s22033_s9  ;;  %v18138_v49 = vld [vmem:[%s26263_s3] sm:$0xff] }
0x1773   : > { %v20596_v22 = vpop.f32.mrb[189].mxu0  ;;  %v15347_v52 = vpop.permute.xlu1 %15346 }
0x1774   : > { %12339 = vrot.lane.b32.xlu0 %v25920_v32, %s22042_s15  ;;  %15390 = vst.msk [vmem:[#allocation2 + $0x28] sm:$0xff] %vm15384_vm10, %v15347_v52  ;;  %v12336_v58 = vpop.permute.xlu0 %12335 }
0x1776   : > { %10962 = vrot.lane.b32.xlu1 %v25981_v33, %s22036_s11  ;;  %v18140_v33 = vld [vmem:[%s26263_s3 + $0x10] sm:$0xff] }
0x1777   : > { %v10947_v14 = vpop.permute.xlu1 %10946 }
0x1778   : > { %15360 = vrot.lane.b32.xlu0 %v25928_v27, %s22033_s9  ;;  %10989 = vst.msk [vmem:[#allocation2 + $0x30] sm:$0xff] %vm10982_vm8, %v10947_v14 }
0x1779   : > { %12355 = vst.msk [vmem:[#allocation2 + $0x30] sm:$0xff] %vm12351_vm9, %v12334_v55 }
0x177a   : > { %15391 = vst.msk [vmem:[#allocation2 + $0x30] sm:$0xff] %vm15384_vm10, %v15349_v36  ;;  %10964 = vrot.lane.b32.xlu1 %v25988_v13, %s22036_s11  ;;  %v18141_v13 = vld [vmem:[%s26263_s3 + $0x18] sm:$0xff]  ;;  %s26174_s11 = scalar_lea.vmem [#allocation6], %s18459_s25  ;;  %s18903_s25 = sshll.u32 %s22097_s22, 11 }
0x177b   : > { %16757 = vst.msk [vmem:[#allocation2 + $0x30] sm:$0xff] %vm16753_vm11, %v16736_v17  ;;  %v10949_v32 = vpop.permute.xlu1 %10948  ;;  %v21012_v4 = vpack.c.bf16 %v18141_v13, %v18140_v33  ;;  %s18378_s13 = sshll.u32 %s26174_s11, 4  ;;  %s26209_s26 = scalar_lea.hbm %s26265_s5, %s18903_s25  ;;  %s26211_s13 = int_to_ptr.vmem [resolvable:$true] %s18378_s13 }
0x177c   : > { %16741 = vrot.lane.b32.xlu0 %v25936_v28, %s22043_s28  ;;  %10990 = vst.msk [vmem:[#allocation2 + $0x38] sm:$0xff] %vm10982_vm8, %v10949_v32  ;;  %v18139_v28 = vld [vmem:[%s26263_s3 + $0x8] sm:$0xff]  ;;  %s18364_s22 = scalar_lea.sflag [#allocation5], %s22180_s23  ;;  %s21956_s12 = scalar_lea.vmem %s26211_s13, 2048 }
0x177d   : > { %p21957_p6 = scmp.ne.s32.totalorder %s26211_s13, %s21956_s12 }
0x177e   : > { %13702 = vrot.lane.b32.xlu1 %v25992_v38, %s22042_s15 }
0x177f   : > { %v13695_v27 = vpop.permute.xlu1 %13694  ;;  %p21958_p12 = pnand %p21957_p6, %p26936_p11 }
0x1780   : > { %12341 = vrot.lane.b32.xlu0 %v25947_v34, %s22042_s15  ;;  %13715 = vst.msk [vmem:[#allocation2 + $0x38] sm:$0xff] %vm12351_vm9, %v13695_v27  ;;  %v21008_v34 = vpack.c.bf16 %v18139_v28, %v18138_v49  ;;  %s22044_s15 = smov [#allocation6]  }
0x1781   : > { %p21959_p13 = pneg %p21958_p12  ;;  %s21960_s16 = sshll.u32 %s22044_s15, 4  ;;  %s21961_s16 = int_to_ptr.vmem [resolvable:$false] %s21960_s16 }
0x1782   : > { %15366 = vrot.lane.b32.xlu1 %v25996_v8, %s22033_s9  ;;  %21009 = vmatprep.subr.bf16.mxu0 %v21008_v34  ;;  %s21962_s8 = scalar_lea.vmem %s21961_s16, 4096  ;;  %p21963_p8 = scmp.lt.s32.totalorder %s26211_s13, %s21961_s16 }
0x1783   : > { %v15351_v47 = vpop.permute.xlu1 %15350  ;;  %21011 = vmatpush3.bf16.msra.mxu0 %v21008_v34  ;;  %p21964_p10 = scmp.lt.s32.totalorder %s21962_s8, %s21956_s12 }
0x1784   : > { %15364 = vrot.lane.b32.xlu0 %v25958_v5, %s22033_s9  ;;  %15392 = vst.msk [vmem:[#allocation2 + $0x38] sm:$0xff] %vm15384_vm10, %v15351_v47  ;;  %21013 = vmatprep.subr.bf16.mxu0 %v21012_v4  ;;  %v18142_v5 = vld [vmem:[%s26263_s3 + $0x20] sm:$0xff] }
0x1785   : > { %v21016_v16 = vpack.c.bf16 %v18143_v57, %v18142_v5  ;;  %p21965_p0 = por %p21964_p10, %p21963_p8 }
0x1787   : > { %v10951_v38 = vpop.permute.xlu1 %10950  ;;  %21015 = vmatpush3.bf16.msra.mxu0 %v21012_v4  ;;  %p21966_p2 = pnand %p21965_p0, %p21959_p13 }
0x1788   : > { %10991 = vst.msk [vmem:[#allocation2 + $0x40] sm:$0xff] %vm10982_vm8, %v10951_v38  ;;  %21017 = vmatprep.subr.bf16.mxu0 %v21016_v16 }
0x1789   : > { %12356 = vst.msk [vmem:[#allocation2 + $0x40] sm:$0xff] %vm12351_vm9, %v12336_v58 }
0x178b   : > { %v10953_v53 = vpop.permute.xlu1 %10952  ;;  %21019 = vmatpush3.bf16.msra.mxu0 %v21016_v16 }
0x178c   : > { %10992 = vst.msk [vmem:[#allocation2 + $0x48] sm:$0xff] %vm10982_vm8, %v10953_v53  ;;  %21021 = vmatprep.subr.bf16.mxu0 %v21020_v39 }
0x178f   : > { %21023 = vmatpush3.bf16.msra.mxu0 %v21020_v39 }
0x1792   : > { %v18044_v8 = vpop.xlane.xlu0 %18043 }
0x1793   : > { %21910 = vrcp.f32 %v18044_v8 }
0x1796   : > { %v18047_v7 = vpop.xlane.xlu0 %18046 }
0x1797   : > { %21912 = vrcp.f32 %v18047_v7  ;;  %v18124_v7 = vld [vmem:[#allocation2 + $0x10] sm:$0xff] }
0x179a   : > { %v18050_v21 = vpop.xlane.xlu0 %18049 }
0x179b   : > { %21914 = vrcp.f32 %v18050_v21 }
0x179d   : > { %v21911_v54 = vpop.eup %21910 }
0x179e   : > { %v18053_v6 = vpop.xlane.xlu0 %18052  ;;  %v18074_v26 = vmul.f32 %v21911_v54, %v17506_v44 }
0x179f   : > { %21916 = vrcp.f32 %v18053_v6 }
0x17a0   : > { %18090 = vrot.lane.b32.xlu0 %v18074_v26, %s22043_s28  ;;  %v18126_v26 = vld [vmem:[#allocation2 + $0x20] sm:$0xff] }
0x17a1   : > { %v21913_v9 = vpop.eup %21912 }
0x17a2   : > { %v18056_v35 = vpop.xlane.xlu0 %18055 }
0x17a3   : > { %21918 = vrcp.f32 %v18056_v35 }
0x17a5   : > { %v17582_v24 = vpop.f32.mrb[212].mxu1  ;;  %v21915_v23 = vpop.eup %21914 }
0x17a6   : > { %v18059_v19 = vpop.xlane.xlu0 %18058  ;;  %v18075_v62 = vmul.f32 %v21913_v9, %v17582_v24  ;;  %v20601_v31 = vpop.f32.mrb[213].mxu1  ;;  %v18128_v24 = vld [vmem:[#allocation2 + $0x30] sm:$0xff] }
0x17a7   : > { %21920 = vrcp.f32 %v18059_v19 }
0x17a8   : > { %18092 = vrot.lane.b32.xlu0 %v18075_v62, %s22043_s28 }
0x17a9   : > { %v17658_v20 = vpop.f32.mrb[190].mxu0  ;;  %v17734_v60 = vpop.f32.mrb[214].mxu1 }
0x17aa   : > { %v15353_v50 = vpop.permute.xlu0 %15352  ;;  %v18076_v61 = vmul.f32 %v21915_v23, %v17658_v20  ;;  %v20606_v43 = vpop.f32.mrb[191].mxu0 }
0x17ab   : > { %15393 = vst.msk [vmem:[#allocation2 + $0x40] sm:$0xff] %vm15384_vm10, %v15353_v50  ;;  %v20611_v29 = vpop.f32.mrb[215].mxu1  ;;  %v21917_v46 = vpop.eup %21916 }
0x17ac   : > { %18094 = vrot.lane.b32.xlu0 %v18076_v61, %s22043_s28  ;;  %v18077_v2 = vmul.f32 %v21917_v46, %v17734_v60 }
0x17ad   : > { %v17886_v51 = vpop.f32.mrb[216].mxu1  ;;  %v21919_v40 = vpop.eup %21918 }
0x17ae   : > { %v16738_v18 = vpop.permute.xlu0 %16737  ;;  %v20621_v41 = vpop.f32.mrb[217].mxu1 }
0x17af   : > { %16758 = vst.msk [vmem:[#allocation2 + $0x40] sm:$0xff] %vm16753_vm11, %v16738_v18 }
0x17b0   : > { %18096 = vrot.lane.b32.xlu0 %v18077_v2, %s22043_s28 }
0x17b1   : > { %v17810_v12 = vpop.f32.mrb[192].mxu0  ;;  %v21921_v25 = vpop.eup %21920 }
0x17b2   : > { %v18078_v10 = vmul.f32 %v21919_v40, %v17810_v12  ;;  %v18038_v30 = vpop.f32.mrb[218].mxu1  ;;  %v20616_v11 = vpop.f32.mrb[193].mxu0  ;;  %v18079_v45 = vmul.f32 %v21921_v25, %v17886_v51  ;;  %v18877_v51 = vld [vmem:[%s26264_s4] ss:$0 sm:$0xff] }
0x17b3   : > { %v20631_v0 = vpop.f32.mrb[219].mxu1  ;;  %v12338_v22 = vpop.permute.xlu0 %12337 }
0x17b4   : > { %18098 = vrot.lane.b32.xlu0 %v18078_v10, %s22043_s28 }
0x17b6   : > { %v18130_v31 = vld [vmem:[#allocation2 + $0x40] sm:$0xff] }
0x17b8   : > { %18100 = vrot.lane.b32.xlu0 %v18079_v45, %s22043_s28 }
0x17b9   : > { %v17962_v59 = vpop.f32.mrb[194].mxu0 }
0x17ba   : > { %v20626_v56 = vpop.f32.mrb[195].mxu0 }
0x17ca   : > { %v18062_v48 = vpop.xlane.xlu1 %18061 }
0x17cb   : > { %21922 = vrcp.f32 %v18062_v48 }
0x17ce   : > { %v13697_v63 = vpop.permute.xlu1 %13696 }
0x17cf   : > { %13716 = vst.msk [vmem:[#allocation2 + $0x48] sm:$0xff] %vm12351_vm9, %v13697_v63 }
0x17d2   : > { %v15355_v1 = vpop.permute.xlu1 %15354 }
0x17d3   : > { %15394 = vst.msk [vmem:[#allocation2 + $0x48] sm:$0xff] %vm15384_vm10, %v15355_v1 }
0x17d5   : > { %v21923_v55 = vpop.eup %21922 }
0x17d6   : > { %v10955_v37 = vpop.permute.xlu1 %10954  ;;  %v18080_v44 = vmul.f32 %v21923_v55, %v17962_v59 }
0x17d7   : > { %10993 = vst.msk [vmem:[#allocation2 + $0x50] sm:$0xff] %vm10982_vm8, %v10955_v37 }
0x17d8   : > { %12357 = vst.msk [vmem:[#allocation2 + $0x50] sm:$0xff] %vm12351_vm9, %v12338_v22  ;;  %18102 = vrot.lane.b32.xlu0 %v18080_v44, %s22043_s28 }
0x17da   : > { %v10957_v52 = vpop.permute.xlu1 %10956 }
0x17db   : > { %10994 = vst.msk [vmem:[#allocation2 + $0x58] sm:$0xff] %vm10982_vm8, %v10957_v52 }
0x17dc   : > { %16743 = vrot.lane.b32.xlu0 %v25968_v42, %s22043_s28 }
0x17de   : > { %v13699_v36 = vpop.permute.xlu1 %13698 }
0x17df   : > { %13717 = vst.msk [vmem:[#allocation2 + $0x58] sm:$0xff] %vm12351_vm9, %v13699_v36 }
0x17e2   : > { %v15359_v14 = vpop.permute.xlu1 %15358 }
0x17e3   : > { %v18065_v17 = vpop.xlane.xlu0 %18064  ;;  %15396 = vst.msk [vmem:[#allocation2 + $0x58] sm:$0xff] %vm15384_vm10, %v15359_v14 }
0x17e4   : > { %21924 = vrcp.f32 %v18065_v17 }
0x17e6   : > { %v10959_v32 = vpop.permute.xlu1 %10958 }
0x17e7   : > { %v15357_v27 = vpop.permute.xlu0 %15356  ;;  %10995 = vst.msk [vmem:[#allocation2 + $0x60] sm:$0xff] %vm10982_vm8, %v10959_v32 }
0x17e8   : > { %15395 = vst.msk [vmem:[#allocation2 + $0x50] sm:$0xff] %vm15384_vm10, %v15357_v27 }
0x17ea   : > { %v10961_v47 = vpop.permute.xlu1 %10960 }
0x17eb   : > { %v16740_v49 = vpop.permute.xlu0 %16739  ;;  %10996 = vst.msk [vmem:[#allocation2 + $0x68] sm:$0xff] %vm10982_vm8, %v10961_v47 }
0x17ec   : > { %16759 = vst.msk [vmem:[#allocation2 + $0x50] sm:$0xff] %vm16753_vm11, %v16740_v49 }
0x17ee   : > { %v21925_v42 = vpop.eup %21924  ;;  %v13701_v28 = vpop.permute.xlu1 %13700 }
0x17ef   : > { %v12340_v33 = vpop.permute.xlu0 %12339  ;;  %13718 = vst.msk [vmem:[#allocation2 + $0x68] sm:$0xff] %vm12351_vm9, %v13701_v28  ;;  %v18081_v34 = vmul.f32 %v21925_v42, %v18038_v30 }
0x17f0   : > { %12358 = vst.msk [vmem:[#allocation2 + $0x60] sm:$0xff] %vm12351_vm9, %v12340_v33 }
0x17f1   : > { %18104 = vrot.lane.b32.xlu1 %v18081_v34, %s22043_s28 }
0x17f2   : > { %v15363_v13 = vpop.permute.xlu1 %15362 }
0x17f3   : > { %v15361_v4 = vpop.permute.xlu0 %15360  ;;  %15398 = vst.msk [vmem:[#allocation2 + $0x68] sm:$0xff] %vm15384_vm10, %v15363_v13  ;;  %v18132_v20 = vld [vmem:[#allocation2 + $0x50] sm:$0xff] }
0x17f4   : > { %15397 = vst.msk [vmem:[#allocation2 + $0x60] sm:$0xff] %vm15384_vm10, %v15361_v4 }
0x17f6   : > { %v10963_v38 = vpop.permute.xlu1 %10962 }
0x17f7   : > { %v16742_v58 = vpop.permute.xlu0 %16741  ;;  %10997 = vst.msk [vmem:[#allocation2 + $0x70] sm:$0xff] %vm10982_vm8, %v10963_v38 }
0x17f8   : > { %16760 = vst.msk [vmem:[#allocation2 + $0x60] sm:$0xff] %vm16753_vm11, %v16742_v58 }
0x17fa   : > { %v10965_v53 = vpop.permute.xlu1 %10964 }
0x17fb   : > { %v12342_v5 = vpop.permute.xlu0 %12341  ;;  %10998 = vst.msk [vmem:[#allocation2 + $0x78] sm:$0xff] %vm10982_vm8, %v10965_v53 }
0x17fc   : > { %12359 = vst.msk [vmem:[#allocation2 + $0x70] sm:$0xff] %vm12351_vm9, %v12342_v5 }
0x17fe   : > { %v13703_v57 = vpop.permute.xlu1 %13702 }
0x17ff   : > { %v15365_v8 = vpop.permute.xlu0 %15364  ;;  %13719 = vst.msk [vmem:[#allocation2 + $0x78] sm:$0xff] %vm12351_vm9, %v13703_v57  ;;  %v18134_v61 = vld [vmem:[#allocation2 + $0x60] sm:$0xff] }
0x1800   : > { %15399 = vst.msk [vmem:[#allocation2 + $0x70] sm:$0xff] %vm15384_vm10, %v15365_v8 }
0x1802   : > { %v15367_v16 = vpop.permute.xlu1 %15366 }
0x1803   : > { %15400 = vst.msk [vmem:[#allocation2 + $0x78] sm:$0xff] %vm15384_vm10, %v15367_v16 }
0x1812   : > { %v18091_v3 = vpop.permute.xlu0 %18090 }
0x1813   : > { %18114 = vst.msk [vmem:[#allocation2 + $0x8] sm:$0xff] %vm16753_vm11, %v18091_v3 }
0x181a   : > { %v18123_v15 = vld [vmem:[#allocation2 + $0x8] sm:$0xff]  ;;  %v18093_v39 = vpop.permute.xlu0 %18092 }
0x181b   : > { %20649 = vmatmul.mubr.msk.f32.vlgmr.msra.gmra.mrb[196].mxu0 %vm18153_vm12, %v18123_v15  ;;  %18115 = vst.msk [vmem:[#allocation2 + $0x18] sm:$0xff] %vm16753_vm11, %v18093_v39 }
0x181c   : > { %20651 = vmatprep.mubr.msk.f32.mxu0 %vm18153_vm12, %v18124_v7 }
0x181e   : > { %v18095_v21 = vpop.permute.xlu0 %18094 }
0x181f   : > { %18116 = vst.msk [vmem:[#allocation2 + $0x28] sm:$0xff] %vm16753_vm11, %v18095_v21 }
0x1822   : > { %v18097_v54 = vpop.permute.xlu0 %18096  ;;  %v18125_v6 = vld [vmem:[#allocation2 + $0x18] sm:$0xff] }
0x1823   : > { %18117 = vst.msk [vmem:[#allocation2 + $0x38] sm:$0xff] %vm16753_vm11, %v18097_v54  ;;  %20652 = vmatmul.mubr.msk.f32.gmra.mrb[198].mxu0 %vm18153_vm12, %v18125_v6 }
0x1824   : > { %20654 = vmatprep.mubr.msk.f32.mxu0 %vm18153_vm12, %v18126_v26 }
0x1826   : > { %v18099_v35 = vpop.permute.xlu0 %18098  ;;  %v18127_v9 = vld [vmem:[#allocation2 + $0x28] sm:$0xff] }
0x1827   : > { %18118 = vst.msk [vmem:[#allocation2 + $0x48] sm:$0xff] %vm16753_vm11, %v18099_v35  ;;  %20655 = vmatmul.mubr.msk.f32.gmra.mrb[200].mxu0 %vm18153_vm12, %v18127_v9 }
0x1828   : > { %20657 = vmatprep.mubr.msk.f32.mxu0 %vm18153_vm12, %v18128_v24 }
0x182a   : > { %v18101_v19 = vpop.permute.xlu0 %18100  ;;  %v18129_v62 = vld [vmem:[#allocation2 + $0x38] sm:$0xff] }
0x182b   : > { %18119 = vst.msk [vmem:[#allocation2 + $0x58] sm:$0xff] %vm16753_vm11, %v18101_v19  ;;  %20658 = vmatmul.mubr.msk.f32.gmra.mrb[202].mxu0 %vm18153_vm12, %v18129_v62 }
0x182c   : > { %20660 = vmatprep.mubr.msk.f32.mxu0 %vm18153_vm12, %v18130_v31 }
0x182e   : > { %v18131_v23 = vld [vmem:[#allocation2 + $0x48] sm:$0xff] }
0x182f   : > { %20661 = vmatmul.mubr.msk.f32.gmra.mrb[204].mxu0 %vm18153_vm12, %v18131_v23 }
0x1830   : > { %20663 = vmatprep.mubr.msk.f32.mxu0 %vm18153_vm12, %v18132_v20 }
0x1832   : > { %v18133_v50 = vld [vmem:[#allocation2 + $0x58] sm:$0xff] }
0x1833   : > { %20664 = vmatmul.mubr.msk.f32.gmra.mrb[206].mxu0 %vm18153_vm12, %v18133_v50 }
0x1834   : > { %20666 = vmatprep.mubr.msk.f32.mxu0 %vm18153_vm12, %v18134_v61 }
0x184a   : > { %v18103_v60 = vpop.permute.xlu0 %18102 }
0x184b   : > { %18120 = vst.msk [vmem:[#allocation2 + $0x68] sm:$0xff] %vm16753_vm11, %v18103_v60 }
0x184e   : > { %v16744_v43 = vpop.permute.xlu0 %16743 }
0x184f   : > { %16761 = vst.msk [vmem:[#allocation2 + $0x70] sm:$0xff] %vm16753_vm11, %v16744_v43 }
0x1852   : > { %v18135_v29 = vld [vmem:[#allocation2 + $0x68] sm:$0xff] }
0x1853   : > { %20667 = vmatmul.mubr.msk.f32.gmra.mrb[208].mxu0 %vm18153_vm12, %v18135_v29 }
0x1856   : > { %v18136_v46 = vld [vmem:[#allocation2 + $0x70] sm:$0xff] }
0x1857   : > { %20669 = vmatprep.mubr.msk.f32.mxu0 %vm18153_vm12, %v18136_v46 }
0x1863   : > { %v18105_v2 = vpop.permute.xlu1 %18104 }
0x1864   : > { %18121 = vst.msk [vmem:[#allocation2 + $0x78] sm:$0xff] %vm16753_vm11, %v18105_v2 }
0x186b   : > { %v18137_v18 = vld [vmem:[#allocation2 + $0x78] sm:$0xff] }
0x186c   : > { %20670 = vmatmul.mubr.msk.f32.gmra.mrb[210].mxu0 %vm18153_vm12, %v18137_v18 }
0x18ee   : > { %v20650_v41 = vpop.f32.mrb[196].mxu0 }
0x18ef   : > { %v18274_v40 = vadd.f32 %v20650_v41, %v18877_v51  ;;  %v18268_v12 = vpop.f32.mrb[197].mxu0 }
0x18f0   : > { %v18269_v10 = vadd.f32 %v18877_v51, %v18268_v12 }
0x18f1   : > { %18348 = vst.msk [vmem:[%s26174_s11 + $0x8] sm:$0xff] %vm266_vm0, %v18274_v40 }
0x18f2   : > { %18347 = vst.msk [vmem:[%s26174_s11] sm:$0xff] %vm266_vm0, %v18269_v10 }
0x18f6   : > { %v20653_v30 = vpop.f32.mrb[198].mxu0 }
0x18f7   : > { %v18284_v25 = vadd.f32 %v20653_v30, %v18877_v51  ;;  %v18278_v11 = vpop.f32.mrb[199].mxu0 }
0x18f8   : > { %v18279_v0 = vadd.f32 %v18877_v51, %v18278_v11 }
0x18f9   : > { %18350 = vst.msk [vmem:[%s26174_s11 + $0x18] sm:$0xff] %vm266_vm0, %v18284_v25 }
0x18fa   : > { %18349 = vst.msk [vmem:[%s26174_s11 + $0x10] sm:$0xff] %vm266_vm0, %v18279_v0  ;;  %v20656_v45 = vpop.f32.mrb[200].mxu0 }
0x18fb   : > { %v18294_v59 = vadd.f32 %v20656_v45, %v18877_v51  ;;  %v18288_v56 = vpop.f32.mrb[201].mxu0 }
0x18fc   : > { %v18289_v48 = vadd.f32 %v18877_v51, %v18288_v56 }
0x18fd   : > { %18352 = vst.msk [vmem:[%s26174_s11 + $0x28] sm:$0xff] %vm266_vm0, %v18294_v59 }
0x18fe   : > { %18351 = vst.msk [vmem:[%s26174_s11 + $0x20] sm:$0xff] %vm266_vm0, %v18289_v48  ;;  %v20659_v63 = vpop.f32.mrb[202].mxu0 }
0x18ff   : > { %v18304_v1 = vadd.f32 %v20659_v63, %v18877_v51  ;;  %v18298_v55 = vpop.f32.mrb[203].mxu0 }
0x1900   : > { %v18299_v37 = vadd.f32 %v18877_v51, %v18298_v55 }
0x1901   : > { %18354 = vst.msk [vmem:[%s26174_s11 + $0x38] sm:$0xff] %vm266_vm0, %v18304_v1 }
0x1902   : > { %18353 = vst.msk [vmem:[%s26174_s11 + $0x30] sm:$0xff] %vm266_vm0, %v18299_v37  ;;  %v20662_v44 = vpop.f32.mrb[204].mxu0 }
0x1903   : > { %v18314_v22 = vadd.f32 %v20662_v44, %v18877_v51  ;;  %v18308_v52 = vpop.f32.mrb[205].mxu0 }
0x1904   : > { %v18309_v36 = vadd.f32 %v18877_v51, %v18308_v52 }
0x1905   : > { %18356 = vst.msk [vmem:[%s26174_s11 + $0x48] sm:$0xff] %vm266_vm0, %v18314_v22 }
0x1906   : > { %18355 = vst.msk [vmem:[%s26174_s11 + $0x40] sm:$0xff] %vm266_vm0, %v18309_v36  ;;  %v20665_v14 = vpop.f32.mrb[206].mxu0 }
0x1907   : > { %v18324_v17 = vadd.f32 %v20665_v14, %v18877_v51  ;;  %v18318_v32 = vpop.f32.mrb[207].mxu0 }
0x1908   : > { %v18319_v27 = vadd.f32 %v18877_v51, %v18318_v32 }
0x1909   : > { %18358 = vst.msk [vmem:[%s26174_s11 + $0x58] sm:$0xff] %vm266_vm0, %v18324_v17 }
0x190a   : > { %18357 = vst.msk [vmem:[%s26174_s11 + $0x50] sm:$0xff] %vm266_vm0, %v18319_v27 }
0x1926   : > { %v20668_v47 = vpop.f32.mrb[208].mxu0 }
0x1927   : > { %v18334_v49 = vadd.f32 %v20668_v47, %v18877_v51  ;;  %v18328_v42 = vpop.f32.mrb[209].mxu0 }
0x1928   : > { %v18329_v28 = vadd.f32 %v18877_v51, %v18328_v42 }
0x1929   : > { %18360 = vst.msk [vmem:[%s26174_s11 + $0x68] sm:$0xff] %vm266_vm0, %v18334_v49 }
0x192a   : > { %18359 = vst.msk [vmem:[%s26174_s11 + $0x60] sm:$0xff] %vm266_vm0, %v18329_v28 }
0x193f   : > { %v20671_v33 = vpop.f32.mrb[210].mxu0 }
0x1940   : > { %v18344_v34 = vadd.f32 %v20671_v33, %v18877_v51  ;;  %v18338_v13 = vpop.f32.mrb[211].mxu0 }
0x1941   : > { %v18339_v4 = vadd.f32 %v18877_v51, %v18338_v13 }
0x1942   : > { %18362 = vst.msk [vmem:[%s26174_s11 + $0x78] sm:$0xff] %vm266_vm0, %v18344_v34 }
0x1943   : > { %18361 = vst.msk [vmem:[%s26174_s11 + $0x70] sm:$0xff] %vm266_vm0, %v18339_v4 }
0x1944   : > { %21969 = shalt.err (!%p21966_p2)
}
0x1945   : > { %s21970_s7 = scalar_lea.hbm %s26209_s26, 2048  ;;  %s21974_s29 = scalar_lea.hbm %s26265_s5, 4096 }
0x1946   : > { %p21971_p4 = scmp.ne.s32.totalorder %s26209_s26, %s21970_s7  ;;  %p21975_p9 = scmp.lt.u32.totalorder %s26209_s26, %s26265_s5 }
0x1947   : > { %p21976_p1 = scmp.lt.u32.totalorder %s21974_s29, %s21970_s7  ;;  %p21978_p6 = scmp.lt.u32.totalorder %s21970_s7, %s26209_s26 }
0x1948   : > { %p21972_p5 = pnand %p21971_p4, %p26936_p11 }
0x1949   : > { %p21977_p3 = por %p21976_p1, %p21975_p9 }
0x194a   : > { %p21973_p7 = pneg %p21972_p5 }
0x194b   : > { %p21979_p12 = por %p21978_p6, %p21977_p3 }
0x194d   : > { %p21980_p13 = pnand %p21979_p12, %p21973_p7 }
0x194f   : > { %21983 = shalt.err (!%p21980_p13)
}
0x1950   : > { %s22045_s17 = smov 128  }
0x1951   : > { %21030 = dma.vmem_to_hbm [thread:$0]  (%p26936_p11), %s26211_s13, 2048, %s26209_s26, %s18364_s22, %s22045_s17, %s22045_s17, %s22041_s14  }
0x1952 PF: > { %s18393_s9 = sand.u32 1, %s22010_s18   ;;  %p26937_p8 = scmp.ne.s32.totalorder %s26426_s6, 0 }
0x1953   : > { %p26938_p10 = scmp.ge.s32.totalorder %s22022_s21, 2  ;;  %s18394_s12 = scalar_lea.sflag [#allocation5], %s18393_s9 }
0x1955   : > { %p21037_p0 = pnand %p26938_p10, %p26937_p8 }
0x1957   : > { %22005 = dma.done.wait (!%p21037_p0), %s18394_s12, 2048  }
0x1958   : > { %22007 = vsyncadd (!%p21037_p0), %s18394_s12, 4294965248  ;;  %p18_p2 = scmp.ge.s32.totalorder %s22101_s24, 4   ;;  %s26939_s18 = smov %s22014_s19 }
0x1959   : > { %s26940_s19 = smov %s22018_s20  ;;  %s26941_s20 = smov %s22113_s27 }
0x195a   : > { %s26942_s21 = smov %s22101_s24  ;;  %20 = sbr.rel (!%p18_p2) target bundleno = 5 (0x5), region = 85 }
0x1961   :  { %18399 = vsyncpa [#allocation4], 1 }
0x1962   :  { %18401 = vsyncpa [#allocation4 + $0x1], 1 }
0x1963   :  { %18402 = vsyncpa [#allocation5], 1 }
0x1964   :  { %18404 = vsyncpa [#allocation5 + $0x1], 1 }

</bundles_post_ra>
